<compile_context>
chip_gen: v5e
topology: v5e:2x2
jax: 0.10.0
libtpu: 0.0.40
codegen_flags: <defaults>
</compile_context>

<pallas_src>
import math

import jax
import jax.numpy as jnp
from jax import lax
from jax.experimental import pallas as pl
from jax.experimental.pallas import tpu as pltpu

EPS = 1e-5
NEG = -1e30                      # pooling sentinel (empty graphs return this)
_VMEM_LIMIT = 32 * 1024 * 1024   # explicit scoped-VMEM limit (safe on v5e/v6e/v7x)


def _round_up(x, m):
    return (x + m - 1) // m * m


# ----------------------------------------------------------------------------
# Kernel 1: S = dinv * ((x * scale + shift) @ W)   (node-row tiled, bf16 MXU)
#   layer 1: scale=1, shift=0        layer 2: scale/shift = folded BatchNorm1
# ----------------------------------------------------------------------------
def _scale_linear_kernel(x_ref, scale_ref, shift_ref, w_ref, dinv_ref, s_ref):
    x = x_ref[...].astype(jnp.float32) * scale_ref[...] + shift_ref[...]
    s = jnp.dot(x.astype(jnp.bfloat16), w_ref[...],
                preferred_element_type=jnp.float32)
    s_ref[...] = (dinv_ref[...] * s).astype(s_ref.dtype)


def _scale_linear(x, scale, shift, w_bf16, dinv, node_tile):
    npad, fin = x.shape
    fout = w_bf16.shape[1]
    return pl.pallas_call(
        _scale_linear_kernel,
        grid=(npad // node_tile,),
        in_specs=[
            pl.BlockSpec((node_tile, fin), lambda i: (i, 0)),
            pl.BlockSpec((1, fin), lambda i: (0, 0)),
            pl.BlockSpec((1, fin), lambda i: (0, 0)),
            pl.BlockSpec((fin, fout), lambda i: (0, 0)),
            pl.BlockSpec((node_tile, 1), lambda i: (i, 0)),
        ],
        out_specs=pl.BlockSpec((node_tile, fout), lambda i: (i, 0)),
        out_shape=jax.ShapeDtypeStruct((npad, fout), jnp.bfloat16),
        compiler_params=pltpu.CompilerParams(
            dimension_semantics=("parallel",),
            vmem_limit_bytes=_VMEM_LIMIT),
    )(x, scale, shift, w_bf16, dinv)


# ----------------------------------------------------------------------------
# Kernel 2: H = relu(dinv * (A @ S + S_self) + b), S resident in VMEM.
# A row tile is int8 in HBM and upcast to bf16 on the VPU right before the
# MXU dot (accumulation stays f32).  Per-row-tile feature sums / sums-of-
# squares are streamed out (pad rows masked) so BatchNorm statistics stay
# global after tiling; h is stored as bf16.
# ----------------------------------------------------------------------------
def _propagate_kernel(adj_ref, s_ref, s_self_ref, dinv_ref, b_ref, mask_ref,
                      h_ref, sum_ref, ssq_ref):
    a = adj_ref[...].astype(jnp.bfloat16)            # int8 (0/1) -> bf16, exact
    acc = jnp.dot(a, s_ref[...], preferred_element_type=jnp.float32)
    h = dinv_ref[...] * (acc + s_self_ref[...].astype(jnp.float32))
    h = jnp.maximum(h + b_ref[...], 0.0)
    h = h * mask_ref[...]                            # zero padded node rows
    h_ref[...] = h.astype(h_ref.dtype)
    s1 = jnp.sum(h, axis=0, keepdims=True)           # (1, F) f32
    s2 = jnp.sum(h * h, axis=0, keepdims=True)
    # stats blocks are (1, 8, F) to satisfy the (8, 128) tiling rule; the same
    # row is broadcast to all 8 sublanes, wrapper reads [:, 0, :].
    sum_ref[...] = jnp.broadcast_to(s1, sum_ref.shape)
    ssq_ref[...] = jnp.broadcast_to(s2, ssq_ref.shape)


def _propagate(adj_i8, s_bf16, dinv, bias, mask, node_tile):
    npad = adj_i8.shape[0]
    f = s_bf16.shape[1]
    ni = npad // node_tile
    h, sums, ssqs = pl.pallas_call(
        _propagate_kernel,
        grid=(ni,),
        in_specs=[
            pl.BlockSpec((node_tile, npad), lambda i: (i, 0)),   # A row tile (int8)
            pl.BlockSpec((npad, f), lambda i: (0, 0)),           # S resident (bf16)
            pl.BlockSpec((node_tile, f), lambda i: (i, 0)),      # S[i] (self loop)
            pl.BlockSpec((node_tile, 1), lambda i: (i, 0)),      # dinv[i]
            pl.BlockSpec((1, f), lambda i: (0, 0)),              # bias
            pl.BlockSpec((node_tile, 1), lambda i: (i, 0)),      # pad-row mask
        ],
        out_specs=[
            pl.BlockSpec((node_tile, f), lambda i: (i, 0)),
            pl.BlockSpec((1, 8, f), lambda i: (i, 0, 0)),
            pl.BlockSpec((1, 8, f), lambda i: (i, 0, 0)),
        ],
        out_shape=[
            jax.ShapeDtypeStruct((npad, f), jnp.bfloat16),
            jax.ShapeDtypeStruct((ni, 8, f), jnp.float32),
            jax.ShapeDtypeStruct((ni, 8, f), jnp.float32),
        ],
        compiler_params=pltpu.CompilerParams(
            dimension_semantics=("parallel",),
            vmem_limit_bytes=_VMEM_LIMIT),
    )(adj_i8, s_bf16, s_bf16, dinv, bias, mask)
    return h, sums[:, 0, :], ssqs[:, 0, :]


# ----------------------------------------------------------------------------
# Kernel 3: global_max_pool (running segment max, serialized node-tile axis)
#           + fused cell-line branch (Linear -> tanh -> BN -> Linear -> ReLU).
# One lane/sublane-dense (g_pad, F) block update per tile (no per-row RMW).
# ----------------------------------------------------------------------------
def _pool_cell_kernel(z_ref, scale_ref, shift_ref, seg_ref,
                      gex_ref, wc1_ref, bc1_ref, gc1_ref, bec1_ref,
                      wc2_ref, bc2_ref,
                      pool_ref, cell_ref):
    i = pl.program_id(0)          # only used in the predicate (kept at top level)

    @pl.when(i == 0)
    def _():
        # running segment-max accumulator stays resident in VMEM across the
        # serialized node-tile axis (output block index never changes).
        pool_ref[...] = jnp.full(pool_ref.shape, NEG, dtype=pool_ref.dtype)
        # fused cell-line branch (tiny, f32; hides under the drug-branch
        # pipeline instead of paying a separate pallas_call launch).
        h = jnp.dot(gex_ref[...], wc1_ref[...],
                    preferred_element_type=jnp.float32) + bc1_ref[...]
        h = jnp.tanh(h)
        mean = jnp.mean(h, axis=0, keepdims=True)
        var = jnp.mean((h - mean) * (h - mean), axis=0, keepdims=True)
        h = gc1_ref[...] * (h - mean) * lax.rsqrt(var + EPS) + bec1_ref[...]
        h = jnp.dot(h, wc2_ref[...], preferred_element_type=jnp.float32) + bc2_ref[...]
        cell_ref[...] = jnp.maximum(h, 0.0)

    # BatchNorm2 affine (global stats folded into scale/shift by the wrapper).
    z = z_ref[...].astype(jnp.float32) * scale_ref[...] + shift_ref[...]
    seg = seg_ref[...]                                     # (pool_tile, 1); pads hold G

    g_pad = pool_ref.shape[0]
    # Build the whole (g_pad, F) tile-max block, then one dense block update.
    rows = [jnp.max(jnp.where(seg == g, z, NEG), axis=0, keepdims=True)
            for g in range(g_pad)]
    tile_max = jnp.concatenate(rows, axis=0)               # (g_pad, F)
    pool_ref[...] = jnp.maximum(pool_ref[...], tile_max)


def _pool_and_cell(z, scale2, shift2, seg, gex, wc1, bc1, gc1, bec1, wc2, bc2,
                   g_pad, pool_tile):
    npad, f = z.shape
    b_cell, fc = gex.shape
    hid = wc1.shape[1]
    # TODO(synk): on v7x the serialized pooling axis could be split across the
    #             two TensorCores (leading size-2 parallel axis + wrapper max).
    return pl.pallas_call(
        _pool_cell_kernel,
        grid=(npad // pool_tile,),
        in_specs=[
            pl.BlockSpec((pool_tile, f), lambda i: (i, 0)),
            pl.BlockSpec((1, f), lambda i: (0, 0)),
            pl.BlockSpec((1, f), lambda i: (0, 0)),
            pl.BlockSpec((pool_tile, 1), lambda i: (i, 0)),
            pl.BlockSpec((b_cell, fc), lambda i: (0, 0)),
            pl.BlockSpec((fc, hid), lambda i: (0, 0)),
            pl.BlockSpec((1, hid), lambda i: (0, 0)),
            pl.BlockSpec((1, hid), lambda i: (0, 0)),
            pl.BlockSpec((1, hid), lambda i: (0, 0)),
            pl.BlockSpec((hid, f), lambda i: (0, 0)),
            pl.BlockSpec((1, f), lambda i: (0, 0)),
        ],
        out_specs=[
            pl.BlockSpec((g_pad, f), lambda i: (0, 0)),
            pl.BlockSpec((b_cell, f), lambda i: (0, 0)),
        ],
        out_shape=[
            jax.ShapeDtypeStruct((g_pad, f), jnp.float32),
            jax.ShapeDtypeStruct((b_cell, f), jnp.float32),
        ],
        compiler_params=pltpu.CompilerParams(
            dimension_semantics=("arbitrary",),   # output revisited -> serial
            vmem_limit_bytes=_VMEM_LIMIT),
    )(z, scale2, shift2, seg, gex, wc1, bc1, gc1, bec1, wc2, bc2)


# ----------------------------------------------------------------------------
# Forward wrapper
# ----------------------------------------------------------------------------
def bio_encoder_forward(params, drug_feature, drug_adj, ibatch, gexpr_data,
                        num_graphs, node_tile=256, pool_tile=128):
    """drug_adj is the DENSE 0/1 adjacency (no self loops).  ibatch: node->graph."""
    n = drug_feature.shape[0]
    out = params["w2"].shape[1]

    out_pad = _round_up(out, 128)                    # lane-dense; sliced at the end
    npad = _round_up(n, math.lcm(node_tile, pool_tile))

    # adjacency stored as int8 (0/1 exact); degree from the UNPADDED adjacency
    adj_i8 = jnp.pad(drug_adj.astype(jnp.int8), ((0, npad - n), (0, npad - n)))
    deg = jnp.sum(drug_adj.astype(jnp.float32), axis=1, keepdims=True) + 1.0
    dinv = jnp.pad(lax.rsqrt(deg), ((0, npad - n), (0, 0)), constant_values=1.0)

    feat = jnp.pad(drug_feature.astype(jnp.float32), ((0, npad - n), (0, 0)))
    mask = jnp.pad(jnp.ones((n, 1), jnp.float32), ((0, npad - n), (0, 0)))
    seg = jnp.pad(jnp.reshape(ibatch, (n, 1)).astype(jnp.int32),
                  ((0, npad - n), (0, 0)), constant_values=num_graphs)

    # pad output-feature dims of layer-2 / cell-2 params to a lane multiple
    pad_o = ((0, 0), (0, out_pad - out))
    w2 = jnp.pad(params["w2"], pad_o).astype(jnp.bfloat16)
    b2 = jnp.pad(params["b2"], pad_o)
    g2 = jnp.pad(params["g2"], pad_o, constant_values=1.0)
    be2 = jnp.pad(params["be2"], pad_o)
    wc2 = jnp.pad(params["wc2"], pad_o)
    bc2 = jnp.pad(params["bc2"], pad_o)
    w1 = params["w1"].astype(jnp.bfloat16)

    fd = feat.shape[1]
    one_fd = jnp.ones((1, fd), jnp.float32)
    zero_fd = jnp.zeros((1, fd), jnp.float32)

    # GCN layer 1: S1 = dinv*(X@W1);  H1 = relu(dinv*(A@S1 + S1) + b1)
    s1 = _scale_linear(feat, one_fd, zero_fd, w1, dinv, node_tile)
    h1, sum1, ssq1 = _propagate(adj_i8, s1, dinv, params["b1"], mask, node_tile)
    # TODO(synk): E[x^2]-mean^2 can cancel for very large activations; fine here.
    mean1 = jnp.sum(sum1, axis=0, keepdims=True) / n
    var1 = jnp.maximum(jnp.sum(ssq1, axis=0, keepdims=True) / n - mean1 * mean1, 0.0)
    scale1 = params["g1"] * lax.rsqrt(var1 + EPS)    # fold BN1 into layer 2
    shift1 = params["be1"] - mean1 * scale1

    # GCN layer 2 (BN1 folded into the node-wise linear)
    s2 = _scale_linear(h1, scale1, shift1, w2, dinv, node_tile)
    z2, sum2, ssq2 = _propagate(adj_i8, s2, dinv, b2, mask, node_tile)
    mean2 = jnp.sum(sum2, axis=0, keepdims=True) / n
    var2 = jnp.maximum(jnp.sum(ssq2, axis=0, keepdims=True) / n - mean2 * mean2, 0.0)
    scale2 = g2 * lax.rsqrt(var2 + EPS)              # BN2 affine, applied pre-pool
    shift2 = be2 - mean2 * scale2

    # global max pool (+ fused cell-line branch); graph rows padded to 8-multiple
    g_pad = _round_up(max(num_graphs, 1), 8)
    pooled, cell = _pool_and_cell(z2, scale2, shift2, seg, gexpr_data,
                                  params["wc1"], params["bc1"], params["gc1"],
                                  params["bec1"], wc2, bc2, g_pad, pool_tile)
    return pooled[:num_graphs, :out], cell[:, :out]


def init_params(key, dim_drug, dim_cellline, output):
    def xavier(k, fan_in, fan_out):
        bound = (6.0 / (fan_in + fan_out)) ** 0.5
        return jax.random.uniform(k, (fan_in, fan_out), jnp.float32, -bound, bound)

    ks = jax.random.split(key, 4)
    return {
        "w1": xavier(ks[0], dim_drug, 128),
        "b1": jnp.zeros((1, 128), jnp.float32),
        "g1": jnp.ones((1, 128), jnp.float32),
        "be1": jnp.zeros((1, 128), jnp.float32),
        "w2": xavier(ks[1], 128, output),
        "b2": jnp.zeros((1, output), jnp.float32),
        "g2": jnp.ones((1, output), jnp.float32),
        "be2": jnp.zeros((1, output), jnp.float32),
        "wc1": xavier(ks[2], dim_cellline, 128),
        "bc1": jnp.zeros((1, 128), jnp.float32),
        "gc1": jnp.ones((1, 128), jnp.float32),
        "bec1": jnp.zeros((1, 128), jnp.float32),
        "wc2": xavier(ks[3], 128, output),
        "bc2": jnp.zeros((1, output), jnp.float32),
    }


# Pure-JAX reference (f32) for a smoke check.
def _reference_forward(params, drug_feature, drug_adj, ibatch, gexpr_data, num_graphs):
    n = drug_feature.shape[0]

    def bn(x, g, b):
        mean = jnp.mean(x, axis=0, keepdims=True)
        var = jnp.mean((x - mean) ** 2, axis=0, keepdims=True)
        return g * (x - mean) / jnp.sqrt(var + EPS) + b

    a_hat = drug_adj + jnp.eye(n, dtype=jnp.float32)
    dinv = 1.0 / jnp.sqrt(jnp.sum(a_hat, axis=1, keepdims=True))
    a_norm = dinv * a_hat * dinv.reshape(1, n)

    h = a_norm @ (drug_feature @ params["w1"]) + params["b1"]
    h = bn(jnp.maximum(h, 0.0), params["g1"], params["be1"])
    h = a_norm @ (h @ params["w2"]) + params["b2"]
    h = bn(jnp.maximum(h, 0.0), params["g2"], params["be2"])
    pooled = jax.ops.segment_max(h, ibatch, num_segments=num_graphs)

    c = jnp.tanh(gexpr_data @ params["wc1"] + params["bc1"])
    c = bn(c, params["gc1"], params["bec1"])
    c = jnp.maximum(c @ params["wc2"] + params["bc2"], 0.0)
    return pooled, c


if __name__ == "__main__":
    key = jax.random.PRNGKey(0)
    k_feat, k_adj, k_gex, k_param = jax.random.split(key, 4)

    NUM_GRAPHS = 12
    NODES_PER_GRAPH = 25
    N_NODES = NUM_GRAPHS * NODES_PER_GRAPH    # 300 -> padded to 512 nodes
    DIM_DRUG = 16
    DIM_CELL = 32
    OUTPUT = 32
    B_CELL = 4

    drug_feature = jax.random.normal(k_feat, (N_NODES, DIM_DRUG), jnp.float32)

    # symmetric 0/1 dense adjacency, no self loops (GCN adds them)
    a = (jax.random.uniform(k_adj, (N_NODES, N_NODES)) < 0.1).astype(jnp.float32)
    drug_adj = jnp.maximum(a, a.T) * (1.0 - jnp.eye(N_NODES, dtype=jnp.float32))

    # node -> graph assignment
    ibatch = jnp.repeat(jnp.arange(NUM_GRAPHS, dtype=jnp.int32), NODES_PER_GRAPH)

    gexpr_data = jax.random.normal(k_gex, (B_CELL, DIM_CELL), jnp.float32)

    params = init_params(k_param, DIM_DRUG, DIM_CELL, OUTPUT)

    fwd = jax.jit(bio_encoder_forward,
                  static_argnames=("num_graphs", "node_tile", "pool_tile"))
    x_drug, x_cell = fwd(params, drug_feature, drug_adj, ibatch, gexpr_data,
                         num_graphs=NUM_GRAPHS)
    jax.block_until_ready((x_drug, x_cell))

    assert x_drug.shape == (NUM_GRAPHS, OUTPUT)
    assert x_cell.shape == (B_CELL, OUTPUT)
    assert bool(jnp.all(jnp.isfinite(x_drug))) and bool(jnp.all(jnp.isfinite(x_cell)))

    # coarse smoke check vs f32 reference (kernel uses int8 adj + bf16 S/H on MXU)
    ref_drug, ref_cell = _reference_forward(params, drug_feature, drug_adj,
                                            ibatch, gexpr_data, NUM_GRAPHS)
    assert float(jnp.max(jnp.abs(x_drug - ref_drug))) < 0.5
    assert float(jnp.max(jnp.abs(x_cell - ref_cell))) < 0.1

    print("KERNEL_OK")
</pallas_src>

<mosaic_0001>
module attributes {stable_mosaic.version = 11 : i64} {
  func.func @_scale_linear_kernel(%arg0: i32, %arg1: memref<256x16xf32, #tpu.memory_space<vmem>>, %arg2: memref<1x16xf32, #tpu.memory_space<vmem>>, %arg3: memref<1x16xf32, #tpu.memory_space<vmem>>, %arg4: memref<16x128xbf16, #tpu.memory_space<vmem>>, %arg5: memref<256x1xf32, #tpu.memory_space<vmem>>, %arg6: memref<256x128xbf16, #tpu.memory_space<vmem>>) attributes {dimension_semantics = [#tpu.dimension_semantics<parallel>], iteration_bounds = array<i64: 2>, scalar_prefetch = 0 : i64, scratch_operands = 0 : i64, tpu.core_type = #tpu.core_type<tc>, window_params = [{transform_indices = @transform_0, window_bounds = array<i64: 256, 16>}, {pipeline_mode = #tpu.pipeline_mode<synchronous>, transform_indices = @transform_1, window_bounds = array<i64: 1, 16>}, {pipeline_mode = #tpu.pipeline_mode<synchronous>, transform_indices = @transform_2, window_bounds = array<i64: 1, 16>}, {pipeline_mode = #tpu.pipeline_mode<synchronous>, transform_indices = @transform_3, window_bounds = array<i64: 16, 128>}, {transform_indices = @transform_4, window_bounds = array<i64: 256, 1>}, {transform_indices = @transform_5, window_bounds = array<i64: 256, 128>}]} {
    %c0 = arith.constant 0 : index
    %c0_0 = arith.constant 0 : index
    %0 = vector.load %arg1[%c0, %c0_0] : memref<256x16xf32, #tpu.memory_space<vmem>>, vector<256x16xf32>
    %c0_1 = arith.constant 0 : index
    %c0_2 = arith.constant 0 : index
    %1 = vector.load %arg2[%c0_1, %c0_2] : memref<1x16xf32, #tpu.memory_space<vmem>>, vector<1x16xf32>
    %2 = vector.broadcast %1 : vector<1x16xf32> to vector<256x16xf32>
    %3 = arith.mulf %0, %2 : vector<256x16xf32>
    %c0_3 = arith.constant 0 : index
    %c0_4 = arith.constant 0 : index
    %4 = vector.load %arg3[%c0_3, %c0_4] : memref<1x16xf32, #tpu.memory_space<vmem>>, vector<1x16xf32>
    %5 = vector.broadcast %4 : vector<1x16xf32> to vector<256x16xf32>
    %6 = arith.addf %3, %5 : vector<256x16xf32>
    %7 = arith.truncf %6 : vector<256x16xf32> to vector<256x16xbf16>
    %c0_5 = arith.constant 0 : index
    %c0_6 = arith.constant 0 : index
    %8 = vector.load %arg4[%c0_5, %c0_6] : memref<16x128xbf16, #tpu.memory_space<vmem>>, vector<16x128xbf16>
    %cst = arith.constant dense<0.000000e+00> : vector<256x128xf32>
    %9 = tpu.matmul %7, %8, %cst {dimension_numbers = #tpu.dot_dimension_numbers<[1], [0], [0], [1], [0, 0, 1, 1], [], []>} : vector<256x16xbf16>, vector<16x128xbf16>, vector<256x128xf32> -> vector<256x128xf32>
    %c0_7 = arith.constant 0 : index
    %c0_8 = arith.constant 0 : index
    %10 = vector.load %arg5[%c0_7, %c0_8] : memref<256x1xf32, #tpu.memory_space<vmem>>, vector<256x1xf32>
    %11 = vector.broadcast %10 : vector<256x1xf32> to vector<256x128xf32>
    %12 = arith.mulf %11, %9 : vector<256x128xf32>
    %13 = arith.truncf %12 : vector<256x128xf32> to vector<256x128xbf16>
    %c0_9 = arith.constant 0 : index
    %c0_10 = arith.constant 0 : index
    %14 = vector.load %arg6[%c0_9, %c0_10] : memref<256x128xbf16, #tpu.memory_space<vmem>>, vector<256x128xbf16>
    tpu.vector_store %arg6[%c0_9, %c0_10], %13 {strides = array<i32>} : memref<256x128xbf16, #tpu.memory_space<vmem>>, vector<256x128xbf16>,
    return
  }
  func.func @transform_0(%arg0: i32) -> (i32, i32) {
    %c0_i32 = arith.constant 0 : i32
    %c0_i32_0 = arith.constant 0 : i32
    return %arg0, %c0_i32 : i32, i32
  }
  func.func @transform_1(%arg0: i32) -> (i32, i32) {
    %c0_i32 = arith.constant 0 : i32
    %c0_i32_0 = arith.constant 0 : i32
    %c0_i32_1 = arith.constant 0 : i32
    return %c0_i32, %c0_i32_0 : i32, i32
  }
  func.func @transform_2(%arg0: i32) -> (i32, i32) {
    %c0_i32 = arith.constant 0 : i32
    %c0_i32_0 = arith.constant 0 : i32
    %c0_i32_1 = arith.constant 0 : i32
    return %c0_i32, %c0_i32_0 : i32, i32
  }
  func.func @transform_3(%arg0: i32) -> (i32, i32) {
    %c0_i32 = arith.constant 0 : i32
    %c0_i32_0 = arith.constant 0 : i32
    %c0_i32_1 = arith.constant 0 : i32
    return %c0_i32, %c0_i32_0 : i32, i32
  }
  func.func @transform_4(%arg0: i32) -> (i32, i32) {
    %c0_i32 = arith.constant 0 : i32
    %c0_i32_0 = arith.constant 0 : i32
    return %arg0, %c0_i32 : i32, i32
  }
  func.func @transform_5(%arg0: i32) -> (i32, i32) {
    %c0_i32 = arith.constant 0 : i32
    %c0_i32_0 = arith.constant 0 : i32
    return %arg0, %c0_i32 : i32, i32
  }
}

module attributes {stable_mosaic.version = 11 : i64} {
  func.func @_propagate_kernel(%arg0: i32, %arg1: memref<256x512xi8, #tpu.memory_space<vmem>>, %arg2: memref<512x128xbf16, #tpu.memory_space<vmem>>, %arg3: memref<256x128xbf16, #tpu.memory_space<vmem>>, %arg4: memref<256x1xf32, #tpu.memory_space<vmem>>, %arg5: memref<1x128xf32, #tpu.memory_space<vmem>>, %arg6: memref<256x1xf32, #tpu.memory_space<vmem>>, %arg7: memref<256x128xbf16, #tpu.memory_space<vmem>>, %arg8: memref<1x8x128xf32, #tpu.memory_space<vmem>>, %arg9: memref<1x8x128xf32, #tpu.memory_space<vmem>>) attributes {dimension_semantics = [#tpu.dimension_semantics<parallel>], iteration_bounds = array<i64: 2>, scalar_prefetch = 0 : i64, scratch_operands = 0 : i64, tpu.core_type = #tpu.core_type<tc>, window_params = [{transform_indices = @transform_0, window_bounds = array<i64: 256, 512>}, {pipeline_mode = #tpu.pipeline_mode<synchronous>, transform_indices = @transform_1, window_bounds = array<i64: 512, 128>}, {transform_indices = @transform_2, window_bounds = array<i64: 256, 128>}, {transform_indices = @transform_3, window_bounds = array<i64: 256, 1>}, {pipeline_mode = #tpu.pipeline_mode<synchronous>, transform_indices = @transform_4, window_bounds = array<i64: 1, 128>}, {transform_indices = @transform_5, window_bounds = array<i64: 256, 1>}, {transform_indices = @transform_6, window_bounds = array<i64: 256, 128>}, {transform_indices = @transform_7, window_bounds = array<i64: 1, 8, 128>}, {transform_indices = @transform_8, window_bounds = array<i64: 1, 8, 128>}]} {
    %c0 = arith.constant 0 : index
    %c0_0 = arith.constant 0 : index
    %0 = vector.load %arg1[%c0, %c0_0] : memref<256x512xi8, #tpu.memory_space<vmem>>, vector<256x512xi8>
    %1 = arith.sitofp %0 : vector<256x512xi8> to vector<256x512xbf16>
    %c0_1 = arith.constant 0 : index
    %c0_2 = arith.constant 0 : index
    %2 = vector.load %arg2[%c0_1, %c0_2] : memref<512x128xbf16, #tpu.memory_space<vmem>>, vector<512x128xbf16>
    %cst = arith.constant dense<0.000000e+00> : vector<256x128xf32>
    %3 = tpu.matmul %1, %2, %cst {dimension_numbers = #tpu.dot_dimension_numbers<[1], [0], [0], [1], [0, 0, 1, 1], [], []>} : vector<256x512xbf16>, vector<512x128xbf16>, vector<256x128xf32> -> vector<256x128xf32>
    %c0_3 = arith.constant 0 : index
    %c0_4 = arith.constant 0 : index
    %4 = vector.load %arg4[%c0_3, %c0_4] : memref<256x1xf32, #tpu.memory_space<vmem>>, vector<256x1xf32>
    %c0_5 = arith.constant 0 : index
    %c0_6 = arith.constant 0 : index
    %5 = vector.load %arg3[%c0_5, %c0_6] : memref<256x128xbf16, #tpu.memory_space<vmem>>, vector<256x128xbf16>
    %6 = arith.extf %5 : vector<256x128xbf16> to vector<256x128xf32>
    %7 = arith.addf %3, %6 : vector<256x128xf32>
    %8 = vector.broadcast %4 : vector<256x1xf32> to vector<256x128xf32>
    %9 = arith.mulf %8, %7 : vector<256x128xf32>
    %c0_7 = arith.constant 0 : index
    %c0_8 = arith.constant 0 : index
    %10 = vector.load %arg5[%c0_7, %c0_8] : memref<1x128xf32, #tpu.memory_space<vmem>>, vector<1x128xf32>
    %11 = vector.broadcast %10 : vector<1x128xf32> to vector<256x128xf32>
    %12 = arith.addf %9, %11 : vector<256x128xf32>
    %cst_9 = arith.constant 0.000000e+00 : f32
    %13 = vector.broadcast %cst_9 : f32 to vector<256x128xf32>
    %14 = arith.maximumf %12, %13 : vector<256x128xf32>
    %c0_10 = arith.constant 0 : index
    %c0_11 = arith.constant 0 : index
    %15 = vector.load %arg6[%c0_10, %c0_11] : memref<256x1xf32, #tpu.memory_space<vmem>>, vector<256x1xf32>
    %16 = vector.broadcast %15 : vector<256x1xf32> to vector<256x128xf32>
    %17 = arith.mulf %14, %16 : vector<256x128xf32>
    %18 = arith.truncf %17 : vector<256x128xf32> to vector<256x128xbf16>
    %c0_12 = arith.constant 0 : index
    %c0_13 = arith.constant 0 : index
    %19 = vector.load %arg7[%c0_12, %c0_13] : memref<256x128xbf16, #tpu.memory_space<vmem>>, vector<256x128xbf16>
    tpu.vector_store %arg7[%c0_12, %c0_13], %18 {strides = array<i32>} : memref<256x128xbf16, #tpu.memory_space<vmem>>, vector<256x128xbf16>,
    %cst_14 = arith.constant dense<0.000000e+00> : vector<128xf32>
    %20 = vector.multi_reduction <add>, %17, %cst_14 [0] : vector<256x128xf32> to vector<128xf32>
    %21 = vector.shape_cast %20 : vector<128xf32> to vector<1x128xf32>
    %22 = arith.mulf %17, %17 : vector<256x128xf32>
    %cst_15 = arith.constant dense<0.000000e+00> : vector<128xf32>
    %23 = vector.multi_reduction <add>, %22, %cst_15 [0] : vector<256x128xf32> to vector<128xf32>
    %24 = vector.shape_cast %23 : vector<128xf32> to vector<1x128xf32>
    %25 = vector.shape_cast %21 : vector<1x128xf32> to vector<1x1x128xf32>
    %26 = vector.broadcast %25 : vector<1x1x128xf32> to vector<1x8x128xf32>
    %c0_16 = arith.constant 0 : index
    %c0_17 = arith.constant 0 : index
    %c0_18 = arith.constant 0 : index
    %27 = vector.load %arg8[%c0_16, %c0_17, %c0_18] : memref<1x8x128xf32, #tpu.memory_space<vmem>>, vector<1x8x128xf32>
    tpu.vector_store %arg8[%c0_16, %c0_17, %c0_18], %26 {strides = array<i32>} : memref<1x8x128xf32, #tpu.memory_space<vmem>>, vector<1x8x128xf32>,
    %28 = vector.shape_cast %24 : vector<1x128xf32> to vector<1x1x128xf32>
    %29 = vector.broadcast %28 : vector<1x1x128xf32> to vector<1x8x128xf32>
    %c0_19 = arith.constant 0 : index
    %c0_20 = arith.constant 0 : index
    %c0_21 = arith.constant 0 : index
    %30 = vector.load %arg9[%c0_19, %c0_20, %c0_21] : memref<1x8x128xf32, #tpu.memory_space<vmem>>, vector<1x8x128xf32>
    tpu.vector_store %arg9[%c0_19, %c0_20, %c0_21], %29 {strides = array<i32>} : memref<1x8x128xf32, #tpu.memory_space<vmem>>, vector<1x8x128xf32>,
    return
  }
  func.func @transform_0(%arg0: i32) -> (i32, i32) {
    %c0_i32 = arith.constant 0 : i32
    %c0_i32_0 = arith.constant 0 : i32
    return %arg0, %c0_i32 : i32, i32
  }
  func.func @transform_1(%arg0: i32) -> (i32, i32) {
    %c0_i32 = arith.constant 0 : i32
    %c0_i32_0 = arith.constant 0 : i32
    %c0_i32_1 = arith.constant 0 : i32
    return %c0_i32, %c0_i32_0 : i32, i32
  }
  func.func @transform_2(%arg0: i32) -> (i32, i32) {
    %c0_i32 = arith.constant 0 : i32
    %c0_i32_0 = arith.constant 0 : i32
    return %arg0, %c0_i32 : i32, i32
  }
  func.func @transform_3(%arg0: i32) -> (i32, i32) {
    %c0_i32 = arith.constant 0 : i32
    %c0_i32_0 = arith.constant 0 : i32
    return %arg0, %c0_i32 : i32, i32
  }
  func.func @transform_4(%arg0: i32) -> (i32, i32) {
    %c0_i32 = arith.constant 0 : i32
    %c0_i32_0 = arith.constant 0 : i32
    %c0_i32_1 = arith.constant 0 : i32
    return %c0_i32, %c0_i32_0 : i32, i32
  }
  func.func @transform_5(%arg0: i32) -> (i32, i32) {
    %c0_i32 = arith.constant 0 : i32
    %c0_i32_0 = arith.constant 0 : i32
    return %arg0, %c0_i32 : i32, i32
  }
  func.func @transform_6(%arg0: i32) -> (i32, i32) {
    %c0_i32 = arith.constant 0 : i32
    %c0_i32_0 = arith.constant 0 : i32
    return %arg0, %c0_i32 : i32, i32
  }
  func.func @transform_7(%arg0: i32) -> (i32, i32, i32) {
    %c0_i32 = arith.constant 0 : i32
    %c0_i32_0 = arith.constant 0 : i32
    %c0_i32_1 = arith.constant 0 : i32
    return %arg0, %c0_i32, %c0_i32_0 : i32, i32, i32
  }
  func.func @transform_8(%arg0: i32) -> (i32, i32, i32) {
    %c0_i32 = arith.constant 0 : i32
    %c0_i32_0 = arith.constant 0 : i32
    %c0_i32_1 = arith.constant 0 : i32
    return %arg0, %c0_i32, %c0_i32_0 : i32, i32, i32
  }
}

module attributes {stable_mosaic.version = 11 : i64} {
  func.func @_scale_linear_kernel(%arg0: i32, %arg1: memref<256x128xbf16, #tpu.memory_space<vmem>>, %arg2: memref<1x128xf32, #tpu.memory_space<vmem>>, %arg3: memref<1x128xf32, #tpu.memory_space<vmem>>, %arg4: memref<128x128xbf16, #tpu.memory_space<vmem>>, %arg5: memref<256x1xf32, #tpu.memory_space<vmem>>, %arg6: memref<256x128xbf16, #tpu.memory_space<vmem>>) attributes {dimension_semantics = [#tpu.dimension_semantics<parallel>], iteration_bounds = array<i64: 2>, scalar_prefetch = 0 : i64, scratch_operands = 0 : i64, tpu.core_type = #tpu.core_type<tc>, window_params = [{transform_indices = @transform_0, window_bounds = array<i64: 256, 128>}, {pipeline_mode = #tpu.pipeline_mode<synchronous>, transform_indices = @transform_1, window_bounds = array<i64: 1, 128>}, {pipeline_mode = #tpu.pipeline_mode<synchronous>, transform_indices = @transform_2, window_bounds = array<i64: 1, 128>}, {pipeline_mode = #tpu.pipeline_mode<synchronous>, transform_indices = @transform_3, window_bounds = array<i64: 128, 128>}, {transform_indices = @transform_4, window_bounds = array<i64: 256, 1>}, {transform_indices = @transform_5, window_bounds = array<i64: 256, 128>}]} {
    %c0 = arith.constant 0 : index
    %c0_0 = arith.constant 0 : index
    %0 = vector.load %arg1[%c0, %c0_0] : memref<256x128xbf16, #tpu.memory_space<vmem>>, vector<256x128xbf16>
    %1 = arith.extf %0 : vector<256x128xbf16> to vector<256x128xf32>
    %c0_1 = arith.constant 0 : index
    %c0_2 = arith.constant 0 : index
    %2 = vector.load %arg2[%c0_1, %c0_2] : memref<1x128xf32, #tpu.memory_space<vmem>>, vector<1x128xf32>
    %3 = vector.broadcast %2 : vector<1x128xf32> to vector<256x128xf32>
    %4 = arith.mulf %1, %3 : vector<256x128xf32>
    %c0_3 = arith.constant 0 : index
    %c0_4 = arith.constant 0 : index
    %5 = vector.load %arg3[%c0_3, %c0_4] : memref<1x128xf32, #tpu.memory_space<vmem>>, vector<1x128xf32>
    %6 = vector.broadcast %5 : vector<1x128xf32> to vector<256x128xf32>
    %7 = arith.addf %4, %6 : vector<256x128xf32>
    %8 = arith.truncf %7 : vector<256x128xf32> to vector<256x128xbf16>
    %c0_5 = arith.constant 0 : index
    %c0_6 = arith.constant 0 : index
    %9 = vector.load %arg4[%c0_5, %c0_6] : memref<128x128xbf16, #tpu.memory_space<vmem>>, vector<128x128xbf16>
    %cst = arith.constant dense<0.000000e+00> : vector<256x128xf32>
    %10 = tpu.matmul %8, %9, %cst {dimension_numbers = #tpu.dot_dimension_numbers<[1], [0], [0], [1], [0, 0, 1, 1], [], []>} : vector<256x128xbf16>, vector<128x128xbf16>, vector<256x128xf32> -> vector<256x128xf32>
    %c0_7 = arith.constant 0 : index
    %c0_8 = arith.constant 0 : index
    %11 = vector.load %arg5[%c0_7, %c0_8] : memref<256x1xf32, #tpu.memory_space<vmem>>, vector<256x1xf32>
    %12 = vector.broadcast %11 : vector<256x1xf32> to vector<256x128xf32>
    %13 = arith.mulf %12, %10 : vector<256x128xf32>
    %14 = arith.truncf %13 : vector<256x128xf32> to vector<256x128xbf16>
    %c0_9 = arith.constant 0 : index
    %c0_10 = arith.constant 0 : index
    %15 = vector.load %arg6[%c0_9, %c0_10] : memref<256x128xbf16, #tpu.memory_space<vmem>>, vector<256x128xbf16>
    tpu.vector_store %arg6[%c0_9, %c0_10], %14 {strides = array<i32>} : memref<256x128xbf16, #tpu.memory_space<vmem>>, vector<256x128xbf16>,
    return
  }
  func.func @transform_0(%arg0: i32) -> (i32, i32) {
    %c0_i32 = arith.constant 0 : i32
    %c0_i32_0 = arith.constant 0 : i32
    return %arg0, %c0_i32 : i32, i32
  }
  func.func @transform_1(%arg0: i32) -> (i32, i32) {
    %c0_i32 = arith.constant 0 : i32
    %c0_i32_0 = arith.constant 0 : i32
    %c0_i32_1 = arith.constant 0 : i32
    return %c0_i32, %c0_i32_0 : i32, i32
  }
  func.func @transform_2(%arg0: i32) -> (i32, i32) {
    %c0_i32 = arith.constant 0 : i32
    %c0_i32_0 = arith.constant 0 : i32
    %c0_i32_1 = arith.constant 0 : i32
    return %c0_i32, %c0_i32_0 : i32, i32
  }
  func.func @transform_3(%arg0: i32) -> (i32, i32) {
    %c0_i32 = arith.constant 0 : i32
    %c0_i32_0 = arith.constant 0 : i32
    %c0_i32_1 = arith.constant 0 : i32
    return %c0_i32, %c0_i32_0 : i32, i32
  }
  func.func @transform_4(%arg0: i32) -> (i32, i32) {
    %c0_i32 = arith.constant 0 : i32
    %c0_i32_0 = arith.constant 0 : i32
    return %arg0, %c0_i32 : i32, i32
  }
  func.func @transform_5(%arg0: i32) -> (i32, i32) {
    %c0_i32 = arith.constant 0 : i32
    %c0_i32_0 = arith.constant 0 : i32
    return %arg0, %c0_i32 : i32, i32
  }
}

module attributes {stable_mosaic.version = 11 : i64} {
  func.func @_pool_cell_kernel(%arg0: i32, %arg1: memref<128x128xbf16, #tpu.memory_space<vmem>>, %arg2: memref<1x128xf32, #tpu.memory_space<vmem>>, %arg3: memref<1x128xf32, #tpu.memory_space<vmem>>, %arg4: memref<128x1xi32, #tpu.memory_space<vmem>>, %arg5: memref<4x32xf32, #tpu.memory_space<vmem>>, %arg6: memref<32x128xf32, #tpu.memory_space<vmem>>, %arg7: memref<1x128xf32, #tpu.memory_space<vmem>>, %arg8: memref<1x128xf32, #tpu.memory_space<vmem>>, %arg9: memref<1x128xf32, #tpu.memory_space<vmem>>, %arg10: memref<128x128xf32, #tpu.memory_space<vmem>>, %arg11: memref<1x128xf32, #tpu.memory_space<vmem>>, %arg12: memref<16x128xf32, #tpu.memory_space<vmem>>, %arg13: memref<4x128xf32, #tpu.memory_space<vmem>>) attributes {dimension_semantics = [#tpu.dimension_semantics<arbitrary>], iteration_bounds = array<i64: 4>, scalar_prefetch = 0 : i64, scratch_operands = 0 : i64, tpu.core_type = #tpu.core_type<tc>, window_params = [{transform_indices = @transform_0, window_bounds = array<i64: 128, 128>}, {pipeline_mode = #tpu.pipeline_mode<synchronous>, transform_indices = @transform_1, window_bounds = array<i64: 1, 128>}, {pipeline_mode = #tpu.pipeline_mode<synchronous>, transform_indices = @transform_2, window_bounds = array<i64: 1, 128>}, {transform_indices = @transform_3, window_bounds = array<i64: 128, 1>}, {pipeline_mode = #tpu.pipeline_mode<synchronous>, transform_indices = @transform_4, window_bounds = array<i64: 4, 32>}, {pipeline_mode = #tpu.pipeline_mode<synchronous>, transform_indices = @transform_5, window_bounds = array<i64: 32, 128>}, {pipeline_mode = #tpu.pipeline_mode<synchronous>, transform_indices = @transform_6, window_bounds = array<i64: 1, 128>}, {pipeline_mode = #tpu.pipeline_mode<synchronous>, transform_indices = @transform_7, window_bounds = array<i64: 1, 128>}, {pipeline_mode = #tpu.pipeline_mode<synchronous>, transform_indices = @transform_8, window_bounds = array<i64: 1, 128>}, {pipeline_mode = #tpu.pipeline_mode<synchronous>, transform_indices = @transform_9, window_bounds = array<i64: 128, 128>}, {pipeline_mode = #tpu.pipeline_mode<synchronous>, transform_indices = @transform_10, window_bounds = array<i64: 1, 128>}, {pipeline_mode = #tpu.pipeline_mode<synchronous>, transform_indices = @transform_11, window_bounds = array<i64: 16, 128>}, {pipeline_mode = #tpu.pipeline_mode<synchronous>, transform_indices = @transform_12, window_bounds = array<i64: 4, 128>}]} {
    %c0_i32 = arith.constant 0 : i32
    %0 = arith.cmpi eq, %arg0, %c0_i32 : i32
    %1 = arith.extui %0 : i1 to i32
    %c0_i32_0 = arith.constant 0 : i32
    %2 = arith.cmpi ne, %1, %c0_i32_0 : i32
    scf.if %2 {
      %cst_44 = arith.constant -1.000000e+30 : f32
      %144 = vector.broadcast %cst_44 : f32 to vector<16x128xf32>
      %c0_45 = arith.constant 0 : index
      %c0_46 = arith.constant 0 : index
      %145 = vector.load %arg12[%c0_45, %c0_46] : memref<16x128xf32, #tpu.memory_space<vmem>>, vector<16x128xf32>
      tpu.vector_store %arg12[%c0_45, %c0_46], %144 {strides = array<i32>} : memref<16x128xf32, #tpu.memory_space<vmem>>, vector<16x128xf32>,
      %c0_47 = arith.constant 0 : index
      %c0_48 = arith.constant 0 : index
      %146 = vector.load %arg5[%c0_47, %c0_48] : memref<4x32xf32, #tpu.memory_space<vmem>>, vector<4x32xf32>
      %c0_49 = arith.constant 0 : index
      %c0_50 = arith.constant 0 : index
      %147 = vector.load %arg6[%c0_49, %c0_50] : memref<32x128xf32, #tpu.memory_space<vmem>>, vector<32x128xf32>
      %cst_51 = arith.constant dense<0.000000e+00> : vector<4x128xf32>
      %148 = tpu.matmul %146, %147, %cst_51 {dimension_numbers = #tpu.dot_dimension_numbers<[1], [0], [0], [1], [0, 0, 1, 1], [], []>} : vector<4x32xf32>, vector<32x128xf32>, vector<4x128xf32> -> vector<4x128xf32>
      %c0_52 = arith.constant 0 : index
      %c0_53 = arith.constant 0 : index
      %149 = vector.load %arg7[%c0_52, %c0_53] : memref<1x128xf32, #tpu.memory_space<vmem>>, vector<1x128xf32>
      %150 = vector.broadcast %149 : vector<1x128xf32> to vector<4x128xf32>
      %151 = arith.addf %148, %150 : vector<4x128xf32>
      %152 = math.tanh %151 : vector<4x128xf32>
      %cst_54 = arith.constant dense<0.000000e+00> : vector<128xf32>
      %153 = vector.multi_reduction <add>, %152, %cst_54 [0] : vector<4x128xf32> to vector<128xf32>
      %154 = vector.shape_cast %153 : vector<128xf32> to vector<1x128xf32>
      %cst_55 = arith.constant 4.000000e+00 : f32
      %155 = vector.broadcast %cst_55 : f32 to vector<1x128xf32>
      %156 = arith.divf %154, %155 : vector<1x128xf32>
      %157 = vector.broadcast %156 : vector<1x128xf32> to vector<4x128xf32>
      %158 = arith.subf %152, %157 : vector<4x128xf32>
      %159 = vector.broadcast %156 : vector<1x128xf32> to vector<4x128xf32>
      %160 = arith.subf %152, %159 : vector<4x128xf32>
      %161 = arith.mulf %158, %160 : vector<4x128xf32>
      %cst_56 = arith.constant dense<0.000000e+00> : vector<128xf32>
      %162 = vector.multi_reduction <add>, %161, %cst_56 [0] : vector<4x128xf32> to vector<128xf32>
      %163 = vector.shape_cast %162 : vector<128xf32> to vector<1x128xf32>
      %cst_57 = arith.constant 4.000000e+00 : f32
      %164 = vector.broadcast %cst_57 : f32 to vector<1x128xf32>
      %165 = arith.divf %163, %164 : vector<1x128xf32>
      %c0_58 = arith.constant 0 : index
      %c0_59 = arith.constant 0 : index
      %166 = vector.load %arg8[%c0_58, %c0_59] : memref<1x128xf32, #tpu.memory_space<vmem>>, vector<1x128xf32>
      %167 = vector.broadcast %156 : vector<1x128xf32> to vector<4x128xf32>
      %168 = arith.subf %152, %167 : vector<4x128xf32>
      %169 = vector.broadcast %166 : vector<1x128xf32> to vector<4x128xf32>
      %170 = arith.mulf %169, %168 : vector<4x128xf32>
      %cst_60 = arith.constant 9.99999974E-6 : f32
      %171 = vector.broadcast %cst_60 : f32 to vector<1x128xf32>
      %172 = arith.addf %165, %171 : vector<1x128xf32>
      %173 = math.rsqrt %172 : vector<1x128xf32>
      %174 = vector.broadcast %173 : vector<1x128xf32> to vector<4x128xf32>
      %175 = arith.mulf %170, %174 : vector<4x128xf32>
      %c0_61 = arith.constant 0 : index
      %c0_62 = arith.constant 0 : index
      %176 = vector.load %arg9[%c0_61, %c0_62] : memref<1x128xf32, #tpu.memory_space<vmem>>, vector<1x128xf32>
      %177 = vector.broadcast %176 : vector<1x128xf32> to vector<4x128xf32>
      %178 = arith.addf %175, %177 : vector<4x128xf32>
      %c0_63 = arith.constant 0 : index
      %c0_64 = arith.constant 0 : index
      %179 = vector.load %arg10[%c0_63, %c0_64] : memref<128x128xf32, #tpu.memory_space<vmem>>, vector<128x128xf32>
      %cst_65 = arith.constant dense<0.000000e+00> : vector<4x128xf32>
      %180 = tpu.matmul %178, %179, %cst_65 {dimension_numbers = #tpu.dot_dimension_numbers<[1], [0], [0], [1], [0, 0, 1, 1], [], []>} : vector<4x128xf32>, vector<128x128xf32>, vector<4x128xf32> -> vector<4x128xf32>
      %c0_66 = arith.constant 0 : index
      %c0_67 = arith.constant 0 : index
      %181 = vector.load %arg11[%c0_66, %c0_67] : memref<1x128xf32, #tpu.memory_space<vmem>>, vector<1x128xf32>
      %182 = vector.broadcast %181 : vector<1x128xf32> to vector<4x128xf32>
      %183 = arith.addf %180, %182 : vector<4x128xf32>
      %cst_68 = arith.constant 0.000000e+00 : f32
      %184 = vector.broadcast %cst_68 : f32 to vector<4x128xf32>
      %185 = arith.maximumf %183, %184 : vector<4x128xf32>
      %c0_69 = arith.constant 0 : index
      %c0_70 = arith.constant 0 : index
      %186 = vector.load %arg13[%c0_69, %c0_70] : memref<4x128xf32, #tpu.memory_space<vmem>>, vector<4x128xf32>
      tpu.vector_store %arg13[%c0_69, %c0_70], %185 {strides = array<i32>} : memref<4x128xf32, #tpu.memory_space<vmem>>, vector<4x128xf32>,
    } else {
    }
    %c0 = arith.constant 0 : index
    %c0_1 = arith.constant 0 : index
    %3 = vector.load %arg1[%c0, %c0_1] : memref<128x128xbf16, #tpu.memory_space<vmem>>, vector<128x128xbf16>
    %4 = arith.extf %3 : vector<128x128xbf16> to vector<128x128xf32>
    %c0_2 = arith.constant 0 : index
    %c0_3 = arith.constant 0 : index
    %5 = vector.load %arg2[%c0_2, %c0_3] : memref<1x128xf32, #tpu.memory_space<vmem>>, vector<1x128xf32>
    %6 = vector.broadcast %5 : vector<1x128xf32> to vector<128x128xf32>
    %7 = arith.mulf %4, %6 : vector<128x128xf32>
    %c0_4 = arith.constant 0 : index
    %c0_5 = arith.constant 0 : index
    %8 = vector.load %arg3[%c0_4, %c0_5] : memref<1x128xf32, #tpu.memory_space<vmem>>, vector<1x128xf32>
    %9 = vector.broadcast %8 : vector<1x128xf32> to vector<128x128xf32>
    %10 = arith.addf %7, %9 : vector<128x128xf32>
    %c0_6 = arith.constant 0 : index
    %c0_7 = arith.constant 0 : index
    %11 = vector.load %arg4[%c0_6, %c0_7] : memref<128x1xi32, #tpu.memory_space<vmem>>, vector<128x1xi32>
    %c0_i32_8 = arith.constant 0 : i32
    %12 = vector.broadcast %c0_i32_8 : i32 to vector<128x1xi32>
    %13 = arith.cmpi eq, %11, %12 : vector<128x1xi32>
    %cst = arith.constant -1.000000e+30 : f32
    %14 = vector.shape_cast %13 : vector<128x1xi1> to vector<128x1xi1>
    %15 = vector.broadcast %14 : vector<128x1xi1> to vector<128x128xi1>
    %16 = vector.broadcast %cst : f32 to vector<128x128xf32>
    %17 = arith.select %15, %10, %16 : vector<128x128xi1>, vector<128x128xf32>
    %cst_9 = arith.constant dense<0xFF800000> : vector<128xf32>
    %18 = vector.multi_reduction <maximumf>, %17, %cst_9 [0] : vector<128x128xf32> to vector<128xf32>
    %19 = vector.shape_cast %18 : vector<128xf32> to vector<1x128xf32>
    %c1_i32 = arith.constant 1 : i32
    %20 = vector.broadcast %c1_i32 : i32 to vector<128x1xi32>
    %21 = arith.cmpi eq, %11, %20 : vector<128x1xi32>
    %cst_10 = arith.constant -1.000000e+30 : f32
    %22 = vector.shape_cast %21 : vector<128x1xi1> to vector<128x1xi1>
    %23 = vector.broadcast %22 : vector<128x1xi1> to vector<128x128xi1>
    %24 = vector.broadcast %cst_10 : f32 to vector<128x128xf32>
    %25 = arith.select %23, %10, %24 : vector<128x128xi1>, vector<128x128xf32>
    %cst_11 = arith.constant dense<0xFF800000> : vector<128xf32>
    %26 = vector.multi_reduction <maximumf>, %25, %cst_11 [0] : vector<128x128xf32> to vector<128xf32>
    %27 = vector.shape_cast %26 : vector<128xf32> to vector<1x128xf32>
    %c2_i32 = arith.constant 2 : i32
    %28 = vector.broadcast %c2_i32 : i32 to vector<128x1xi32>
    %29 = arith.cmpi eq, %11, %28 : vector<128x1xi32>
    %cst_12 = arith.constant -1.000000e+30 : f32
    %30 = vector.shape_cast %29 : vector<128x1xi1> to vector<128x1xi1>
    %31 = vector.broadcast %30 : vector<128x1xi1> to vector<128x128xi1>
    %32 = vector.broadcast %cst_12 : f32 to vector<128x128xf32>
    %33 = arith.select %31, %10, %32 : vector<128x128xi1>, vector<128x128xf32>
    %cst_13 = arith.constant dense<0xFF800000> : vector<128xf32>
    %34 = vector.multi_reduction <maximumf>, %33, %cst_13 [0] : vector<128x128xf32> to vector<128xf32>
    %35 = vector.shape_cast %34 : vector<128xf32> to vector<1x128xf32>
    %c3_i32 = arith.constant 3 : i32
    %36 = vector.broadcast %c3_i32 : i32 to vector<128x1xi32>
    %37 = arith.cmpi eq, %11, %36 : vector<128x1xi32>
    %cst_14 = arith.constant -1.000000e+30 : f32
    %38 = vector.shape_cast %37 : vector<128x1xi1> to vector<128x1xi1>
    %39 = vector.broadcast %38 : vector<128x1xi1> to vector<128x128xi1>
    %40 = vector.broadcast %cst_14 : f32 to vector<128x128xf32>
    %41 = arith.select %39, %10, %40 : vector<128x128xi1>, vector<128x128xf32>
    %cst_15 = arith.constant dense<0xFF800000> : vector<128xf32>
    %42 = vector.multi_reduction <maximumf>, %41, %cst_15 [0] : vector<128x128xf32> to vector<128xf32>
    %43 = vector.shape_cast %42 : vector<128xf32> to vector<1x128xf32>
    %c4_i32 = arith.constant 4 : i32
    %44 = vector.broadcast %c4_i32 : i32 to vector<128x1xi32>
    %45 = arith.cmpi eq, %11, %44 : vector<128x1xi32>
    %cst_16 = arith.constant -1.000000e+30 : f32
    %46 = vector.shape_cast %45 : vector<128x1xi1> to vector<128x1xi1>
    %47 = vector.broadcast %46 : vector<128x1xi1> to vector<128x128xi1>
    %48 = vector.broadcast %cst_16 : f32 to vector<128x128xf32>
    %49 = arith.select %47, %10, %48 : vector<128x128xi1>, vector<128x128xf32>
    %cst_17 = arith.constant dense<0xFF800000> : vector<128xf32>
    %50 = vector.multi_reduction <maximumf>, %49, %cst_17 [0] : vector<128x128xf32> to vector<128xf32>
    %51 = vector.shape_cast %50 : vector<128xf32> to vector<1x128xf32>
    %c5_i32 = arith.constant 5 : i32
    %52 = vector.broadcast %c5_i32 : i32 to vector<128x1xi32>
    %53 = arith.cmpi eq, %11, %52 : vector<128x1xi32>
    %cst_18 = arith.constant -1.000000e+30 : f32
    %54 = vector.shape_cast %53 : vector<128x1xi1> to vector<128x1xi1>
    %55 = vector.broadcast %54 : vector<128x1xi1> to vector<128x128xi1>
    %56 = vector.broadcast %cst_18 : f32 to vector<128x128xf32>
    %57 = arith.select %55, %10, %56 : vector<128x128xi1>, vector<128x128xf32>
    %cst_19 = arith.constant dense<0xFF800000> : vector<128xf32>
    %58 = vector.multi_reduction <maximumf>, %57, %cst_19 [0] : vector<128x128xf32> to vector<128xf32>
    %59 = vector.shape_cast %58 : vector<128xf32> to vector<1x128xf32>
    %c6_i32 = arith.constant 6 : i32
    %60 = vector.broadcast %c6_i32 : i32 to vector<128x1xi32>
    %61 = arith.cmpi eq, %11, %60 : vector<128x1xi32>
    %cst_20 = arith.constant -1.000000e+30 : f32
    %62 = vector.shape_cast %61 : vector<128x1xi1> to vector<128x1xi1>
    %63 = vector.broadcast %62 : vector<128x1xi1> to vector<128x128xi1>
    %64 = vector.broadcast %cst_20 : f32 to vector<128x128xf32>
    %65 = arith.select %63, %10, %64 : vector<128x128xi1>, vector<128x128xf32>
    %cst_21 = arith.constant dense<0xFF800000> : vector<128xf32>
    %66 = vector.multi_reduction <maximumf>, %65, %cst_21 [0] : vector<128x128xf32> to vector<128xf32>
    %67 = vector.shape_cast %66 : vector<128xf32> to vector<1x128xf32>
    %c7_i32 = arith.constant 7 : i32
    %68 = vector.broadcast %c7_i32 : i32 to vector<128x1xi32>
    %69 = arith.cmpi eq, %11, %68 : vector<128x1xi32>
    %cst_22 = arith.constant -1.000000e+30 : f32
    %70 = vector.shape_cast %69 : vector<128x1xi1> to vector<128x1xi1>
    %71 = vector.broadcast %70 : vector<128x1xi1> to vector<128x128xi1>
    %72 = vector.broadcast %cst_22 : f32 to vector<128x128xf32>
    %73 = arith.select %71, %10, %72 : vector<128x128xi1>, vector<128x128xf32>
    %cst_23 = arith.constant dense<0xFF800000> : vector<128xf32>
    %74 = vector.multi_reduction <maximumf>, %73, %cst_23 [0] : vector<128x128xf32> to vector<128xf32>
    %75 = vector.shape_cast %74 : vector<128xf32> to vector<1x128xf32>
    %c8_i32 = arith.constant 8 : i32
    %76 = vector.broadcast %c8_i32 : i32 to vector<128x1xi32>
    %77 = arith.cmpi eq, %11, %76 : vector<128x1xi32>
    %cst_24 = arith.constant -1.000000e+30 : f32
    %78 = vector.shape_cast %77 : vector<128x1xi1> to vector<128x1xi1>
    %79 = vector.broadcast %78 : vector<128x1xi1> to vector<128x128xi1>
    %80 = vector.broadcast %cst_24 : f32 to vector<128x128xf32>
    %81 = arith.select %79, %10, %80 : vector<128x128xi1>, vector<128x128xf32>
    %cst_25 = arith.constant dense<0xFF800000> : vector<128xf32>
    %82 = vector.multi_reduction <maximumf>, %81, %cst_25 [0] : vector<128x128xf32> to vector<128xf32>
    %83 = vector.shape_cast %82 : vector<128xf32> to vector<1x128xf32>
    %c9_i32 = arith.constant 9 : i32
    %84 = vector.broadcast %c9_i32 : i32 to vector<128x1xi32>
    %85 = arith.cmpi eq, %11, %84 : vector<128x1xi32>
    %cst_26 = arith.constant -1.000000e+30 : f32
    %86 = vector.shape_cast %85 : vector<128x1xi1> to vector<128x1xi1>
    %87 = vector.broadcast %86 : vector<128x1xi1> to vector<128x128xi1>
    %88 = vector.broadcast %cst_26 : f32 to vector<128x128xf32>
    %89 = arith.select %87, %10, %88 : vector<128x128xi1>, vector<128x128xf32>
    %cst_27 = arith.constant dense<0xFF800000> : vector<128xf32>
    %90 = vector.multi_reduction <maximumf>, %89, %cst_27 [0] : vector<128x128xf32> to vector<128xf32>
    %91 = vector.shape_cast %90 : vector<128xf32> to vector<1x128xf32>
    %c10_i32 = arith.constant 10 : i32
    %92 = vector.broadcast %c10_i32 : i32 to vector<128x1xi32>
    %93 = arith.cmpi eq, %11, %92 : vector<128x1xi32>
    %cst_28 = arith.constant -1.000000e+30 : f32
    %94 = vector.shape_cast %93 : vector<128x1xi1> to vector<128x1xi1>
    %95 = vector.broadcast %94 : vector<128x1xi1> to vector<128x128xi1>
    %96 = vector.broadcast %cst_28 : f32 to vector<128x128xf32>
    %97 = arith.select %95, %10, %96 : vector<128x128xi1>, vector<128x128xf32>
    %cst_29 = arith.constant dense<0xFF800000> : vector<128xf32>
    %98 = vector.multi_reduction <maximumf>, %97, %cst_29 [0] : vector<128x128xf32> to vector<128xf32>
    %99 = vector.shape_cast %98 : vector<128xf32> to vector<1x128xf32>
    %c11_i32 = arith.constant 11 : i32
    %100 = vector.broadcast %c11_i32 : i32 to vector<128x1xi32>
    %101 = arith.cmpi eq, %11, %100 : vector<128x1xi32>
    %cst_30 = arith.constant -1.000000e+30 : f32
    %102 = vector.shape_cast %101 : vector<128x1xi1> to vector<128x1xi1>
    %103 = vector.broadcast %102 : vector<128x1xi1> to vector<128x128xi1>
    %104 = vector.broadcast %cst_30 : f32 to vector<128x128xf32>
    %105 = arith.select %103, %10, %104 : vector<128x128xi1>, vector<128x128xf32>
    %cst_31 = arith.constant dense<0xFF800000> : vector<128xf32>
    %106 = vector.multi_reduction <maximumf>, %105, %cst_31 [0] : vector<128x128xf32> to vector<128xf32>
    %107 = vector.shape_cast %106 : vector<128xf32> to vector<1x128xf32>
    %c12_i32 = arith.constant 12 : i32
    %108 = vector.broadcast %c12_i32 : i32 to vector<128x1xi32>
    %109 = arith.cmpi eq, %11, %108 : vector<128x1xi32>
    %cst_32 = arith.constant -1.000000e+30 : f32
    %110 = vector.shape_cast %109 : vector<128x1xi1> to vector<128x1xi1>
    %111 = vector.broadcast %110 : vector<128x1xi1> to vector<128x128xi1>
    %112 = vector.broadcast %cst_32 : f32 to vector<128x128xf32>
    %113 = arith.select %111, %10, %112 : vector<128x128xi1>, vector<128x128xf32>
    %cst_33 = arith.constant dense<0xFF800000> : vector<128xf32>
    %114 = vector.multi_reduction <maximumf>, %113, %cst_33 [0] : vector<128x128xf32> to vector<128xf32>
    %115 = vector.shape_cast %114 : vector<128xf32> to vector<1x128xf32>
    %c13_i32 = arith.constant 13 : i32
    %116 = vector.broadcast %c13_i32 : i32 to vector<128x1xi32>
    %117 = arith.cmpi eq, %11, %116 : vector<128x1xi32>
    %cst_34 = arith.constant -1.000000e+30 : f32
    %118 = vector.shape_cast %117 : vector<128x1xi1> to vector<128x1xi1>
    %119 = vector.broadcast %118 : vector<128x1xi1> to vector<128x128xi1>
    %120 = vector.broadcast %cst_34 : f32 to vector<128x128xf32>
    %121 = arith.select %119, %10, %120 : vector<128x128xi1>, vector<128x128xf32>
    %cst_35 = arith.constant dense<0xFF800000> : vector<128xf32>
    %122 = vector.multi_reduction <maximumf>, %121, %cst_35 [0] : vector<128x128xf32> to vector<128xf32>
    %123 = vector.shape_cast %122 : vector<128xf32> to vector<1x128xf32>
    %c14_i32 = arith.constant 14 : i32
    %124 = vector.broadcast %c14_i32 : i32 to vector<128x1xi32>
    %125 = arith.cmpi eq, %11, %124 : vector<128x1xi32>
    %cst_36 = arith.constant -1.000000e+30 : f32
    %126 = vector.shape_cast %125 : vector<128x1xi1> to vector<128x1xi1>
    %127 = vector.broadcast %126 : vector<128x1xi1> to vector<128x128xi1>
    %128 = vector.broadcast %cst_36 : f32 to vector<128x128xf32>
    %129 = arith.select %127, %10, %128 : vector<128x128xi1>, vector<128x128xf32>
    %cst_37 = arith.constant dense<0xFF800000> : vector<128xf32>
    %130 = vector.multi_reduction <maximumf>, %129, %cst_37 [0] : vector<128x128xf32> to vector<128xf32>
    %131 = vector.shape_cast %130 : vector<128xf32> to vector<1x128xf32>
    %c15_i32 = arith.constant 15 : i32
    %132 = vector.broadcast %c15_i32 : i32 to vector<128x1xi32>
    %133 = arith.cmpi eq, %11, %132 : vector<128x1xi32>
    %cst_38 = arith.constant -1.000000e+30 : f32
    %134 = vector.shape_cast %133 : vector<128x1xi1> to vector<128x1xi1>
    %135 = vector.broadcast %134 : vector<128x1xi1> to vector<128x128xi1>
    %136 = vector.broadcast %cst_38 : f32 to vector<128x128xf32>
    %137 = arith.select %135, %10, %136 : vector<128x128xi1>, vector<128x128xf32>
    %cst_39 = arith.constant dense<0xFF800000> : vector<128xf32>
    %138 = vector.multi_reduction <maximumf>, %137, %cst_39 [0] : vector<128x128xf32> to vector<128xf32>
    %139 = vector.shape_cast %138 : vector<128xf32> to vector<1x128xf32>
    %140 = tpu.concatenate %19, %27, %35, %43, %51, %59, %67, %75, %83, %91, %99, %107, %115, %123, %131, %139 in 0 : vector<1x128xf32>, vector<1x128xf32>, vector<1x128xf32>, vector<1x128xf32>, vector<1x128xf32>, vector<1x128xf32>, vector<1x128xf32>, vector<1x128xf32>, vector<1x128xf32>, vector<1x128xf32>, vector<1x128xf32>, vector<1x128xf32>, vector<1x128xf32>, vector<1x128xf32>, vector<1x128xf32>, vector<1x128xf32> -> vector<16x128xf32>
    %c0_40 = arith.constant 0 : index
    %c0_41 = arith.constant 0 : index
    %141 = vector.load %arg12[%c0_40, %c0_41] : memref<16x128xf32, #tpu.memory_space<vmem>>, vector<16x128xf32>
    %142 = arith.maximumf %141, %140 : vector<16x128xf32>
    %c0_42 = arith.constant 0 : index
    %c0_43 = arith.constant 0 : index
    %143 = vector.load %arg12[%c0_42, %c0_43] : memref<16x128xf32, #tpu.memory_space<vmem>>, vector<16x128xf32>
    tpu.vector_store %arg12[%c0_42, %c0_43], %142 {strides = array<i32>} : memref<16x128xf32, #tpu.memory_space<vmem>>, vector<16x128xf32>,
    return
  }
  func.func @transform_0(%arg0: i32) -> (i32, i32) {
    %c0_i32 = arith.constant 0 : i32
    %c0_i32_0 = arith.constant 0 : i32
    return %arg0, %c0_i32 : i32, i32
  }
  func.func @transform_1(%arg0: i32) -> (i32, i32) {
    %c0_i32 = arith.constant 0 : i32
    %c0_i32_0 = arith.constant 0 : i32
    %c0_i32_1 = arith.constant 0 : i32
    return %c0_i32, %c0_i32_0 : i32, i32
  }
  func.func @transform_2(%arg0: i32) -> (i32, i32) {
    %c0_i32 = arith.constant 0 : i32
    %c0_i32_0 = arith.constant 0 : i32
    %c0_i32_1 = arith.constant 0 : i32
    return %c0_i32, %c0_i32_0 : i32, i32
  }
  func.func @transform_3(%arg0: i32) -> (i32, i32) {
    %c0_i32 = arith.constant 0 : i32
    %c0_i32_0 = arith.constant 0 : i32
    return %arg0, %c0_i32 : i32, i32
  }
  func.func @transform_4(%arg0: i32) -> (i32, i32) {
    %c0_i32 = arith.constant 0 : i32
    %c0_i32_0 = arith.constant 0 : i32
    %c0_i32_1 = arith.constant 0 : i32
    return %c0_i32, %c0_i32_0 : i32, i32
  }
  func.func @transform_5(%arg0: i32) -> (i32, i32) {
    %c0_i32 = arith.constant 0 : i32
    %c0_i32_0 = arith.constant 0 : i32
    %c0_i32_1 = arith.constant 0 : i32
    return %c0_i32, %c0_i32_0 : i32, i32
  }
  func.func @transform_6(%arg0: i32) -> (i32, i32) {
    %c0_i32 = arith.constant 0 : i32
    %c0_i32_0 = arith.constant 0 : i32
    %c0_i32_1 = arith.constant 0 : i32
    return %c0_i32, %c0_i32_0 : i32, i32
  }
  func.func @transform_7(%arg0: i32) -> (i32, i32) {
    %c0_i32 = arith.constant 0 : i32
    %c0_i32_0 = arith.constant 0 : i32
    %c0_i32_1 = arith.constant 0 : i32
    return %c0_i32, %c0_i32_0 : i32, i32
  }
  func.func @transform_8(%arg0: i32) -> (i32, i32) {
    %c0_i32 = arith.constant 0 : i32
    %c0_i32_0 = arith.constant 0 : i32
    %c0_i32_1 = arith.constant 0 : i32
    return %c0_i32, %c0_i32_0 : i32, i32
  }
  func.func @transform_9(%arg0: i32) -> (i32, i32) {
    %c0_i32 = arith.constant 0 : i32
    %c0_i32_0 = arith.constant 0 : i32
    %c0_i32_1 = arith.constant 0 : i32
    return %c0_i32, %c0_i32_0 : i32, i32
  }
  func.func @transform_10(%arg0: i32) -> (i32, i32) {
    %c0_i32 = arith.constant 0 : i32
    %c0_i32_0 = arith.constant 0 : i32
    %c0_i32_1 = arith.constant 0 : i32
    return %c0_i32, %c0_i32_0 : i32, i32
  }
  func.func @transform_11(%arg0: i32) -> (i32, i32) {
    %c0_i32 = arith.constant 0 : i32
    %c0_i32_0 = arith.constant 0 : i32
    %c0_i32_1 = arith.constant 0 : i32
    return %c0_i32, %c0_i32_0 : i32, i32
  }
  func.func @transform_12(%arg0: i32) -> (i32, i32) {
    %c0_i32 = arith.constant 0 : i32
    %c0_i32_0 = arith.constant 0 : i32
    %c0_i32_1 = arith.constant 0 : i32
    return %c0_i32, %c0_i32_0 : i32, i32
  }
}

</mosaic_0001>

<bundles_post_ra>
// kernel: bio_encoder_forward.5
= control target key start
LH: loop header
LB: loop body
LE: loop exit
PB: predicated region body
PF: predicated region fallthrough
CT: control target
= control target key end

     0   :  { %s1058_s18 = smov 0   ;;  %s1282_s0 = inlined_call_operand.vmem [shape: f32[512,16], index: 0, kind: input, shape index: {}]   ;;  %s1283_s1 = inlined_call_operand.vmem [shape: f32[1,16], index: 1, kind: input, shape index: {}]   ;;  %s1284_s2 = inlined_call_operand.vmem [shape: f32[1,16], index: 2, kind: input, shape index: {}]   ;;  %s1285_s3 = inlined_call_operand.vmem [shape: bf16[16,128], index: 3, kind: input, shape index: {}]   ;;  %s1286_s4 = inlined_call_operand.vmem [shape: f32[512,1], index: 4, kind: input, shape index: {}]   ;;  %s1287_s5 = inlined_call_operand.vmem [shape: bf16[512,128], index: 5, kind: output, shape index: {}]  }
   0x1 LB: > { %s873_s19 = sadd.s32 4294967295, %s1025_s18   ;;  %p877_p0 = scmp.ge.s32.totalorder %s1025_s18, 1  ;;  %s1025_s18 = sphi %s1058_s18, %s15_s18  }
   0x2   : > { %p199_p1 = scmp.lt.s32.totalorder %s1025_s18, 3 }
   0x4   : > { %p200_p2 = pnand %p877_p0, %p199_p1 }
   0x5   : > { %s878_s20 = sshll.u32 (!%p200_p2), %s873_s19, 5 }
   0x6   : > { %203 = sbr.rel (%p200_p2) target bundleno = 219 (0xdb), region = 40  ;;  %p233_p3 = scmp.lt.s32.totalorder (!%p200_p2), %s878_s20, 63 }
   0xb   : > { %v906_v0 = vld [vmem:[%s1285_s3] sm:$0xff]  ;;  %v1027_v1 = vmov 0   ;;  %s1289_s20 = smov (!%p233_p3, %s878_s20), 63  ;;  %vm379_vm0 = vcmask 130048  }
   0xc   : > { %1016 = vset.pattern.permute.xlu2 %v1027_v1  ;;  %1015 = vset.pattern.permute.xlu1 %v1027_v1  ;;  %s879_s23 = sshll.u32 %s1289_s20, 3  ;;  %v1075_v2 = vld [vmem:[%s1283_s1] ss:$0 sm:$0xff]  ;;  %s883_s9 = sshll.u32 %s1289_s20, 2 }
   0xd   : > { %1014 = vset.pattern.permute.xlu0 %v1027_v1  ;;  %435 = vmatpush.bf16.msra.mxu0 %v906_v0  ;;  %s1080_s28 = scalar_lea.vmem %s1286_s4, %s879_s23  ;;  %s1085_s6 = scalar_lea.vmem %s1282_s0, %s879_s23  ;;  %v1090_v3 = vld [vmem:[%s1284_s2] ss:$0 sm:$0xff] }
   0xe   : > { %1002 = vmatpush.bf16.msra.mxu1 %v906_v0  ;;  %1003 = vmatpush.bf16.msra.mxu2 %v906_v0  ;;  %v521_v4 = vld [vmem:[%s1080_s28 + $0x20] sm:$0xff]  ;;  %v519_v5 = vld [vmem:[%s1080_s28 + $0x10] sm:$0xff]  ;;  %v252_v8 = vld [vmem:[%s1085_s6 + $0x8] sm:$0xff]  ;;  %s1252_s12 = scalar_lea.vmem %s1287_s5, %s883_s9 }
   0xf   : > { %1004 = vmatpush.bf16.msra.mxu3 %v906_v0  ;;  %v517_v6 = vld [vmem:[%s1080_s28] sm:$0xff]  ;;  %571 = vperm.xlu2 %1016, %v521_v4   ;;  %v288_v11 = vmul.f32 %v1075_v2, %v252_v8  ;;  %v260_v12 = vld [vmem:[%s1085_s6 + $0x48] sm:$0xff]  ;;  %v520_v35 = vld [vmem:[%s1080_s28 + $0x18] sm:$0xff] }
  0x10   : > { %561 = vperm.xlu1 %1015, %v519_v5   ;;  %v251_v7 = vld [vmem:[%s1085_s6] sm:$0xff]  ;;  %551 = vperm.xlu0 %1014, %v517_v6   ;;  %v268_v15 = vld [vmem:[%s1085_s6 + $0x88] sm:$0xff]  ;;  %v296_v16 = vmul.f32 %v1075_v2, %v260_v12  ;;  %v253_v38 = vld [vmem:[%s1085_s6 + $0x10] sm:$0xff] }
  0x11   : > { %v259_v9 = vld [vmem:[%s1085_s6 + $0x40] sm:$0xff]  ;;  %v287_v10 = vmul.f32 %v1075_v2, %v251_v7  ;;  %v304_v18 = vmul.f32 %v1075_v2, %v268_v15  ;;  %v276_v20 = vld [vmem:[%s1085_s6 + $0xc8] sm:$0xff]  ;;  %v324_v22 = vadd.f32 %v1090_v3, %v288_v11  ;;  %v254_v39 = vld [vmem:[%s1085_s6 + $0x18] sm:$0xff]  ;;  %v289_v44 = vmul.f32 %v1075_v2, %v253_v38 }
  0x12   : > { %v295_v13 = vmul.f32 %v1075_v2, %v259_v9  ;;  %v267_v14 = vld [vmem:[%s1085_s6 + $0x80] sm:$0xff]  ;;  %v332_v25 = vadd.f32 %v1090_v3, %v296_v16  ;;  %v312_v28 = vmul.f32 %v1075_v2, %v276_v20  ;;  %v522_v34 = vld [vmem:[%s1080_s28 + $0x28] sm:$0xff]  ;;  %v261_v40 = vld [vmem:[%s1085_s6 + $0x50] sm:$0xff]  ;;  %v290_v45 = vmul.f32 %v1075_v2, %v254_v39 }
  0x13   : > { %v303_v17 = vmul.f32 %v1075_v2, %v267_v14  ;;  %v275_v19 = vld [vmem:[%s1085_s6 + $0xc0] sm:$0xff]  ;;  %v323_v21 = vadd.f32 %v1090_v3, %v287_v10  ;;  %v340_v27 = vadd.f32 %v1090_v3, %v304_v18  ;;  %v518_v36 = vld [vmem:[%s1080_s28 + $0x8] sm:$0xff]  ;;  %v262_v41 = vld [vmem:[%s1085_s6 + $0x58] sm:$0xff]  ;;  %v297_v48 = vmul.f32 %v1075_v2, %v261_v40 }
  0x14   : > { %v331_v23 = vadd.f32 %v1090_v3, %v295_v13  ;;  %v311_v24 = vmul.f32 %v1075_v2, %v275_v19  ;;  %v348_v33 = vadd.f32 %v1090_v3, %v312_v28  ;;  %v269_v42 = vld [vmem:[%s1085_s6 + $0x90] sm:$0xff]  ;;  %v270_v43 = vld [vmem:[%s1085_s6 + $0x98] sm:$0xff]  ;;  %v298_v49 = vmul.f32 %v1075_v2, %v262_v41  ;;  %v525_v52 = vld [vmem:[%s1080_s28 + $0x40] sm:$0xff] }
  0x15   : > { %v339_v26 = vadd.f32 %v1090_v3, %v303_v17  ;;  %v355_v29 = vpack.c.bf16 %v324_v22, %v323_v21  ;;  %v277_v46 = vld [vmem:[%s1085_s6 + $0xd0] sm:$0xff]  ;;  %v278_v47 = vld [vmem:[%s1085_s6 + $0xd8] sm:$0xff]  ;;  %v305_v50 = vmul.f32 %v1075_v2, %v269_v42  ;;  %v306_v51 = vmul.f32 %v1075_v2, %v270_v43  ;;  %v526_v9 = vld [vmem:[%s1080_s28 + $0x48] sm:$0xff] }
  0x16   : > { %v347_v30 = vadd.f32 %v1090_v3, %v311_v24  ;;  %v359_v31 = vpack.c.bf16 %v332_v25, %v331_v23  ;;  %v524_v53 = vld [vmem:[%s1080_s28 + $0x38] sm:$0xff]  ;;  %v313_v54 = vmul.f32 %v1075_v2, %v277_v46  ;;  %v314_v55 = vmul.f32 %v1075_v2, %v278_v47  ;;  %v523_v56 = vld [vmem:[%s1080_s28 + $0x30] sm:$0xff]  ;;  %v255_v10 = vld [vmem:[%s1085_s6 + $0x20] sm:$0xff] }
  0x17   : > { %v363_v32 = vpack.c.bf16 %v340_v27, %v339_v26  ;;  %888 = vmatmul.msk.bf16.vlgmr.msra.gmra.mxu0 %vm379_vm0, %v355_v29  ;;  %576 = vperm.xlu2 %1016, %v522_v34   ;;  %v325_v57 = vadd.f32 %v1090_v3, %v289_v44  ;;  %v326_v58 = vadd.f32 %v1090_v3, %v290_v45  ;;  %v528_v7 = vld [vmem:[%s1080_s28 + $0x58] sm:$0xff]  ;;  %v527_v8 = vld [vmem:[%s1080_s28 + $0x50] sm:$0xff]  ;;  %v256_v11 = vld [vmem:[%s1085_s6 + $0x28] sm:$0xff] }
  0x18   : > { %892 = vmatmul.msk.bf16.vlgmr.msra.gmra.mxu1 %vm379_vm0, %v359_v31  ;;  %v367_v37 = vpack.c.bf16 %v348_v33, %v347_v30  ;;  %566 = vperm.xlu1 %1015, %v520_v35   ;;  %v333_v59 = vadd.f32 %v1090_v3, %v297_v48  ;;  %v334_v60 = vadd.f32 %v1090_v3, %v298_v49  ;;  %v263_v12 = vld [vmem:[%s1085_s6 + $0x60] sm:$0xff]  ;;  %v264_v13 = vld [vmem:[%s1085_s6 + $0x68] sm:$0xff]  ;;  %v531_v24 = vld [vmem:[%s1080_s28 + $0x70] sm:$0xff] }
  0x19   : > { %896 = vmatmul.msk.bf16.vlgmr.msra.gmra.mxu2 %vm379_vm0, %v363_v32  ;;  %556 = vperm.xlu0 %1014, %v518_v36   ;;  %v341_v61 = vadd.f32 %v1090_v3, %v305_v50  ;;  %v342_v62 = vadd.f32 %v1090_v3, %v306_v51  ;;  %v349_v63 = vadd.f32 %v1090_v3, %v313_v54  ;;  %v271_v14 = vld [vmem:[%s1085_s6 + $0xa0] sm:$0xff]  ;;  %v272_v15 = vld [vmem:[%s1085_s6 + $0xa8] sm:$0xff]  ;;  %v532_v43 = vld [vmem:[%s1080_s28 + $0x78] sm:$0xff] }
  0x1a   : > { %900 = vmatmul.msk.bf16.vlgmr.msra.gmra.mxu3 %vm379_vm0, %v367_v37  ;;  %v350_v0 = vadd.f32 %v1090_v3, %v314_v55  ;;  %v356_v1 = vpack.c.bf16 %v326_v58, %v325_v57  ;;  %v360_v4 = vpack.c.bf16 %v334_v60, %v333_v59  ;;  %v291_v16 = vmul.f32 %v1075_v2, %v255_v10  ;;  %v279_v18 = vld [vmem:[%s1085_s6 + $0xe0] sm:$0xff]  ;;  %v280_v19 = vld [vmem:[%s1085_s6 + $0xe8] sm:$0xff]  ;;  %v257_v44 = vld [vmem:[%s1085_s6 + $0x30] sm:$0xff] }
  0x1b   : > { %v364_v5 = vpack.c.bf16 %v342_v62, %v341_v61  ;;  %v292_v17 = vmul.f32 %v1075_v2, %v256_v11  ;;  %v299_v20 = vmul.f32 %v1075_v2, %v263_v12  ;;  %v300_v21 = vmul.f32 %v1075_v2, %v264_v13  ;;  %v530_v25 = vld [vmem:[%s1080_s28 + $0x68] sm:$0xff]  ;;  %v529_v28 = vld [vmem:[%s1080_s28 + $0x60] sm:$0xff]  ;;  %v258_v45 = vld [vmem:[%s1085_s6 + $0x38] sm:$0xff] }
  0x1c   : > { %v368_v6 = vpack.c.bf16 %v350_v0, %v349_v63  ;;  %v307_v22 = vmul.f32 %v1075_v2, %v271_v14  ;;  %v308_v23 = vmul.f32 %v1075_v2, %v272_v15  ;;  %v315_v26 = vmul.f32 %v1075_v2, %v279_v18  ;;  %v534_v41 = vld [vmem:[%s1080_s28 + $0x88] sm:$0xff]  ;;  %v533_v42 = vld [vmem:[%s1080_s28 + $0x80] sm:$0xff]  ;;  %v265_v46 = vld [vmem:[%s1085_s6 + $0x70] sm:$0xff] }
  0x1d   : > { %v316_v27 = vmul.f32 %v1075_v2, %v280_v19  ;;  %v327_v29 = vadd.f32 %v1090_v3, %v291_v16  ;;  %v328_v30 = vadd.f32 %v1090_v3, %v292_v17  ;;  %v335_v31 = vadd.f32 %v1090_v3, %v299_v20  ;;  %v266_v47 = vld [vmem:[%s1085_s6 + $0x78] sm:$0xff]  ;;  %v273_v48 = vld [vmem:[%s1085_s6 + $0xb0] sm:$0xff]  ;;  %v537_v58 = vld [vmem:[%s1080_s28 + $0xa0] sm:$0xff] }
  0x1e   : > { %v336_v32 = vadd.f32 %v1090_v3, %v300_v21  ;;  %v343_v33 = vadd.f32 %v1090_v3, %v307_v22  ;;  %v344_v34 = vadd.f32 %v1090_v3, %v308_v23  ;;  %v351_v35 = vadd.f32 %v1090_v3, %v315_v26  ;;  %v274_v49 = vld [vmem:[%s1085_s6 + $0xb8] sm:$0xff]  ;;  %v535_v62 = vld [vmem:[%s1080_s28 + $0x90] sm:$0xff]  ;;  %v538_v14 = vld [vmem:[%s1080_s28 + $0xa8] sm:$0xff] }
  0x1f   : > { %591 = vperm.xlu2 %1016, %v525_v52   ;;  %v352_v36 = vadd.f32 %v1090_v3, %v316_v27  ;;  %v357_v37 = vpack.c.bf16 %v328_v30, %v327_v29  ;;  %v293_v50 = vmul.f32 %v1075_v2, %v257_v44  ;;  %v294_v51 = vmul.f32 %v1075_v2, %v258_v45  ;;  %v281_v52 = vld [vmem:[%s1085_s6 + $0xf0] sm:$0xff]  ;;  %v536_v59 = vld [vmem:[%s1080_s28 + $0x98] sm:$0xff]  ;;  %v542_v15 = vld [vmem:[%s1080_s28 + $0xc8] sm:$0xff] }
  0x20   : > { %586 = vperm.xlu1 %1015, %v524_v53   ;;  %v361_v38 = vpack.c.bf16 %v336_v32, %v335_v31  ;;  %v365_v39 = vpack.c.bf16 %v344_v34, %v343_v33  ;;  %v282_v53 = vld [vmem:[%s1085_s6 + $0xf8] sm:$0xff]  ;;  %v301_v54 = vmul.f32 %v1075_v2, %v265_v46  ;;  %v302_v55 = vmul.f32 %v1075_v2, %v266_v47  ;;  %v539_v13 = vld [vmem:[%s1080_s28 + $0xb0] sm:$0xff]  ;;  %v541_v16 = vld [vmem:[%s1080_s28 + $0xc0] sm:$0xff] }
  0x21   : > { %581 = vperm.xlu0 %1014, %v523_v56   ;;  %v369_v40 = vpack.c.bf16 %v352_v36, %v351_v35  ;;  %v309_v56 = vmul.f32 %v1075_v2, %v273_v48  ;;  %v310_v57 = vmul.f32 %v1075_v2, %v274_v49  ;;  %v317_v60 = vmul.f32 %v1075_v2, %v281_v52  ;;  %v540_v12 = vld [vmem:[%s1080_s28 + $0xb8] sm:$0xff]  ;;  %v546_v17 = vld [vmem:[%s1080_s28 + $0xe8] sm:$0xff]  ;;  %v545_v18 = vld [vmem:[%s1080_s28 + $0xe0] sm:$0xff] }
  0x22   : > { %v318_v61 = vmul.f32 %v1075_v2, %v282_v53  ;;  %v329_v63 = vadd.f32 %v1090_v3, %v293_v50  ;;  %v330_v0 = vadd.f32 %v1090_v3, %v294_v51  ;;  %v544_v19 = vld [vmem:[%s1080_s28 + $0xd8] sm:$0xff]  ;;  %v547_v21 = vld [vmem:[%s1080_s28 + $0xf0] sm:$0xff] }
  0x23   : > { %v353_v2 = vadd.f32 %v1090_v3, %v317_v60  ;;  %v548_v20 = vld [vmem:[%s1080_s28 + $0xf8] sm:$0xff] }
  0x27   : > { %889 = vmatmul.msk.bf16.gmra.mxu0 %vm379_vm0, %v356_v1  ;;  %606 = vperm.xlu2 %1016, %v528_v7   ;;  %v337_v1 = vadd.f32 %v1090_v3, %v301_v54  ;;  %v354_v7 = vadd.f32 %v1090_v3, %v318_v61 }
  0x28   : > { %893 = vmatmul.msk.bf16.gmra.mxu1 %vm379_vm0, %v360_v4  ;;  %601 = vperm.xlu1 %1015, %v527_v8   ;;  %v338_v4 = vadd.f32 %v1090_v3, %v302_v55  ;;  %v358_v8 = vpack.c.bf16 %v330_v0, %v329_v63 }
  0x29   : > { %897 = vmatmul.msk.bf16.gmra.mxu2 %vm379_vm0, %v364_v5  ;;  %596 = vperm.xlu0 %1014, %v526_v9   ;;  %v345_v5 = vadd.f32 %v1090_v3, %v309_v56  ;;  %v370_v11 = vpack.c.bf16 %v354_v7, %v353_v2 }
  0x2a   : > { %901 = vmatmul.msk.bf16.gmra.mxu3 %vm379_vm0, %v368_v6  ;;  %v346_v6 = vadd.f32 %v1090_v3, %v310_v57  ;;  %v362_v9 = vpack.c.bf16 %v338_v4, %v337_v1  ;;  %v543_v3 = vld [vmem:[%s1080_s28 + $0xd0] sm:$0xff] }
  0x2c   : > { %v366_v10 = vpack.c.bf16 %v346_v6, %v345_v5 }
  0x2f   : > { %621 = vperm.xlu2 %1016, %v531_v24  }
  0x30   : > { %616 = vperm.xlu1 %1015, %v530_v25  }
  0x31   : > { %611 = vperm.xlu0 %1014, %v529_v28  }
  0x37   : > { %890 = vmatmul.msk.bf16.gmra.mxu0 %vm379_vm0, %v357_v37  ;;  %636 = vperm.xlu2 %1016, %v534_v41  }
  0x38   : > { %894 = vmatmul.msk.bf16.gmra.mxu1 %vm379_vm0, %v361_v38  ;;  %631 = vperm.xlu1 %1015, %v533_v42  }
  0x39   : > { %898 = vmatmul.msk.bf16.gmra.mxu2 %vm379_vm0, %v365_v39  ;;  %626 = vperm.xlu0 %1014, %v532_v43  }
  0x3a   : > { %902 = vmatmul.msk.bf16.gmra.mxu3 %vm379_vm0, %v369_v40 }
  0x3f   : > { %651 = vperm.xlu2 %1016, %v537_v58  }
  0x40   : > { %646 = vperm.xlu1 %1015, %v536_v59  }
  0x41   : > { %641 = vperm.xlu0 %1014, %v535_v62  }
  0x47   : > { %891 = vmatmul.msk.bf16.gmra.mxu0 %vm379_vm0, %v358_v8  ;;  %666 = vperm.xlu2 %1016, %v540_v12  }
  0x48   : > { %895 = vmatmul.msk.bf16.gmra.mxu1 %vm379_vm0, %v362_v9  ;;  %661 = vperm.xlu1 %1015, %v539_v13  }
  0x49   : > { %899 = vmatmul.msk.bf16.gmra.mxu2 %vm379_vm0, %v366_v10  ;;  %656 = vperm.xlu0 %1014, %v538_v14  }
  0x4a   : > { %903 = vmatmul.msk.bf16.gmra.mxu3 %vm379_vm0, %v370_v11 }
  0x4f   : > { %681 = vperm.xlu2 %1016, %v543_v3  }
  0x50   : > { %676 = vperm.xlu1 %1015, %v542_v15  }
  0x51   : > { %671 = vperm.xlu0 %1014, %v541_v16  }
  0x57   : > { %696 = vperm.xlu2 %1016, %v546_v17  }
  0x58   : > { %691 = vperm.xlu1 %1015, %v545_v18  }
  0x59   : > { %686 = vperm.xlu0 %1014, %v544_v19  }
  0x60   : > { %706 = vperm.xlu1 %1015, %v548_v20  }
  0x61   : > { %701 = vperm.xlu0 %1014, %v547_v21  }
  0x69   : > { %v1236_v22 = vpop.permute.xlu2 %571 }
  0x71   : > { %v1238_v23 = vpop.permute.xlu2 %576 }
  0x79   : > { %v592_v25 = vpop.permute.xlu2 %591 }
  0x81   : > { %v607_v29 = vpop.permute.xlu2 %606 }
  0x82   : > { %v562_v24 = vpop.permute.xlu1 %561  ;;  %v552_v26 = vpop.permute.xlu0 %551 }
  0x89   : > { %v1244_v34 = vpop.permute.xlu2 %621 }
  0x8a   : > { %v567_v27 = vpop.permute.xlu1 %566 }
  0x8b   : > { %v557_v28 = vpop.permute.xlu0 %556 }
  0x91   : > { %v637_v46 = vpop.permute.xlu2 %636 }
  0x92   : > { %v1240_v30 = vpop.permute.xlu1 %586 }
  0x93   : > { %v1242_v31 = vpop.permute.xlu0 %581 }
  0x94   : > { %v437_v32 = vpop.f32.mrf.mxu0 }
  0x95   : > { %v457_v33 = vpop.f32.mrf.mxu1  ;;  %v709_v40 = vmul.f32 %v552_v26, %v437_v32 }
  0x96   : > { %v717_v43 = vmul.f32 %v592_v25, %v457_v33 }
  0x99   : > { %v652_v54 = vpop.permute.xlu2 %651 }
  0x9a   : > { %v602_v36 = vpop.permute.xlu1 %601 }
  0x9b   : > { %v597_v37 = vpop.permute.xlu0 %596 }
  0x9c   : > { %v477_v35 = vpop.f32.mrf.mxu2  ;;  %v439_v39 = vpop.f32.mrf.mxu0 }
  0x9d   : > { %v1247_v38 = vpop.f32.mrf.mxu3  ;;  %v710_v41 = vmul.f32 %v557_v28, %v439_v39  ;;  %v459_v42 = vpop.f32.mrf.mxu1 }
  0x9e   : > { %v718_v44 = vmul.f32 %v597_v37, %v459_v42 }
  0x9f   : > { %v910_v45 = vpack.c.bf16 %v710_v41, %v709_v40 }
  0xa0   : > { %v930_v47 = vpack.c.bf16 %v718_v44, %v717_v43 }
  0xa1   : > { %911 = vst [vmem:[%s1252_s12] sm:$0xff] %v910_v45   ;;  %v667_v3 = vpop.permute.xlu2 %666 }
  0xa2   : > { %990 = vst [vmem:[%s1252_s12 + $0x20] sm:$0xff] %v930_v47   ;;  %v617_v49 = vpop.permute.xlu1 %616 }
  0xa3   : > { %v612_v50 = vpop.permute.xlu0 %611 }
  0xa4   : > { %v479_v48 = vpop.f32.mrf.mxu2  ;;  %v442_v52 = vpop.f32.mrf.mxu0 }
  0xa5   : > { %v499_v51 = vpop.f32.mrf.mxu3  ;;  %v462_v53 = vpop.f32.mrf.mxu1  ;;  %v726_v58 = vmul.f32 %v637_v46, %v479_v48  ;;  %v711_v62 = vmul.f32 %v562_v24, %v442_v52 }
  0xa6   : > { %v719_v1 = vmul.f32 %v602_v36, %v462_v53 }
  0xaa   : > { %v632_v56 = vpop.permute.xlu1 %631 }
  0xab   : > { %v1256_v57 = vpop.permute.xlu0 %626  ;;  %v725_v60 = vmul.f32 %v632_v56, %v477_v35 }
  0xac   : > { %v482_v55 = vpop.f32.mrf.mxu2  ;;  %v444_v61 = vpop.f32.mrf.mxu0 }
  0xad   : > { %v502_v59 = vpop.f32.mrf.mxu3  ;;  %v712_v63 = vmul.f32 %v567_v27, %v444_v61  ;;  %v464_v0 = vpop.f32.mrf.mxu1  ;;  %v950_v4 = vpack.c.bf16 %v726_v58, %v725_v60 }
  0xae   : > { %v720_v5 = vmul.f32 %v607_v29, %v464_v0  ;;  %v682_v29 = vpop.permute.xlu2 %681 }
  0xaf   : > { %v915_v6 = vpack.c.bf16 %v712_v63, %v711_v62  ;;  %994 = vst [vmem:[%s1252_s12 + $0x40] sm:$0xff] %v950_v4  }
  0xb0   : > { %v935_v2 = vpack.c.bf16 %v720_v5, %v719_v1 }
  0xb1   : > { %987 = vst [vmem:[%s1252_s12 + $0x8] sm:$0xff] %v915_v6  }
  0xb2   : > { %991 = vst [vmem:[%s1252_s12 + $0x28] sm:$0xff] %v935_v2   ;;  %v647_v8 = vpop.permute.xlu1 %646 }
  0xb3   : > { %v642_v9 = vpop.permute.xlu0 %641 }
  0xb4   : > { %v484_v7 = vpop.f32.mrf.mxu2  ;;  %v727_v12 = vmul.f32 %v642_v9, %v482_v55  ;;  %v447_v13 = vpop.f32.mrf.mxu0 }
  0xb5   : > { %v504_v10 = vpop.f32.mrf.mxu3  ;;  %v728_v11 = vmul.f32 %v647_v8, %v484_v7  ;;  %v467_v14 = vpop.f32.mrf.mxu1  ;;  %v713_v21 = vmul.f32 %v1236_v22, %v447_v13 }
  0xb6   : > { %v721_v26 = vmul.f32 %v612_v50, %v467_v14  ;;  %v697_v45 = vpop.permute.xlu2 %696 }
  0xb7   : > { %v955_v15 = vpack.c.bf16 %v728_v11, %v727_v12 }
  0xb9   : > { %995 = vst [vmem:[%s1252_s12 + $0x48] sm:$0xff] %v955_v15  }
  0xba   : > { %v662_v17 = vpop.permute.xlu1 %661 }
  0xbb   : > { %v657_v18 = vpop.permute.xlu0 %656 }
  0xbc   : > { %v487_v16 = vpop.f32.mrf.mxu2  ;;  %v449_v20 = vpop.f32.mrf.mxu0 }
  0xbd   : > { %v507_v19 = vpop.f32.mrf.mxu3  ;;  %v714_v24 = vmul.f32 %v1238_v23, %v449_v20  ;;  %v469_v25 = vpop.f32.mrf.mxu1  ;;  %v729_v35 = vmul.f32 %v652_v54, %v487_v16 }
  0xbe   : > { %v722_v27 = vmul.f32 %v617_v49, %v469_v25  ;;  %v735_v49 = vmul.f32 %v682_v29, %v502_v59 }
  0xbf   : > { %v920_v28 = vpack.c.bf16 %v714_v24, %v713_v21 }
  0xc0   : > { %v940_v32 = vpack.c.bf16 %v722_v27, %v721_v26 }
  0xc1   : > { %988 = vst [vmem:[%s1252_s12 + $0x10] sm:$0xff] %v920_v28  }
  0xc2   : > { %992 = vst [vmem:[%s1252_s12 + $0x30] sm:$0xff] %v940_v32   ;;  %v677_v37 = vpop.permute.xlu1 %676 }
  0xc3   : > { %v672_v39 = vpop.permute.xlu0 %671  ;;  %v734_v41 = vmul.f32 %v677_v37, %v499_v51 }
  0xc4   : > { %v489_v33 = vpop.f32.mrf.mxu2  ;;  %v733_v22 = vmul.f32 %v672_v39, %v1247_v38  ;;  %v452_v23 = vpop.f32.mrf.mxu0 }
  0xc5   : > { %v730_v36 = vmul.f32 %v657_v18, %v489_v33  ;;  %v509_v40 = vpop.f32.mrf.mxu3  ;;  %v472_v43 = vpop.f32.mrf.mxu1  ;;  %v715_v54 = vmul.f32 %v1242_v31, %v452_v23 }
  0xc6   : > { %v970_v44 = vpack.c.bf16 %v734_v41, %v733_v22  ;;  %v738_v50 = vmul.f32 %v697_v45, %v509_v40  ;;  %v723_v58 = vmul.f32 %v1244_v34, %v472_v43 }
  0xc7   : > { %v960_v42 = vpack.c.bf16 %v730_v36, %v729_v35 }
  0xc8   : > { %998 = vst [vmem:[%s1252_s12 + $0x60] sm:$0xff] %v970_v44  }
  0xc9   : > { %996 = vst [vmem:[%s1252_s12 + $0x50] sm:$0xff] %v960_v42  }
  0xca   : > { %v692_v47 = vpop.permute.xlu1 %691 }
  0xcb   : > { %v687_v48 = vpop.permute.xlu0 %686  ;;  %v737_v53 = vmul.f32 %v692_v47, %v507_v19 }
  0xcc   : > { %v492_v46 = vpop.f32.mrf.mxu2  ;;  %v736_v51 = vmul.f32 %v687_v48, %v504_v10  ;;  %v454_v38 = vpop.f32.mrf.mxu0 }
  0xcd   : > { %v512_v52 = vpop.f32.mrf.mxu3  ;;  %v716_v55 = vmul.f32 %v1240_v30, %v454_v38  ;;  %v474_v56 = vpop.f32.mrf.mxu1  ;;  %v980_v60 = vpack.c.bf16 %v738_v50, %v737_v53  ;;  %v731_v1 = vmul.f32 %v662_v17, %v492_v46 }
  0xce   : > { %v975_v61 = vpack.c.bf16 %v736_v51, %v735_v49  ;;  %v724_v62 = vmul.f32 %v1256_v57, %v474_v56 }
  0xcf   : > { %v925_v59 = vpack.c.bf16 %v716_v55, %v715_v54  ;;  %1000 = vst [vmem:[%s1252_s12 + $0x70] sm:$0xff] %v980_v60  }
  0xd0   : > { %v945_v63 = vpack.c.bf16 %v724_v62, %v723_v58  ;;  %999 = vst [vmem:[%s1252_s12 + $0x68] sm:$0xff] %v975_v61  }
  0xd1   : > { %989 = vst [vmem:[%s1252_s12 + $0x18] sm:$0xff] %v925_v59  }
  0xd2   : > { %993 = vst [vmem:[%s1252_s12 + $0x38] sm:$0xff] %v945_v63   ;;  %v707_v4 = vpop.permute.xlu1 %706 }
  0xd3   : > { %v702_v30 = vpop.permute.xlu0 %701 }
  0xd4   : > { %v494_v0 = vpop.f32.mrf.mxu2  ;;  %v739_v6 = vmul.f32 %v702_v30, %v512_v52 }
  0xd5   : > { %v732_v31 = vmul.f32 %v667_v3, %v494_v0  ;;  %v514_v5 = vpop.f32.mrf.mxu3 }
  0xd6   : > { %v740_v2 = vmul.f32 %v707_v4, %v514_v5 }
  0xd7   : > { %v965_v34 = vpack.c.bf16 %v732_v31, %v731_v1 }
  0xd8   : > { %v985_v7 = vpack.c.bf16 %v740_v2, %v739_v6 }
  0xd9   : > { %997 = vst [vmem:[%s1252_s12 + $0x58] sm:$0xff] %v965_v34  }
  0xda   : > { %1001 = vst [vmem:[%s1252_s12 + $0x78] sm:$0xff] %v985_v7  }
  0xdb PF: > { %s15_s18 = sadd.s32 1, %s1025_s18  }
  0xdc   : > { %p12_p4 = scmp.ge.s32.totalorder %s15_s18, 4  }
  0xde   :  { %14 = sbr.rel (!%p12_p4) target bundleno = 1 (0x1), region = 73 }

// kernel: bio_encoder_forward.7
= control target key start
LH: loop header
LB: loop body
LE: loop exit
PB: predicated region body
PF: predicated region fallthrough
CT: control target
= control target key end

     0   :  { %s1215_s18 = smov 0   ;;  %s1441_s0 = inlined_call_operand.vmem [shape: bf16[512,128], index: 0, kind: input, shape index: {}]   ;;  %s1442_s1 = inlined_call_operand.vmem [shape: f32[1,128], index: 1, kind: input, shape index: {}]   ;;  %s1443_s2 = inlined_call_operand.vmem [shape: f32[1,128], index: 2, kind: input, shape index: {}]   ;;  %s1444_s3 = inlined_call_operand.vmem [shape: bf16[128,128], index: 3, kind: input, shape index: {}]   ;;  %s1445_s4 = inlined_call_operand.vmem [shape: f32[512,1], index: 4, kind: input, shape index: {}]   ;;  %s1446_s5 = inlined_call_operand.vmem [shape: bf16[512,128], index: 5, kind: output, shape index: {}]  }
   0x1 LB: > { %s911_s19 = sadd.s32 4294967295, %s1182_s18   ;;  %p915_p0 = scmp.ge.s32.totalorder %s1182_s18, 1  ;;  %s1182_s18 = sphi %s1215_s18, %s15_s18  }
   0x2   : > { %p199_p1 = scmp.lt.s32.totalorder %s1182_s18, 3 }
   0x4   : > { %p200_p2 = pnand %p915_p0, %p199_p1 }
   0x5   : > { %s916_s22 = sshll.u32 (!%p200_p2), %s911_s19, 5 }
   0x6   : > { %203 = sbr.rel (%p200_p2) target bundleno = 239 (0xef), region = 40  ;;  %p233_p3 = scmp.lt.s32.totalorder (!%p200_p2), %s916_s22, 63 }
   0xb   : > { %v963_v0 = vld [vmem:[%s1444_s3 + $0x38] sm:$0xff]  ;;  %v1184_v1 = vmov 0   ;;  %v962_v2 = vld [vmem:[%s1444_s3 + $0x30] sm:$0xff]  ;;  %s1448_s22 = smov (!%p233_p3, %s916_s22), 63  ;;  %v961_v3 = vld [vmem:[%s1444_s3 + $0x28] sm:$0xff] }
   0xc   : > { %1173 = vset.pattern.permute.xlu2 %v1184_v1  ;;  %1172 = vset.pattern.permute.xlu1 %v1184_v1  ;;  %s919_s25 = sshll.u32 %s1448_s22, 3  ;;  %s917_s6 = sshll.u32 %s1448_s22, 2  ;;  %v960_v7 = vld [vmem:[%s1444_s3 + $0x20] sm:$0xff]  ;;  %v959_v10 = vld [vmem:[%s1444_s3 + $0x18] sm:$0xff]  ;;  %v958_v20 = vld [vmem:[%s1444_s3 + $0x10] sm:$0xff] }
   0xd   : > { %466 = vmatpush.bf16.msra.mxu0 %v963_v0  ;;  %1138 = vmatpush.bf16.msra.mxu1 %v963_v0  ;;  %s1235_s28 = scalar_lea.vmem %s1445_s4, %s919_s25  ;;  %s1252_s11 = scalar_lea.vmem %s1441_s0, %s917_s6  ;;  %v1267_v18 = vld [vmem:[%s1442_s1] ss:$0 sm:$0xff]  ;;  %v957_v33 = vld [vmem:[%s1444_s3 + $0x8] sm:$0xff] }
   0xe   : > { %1139 = vmatpush.bf16.msra.mxu2 %v963_v0  ;;  %1140 = vmatpush.bf16.msra.mxu3 %v963_v0  ;;  %v559_v4 = vld [vmem:[%s1235_s28 + $0x20] sm:$0xff]  ;;  %v557_v5 = vld [vmem:[%s1235_s28 + $0x10] sm:$0xff]  ;;  %v560_v8 = vld [vmem:[%s1235_s28 + $0x28] sm:$0xff] }
   0xf   : > { %1171 = vset.pattern.permute.xlu0 %v1184_v1  ;;  %v555_v6 = vld [vmem:[%s1235_s28] sm:$0xff]  ;;  %609 = vperm.xlu2 %1173, %v559_v4   ;;  %v558_v9 = vld [vmem:[%s1235_s28 + $0x18] sm:$0xff]  ;;  %v556_v11 = vld [vmem:[%s1235_s28 + $0x8] sm:$0xff] }
  0x10   : > { %599 = vperm.xlu1 %1172, %v557_v5   ;;  %589 = vperm.xlu0 %1171, %v555_v6   ;;  %v965_v12 = vld [vmem:[%s1252_s11] sm:$0xff]   ;;  %v562_v27 = vld [vmem:[%s1235_s28 + $0x38] sm:$0xff]  ;;  %v561_v32 = vld [vmem:[%s1235_s28 + $0x30] sm:$0xff] }
  0x11   : > { %467 = vmatpush.bf16.msra.mxu0 %v962_v2  ;;  %1141 = vmatpush.bf16.msra.mxu1 %v962_v2  ;;  %v1111_v13 = vld [vmem:[%s1252_s11 + $0x20] sm:$0xff]   ;;  %v966_v16 = vunpack.c.l.bf16 %v965_v12  ;;  %v967_v17 = vunpack.c.h.bf16 %v965_v12  ;;  %v566_v48 = vld [vmem:[%s1235_s28 + $0x58] sm:$0xff]  ;;  %v565_v49 = vld [vmem:[%s1235_s28 + $0x50] sm:$0xff] }
  0x12   : > { %1142 = vmatpush.bf16.msra.mxu2 %v962_v2  ;;  %1143 = vmatpush.bf16.msra.mxu3 %v962_v2  ;;  %v1115_v14 = vld [vmem:[%s1252_s11 + $0x40] sm:$0xff]   ;;  %v982_v19 = vunpack.c.l.bf16 %v1111_v13  ;;  %v983_v21 = vunpack.c.h.bf16 %v1111_v13  ;;  %v564_v51 = vld [vmem:[%s1235_s28 + $0x48] sm:$0xff] }
  0x13   : > { %v1119_v15 = vld [vmem:[%s1252_s11 + $0x60] sm:$0xff]   ;;  %v998_v22 = vunpack.c.l.bf16 %v1115_v14  ;;  %v999_v23 = vunpack.c.h.bf16 %v1115_v14  ;;  %v318_v28 = vmul.f32 %v1267_v18, %v966_v16  ;;  %v319_v29 = vmul.f32 %v1267_v18, %v967_v17  ;;  %v1108_v54 = vld [vmem:[%s1252_s11 + $0x8] sm:$0xff]  }
  0x14   : > { %v1014_v24 = vunpack.c.l.bf16 %v1119_v15  ;;  %v1015_v25 = vunpack.c.h.bf16 %v1119_v15  ;;  %v563_v26 = vld [vmem:[%s1235_s28 + $0x40] sm:$0xff]  ;;  %v326_v31 = vmul.f32 %v1267_v18, %v982_v19  ;;  %v327_v34 = vmul.f32 %v1267_v18, %v983_v21  ;;  %v1112_v56 = vld [vmem:[%s1252_s11 + $0x28] sm:$0xff]  }
  0x15   : > { %468 = vmatpush.bf16.msra.mxu0 %v961_v3  ;;  %1144 = vmatpush.bf16.msra.mxu1 %v961_v3  ;;  %v1279_v30 = vld [vmem:[%s1443_s2] ss:$0 sm:$0xff]  ;;  %v334_v35 = vmul.f32 %v1267_v18, %v998_v22  ;;  %v335_v36 = vmul.f32 %v1267_v18, %v999_v23  ;;  %v1116_v57 = vld [vmem:[%s1252_s11 + $0x48] sm:$0xff]   ;;  %v970_v59 = vunpack.c.l.bf16 %v1108_v54  ;;  %v971_v60 = vunpack.c.h.bf16 %v1108_v54 }
  0x16   : > { %1145 = vmatpush.bf16.msra.mxu2 %v961_v3  ;;  %1146 = vmatpush.bf16.msra.mxu3 %v961_v3  ;;  %v342_v37 = vmul.f32 %v1267_v18, %v1014_v24  ;;  %v343_v38 = vmul.f32 %v1267_v18, %v1015_v25  ;;  %v354_v39 = vadd.f32 %v1279_v30, %v318_v28  ;;  %v956_v42 = vld [vmem:[%s1444_s3] sm:$0xff]  ;;  %v1120_v58 = vld [vmem:[%s1252_s11 + $0x68] sm:$0xff]   ;;  %v986_v61 = vunpack.c.l.bf16 %v1112_v56  ;;  %v569_v3 = vld [vmem:[%s1235_s28 + $0x70] sm:$0xff] }
  0x17   : > { %614 = vperm.xlu2 %1173, %v560_v8   ;;  %v355_v40 = vadd.f32 %v1279_v30, %v319_v29  ;;  %v362_v41 = vadd.f32 %v1279_v30, %v326_v31  ;;  %v363_v43 = vadd.f32 %v1279_v30, %v327_v34  ;;  %v370_v44 = vadd.f32 %v1279_v30, %v334_v35  ;;  %v568_v4 = vld [vmem:[%s1235_s28 + $0x68] sm:$0xff]  ;;  %v571_v24 = vld [vmem:[%s1235_s28 + $0x80] sm:$0xff]  ;;  %v1109_v29 = vld [vmem:[%s1252_s11 + $0x10] sm:$0xff]  }
  0x18   : > { %604 = vperm.xlu1 %1172, %v558_v9   ;;  %594 = vperm.xlu0 %1171, %v556_v11   ;;  %v371_v45 = vadd.f32 %v1279_v30, %v335_v36  ;;  %v378_v46 = vadd.f32 %v1279_v30, %v342_v37  ;;  %v379_v47 = vadd.f32 %v1279_v30, %v343_v38  ;;  %v987_v62 = vunpack.c.h.bf16 %v1112_v56  ;;  %v572_v23 = vld [vmem:[%s1235_s28 + $0x88] sm:$0xff]  ;;  %v1121_v34 = vld [vmem:[%s1252_s11 + $0x70] sm:$0xff]  }
  0x19   : > { %469 = vmatpush.bf16.msra.mxu0 %v960_v7  ;;  %1147 = vmatpush.bf16.msra.mxu1 %v960_v7  ;;  %v386_v50 = vpack.c.bf16 %v355_v40, %v354_v39  ;;  %v390_v52 = vpack.c.bf16 %v363_v43, %v362_v41  ;;  %v1002_v63 = vunpack.c.l.bf16 %v1116_v57  ;;  %v1003_v0 = vunpack.c.h.bf16 %v1116_v57  ;;  %v575_v43 = vld [vmem:[%s1235_s28 + $0xa0] sm:$0xff] }
  0x1a   : > { %1148 = vmatpush.bf16.msra.mxu2 %v960_v7  ;;  %1149 = vmatpush.bf16.msra.mxu3 %v960_v7  ;;  %v394_v53 = vpack.c.bf16 %v371_v45, %v370_v44  ;;  %v398_v55 = vpack.c.bf16 %v379_v47, %v378_v46  ;;  %v1018_v1 = vunpack.c.l.bf16 %v1120_v58  ;;  %v1019_v2 = vunpack.c.h.bf16 %v1120_v58  ;;  %v567_v7 = vld [vmem:[%s1235_s28 + $0x60] sm:$0xff]  ;;  %v574_v44 = vld [vmem:[%s1235_s28 + $0x98] sm:$0xff]  ;;  %v573_v47 = vld [vmem:[%s1235_s28 + $0x90] sm:$0xff] }
  0x1b   : > { %v320_v5 = vmul.f32 %v1267_v18, %v970_v59  ;;  %v321_v6 = vmul.f32 %v1267_v18, %v971_v60  ;;  %v328_v8 = vmul.f32 %v1267_v18, %v986_v61  ;;  %v329_v9 = vmul.f32 %v1267_v18, %v987_v62  ;;  %v578_v62 = vld [vmem:[%s1235_s28 + $0xb8] sm:$0xff] }
  0x1c   : > { %v337_v11 = vmul.f32 %v1267_v18, %v1003_v0  ;;  %v344_v12 = vmul.f32 %v1267_v18, %v1018_v1  ;;  %v345_v13 = vmul.f32 %v1267_v18, %v1019_v2  ;;  %v974_v35 = vunpack.c.l.bf16 %v1109_v29  ;;  %v576_v1 = vld [vmem:[%s1235_s28 + $0xa8] sm:$0xff] }
  0x1d   : > { %470 = vmatpush.bf16.msra.mxu0 %v959_v10  ;;  %1150 = vmatpush.bf16.msra.mxu1 %v959_v10  ;;  %v356_v14 = vadd.f32 %v1279_v30, %v320_v5  ;;  %v357_v15 = vadd.f32 %v1279_v30, %v321_v6  ;;  %v364_v16 = vadd.f32 %v1279_v30, %v328_v8  ;;  %v975_v36 = vunpack.c.h.bf16 %v1109_v29  ;;  %v1114_v6 = vld [vmem:[%s1252_s11 + $0x38] sm:$0xff]  }
  0x1e   : > { %1151 = vmatpush.bf16.msra.mxu2 %v959_v10  ;;  %1152 = vmatpush.bf16.msra.mxu3 %v959_v10  ;;  %v336_v10 = vmul.f32 %v1267_v18, %v1002_v63  ;;  %v365_v17 = vadd.f32 %v1279_v30, %v329_v9  ;;  %v380_v21 = vadd.f32 %v1279_v30, %v344_v12  ;;  %v1022_v41 = vunpack.c.l.bf16 %v1121_v34  ;;  %v577_v63 = vld [vmem:[%s1235_s28 + $0xb0] sm:$0xff]  ;;  %v1122_v8 = vld [vmem:[%s1252_s11 + $0x78] sm:$0xff]  }
  0x1f   : > { %629 = vperm.xlu2 %1173, %v563_v26   ;;  %v381_v22 = vadd.f32 %v1279_v30, %v345_v13  ;;  %v387_v25 = vpack.c.bf16 %v357_v15, %v356_v14  ;;  %v570_v26 = vld [vmem:[%s1235_s28 + $0x78] sm:$0xff]  ;;  %v322_v45 = vmul.f32 %v1267_v18, %v974_v35  ;;  %v323_v46 = vmul.f32 %v1267_v18, %v975_v36 }
  0x20   : > { %624 = vperm.xlu1 %1172, %v562_v27   ;;  %619 = vperm.xlu0 %1171, %v561_v32   ;;  %v372_v19 = vadd.f32 %v1279_v30, %v336_v10  ;;  %v391_v27 = vpack.c.bf16 %v365_v17, %v364_v16  ;;  %v1113_v32 = vld [vmem:[%s1252_s11 + $0x30] sm:$0xff]   ;;  %v995_v12 = vunpack.c.h.bf16 %v1114_v6  ;;  %v1026_v15 = vunpack.c.l.bf16 %v1122_v8 }
  0x21   : > { %471 = vmatpush.bf16.msra.mxu0 %v958_v20  ;;  %1153 = vmatpush.bf16.msra.mxu1 %v958_v20  ;;  %v399_v31 = vpack.c.bf16 %v381_v22, %v380_v21  ;;  %v990_v37 = vunpack.c.l.bf16 %v1113_v32  ;;  %v991_v38 = vunpack.c.h.bf16 %v1113_v32  ;;  %v358_v54 = vadd.f32 %v1279_v30, %v322_v45  ;;  %v581_v17 = vld [vmem:[%s1235_s28 + $0xd0] sm:$0xff]  ;;  %v579_v22 = vld [vmem:[%s1235_s28 + $0xc0] sm:$0xff] }
  0x22   : > { %1154 = vmatpush.bf16.msra.mxu2 %v958_v20  ;;  %1155 = vmatpush.bf16.msra.mxu3 %v958_v20  ;;  %v373_v20 = vadd.f32 %v1279_v30, %v337_v11  ;;  %v994_v11 = vunpack.c.l.bf16 %v1114_v6  ;;  %v1027_v16 = vunpack.c.h.bf16 %v1122_v8  ;;  %v585_v45 = vld [vmem:[%s1235_s28 + $0xf0] sm:$0xff] }
  0x24   : > { %v395_v28 = vpack.c.bf16 %v373_v20, %v372_v19  ;;  %v580_v19 = vld [vmem:[%s1235_s28 + $0xc8] sm:$0xff] }
  0x25   : > { %472 = vmatpush.bf16.msra.mxu0 %v957_v33  ;;  %1156 = vmatpush.bf16.msra.mxu1 %v957_v33 }
  0x26   : > { %1157 = vmatpush.bf16.msra.mxu2 %v957_v33  ;;  %1158 = vmatpush.bf16.msra.mxu3 %v957_v33  ;;  %v1117_v33 = vld [vmem:[%s1252_s11 + $0x50] sm:$0xff]  }
  0x27   : > { %644 = vperm.xlu2 %1173, %v566_v48   ;;  %v1006_v39 = vunpack.c.l.bf16 %v1117_v33  ;;  %v1007_v40 = vunpack.c.h.bf16 %v1117_v33  ;;  %v330_v48 = vmul.f32 %v1267_v18, %v990_v37  ;;  %v584_v37 = vld [vmem:[%s1235_s28 + $0xe8] sm:$0xff] }
  0x28   : > { %639 = vperm.xlu1 %1172, %v565_v49   ;;  %634 = vperm.xlu0 %1171, %v564_v51   ;;  %v331_v49 = vmul.f32 %v1267_v18, %v991_v38  ;;  %v583_v38 = vld [vmem:[%s1235_s28 + $0xe0] sm:$0xff] }
  0x29   : > { %473 = vmatpush.bf16.msra.mxu0 %v956_v42  ;;  %1159 = vmatpush.bf16.msra.mxu1 %v956_v42  ;;  %v339_v51 = vmul.f32 %v1267_v18, %v1007_v40  ;;  %v366_v56 = vadd.f32 %v1279_v30, %v330_v48  ;;  %v582_v40 = vld [vmem:[%s1235_s28 + $0xd8] sm:$0xff] }
  0x2a   : > { %1160 = vmatpush.bf16.msra.mxu2 %v956_v42  ;;  %1161 = vmatpush.bf16.msra.mxu3 %v956_v42  ;;  %v1023_v42 = vunpack.c.h.bf16 %v1121_v34  ;;  %v367_v57 = vadd.f32 %v1279_v30, %v331_v49 }
  0x2b   : > { %v375_v59 = vadd.f32 %v1279_v30, %v339_v51 }
  0x2c   : > { %474 = vmatmul.bf16.vlgmr.msra.gmra.mxu0 %v386_v50  ;;  %494 = vmatmul.bf16.vlgmr.msra.gmra.mxu1 %v390_v52  ;;  %v338_v50 = vmul.f32 %v1267_v18, %v1006_v39  ;;  %v346_v52 = vmul.f32 %v1267_v18, %v1022_v41  ;;  %v392_v2 = vpack.c.bf16 %v367_v57, %v366_v56 }
  0x2d   : > { %514 = vmatmul.bf16.vlgmr.msra.gmra.mxu2 %v394_v53  ;;  %534 = vmatmul.bf16.vlgmr.msra.gmra.mxu3 %v398_v55  ;;  %v347_v53 = vmul.f32 %v1267_v18, %v1023_v42  ;;  %v359_v55 = vadd.f32 %v1279_v30, %v323_v46 }
  0x2e   : > { %v374_v58 = vadd.f32 %v1279_v30, %v338_v50  ;;  %v382_v60 = vadd.f32 %v1279_v30, %v346_v52 }
  0x2f   : > { %659 = vperm.xlu2 %1173, %v569_v3   ;;  %v383_v61 = vadd.f32 %v1279_v30, %v347_v53  ;;  %v388_v0 = vpack.c.bf16 %v359_v55, %v358_v54 }
  0x30   : > { %654 = vperm.xlu1 %1172, %v568_v4   ;;  %649 = vperm.xlu0 %1171, %v567_v7   ;;  %v396_v3 = vpack.c.bf16 %v375_v59, %v374_v58  ;;  %v1110_v4 = vld [vmem:[%s1252_s11 + $0x18] sm:$0xff]  }
  0x31   : > { %v400_v5 = vpack.c.bf16 %v383_v61, %v382_v60  ;;  %v1118_v7 = vld [vmem:[%s1252_s11 + $0x58] sm:$0xff]   ;;  %v978_v9 = vunpack.c.l.bf16 %v1110_v4  ;;  %v979_v10 = vunpack.c.h.bf16 %v1110_v4 }
  0x32   : > { %v1010_v13 = vunpack.c.l.bf16 %v1118_v7  ;;  %v1011_v14 = vunpack.c.h.bf16 %v1118_v7 }
  0x33   : > { %v324_v20 = vmul.f32 %v1267_v18, %v978_v9  ;;  %v325_v21 = vmul.f32 %v1267_v18, %v979_v10 }
  0x35   : > { %v360_v29 = vadd.f32 %v1279_v30, %v324_v20 }
  0x37   : > { %674 = vperm.xlu2 %1173, %v572_v23   ;;  %v332_v23 = vmul.f32 %v1267_v18, %v994_v11 }
  0x38   : > { %669 = vperm.xlu1 %1172, %v571_v24   ;;  %664 = vperm.xlu0 %1171, %v570_v26   ;;  %v333_v24 = vmul.f32 %v1267_v18, %v995_v12  ;;  %v341_v26 = vmul.f32 %v1267_v18, %v1011_v14 }
  0x39   : > { %v368_v32 = vadd.f32 %v1279_v30, %v332_v23 }
  0x3a   : > { %v369_v33 = vadd.f32 %v1279_v30, %v333_v24  ;;  %v377_v35 = vadd.f32 %v1279_v30, %v341_v26 }
  0x3c   : > { %479 = vmatmul.bf16.gmra.mxu0 %v387_v25  ;;  %499 = vmatmul.bf16.gmra.mxu1 %v391_v27  ;;  %v340_v25 = vmul.f32 %v1267_v18, %v1010_v13  ;;  %v348_v27 = vmul.f32 %v1267_v18, %v1026_v15  ;;  %v393_v41 = vpack.c.bf16 %v369_v33, %v368_v32 }
  0x3d   : > { %519 = vmatmul.bf16.gmra.mxu2 %v395_v28  ;;  %539 = vmatmul.bf16.gmra.mxu3 %v399_v31  ;;  %v349_v28 = vmul.f32 %v1267_v18, %v1027_v16  ;;  %v361_v31 = vadd.f32 %v1279_v30, %v325_v21 }
  0x3e   : > { %v376_v34 = vadd.f32 %v1279_v30, %v340_v25  ;;  %v384_v36 = vadd.f32 %v1279_v30, %v348_v27 }
  0x3f   : > { %689 = vperm.xlu2 %1173, %v575_v43   ;;  %v385_v18 = vadd.f32 %v1279_v30, %v349_v28  ;;  %v389_v39 = vpack.c.bf16 %v361_v31, %v360_v29 }
  0x40   : > { %684 = vperm.xlu1 %1172, %v574_v44   ;;  %679 = vperm.xlu0 %1171, %v573_v47   ;;  %v397_v42 = vpack.c.bf16 %v377_v35, %v376_v34  ;;  %v586_v44 = vld [vmem:[%s1235_s28 + $0xf8] sm:$0xff]  ;;  %s1406_s28 = scalar_lea.vmem %s1446_s5, %s917_s6 }
  0x41   : > { %v401_v43 = vpack.c.bf16 %v385_v18, %v384_v36 }
  0x47   : > { %704 = vperm.xlu2 %1173, %v578_v62  }
  0x48   : > { %699 = vperm.xlu1 %1172, %v577_v63   ;;  %694 = vperm.xlu0 %1171, %v576_v1  }
  0x4c   : > { %484 = vmatmul.bf16.gmra.mxu0 %v388_v0  ;;  %504 = vmatmul.bf16.gmra.mxu1 %v392_v2 }
  0x4d   : > { %524 = vmatmul.bf16.gmra.mxu2 %v396_v3  ;;  %544 = vmatmul.bf16.gmra.mxu3 %v400_v5 }
  0x4f   : > { %719 = vperm.xlu2 %1173, %v581_v17  }
  0x50   : > { %714 = vperm.xlu1 %1172, %v580_v19   ;;  %709 = vperm.xlu0 %1171, %v579_v22  }
  0x57   : > { %734 = vperm.xlu2 %1173, %v584_v37  }
  0x58   : > { %729 = vperm.xlu1 %1172, %v583_v38   ;;  %724 = vperm.xlu0 %1171, %v582_v40  }
  0x5c   : > { %489 = vmatmul.bf16.gmra.mxu0 %v389_v39  ;;  %509 = vmatmul.bf16.gmra.mxu1 %v393_v41 }
  0x5d   : > { %529 = vmatmul.bf16.gmra.mxu2 %v397_v42  ;;  %549 = vmatmul.bf16.gmra.mxu3 %v401_v43 }
  0x60   : > { %744 = vperm.xlu1 %1172, %v586_v44   ;;  %739 = vperm.xlu0 %1171, %v585_v45  }
  0x69   : > { %v1385_v30 = vpop.permute.xlu2 %609 }
  0x71   : > { %v1387_v47 = vpop.permute.xlu2 %614 }
  0x79   : > { %v630_v51 = vpop.permute.xlu2 %629 }
  0x81   : > { %v645_v54 = vpop.permute.xlu2 %644 }
  0x82   : > { %v600_v46 = vpop.permute.xlu1 %599  ;;  %v590_v48 = vpop.permute.xlu0 %589 }
  0x89   : > { %v1393_v57 = vpop.permute.xlu2 %659 }
  0x8a   : > { %v605_v49 = vpop.permute.xlu1 %604  ;;  %v595_v50 = vpop.permute.xlu0 %594 }
  0x91   : > { %v675_v63 = vpop.permute.xlu2 %674 }
  0x92   : > { %v1389_v52 = vpop.permute.xlu1 %624  ;;  %v1391_v53 = vpop.permute.xlu0 %619 }
  0x99   : > { %v690_v13 = vpop.permute.xlu2 %689 }
  0x9a   : > { %v640_v55 = vpop.permute.xlu1 %639  ;;  %v635_v56 = vpop.permute.xlu0 %634 }
  0xa1   : > { %v1413_v31 = vpop.permute.xlu2 %704 }
  0xa2   : > { %v1395_v58 = vpop.permute.xlu1 %654  ;;  %v1397_v59 = vpop.permute.xlu0 %649 }
  0xa9   : > { %v475_v60 = vpop.f32.mrf.mxu0  ;;  %v495_v61 = vpop.f32.mrf.mxu1 }
  0xaa   : > { %v670_v62 = vpop.permute.xlu1 %669  ;;  %v1399_v0 = vpop.permute.xlu0 %664  ;;  %v747_v4 = vmul.f32 %v590_v48, %v475_v60  ;;  %v755_v7 = vmul.f32 %v630_v51, %v495_v61 }
  0xab   : > { %v720_v48 = vpop.permute.xlu2 %719 }
  0xb0   : > { %v515_v1 = vpop.f32.mrf.mxu2  ;;  %v535_v2 = vpop.f32.mrf.mxu3 }
  0xb1   : > { %v477_v3 = vpop.f32.mrf.mxu0  ;;  %v497_v6 = vpop.f32.mrf.mxu1  ;;  %v763_v15 = vmul.f32 %v670_v62, %v515_v1 }
  0xb2   : > { %v748_v5 = vmul.f32 %v595_v50, %v477_v3  ;;  %v756_v8 = vmul.f32 %v635_v56, %v497_v6  ;;  %v685_v11 = vpop.permute.xlu1 %684  ;;  %v680_v12 = vpop.permute.xlu0 %679 }
  0xb4   : > { %v1031_v9 = vpack.c.bf16 %v748_v5, %v747_v4  ;;  %v1051_v10 = vpack.c.bf16 %v756_v8, %v755_v7  ;;  %v735_v5 = vpop.permute.xlu2 %734 }
  0xb6   : > { %1032 = vst [vmem:[%s1406_s28] sm:$0xff] %v1031_v9  }
  0xb7   : > { %1126 = vst [vmem:[%s1406_s28 + $0x20] sm:$0xff] %v1051_v10  }
  0xb8   : > { %v517_v14 = vpop.f32.mrf.mxu2  ;;  %v537_v17 = vpop.f32.mrf.mxu3 }
  0xb9   : > { %v764_v16 = vmul.f32 %v675_v63, %v517_v14  ;;  %v480_v19 = vpop.f32.mrf.mxu0  ;;  %v500_v20 = vpop.f32.mrf.mxu1 }
  0xba   : > { %v1411_v22 = vpop.permute.xlu1 %699  ;;  %v695_v23 = vpop.permute.xlu0 %694  ;;  %v749_v27 = vmul.f32 %v600_v46, %v480_v19  ;;  %v757_v32 = vmul.f32 %v640_v55, %v500_v20 }
  0xbb   : > { %v1071_v21 = vpack.c.bf16 %v764_v16, %v763_v15 }
  0xbd   : > { %1130 = vst [vmem:[%s1406_s28 + $0x40] sm:$0xff] %v1071_v21  }
  0xc0   : > { %v520_v24 = vpop.f32.mrf.mxu2  ;;  %v540_v25 = vpop.f32.mrf.mxu3 }
  0xc1   : > { %v482_v26 = vpop.f32.mrf.mxu0  ;;  %v502_v29 = vpop.f32.mrf.mxu1  ;;  %v765_v40 = vmul.f32 %v680_v12, %v520_v24  ;;  %v773_v50 = vmul.f32 %v720_v48, %v540_v25 }
  0xc2   : > { %v750_v28 = vmul.f32 %v605_v49, %v482_v26  ;;  %v758_v33 = vmul.f32 %v645_v54, %v502_v29  ;;  %v715_v36 = vpop.permute.xlu1 %714  ;;  %v710_v37 = vpop.permute.xlu0 %709 }
  0xc3   : > { %v772_v18 = vmul.f32 %v715_v36, %v537_v17  ;;  %v771_v38 = vmul.f32 %v710_v37, %v535_v2 }
  0xc4   : > { %v1036_v34 = vpack.c.bf16 %v750_v28, %v749_v27  ;;  %v1056_v35 = vpack.c.bf16 %v758_v33, %v757_v32 }
  0xc5   : > { %v1091_v41 = vpack.c.bf16 %v772_v18, %v771_v38 }
  0xc6   : > { %1123 = vst [vmem:[%s1406_s28 + $0x8] sm:$0xff] %v1036_v34  }
  0xc7   : > { %1127 = vst [vmem:[%s1406_s28 + $0x28] sm:$0xff] %v1056_v35  }
  0xc8   : > { %v522_v39 = vpop.f32.mrf.mxu2  ;;  %v542_v43 = vpop.f32.mrf.mxu3  ;;  %1134 = vst [vmem:[%s1406_s28 + $0x60] sm:$0xff] %v1091_v41  }
  0xc9   : > { %v766_v42 = vmul.f32 %v685_v11, %v522_v39  ;;  %v485_v44 = vpop.f32.mrf.mxu0  ;;  %v505_v45 = vpop.f32.mrf.mxu1 }
  0xca   : > { %v725_v49 = vpop.permute.xlu0 %724  ;;  %v751_v61 = vmul.f32 %v1385_v30, %v485_v44  ;;  %v759_v1 = vmul.f32 %v1397_v59, %v505_v45  ;;  %v730_v6 = vpop.permute.xlu1 %729 }
  0xcb   : > { %v1076_v46 = vpack.c.bf16 %v766_v42, %v765_v40  ;;  %v774_v51 = vmul.f32 %v725_v49, %v542_v43 }
  0xcd   : > { %1131 = vst [vmem:[%s1406_s28 + $0x48] sm:$0xff] %v1076_v46   ;;  %v1096_v55 = vpack.c.bf16 %v774_v51, %v773_v50 }
  0xcf   : > { %1135 = vst [vmem:[%s1406_s28 + $0x68] sm:$0xff] %v1096_v55  }
  0xd0   : > { %v525_v54 = vpop.f32.mrf.mxu2  ;;  %v545_v56 = vpop.f32.mrf.mxu3 }
  0xd1   : > { %v487_v60 = vpop.f32.mrf.mxu0  ;;  %v507_v63 = vpop.f32.mrf.mxu1  ;;  %v767_v8 = vmul.f32 %v690_v13, %v525_v54 }
  0xd2   : > { %v752_v62 = vmul.f32 %v1387_v47, %v487_v60  ;;  %v760_v2 = vmul.f32 %v1395_v58, %v507_v63  ;;  %v775_v47 = vmul.f32 %v730_v6, %v545_v56  ;;  %v745_v25 = vpop.permute.xlu1 %744  ;;  %v740_v27 = vpop.permute.xlu0 %739 }
  0xd4   : > { %v1041_v3 = vpack.c.bf16 %v752_v62, %v751_v61  ;;  %v1061_v4 = vpack.c.bf16 %v760_v2, %v759_v1 }
  0xd6   : > { %1124 = vst [vmem:[%s1406_s28 + $0x10] sm:$0xff] %v1041_v3  }
  0xd7   : > { %1128 = vst [vmem:[%s1406_s28 + $0x30] sm:$0xff] %v1061_v4  }
  0xd8   : > { %v527_v7 = vpop.f32.mrf.mxu2  ;;  %v547_v30 = vpop.f32.mrf.mxu3 }
  0xd9   : > { %v768_v9 = vmul.f32 %v695_v23, %v527_v7  ;;  %v490_v10 = vpop.f32.mrf.mxu0  ;;  %v776_v11 = vmul.f32 %v735_v5, %v547_v30  ;;  %v510_v59 = vpop.f32.mrf.mxu1 }
  0xda   : > { %v753_v17 = vmul.f32 %v1391_v53, %v490_v10  ;;  %v761_v20 = vmul.f32 %v1393_v57, %v510_v59 }
  0xdb   : > { %v1081_v12 = vpack.c.bf16 %v768_v9, %v767_v8  ;;  %v1101_v58 = vpack.c.bf16 %v776_v11, %v775_v47 }
  0xdd   : > { %1132 = vst [vmem:[%s1406_s28 + $0x50] sm:$0xff] %v1081_v12  }
  0xde   : > { %1136 = vst [vmem:[%s1406_s28 + $0x70] sm:$0xff] %v1101_v58  }
  0xe0   : > { %v530_v14 = vpop.f32.mrf.mxu2  ;;  %v550_v15 = vpop.f32.mrf.mxu3 }
  0xe1   : > { %v492_v16 = vpop.f32.mrf.mxu0  ;;  %v512_v13 = vpop.f32.mrf.mxu1  ;;  %v769_v28 = vmul.f32 %v1411_v22, %v530_v14 }
  0xe2   : > { %v754_v19 = vmul.f32 %v1389_v52, %v492_v16  ;;  %v762_v21 = vmul.f32 %v1399_v0, %v512_v13  ;;  %v777_v52 = vmul.f32 %v740_v27, %v550_v15 }
  0xe4   : > { %v1046_v23 = vpack.c.bf16 %v754_v19, %v753_v17  ;;  %v1066_v24 = vpack.c.bf16 %v762_v21, %v761_v20 }
  0xe6   : > { %1125 = vst [vmem:[%s1406_s28 + $0x18] sm:$0xff] %v1046_v23  }
  0xe7   : > { %1129 = vst [vmem:[%s1406_s28 + $0x38] sm:$0xff] %v1066_v24  }
  0xe8   : > { %v532_v26 = vpop.f32.mrf.mxu2  ;;  %v552_v29 = vpop.f32.mrf.mxu3 }
  0xe9   : > { %v770_v53 = vmul.f32 %v1413_v31, %v532_v26  ;;  %v778_v32 = vmul.f32 %v745_v25, %v552_v29 }
  0xeb   : > { %v1086_v33 = vpack.c.bf16 %v770_v53, %v769_v28  ;;  %v1106_v57 = vpack.c.bf16 %v778_v32, %v777_v52 }
  0xed   : > { %1133 = vst [vmem:[%s1406_s28 + $0x58] sm:$0xff] %v1086_v33  }
  0xee   : > { %1137 = vst [vmem:[%s1406_s28 + $0x78] sm:$0xff] %v1106_v57  }
  0xef PF: > { %s15_s18 = sadd.s32 1, %s1182_s18  }
  0xf0   : > { %p12_p4 = scmp.ge.s32.totalorder %s15_s18, 4  }
  0xf2   :  { %14 = sbr.rel (!%p12_p4) target bundleno = 1 (0x1), region = 73 }

// kernel: bio_encoder_forward.6
= control target key start
LH: loop header
LB: loop body
LE: loop exit
PB: predicated region body
PF: predicated region fallthrough
CT: control target
= control target key end

     0   :  { %s2692_s27 = smov 0   ;;  %s3364_s0 = inlined_call_operand.vmem [shape: s8[512,512], index: 0, kind: input, shape index: {}]   ;;  %s3365_s1 = inlined_call_operand.vmem [shape: bf16[512,128], index: 1, kind: input, shape index: {}, may-alias: {1,2}]   ;;  %s3366_s2 = inlined_call_operand.vmem [shape: bf16[512,128], index: 2, kind: input, shape index: {}, may-alias: {1,2}]   ;;  %s3367_s3 = inlined_call_operand.vmem [shape: f32[512,1], index: 3, kind: input, shape index: {}]   ;;  %s3368_s4 = inlined_call_operand.vmem [shape: f32[1,128], index: 4, kind: input, shape index: {}]   ;;  %s3369_s5 = inlined_call_operand.vmem [shape: f32[512,1], index: 5, kind: input, shape index: {}]   ;;  %s3370_s6 = inlined_call_operand.vmem [shape: bf16[512,128], index: 6, kind: output, shape index: {0}]   ;;  %s3371_s7 = inlined_call_operand.vmem [shape: f32[2,8,128], index: 7, kind: output, shape index: {1}]   ;;  %s3372_s8 = inlined_call_operand.vmem [shape: f32[2,8,128], index: 8, kind: output, shape index: {2}]  }
   0x1 LB: > { %s2698_s28 = sadd.s32 4294967295, %s2644_s27   ;;  %p2273_p0 = scmp.ge.s32.totalorder %s2644_s27, 1  ;;  %s2644_s27 = sphi %s2692_s27, %s19_s27  }
   0x2   : > { %p302_p1 = scmp.lt.s32.totalorder %s2644_s27, 3 }
   0x4   : > { %p303_p2 = pnand %p2273_p0, %p302_p1 }
   0x6   : > { %306 = sbr.rel (%p303_p2) target bundleno = 454 (0x1c6), region = 44 }
   0xb   : > { %v2425_v0 = vld [vmem:[%s3365_s1 + $0x38] sm:$0xff]  ;;  %s2277_s13 = sshll.u32 %s2698_s28, 5  ;;  %v2646_v4 = vmov 0   ;;  %s2274_s16 = sshll.u32 %s2698_s28, 3  ;;  %v2424_v5 = vld [vmem:[%s3365_s1 + $0x30] sm:$0xff]  ;;  %v2423_v9 = vld [vmem:[%s3365_s1 + $0x28] sm:$0xff] }
   0xc   : > { %v2433_v1 = vld [vmem:[%s3365_s1 + $0x78] sm:$0xff]  ;;  %2635 = vset.pattern.permute.xlu2 %v2646_v4  ;;  %2634 = vset.pattern.permute.xlu1 %v2646_v4  ;;  %p368_p3 = scmp.lt.s32.totalorder %s2277_s13, 63  ;;  %v2432_v6 = vld [vmem:[%s3365_s1 + $0x70] sm:$0xff]  ;;  %p2730_p4 = scmp.lt.s32.totalorder %s2274_s16, 15  ;;  %v2431_v10 = vld [vmem:[%s3365_s1 + $0x68] sm:$0xff] }
   0xd   : > { %v2441_v2 = vld [vmem:[%s3365_s1 + $0xb8] sm:$0xff]  ;;  %1103 = vmatpush.bf16.msra.mxu0 %v2425_v0  ;;  %1192 = vmatpush.bf16.msra.mxu1 %v2433_v1  ;;  %v2440_v7 = vld [vmem:[%s3365_s1 + $0xb0] sm:$0xff]  ;;  %v2439_v11 = vld [vmem:[%s3365_s1 + $0xa8] sm:$0xff]  ;;  %p391_p5 = scmp.lt.s32.totalorder %s2698_s28, 1 }
   0xe   : > { %v2449_v3 = vld [vmem:[%s3365_s1 + $0xf8] sm:$0xff]  ;;  %1281 = vmatpush.bf16.msra.mxu2 %v2441_v2  ;;  %v2448_v8 = vld [vmem:[%s3365_s1 + $0xf0] sm:$0xff]  ;;  %s3387_s13 = smov (!%p368_p3, %s2277_s13), 63  ;;  %2633 = vset.pattern.permute.xlu0 %v2646_v4  ;;  %v2447_v12 = vld [vmem:[%s3365_s1 + $0xe8] sm:$0xff]  ;;  %s3389_s16 = smov (!%p2730_p4, %s2274_s16), 15 }
   0xf   : > { %1370 = vmatpush.bf16.msra.mxu3 %v2449_v3  ;;  %s2280_s26 = sshll.u32 %s3387_s13, 3  ;;  %v2422_v16 = vld [vmem:[%s3365_s1 + $0x20] sm:$0xff]  ;;  %s2417_s9 = sshll.u32 %s3389_s16, 5  ;;  %v2421_v23 = vld [vmem:[%s3365_s1 + $0x18] sm:$0xff]  ;;  %v2420_v27 = vld [vmem:[%s3365_s1 + $0x10] sm:$0xff] }
  0x10   : > { %s2743_s11 = scalar_lea.vmem %s3367_s3, %s2280_s26  ;;  %v2430_v17 = vld [vmem:[%s3365_s1 + $0x60] sm:$0xff]  ;;  %v2429_v24 = vld [vmem:[%s3365_s1 + $0x58] sm:$0xff]  ;;  %s2789_s22 = scalar_lea.vmem %s3364_s0, %s2417_s9  ;;  %v2428_v28 = vld [vmem:[%s3365_s1 + $0x50] sm:$0xff] }
  0x11   : > { %1104 = vmatpush.bf16.msra.mxu0 %v2424_v5  ;;  %1193 = vmatpush.bf16.msra.mxu1 %v2432_v6  ;;  %v819_v13 = vld [vmem:[%s2743_s11 + $0x20] sm:$0xff]  ;;  %v817_v14 = vld [vmem:[%s2743_s11 + $0x10] sm:$0xff]  ;;  %v820_v20 = vld [vmem:[%s2743_s11 + $0x28] sm:$0xff]  ;;  %s2888_s17 = scalar_lea.vmem %s3369_s5, %s2280_s26  ;;  %s2278_s26 = sshll.u32 %s3387_s13, 2 }
  0x12   : > { %1282 = vmatpush.bf16.msra.mxu2 %v2440_v7  ;;  %v815_v15 = vld [vmem:[%s2743_s11] sm:$0xff]  ;;  %1481 = vperm.xlu2 %2635, %v819_v13   ;;  %v818_v21 = vld [vmem:[%s2743_s11 + $0x18] sm:$0xff]  ;;  %v816_v22 = vld [vmem:[%s2743_s11 + $0x8] sm:$0xff]  ;;  %s3018_s16 = scalar_lea.vmem %s3366_s2, %s2278_s26  ;;  %s3149_s24 = scalar_lea.vmem %s3370_s6, %s2278_s26 }
  0x13   : > { %1371 = vmatpush.bf16.msra.mxu3 %v2448_v8  ;;  %1471 = vperm.xlu1 %2634, %v817_v14   ;;  %v2438_v18 = vld [vmem:[%s3365_s1 + $0xa0] sm:$0xff]  ;;  %v2437_v25 = vld [vmem:[%s3365_s1 + $0x98] sm:$0xff]  ;;  %v2436_v29 = vld [vmem:[%s3365_s1 + $0x90] sm:$0xff]  ;;  %s3391_s28 = smov (!%p391_p5, %s2698_s28), 1 }
  0x14   : > { %1461 = vperm.xlu0 %2633, %v815_v15   ;;  %v2446_v19 = vld [vmem:[%s3365_s1 + $0xe0] sm:$0xff]  ;;  %v2445_v26 = vld [vmem:[%s3365_s1 + $0xd8] sm:$0xff]  ;;  %v2444_v31 = vld [vmem:[%s3365_s1 + $0xd0] sm:$0xff]  ;;  %s2285_s29 = sshll.u32 %s3391_s28, 3 }
  0x15   : > { %1105 = vmatpush.bf16.msra.mxu0 %v2423_v9  ;;  %1194 = vmatpush.bf16.msra.mxu1 %v2431_v10  ;;  %v2801_v30 = vld [vmem:[%s2789_s22] sm:$0xff]  ;;  %v2807_v32 = vld [vmem:[%s2789_s22 + $0x8] sm:$0xff]  ;;  %v2810_v33 = vld [vmem:[%s2789_s22 + $0x10] sm:$0xff]  ;;  %s394_s9 = scalar_lea.vmem %s3371_s7, %s2285_s29  ;;  %s398_s14 = scalar_lea.vmem %s3372_s8, %s2285_s29 }
  0x16   : > { %1283 = vmatpush.bf16.msra.mxu2 %v2439_v11  ;;  %v2813_v34 = vld [vmem:[%s2789_s22 + $0x18] sm:$0xff]  ;;  %v823_v35 = vld [vmem:[%s2743_s11 + $0x40] sm:$0xff]  ;;  %v431_v37 = vunpack.c.0.s8 %v2801_v30  ;;  %v435_v38 = vunpack.c.1.s8 %v2801_v30  ;;  %v821_v39 = vld [vmem:[%s2743_s11 + $0x30] sm:$0xff]  ;;  %v432_v42 = vunpack.c.0.s8 %v2807_v32  ;;  %v436_v43 = vunpack.c.1.s8 %v2807_v32 }
  0x17   : > { %1372 = vmatpush.bf16.msra.mxu3 %v2447_v12  ;;  %v822_v36 = vld [vmem:[%s2743_s11 + $0x38] sm:$0xff]  ;;  %v2419_v40 = vld [vmem:[%s3365_s1 + $0x8] sm:$0xff]  ;;  %v433_v44 = vunpack.c.0.s8 %v2810_v33  ;;  %v437_v45 = vunpack.c.1.s8 %v2810_v33  ;;  %v434_v48 = vunpack.c.0.s8 %v2813_v34  ;;  %v438_v49 = vunpack.c.1.s8 %v2813_v34  ;;  %v2418_v52 = vld [vmem:[%s3365_s1] sm:$0xff] }
  0x18   : > { %v2427_v41 = vld [vmem:[%s3365_s1 + $0x48] sm:$0xff]  ;;  %v559_v50 = vcvt.s32.f32 %v431_v37  ;;  %v563_v51 = vcvt.s32.f32 %v435_v38  ;;  %v2426_v53 = vld [vmem:[%s3365_s1 + $0x40] sm:$0xff]  ;;  %v560_v54 = vcvt.s32.f32 %v432_v42  ;;  %v564_v55 = vcvt.s32.f32 %v436_v43  ;;  %v826_v62 = vld [vmem:[%s2743_s11 + $0x58] sm:$0xff] }
  0x19   : > { %1106 = vmatpush.bf16.msra.mxu0 %v2422_v16  ;;  %1195 = vmatpush.bf16.msra.mxu1 %v2430_v17  ;;  %v2435_v46 = vld [vmem:[%s3365_s1 + $0x88] sm:$0xff]  ;;  %v561_v56 = vcvt.s32.f32 %v433_v44  ;;  %v565_v57 = vcvt.s32.f32 %v437_v45  ;;  %v2434_v58 = vld [vmem:[%s3365_s1 + $0x80] sm:$0xff]  ;;  %v562_v60 = vcvt.s32.f32 %v434_v48  ;;  %v566_v61 = vcvt.s32.f32 %v438_v49  ;;  %v825_v63 = vld [vmem:[%s2743_s11 + $0x50] sm:$0xff] }
  0x1a   : > { %1284 = vmatpush.bf16.msra.mxu2 %v2438_v18  ;;  %1486 = vperm.xlu2 %2635, %v820_v20   ;;  %v2443_v47 = vld [vmem:[%s3365_s1 + $0xc8] sm:$0xff]  ;;  %v2442_v59 = vld [vmem:[%s3365_s1 + $0xc0] sm:$0xff]  ;;  %v687_v0 = vpack.c.bf16 %v563_v51, %v559_v50  ;;  %v688_v2 = vpack.c.bf16 %v564_v55, %v560_v54  ;;  %v829_v5 = vld [vmem:[%s2743_s11 + $0x70] sm:$0xff]  ;;  %v439_v7 = vunpack.c.2.s8 %v2801_v30  ;;  %v443_v8 = vunpack.c.3.s8 %v2801_v30 }
  0x1b   : > { %1373 = vmatpush.bf16.msra.mxu3 %v2446_v19  ;;  %1476 = vperm.xlu1 %2634, %v818_v21   ;;  %v824_v1 = vld [vmem:[%s2743_s11 + $0x48] sm:$0xff]  ;;  %v689_v3 = vpack.c.bf16 %v565_v57, %v561_v56  ;;  %v690_v4 = vpack.c.bf16 %v566_v61, %v562_v60  ;;  %v827_v9 = vld [vmem:[%s2743_s11 + $0x60] sm:$0xff]  ;;  %v440_v10 = vunpack.c.2.s8 %v2807_v32  ;;  %v444_v11 = vunpack.c.3.s8 %v2807_v32  ;;  %v838_v54 = vld [vmem:[%s2743_s11 + $0xb8] sm:$0xff] }
  0x1c   : > { %1466 = vperm.xlu0 %2633, %v816_v22   ;;  %v828_v6 = vld [vmem:[%s2743_s11 + $0x68] sm:$0xff]  ;;  %v441_v12 = vunpack.c.2.s8 %v2810_v33  ;;  %v445_v13 = vunpack.c.3.s8 %v2810_v33  ;;  %v442_v14 = vunpack.c.2.s8 %v2813_v34  ;;  %v446_v15 = vunpack.c.3.s8 %v2813_v34  ;;  %v405_v33 = vld [vmem:[%s2789_s22 + $0x30] sm:$0xff]  ;;  %v406_v34 = vld [vmem:[%s2789_s22 + $0x38] sm:$0xff] }
  0x1d   : > { %1107 = vmatpush.bf16.msra.mxu0 %v2421_v23  ;;  %1196 = vmatpush.bf16.msra.mxu1 %v2429_v24  ;;  %v567_v16 = vcvt.s32.f32 %v439_v7  ;;  %v571_v17 = vcvt.s32.f32 %v443_v8  ;;  %v568_v18 = vcvt.s32.f32 %v440_v10  ;;  %v572_v19 = vcvt.s32.f32 %v444_v11  ;;  %v832_v24 = vld [vmem:[%s2743_s11 + $0x88] sm:$0xff]  ;;  %v837_v55 = vld [vmem:[%s2743_s11 + $0xb0] sm:$0xff] }
  0x1e   : > { %1285 = vmatpush.bf16.msra.mxu2 %v2437_v25  ;;  %v569_v20 = vcvt.s32.f32 %v441_v12  ;;  %v573_v21 = vcvt.s32.f32 %v445_v13  ;;  %v570_v22 = vcvt.s32.f32 %v442_v14  ;;  %v574_v23 = vcvt.s32.f32 %v446_v15  ;;  %v831_v25 = vld [vmem:[%s2743_s11 + $0x80] sm:$0xff]  ;;  %v404_v32 = vld [vmem:[%s2789_s22 + $0x28] sm:$0xff]  ;;  %v841_v61 = vld [vmem:[%s2743_s11 + $0xd0] sm:$0xff] }
  0x1f   : > { %1374 = vmatpush.bf16.msra.mxu3 %v2445_v26  ;;  %v691_v26 = vpack.c.bf16 %v571_v17, %v567_v16  ;;  %v449_v42 = vunpack.c.0.s8 %v405_v33  ;;  %v453_v43 = vunpack.c.1.s8 %v405_v33  ;;  %v450_v44 = vunpack.c.0.s8 %v406_v34  ;;  %v836_v57 = vld [vmem:[%s2743_s11 + $0xa8] sm:$0xff]  ;;  %v843_v17 = vld [vmem:[%s2743_s11 + $0xe0] sm:$0xff] }
  0x20   : > { %v694_v30 = vpack.c.bf16 %v574_v23, %v570_v22  ;;  %v454_v45 = vunpack.c.1.s8 %v406_v34  ;;  %v462_v7 = vunpack.c.3.s8 %v406_v34  ;;  %v844_v16 = vld [vmem:[%s2743_s11 + $0xe8] sm:$0xff]  ;;  %v407_v23 = vld [vmem:[%s2789_s22 + $0x40] sm:$0xff] }
  0x21   : > { %1108 = vmatpush.bf16.msra.mxu0 %v2420_v27  ;;  %1197 = vmatpush.bf16.msra.mxu1 %v2428_v28  ;;  %v830_v27 = vld [vmem:[%s2743_s11 + $0x78] sm:$0xff]  ;;  %v692_v28 = vpack.c.bf16 %v572_v19, %v568_v18  ;;  %v577_v50 = vcvt.s32.f32 %v449_v42  ;;  %v581_v51 = vcvt.s32.f32 %v453_v43 }
  0x22   : > { %1286 = vmatpush.bf16.msra.mxu2 %v2436_v29  ;;  %1501 = vperm.xlu2 %2635, %v823_v35   ;;  %v693_v29 = vpack.c.bf16 %v573_v21, %v569_v20  ;;  %v835_v35 = vld [vmem:[%s2743_s11 + $0xa0] sm:$0xff]  ;;  %v590_v15 = vcvt.s32.f32 %v462_v7  ;;  %v842_v19 = vld [vmem:[%s2743_s11 + $0xd8] sm:$0xff] }
  0x23   : > { %1375 = vmatpush.bf16.msra.mxu3 %v2444_v31  ;;  %1496 = vperm.xlu1 %2634, %v822_v36   ;;  %v403_v31 = vld [vmem:[%s2789_s22 + $0x20] sm:$0xff]  ;;  %v834_v36 = vld [vmem:[%s2743_s11 + $0x98] sm:$0xff] }
  0x24   : > { %1491 = vperm.xlu0 %2633, %v821_v39   ;;  %v447_v37 = vunpack.c.0.s8 %v403_v31  ;;  %v451_v38 = vunpack.c.1.s8 %v403_v31  ;;  %v833_v39 = vld [vmem:[%s2743_s11 + $0x90] sm:$0xff] }
  0x25   : > { %1109 = vmatpush.bf16.msra.mxu0 %v2419_v40  ;;  %1198 = vmatpush.bf16.msra.mxu1 %v2427_v41  ;;  %v448_v40 = vunpack.c.0.s8 %v404_v32  ;;  %v452_v41 = vunpack.c.1.s8 %v404_v32 }
  0x26   : > { %1287 = vmatpush.bf16.msra.mxu2 %v2435_v46  ;;  %v575_v46 = vcvt.s32.f32 %v447_v37 }
  0x27   : > { %1376 = vmatpush.bf16.msra.mxu3 %v2443_v47  ;;  %v579_v47 = vcvt.s32.f32 %v451_v38  ;;  %v576_v48 = vcvt.s32.f32 %v448_v40  ;;  %v580_v49 = vcvt.s32.f32 %v452_v41 }
  0x29   : > { %1110 = vmatpush.bf16.msra.mxu0 %v2418_v52  ;;  %1199 = vmatpush.bf16.msra.mxu1 %v2426_v53  ;;  %v578_v52 = vcvt.s32.f32 %v450_v44  ;;  %v582_v53 = vcvt.s32.f32 %v454_v45  ;;  %v695_v56 = vpack.c.bf16 %v579_v47, %v575_v46  ;;  %v1721_v46 = vld [vmem:[%s2888_s17 + $0x10] sm:$0xff] }
  0x2a   : > { %1288 = vmatpush.bf16.msra.mxu2 %v2434_v58  ;;  %1516 = vperm.xlu2 %2635, %v826_v62   ;;  %v696_v58 = vpack.c.bf16 %v580_v49, %v576_v48  ;;  %v840_v62 = vld [vmem:[%s2743_s11 + $0xc8] sm:$0xff]  ;;  %v1722_v48 = vld [vmem:[%s2888_s17 + $0x18] sm:$0xff] }
  0x2b   : > { %1377 = vmatpush.bf16.msra.mxu3 %v2442_v59  ;;  %1511 = vperm.xlu1 %2634, %v825_v63   ;;  %v697_v59 = vpack.c.bf16 %v581_v51, %v577_v50  ;;  %v698_v60 = vpack.c.bf16 %v582_v53, %v578_v52  ;;  %v455_v63 = vunpack.c.2.s8 %v403_v31  ;;  %v1720_v49 = vld [vmem:[%s2888_s17 + $0x8] sm:$0xff] }
  0x2c   : > { %1506 = vperm.xlu0 %2633, %v824_v1   ;;  %1111 = vmatmul.bf16.vlgmr.msra.gmra.mxu0 %v687_v0  ;;  %v459_v0 = vunpack.c.3.s8 %v403_v31  ;;  %v839_v1 = vld [vmem:[%s2743_s11 + $0xc0] sm:$0xff]  ;;  %v845_v31 = vld [vmem:[%s2743_s11 + $0xf0] sm:$0xff] }
  0x2d   : > { %1200 = vmatmul.bf16.vlgmr.msra.gmra.mxu1 %v688_v2  ;;  %1289 = vmatmul.bf16.vlgmr.msra.gmra.mxu2 %v689_v3  ;;  %v456_v2 = vunpack.c.2.s8 %v404_v32  ;;  %v460_v3 = vunpack.c.3.s8 %v404_v32  ;;  %v583_v8 = vcvt.s32.f32 %v455_v63 }
  0x2e   : > { %1378 = vmatmul.bf16.vlgmr.msra.gmra.mxu3 %v690_v4  ;;  %v457_v4 = vunpack.c.2.s8 %v405_v33 }
  0x2f   : > { %v584_v10 = vcvt.s32.f32 %v456_v2  ;;  %v588_v11 = vcvt.s32.f32 %v460_v3 }
  0x30   : > { %v585_v12 = vcvt.s32.f32 %v457_v4 }
  0x31   : > { %v700_v20 = vpack.c.bf16 %v588_v11, %v584_v10  ;;  %v1728_v11 = vld [vmem:[%s2888_s17 + $0x48] sm:$0xff] }
  0x32   : > { %1531 = vperm.xlu2 %2635, %v829_v5   ;;  %v461_v5 = vunpack.c.3.s8 %v405_v33 }
  0x33   : > { %1526 = vperm.xlu1 %2634, %v828_v6   ;;  %v458_v6 = vunpack.c.2.s8 %v406_v34 }
  0x34   : > { %1521 = vperm.xlu0 %2633, %v827_v9   ;;  %v587_v9 = vcvt.s32.f32 %v459_v0  ;;  %v589_v13 = vcvt.s32.f32 %v461_v5 }
  0x35   : > { %v586_v14 = vcvt.s32.f32 %v458_v6 }
  0x36   : > { %v699_v18 = vpack.c.bf16 %v587_v9, %v583_v8  ;;  %v701_v21 = vpack.c.bf16 %v589_v13, %v585_v12  ;;  %v1727_v9 = vld [vmem:[%s2888_s17 + $0x40] sm:$0xff]  ;;  %v1726_v12 = vld [vmem:[%s2888_s17 + $0x38] sm:$0xff] }
  0x37   : > { %v702_v22 = vpack.c.bf16 %v590_v15, %v586_v14 }
  0x3a   : > { %1546 = vperm.xlu2 %2635, %v832_v24   ;;  %v408_v24 = vld [vmem:[%s2789_s22 + $0x48] sm:$0xff] }
  0x3b   : > { %1541 = vperm.xlu1 %2634, %v831_v25   ;;  %v409_v25 = vld [vmem:[%s2789_s22 + $0x50] sm:$0xff]  ;;  %v464_v32 = vunpack.c.0.s8 %v408_v24  ;;  %v468_v33 = vunpack.c.1.s8 %v408_v24 }
  0x3c   : > { %1536 = vperm.xlu0 %2633, %v830_v27   ;;  %1116 = vmatmul.bf16.gmra.mxu0 %v691_v26  ;;  %v410_v26 = vld [vmem:[%s2789_s22 + $0x58] sm:$0xff]  ;;  %v1719_v27 = vld [vmem:[%s2888_s17] sm:$0xff]  ;;  %v465_v34 = vunpack.c.0.s8 %v409_v25 }
  0x3d   : > { %1205 = vmatmul.bf16.gmra.mxu1 %v692_v28  ;;  %1294 = vmatmul.bf16.gmra.mxu2 %v693_v29  ;;  %v846_v28 = vld [vmem:[%s2743_s11 + $0xf8] sm:$0xff]  ;;  %v463_v29 = vunpack.c.0.s8 %v407_v23  ;;  %v470_v37 = vunpack.c.1.s8 %v410_v26  ;;  %v592_v40 = vcvt.s32.f32 %v464_v32  ;;  %v596_v41 = vcvt.s32.f32 %v468_v33 }
  0x3e   : > { %1383 = vmatmul.bf16.gmra.mxu3 %v694_v30  ;;  %v467_v30 = vunpack.c.1.s8 %v407_v23  ;;  %v593_v42 = vcvt.s32.f32 %v465_v34  ;;  %v474_v63 = vunpack.c.2.s8 %v410_v26  ;;  %v478_v0 = vunpack.c.3.s8 %v410_v26 }
  0x3f   : > { %v591_v38 = vcvt.s32.f32 %v463_v29  ;;  %v598_v45 = vcvt.s32.f32 %v470_v37  ;;  %v704_v50 = vpack.c.bf16 %v596_v41, %v592_v40 }
  0x40   : > { %v602_v7 = vcvt.s32.f32 %v474_v63  ;;  %v606_v8 = vcvt.s32.f32 %v478_v0 }
  0x42   : > { %1561 = vperm.xlu2 %2635, %v835_v35   ;;  %v469_v35 = vunpack.c.1.s8 %v409_v25 }
  0x43   : > { %1556 = vperm.xlu1 %2634, %v834_v36   ;;  %v466_v36 = vunpack.c.0.s8 %v410_v26 }
  0x44   : > { %1551 = vperm.xlu0 %2633, %v833_v39   ;;  %v595_v39 = vcvt.s32.f32 %v467_v30  ;;  %v597_v43 = vcvt.s32.f32 %v469_v35 }
  0x45   : > { %v594_v44 = vcvt.s32.f32 %v466_v36 }
  0x46   : > { %v703_v47 = vpack.c.bf16 %v595_v39, %v591_v38  ;;  %v705_v51 = vpack.c.bf16 %v597_v43, %v593_v42  ;;  %v1733_v43 = vld [vmem:[%s2888_s17 + $0x70] sm:$0xff] }
  0x47   : > { %v706_v52 = vpack.c.bf16 %v598_v45, %v594_v44  ;;  %v1734_v45 = vld [vmem:[%s2888_s17 + $0x78] sm:$0xff] }
  0x4a   : > { %1576 = vperm.xlu2 %2635, %v838_v54   ;;  %v1724_v54 = vld [vmem:[%s2888_s17 + $0x28] sm:$0xff] }
  0x4b   : > { %1571 = vperm.xlu1 %2634, %v837_v55   ;;  %v1725_v55 = vld [vmem:[%s2888_s17 + $0x30] sm:$0xff] }
  0x4c   : > { %1566 = vperm.xlu0 %2633, %v836_v57   ;;  %1121 = vmatmul.bf16.gmra.mxu0 %v695_v56  ;;  %v471_v56 = vunpack.c.2.s8 %v407_v23  ;;  %v475_v57 = vunpack.c.3.s8 %v407_v23 }
  0x4d   : > { %1210 = vmatmul.bf16.gmra.mxu1 %v696_v58  ;;  %1299 = vmatmul.bf16.gmra.mxu2 %v697_v59  ;;  %v1723_v58 = vld [vmem:[%s2888_s17 + $0x20] sm:$0xff]  ;;  %v472_v59 = vunpack.c.2.s8 %v408_v24 }
  0x4e   : > { %1388 = vmatmul.bf16.gmra.mxu3 %v698_v60  ;;  %v476_v60 = vunpack.c.3.s8 %v408_v24  ;;  %v603_v2 = vcvt.s32.f32 %v475_v57 }
  0x4f   : > { %v600_v3 = vcvt.s32.f32 %v472_v59 }
  0x50   : > { %v604_v4 = vcvt.s32.f32 %v476_v60 }
  0x52   : > { %1591 = vperm.xlu2 %2635, %v841_v61   ;;  %v473_v61 = vunpack.c.2.s8 %v409_v25  ;;  %v708_v13 = vpack.c.bf16 %v604_v4, %v600_v3 }
  0x53   : > { %1586 = vperm.xlu1 %2634, %v840_v62   ;;  %v477_v62 = vunpack.c.3.s8 %v409_v25  ;;  %v1729_v25 = vld [vmem:[%s2888_s17 + $0x50] sm:$0xff] }
  0x54   : > { %1581 = vperm.xlu0 %2633, %v839_v1   ;;  %v599_v1 = vcvt.s32.f32 %v471_v56  ;;  %v601_v5 = vcvt.s32.f32 %v473_v61 }
  0x55   : > { %v605_v6 = vcvt.s32.f32 %v477_v62 }
  0x56   : > { %v707_v10 = vpack.c.bf16 %v603_v2, %v599_v1 }
  0x57   : > { %v709_v14 = vpack.c.bf16 %v605_v6, %v601_v5 }
  0x5a   : > { %1606 = vperm.xlu2 %2635, %v844_v16   ;;  %v710_v16 = vpack.c.bf16 %v606_v8, %v602_v7 }
  0x5b   : > { %1601 = vperm.xlu1 %2634, %v843_v17   ;;  %v411_v17 = vld [vmem:[%s2789_s22 + $0x60] sm:$0xff] }
  0x5c   : > { %1596 = vperm.xlu0 %2633, %v842_v19   ;;  %1126 = vmatmul.bf16.gmra.mxu0 %v699_v18  ;;  %v2912_v18 = vld [vmem:[%s2789_s22 + $0x68] sm:$0xff]  ;;  %v2915_v19 = vld [vmem:[%s2789_s22 + $0x70] sm:$0xff]  ;;  %v479_v23 = vunpack.c.0.s8 %v411_v17  ;;  %v483_v24 = vunpack.c.1.s8 %v411_v17  ;;  %v487_v56 = vunpack.c.2.s8 %v411_v17  ;;  %v491_v57 = vunpack.c.3.s8 %v411_v17 }
  0x5d   : > { %1215 = vmatmul.bf16.gmra.mxu1 %v700_v20  ;;  %1304 = vmatmul.bf16.gmra.mxu2 %v701_v21  ;;  %v2918_v20 = vld [vmem:[%s2789_s22 + $0x78] sm:$0xff]  ;;  %v480_v26 = vunpack.c.0.s8 %v2912_v18  ;;  %v485_v29 = vunpack.c.1.s8 %v2915_v19  ;;  %v488_v59 = vunpack.c.2.s8 %v2912_v18  ;;  %v492_v60 = vunpack.c.3.s8 %v2912_v18 }
  0x5e   : > { %1393 = vmatmul.bf16.gmra.mxu3 %v702_v22  ;;  %v1730_v21 = vld [vmem:[%s2888_s17 + $0x58] sm:$0xff]  ;;  %v1731_v22 = vld [vmem:[%s2888_s17 + $0x60] sm:$0xff]  ;;  %v482_v30 = vunpack.c.0.s8 %v2918_v20  ;;  %v607_v33 = vcvt.s32.f32 %v479_v23  ;;  %v611_v34 = vcvt.s32.f32 %v483_v24  ;;  %v489_v61 = vunpack.c.2.s8 %v2915_v19  ;;  %v2970_v23 = vld [vmem:[%s2789_s22 + $0x88] sm:$0xff] }
  0x5f   : > { %v608_v36 = vcvt.s32.f32 %v480_v26  ;;  %v613_v39 = vcvt.s32.f32 %v485_v29  ;;  %v493_v62 = vunpack.c.3.s8 %v2915_v19  ;;  %v490_v63 = vunpack.c.2.s8 %v2918_v20  ;;  %v2973_v24 = vld [vmem:[%s2789_s22 + $0x90] sm:$0xff]  ;;  %v1742_v26 = vld [vmem:[%s2888_s17 + $0xb8] sm:$0xff] }
  0x60   : > { %v610_v41 = vcvt.s32.f32 %v482_v30  ;;  %v711_v44 = vpack.c.bf16 %v611_v34, %v607_v33  ;;  %v494_v0 = vunpack.c.3.s8 %v2918_v20  ;;  %v615_v1 = vcvt.s32.f32 %v487_v56  ;;  %v1741_v30 = vld [vmem:[%s2888_s17 + $0xb0] sm:$0xff] }
  0x61   : > { %v619_v2 = vcvt.s32.f32 %v491_v57  ;;  %v616_v4 = vcvt.s32.f32 %v488_v59  ;;  %v620_v5 = vcvt.s32.f32 %v492_v60  ;;  %v617_v6 = vcvt.s32.f32 %v489_v61  ;;  %v1746_v57 = vld [vmem:[%s2888_s17 + $0xd8] sm:$0xff]  ;;  %v1744_v59 = vld [vmem:[%s2888_s17 + $0xc8] sm:$0xff] }
  0x62   : > { %1753 = vperm.xlu2 %2635, %v1719_v27   ;;  %v484_v27 = vunpack.c.1.s8 %v2912_v18  ;;  %v621_v7 = vcvt.s32.f32 %v493_v62  ;;  %v500_v33 = vunpack.c.1.s8 %v2970_v23  ;;  %v497_v34 = vunpack.c.0.s8 %v2973_v24 }
  0x63   : > { %1616 = vperm.xlu1 %2634, %v846_v28   ;;  %v481_v28 = vunpack.c.0.s8 %v2915_v19  ;;  %v716_v17 = vpack.c.bf16 %v620_v5, %v616_v4  ;;  %v1748_v5 = vld [vmem:[%s2888_s17 + $0xe8] sm:$0xff] }
  0x64   : > { %1611 = vperm.xlu0 %2633, %v845_v31   ;;  %v486_v31 = vunpack.c.1.s8 %v2918_v20  ;;  %v612_v37 = vcvt.s32.f32 %v484_v27  ;;  %v717_v18 = vpack.c.bf16 %v621_v7, %v617_v6  ;;  %v1743_v27 = vld [vmem:[%s2888_s17 + $0xc0] sm:$0xff]  ;;  %v1749_v6 = vld [vmem:[%s2888_s17 + $0xf0] sm:$0xff] }
  0x65   : > { %v609_v38 = vcvt.s32.f32 %v481_v28 }
  0x66   : > { %v614_v42 = vcvt.s32.f32 %v486_v31  ;;  %v496_v31 = vunpack.c.0.s8 %v2970_v23 }
  0x6a   : > { %1768 = vperm.xlu2 %2635, %v1722_v48   ;;  %v713_v48 = vpack.c.bf16 %v613_v39, %v609_v38 }
  0x6b   : > { %1763 = vperm.xlu1 %2634, %v1721_v46   ;;  %v1732_v46 = vld [vmem:[%s2888_s17 + $0x68] sm:$0xff] }
  0x6c   : > { %1758 = vperm.xlu0 %2633, %v1720_v49   ;;  %1131 = vmatmul.bf16.gmra.mxu0 %v703_v47  ;;  %v2900_v53 = vpop.permute.xlu2 %1481  ;;  %v712_v47 = vpack.c.bf16 %v612_v37, %v608_v36  ;;  %v714_v49 = vpack.c.bf16 %v614_v42, %v610_v41  ;;  %v501_v36 = vunpack.c.1.s8 %v2973_v24 }
  0x6d   : > { %1220 = vmatmul.bf16.gmra.mxu1 %v704_v50  ;;  %1309 = vmatmul.bf16.gmra.mxu2 %v705_v51 }
  0x6e   : > { %1398 = vmatmul.bf16.gmra.mxu3 %v706_v52 }
  0x72   : > { %1783 = vperm.xlu2 %2635, %v1725_v55   ;;  %v1737_v55 = vld [vmem:[%s2888_s17 + $0x90] sm:$0xff] }
  0x73   : > { %1778 = vperm.xlu1 %2634, %v1724_v54   ;;  %v1736_v54 = vld [vmem:[%s2888_s17 + $0x88] sm:$0xff] }
  0x74   : > { %1773 = vperm.xlu0 %2633, %v1723_v58   ;;  %v2908_v15 = vpop.permute.xlu2 %1486  ;;  %v1735_v58 = vld [vmem:[%s2888_s17 + $0x80] sm:$0xff] }
  0x7a   : > { %1798 = vperm.xlu2 %2635, %v1728_v11  }
  0x7b   : > { %1793 = vperm.xlu1 %2634, %v1727_v9   ;;  %v618_v9 = vcvt.s32.f32 %v490_v63 }
  0x7c   : > { %1788 = vperm.xlu0 %2633, %v1726_v12   ;;  %1136 = vmatmul.bf16.gmra.mxu0 %v707_v10  ;;  %v2929_v32 = vpop.permute.xlu2 %1501  ;;  %v622_v10 = vcvt.s32.f32 %v494_v0  ;;  %v1739_v12 = vld [vmem:[%s2888_s17 + $0xa0] sm:$0xff] }
  0x7d   : > { %1225 = vmatmul.bf16.gmra.mxu1 %v708_v13  ;;  %1314 = vmatmul.bf16.gmra.mxu2 %v709_v14  ;;  %v715_v13 = vpack.c.bf16 %v619_v2, %v615_v1  ;;  %v1740_v14 = vld [vmem:[%s2888_s17 + $0xa8] sm:$0xff] }
  0x7e   : > { %1403 = vmatmul.bf16.gmra.mxu3 %v710_v16  ;;  %v1738_v16 = vld [vmem:[%s2888_s17 + $0x98] sm:$0xff]  ;;  %v718_v19 = vpack.c.bf16 %v622_v10, %v618_v9 }
  0x82   : > { %1813 = vperm.xlu2 %2635, %v1731_v22  }
  0x83   : > { %1808 = vperm.xlu1 %2634, %v1730_v21   ;;  %v2965_v21 = vld [vmem:[%s2789_s22 + $0x80] sm:$0xff] }
  0x84   : > { %1803 = vperm.xlu0 %2633, %v1729_v25   ;;  %v2940_v51 = vpop.permute.xlu2 %1516  ;;  %v2976_v25 = vld [vmem:[%s2789_s22 + $0x98] sm:$0xff]  ;;  %v495_v28 = vunpack.c.0.s8 %v2965_v21  ;;  %v499_v29 = vunpack.c.1.s8 %v2965_v21  ;;  %v503_v7 = vunpack.c.2.s8 %v2965_v21  ;;  %v507_v9 = vunpack.c.3.s8 %v2965_v21 }
  0x85   : > { %v2931_v35 = vpop.permute.xlu1 %1471  ;;  %v498_v38 = vunpack.c.0.s8 %v2976_v25  ;;  %v502_v39 = vunpack.c.1.s8 %v2976_v25  ;;  %v506_v21 = vunpack.c.2.s8 %v2976_v25 }
  0x86   : > { %v2933_v40 = vpop.permute.xlu0 %1461  ;;  %v623_v41 = vcvt.s32.f32 %v495_v28  ;;  %v627_v42 = vcvt.s32.f32 %v499_v29  ;;  %v631_v28 = vcvt.s32.f32 %v503_v7  ;;  %v635_v29 = vcvt.s32.f32 %v507_v9  ;;  %v3064_v7 = vld [vmem:[%s2789_s22 + $0xb8] sm:$0xff] }
  0x88   : > { %v719_v56 = vpack.c.bf16 %v627_v42, %v623_v41  ;;  %v723_v42 = vpack.c.bf16 %v635_v29, %v631_v28 }
  0x8a   : > { %1828 = vperm.xlu2 %2635, %v1734_v45   ;;  %v628_v45 = vcvt.s32.f32 %v500_v33 }
  0x8b   : > { %1823 = vperm.xlu1 %2634, %v1733_v43  }
  0x8c   : > { %1818 = vperm.xlu0 %2633, %v1732_v46   ;;  %1141 = vmatmul.bf16.gmra.mxu0 %v711_v44  ;;  %v2957_v11 = vpop.permute.xlu2 %1531  ;;  %v624_v44 = vcvt.s32.f32 %v496_v31  ;;  %v625_v46 = vcvt.s32.f32 %v497_v34 }
  0x8d   : > { %v2938_v50 = vpop.permute.xlu1 %1476  ;;  %1230 = vmatmul.bf16.gmra.mxu1 %v712_v47  ;;  %1319 = vmatmul.bf16.gmra.mxu2 %v713_v48  ;;  %v629_v47 = vcvt.s32.f32 %v501_v36 }
  0x8e   : > { %v2942_v52 = vpop.permute.xlu0 %1466  ;;  %1408 = vmatmul.bf16.gmra.mxu3 %v714_v49  ;;  %v626_v49 = vcvt.s32.f32 %v498_v38  ;;  %v720_v60 = vpack.c.bf16 %v628_v45, %v624_v44 }
  0x8f   : > { %v721_v61 = vpack.c.bf16 %v629_v47, %v625_v46  ;;  %v1750_v46 = vld [vmem:[%s2888_s17 + $0xf8] sm:$0xff] }
  0x92   : > { %1843 = vperm.xlu2 %2635, %v1737_v55   ;;  %v1745_v55 = vld [vmem:[%s2888_s17 + $0xd0] sm:$0xff] }
  0x93   : > { %1838 = vperm.xlu1 %2634, %v1736_v54   ;;  %v630_v54 = vcvt.s32.f32 %v502_v39 }
  0x94   : > { %1833 = vperm.xlu0 %2633, %v1735_v58   ;;  %v2987_v37 = vpop.permute.xlu2 %1546 }
  0x95   : > { %v2953_v3 = vpop.permute.xlu1 %1496  ;;  %v722_v63 = vpack.c.bf16 %v630_v54, %v626_v49 }
  0x96   : > { %v2955_v8 = vpop.permute.xlu0 %1491 }
  0x9a   : > { %1858 = vperm.xlu2 %2635, %v1740_v14   ;;  %v504_v14 = vunpack.c.2.s8 %v2970_v23 }
  0x9b   : > { %1853 = vperm.xlu1 %2634, %v1739_v12  }
  0x9c   : > { %1848 = vperm.xlu0 %2633, %v1738_v16   ;;  %1146 = vmatmul.bf16.gmra.mxu0 %v715_v13  ;;  %v3000_v0 = vpop.permute.xlu2 %1561  ;;  %v1747_v13 = vld [vmem:[%s2888_s17 + $0xe0] sm:$0xff]  ;;  %v508_v16 = vunpack.c.3.s8 %v2970_v23  ;;  %v632_v23 = vcvt.s32.f32 %v504_v14 }
  0x9d   : > { %v2962_v20 = vpop.permute.xlu1 %1511  ;;  %1235 = vmatmul.bf16.gmra.mxu1 %v716_v17  ;;  %1324 = vmatmul.bf16.gmra.mxu2 %v717_v18  ;;  %3374 = vst [vmem:[#allocation2_spill] sm:$0xff] %v3000_v0  ;;  %v505_v17 = vunpack.c.2.s8 %v2973_v24  ;;  %v509_v18 = vunpack.c.3.s8 %v2973_v24 }
  0x9e   : > { %v2967_v22 = vpop.permute.xlu0 %1506  ;;  %1413 = vmatmul.bf16.gmra.mxu3 %v718_v19  ;;  %v636_v31 = vcvt.s32.f32 %v508_v16 }
  0x9f   : > { %v633_v33 = vcvt.s32.f32 %v505_v17  ;;  %v637_v24 = vcvt.s32.f32 %v509_v18 }
  0xa0   : > { %v724_v47 = vpack.c.bf16 %v636_v31, %v632_v23  ;;  %v514_v31 = vunpack.c.0.s8 %v3064_v7 }
  0xa1   : > { %v725_v49 = vpack.c.bf16 %v637_v24, %v633_v33  ;;  %v518_v33 = vunpack.c.1.s8 %v3064_v7 }
  0xa2   : > { %1873 = vperm.xlu2 %2635, %v1743_v27   ;;  %v3034_v27 = vld [vmem:[%s3018_s16] sm:$0xff]  }
  0xa3   : > { %1868 = vperm.xlu1 %2634, %v1742_v26   ;;  %v510_v26 = vunpack.c.3.s8 %v2976_v25  ;;  %v634_v25 = vcvt.s32.f32 %v506_v21  ;;  %v2452_v39 = vunpack.c.l.bf16 %v3034_v27 }
  0xa4   : > { %1863 = vperm.xlu0 %2633, %v1741_v30   ;;  %v3038_v34 = vpop.permute.xlu2 %1576 }
  0xa5   : > { %v2991_v43 = vpop.permute.xlu1 %1526  ;;  %3375 = vst [vmem:[#allocation3_spill] sm:$0xff] %v3038_v34  ;;  %v638_v38 = vcvt.s32.f32 %v510_v26 }
  0xa6   : > { %v2993_v48 = vpop.permute.xlu0 %1521 }
  0xa9   : > { %v1112_v58 = vpop.f32.mrf.mxu0 }
  0xaa   : > { %v2998_v62 = vpop.f32.mrf.mxu1  ;;  %1888 = vperm.xlu2 %2635, %v1746_v57   ;;  %v2594_v57 = vld [vmem:[%s3018_s16 + $0x8] sm:$0xff]  }
  0xab   : > { %1883 = vperm.xlu1 %2634, %v1745_v55   ;;  %v726_v55 = vpack.c.bf16 %v638_v38, %v634_v25  ;;  %v2456_v9 = vunpack.c.l.bf16 %v2594_v57  ;;  %v2457_v14 = vunpack.c.h.bf16 %v2594_v57  ;;  %v2453_v25 = vunpack.c.h.bf16 %v3034_v27 }
  0xac   : > { %1878 = vperm.xlu0 %2633, %v1744_v59   ;;  %1151 = vmatmul.bf16.gmra.mxu0 %v719_v56  ;;  %v1113_v56 = vadd.f32 %v2452_v39, %v1112_v58  ;;  %v3066_v58 = vpop.permute.xlu2 %1591 }
  0xad   : > { %v3002_v1 = vpop.permute.xlu1 %1541  ;;  %1240 = vmatmul.bf16.gmra.mxu1 %v720_v60  ;;  %1329 = vmatmul.bf16.gmra.mxu2 %v721_v61  ;;  %v3052_v60 = vld [vmem:[%s2789_s22 + $0xa0] sm:$0xff]  ;;  %3378 = vst [vmem:[#allocation6_spill] sm:$0xff] %v3066_v58 }
  0xae   : > { %v3005_v2 = vpop.permute.xlu0 %1536  ;;  %1418 = vmatmul.bf16.gmra.mxu3 %v722_v63  ;;  %v3057_v63 = vld [vmem:[%s2789_s22 + $0xa8] sm:$0xff]  ;;  %v511_v16 = vunpack.c.0.s8 %v3052_v60  ;;  %v515_v17 = vunpack.c.1.s8 %v3052_v60 }
  0xaf   : > { %v512_v26 = vunpack.c.0.s8 %v3057_v63  ;;  %v516_v28 = vunpack.c.1.s8 %v3057_v63 }
  0xb0   : > { %v3007_v4 = vpop.f32.mrf.mxu2 }
  0xb1   : > { %v3020_v10 = vpop.f32.mrf.mxu3  ;;  %v3022_v12 = vpop.f32.mrf.mxu0 }
  0xb2   : > { %v3029_v19 = vpop.f32.mrf.mxu1  ;;  %1903 = vperm.xlu2 %2635, %v1749_v6   ;;  %v1202_v6 = vadd.f32 %v2998_v62, %v1113_v56  ;;  %v644_v56 = vcvt.s32.f32 %v516_v28 }
  0xb3   : > { %1898 = vperm.xlu1 %2634, %v1748_v5   ;;  %v3060_v5 = vld [vmem:[%s2789_s22 + $0xb0] sm:$0xff] }
  0xb4   : > { %1893 = vperm.xlu0 %2633, %v1747_v13   ;;  %v513_v62 = vunpack.c.0.s8 %v3060_v5  ;;  %v517_v29 = vunpack.c.1.s8 %v3060_v5  ;;  %v1291_v24 = vadd.f32 %v3007_v4, %v1202_v6  ;;  %v1115_v4 = vadd.f32 %v2453_v25, %v3022_v12 }
  0xb5   : > { %v3036_v30 = vpop.permute.xlu1 %1556 }
  0xb6   : > { %v3040_v36 = vpop.permute.xlu0 %1551  ;;  %v641_v57 = vcvt.s32.f32 %v513_v62  ;;  %v645_v58 = vcvt.s32.f32 %v517_v29  ;;  %v1380_v0 = vadd.f32 %v3020_v10, %v1291_v24  ;;  %v3092_v10 = vld [vmem:[%s3368_s4] ss:$0 sm:$0xff] }
  0xb8   : > { %v3043_v41 = vpop.f32.mrf.mxu2 }
  0xb9   : > { %v3045_v44 = vpop.f32.mrf.mxu3  ;;  %v1117_v45 = vpop.f32.mrf.mxu0 }
  0xba   : > { %v1206_v54 = vpop.f32.mrf.mxu1  ;;  %v1118_v38 = vadd.f32 %v2456_v9, %v1117_v45 }
  0xbc   : > { %1908 = vperm.xlu0 %2633, %v1750_v46   ;;  %1156 = vmatmul.bf16.gmra.mxu0 %v723_v42  ;;  %v639_v42 = vcvt.s32.f32 %v511_v16  ;;  %v643_v46 = vcvt.s32.f32 %v515_v17  ;;  %v1207_v27 = vadd.f32 %v1206_v54, %v1118_v38  ;;  %v523_v38 = vunpack.c.3.s8 %v3052_v60 }
  0xbd   : > { %v3049_v59 = vpop.permute.xlu1 %1571  ;;  %1245 = vmatmul.bf16.gmra.mxu1 %v724_v47  ;;  %1334 = vmatmul.bf16.gmra.mxu2 %v725_v49  ;;  %v2595_v49 = vld [vmem:[%s3018_s16 + $0x10] sm:$0xff]  }
  0xbe   : > { %3376 = vst [vmem:[#allocation4_spill] sm:$0xff] %v3049_v59  ;;  %v3054_v61 = vpop.permute.xlu0 %1566  ;;  %1423 = vmatmul.bf16.gmra.mxu3 %v726_v55  ;;  %v640_v55 = vcvt.s32.f32 %v512_v26  ;;  %v642_v59 = vcvt.s32.f32 %v514_v31  ;;  %v2460_v9 = vunpack.c.l.bf16 %v2595_v49  ;;  %v729_v26 = vpack.c.bf16 %v645_v58, %v641_v57 }
  0xbf   : > { %3377 = vst [vmem:[#allocation5_spill] sm:$0xff] %v3054_v61  ;;  %v646_v61 = vcvt.s32.f32 %v518_v33  ;;  %v1204_v31 = vadd.f32 %v3029_v19, %v1115_v4  ;;  %v3087_v33 = vpop.permute.xlu2 %1606  ;;  %v2461_v19 = vunpack.c.h.bf16 %v2595_v49  ;;  %v522_v57 = vunpack.c.2.s8 %v3064_v7 }
  0xc0   : > { %v1295_v13 = vpop.f32.mrf.mxu2  ;;  %v526_v4 = vunpack.c.3.s8 %v3064_v7 }
  0xc1   : > { %v1384_v18 = vpop.f32.mrf.mxu3  ;;  %v1119_v21 = vpop.f32.mrf.mxu0  ;;  %v730_v29 = vpack.c.bf16 %v646_v61, %v642_v59  ;;  %v1296_v12 = vadd.f32 %v1295_v13, %v1207_v27  ;;  %v519_v61 = vunpack.c.2.s8 %v3052_v60 }
  0xc2   : > { %v1208_v23 = vpop.f32.mrf.mxu1  ;;  %v1120_v39 = vadd.f32 %v2457_v14, %v1119_v21  ;;  %v727_v14 = vpack.c.bf16 %v643_v46, %v639_v42  ;;  %v728_v21 = vpack.c.bf16 %v644_v56, %v640_v55  ;;  %v524_v55 = vunpack.c.3.s8 %v3057_v63 }
  0xc3   : > { %v1385_v24 = vadd.f32 %v1384_v18, %v1296_v12  ;;  %v521_v56 = vunpack.c.2.s8 %v3060_v5 }
  0xc4   : > { %v1209_v45 = vadd.f32 %v1208_v23, %v1120_v39  ;;  %v1293_v23 = vadd.f32 %v3043_v41, %v1204_v31  ;;  %v520_v41 = vunpack.c.2.s8 %v3057_v63  ;;  %v651_v63 = vcvt.s32.f32 %v523_v38 }
  0xc5   : > { %v3078_v47 = vpop.permute.xlu1 %1586 }
  0xc6   : > { %3379 = vst [vmem:[#allocation7_spill] sm:$0xff] %v3078_v47  ;;  %v3081_v34 = vpop.permute.xlu0 %1581  ;;  %v1619_v47 = vmul.f32 %v2933_v40, %v1380_v0  ;;  %v1382_v39 = vadd.f32 %v3045_v44, %v1293_v23  ;;  %v647_v44 = vcvt.s32.f32 %v519_v61 }
  0xc8   : > { %v1297_v6 = vpop.f32.mrf.mxu2  ;;  %v1655_v0 = vadd.f32 %v3092_v10, %v1619_v47  ;;  %v525_v47 = vunpack.c.3.s8 %v3060_v5  ;;  %v1754_v5 = vpop.permute.xlu2 %1753 }
  0xc9   : > { %v1386_v16 = vpop.f32.mrf.mxu3  ;;  %v1122_v17 = vpop.f32.mrf.mxu0  ;;  %v1298_v28 = vadd.f32 %v1297_v6, %v1209_v45  ;;  %v3111_v45 = vld [vmem:[%s3018_s16 + $0x18] sm:$0xff]   ;;  %v1621_v6 = vmul.f32 %v2931_v35, %v1385_v24  ;;  %v650_v35 = vcvt.s32.f32 %v522_v57 }
  0xca   : > { %v1211_v62 = vpop.f32.mrf.mxu1  ;;  %v1123_v54 = vadd.f32 %v2460_v9, %v1122_v17  ;;  %v1687_v60 = vmax.f32 %v1655_v0, 0.0  ;;  %v652_v17 = vcvt.s32.f32 %v524_v55  ;;  %v3125_v0 = vld [vmem:[%s2789_s22 + $0xc0] sm:$0xff] }
  0xcb   : > { %v1387_v59 = vadd.f32 %v1386_v16, %v1298_v28  ;;  %v1620_v16 = vmul.f32 %v2942_v52, %v1382_v39  ;;  %v1657_v23 = vadd.f32 %v3092_v10, %v1621_v6 }
  0xcc   : > { %1161 = vmatmul.bf16.gmra.mxu0 %v727_v14  ;;  %v1212_v25 = vadd.f32 %v1211_v62, %v1123_v54  ;;  %v648_v14 = vcvt.s32.f32 %v520_v41  ;;  %v2464_v62 = vunpack.c.l.bf16 %v3111_v45  ;;  %v3121_v12 = vmul.f32 %v1754_v5, %v1687_v60  ;;  %v3129_v41 = vld [vmem:[%s2789_s22 + $0xc8] sm:$0xff] }
  0xcd   : > { %v3095_v58 = vpop.permute.xlu1 %1601  ;;  %1250 = vmatmul.bf16.gmra.mxu1 %v728_v21  ;;  %1339 = vmatmul.bf16.gmra.mxu2 %v729_v26  ;;  %v1622_v49 = vmul.f32 %v2938_v50, %v1387_v59  ;;  %v649_v21 = vcvt.s32.f32 %v521_v56  ;;  %v653_v26 = vcvt.s32.f32 %v525_v47  ;;  %v731_v59 = vpack.c.bf16 %v651_v63, %v647_v44 }
  0xce   : > { %v3097_v40 = vpop.permute.xlu0 %1596  ;;  %1428 = vmatmul.bf16.gmra.mxu3 %v730_v29  ;;  %v654_v29 = vcvt.s32.f32 %v526_v4  ;;  %v527_v47 = vunpack.c.0.s8 %v3125_v0  ;;  %v2044_v57 = vmul.f32 %v3121_v12, %v3121_v12  ;;  %v1689_v60 = vmax.f32 %v1657_v23, 0.0 }
  0xcf   : > { %v1658_v7 = vadd.f32 %v3092_v10, %v1622_v49  ;;  %v733_v38 = vpack.c.bf16 %v653_v26, %v649_v21  ;;  %v531_v49 = vunpack.c.1.s8 %v3125_v0 }
  0xd0   : > { %v1300_v13 = vpop.f32.mrf.mxu2  ;;  %v1769_v44 = vpop.permute.xlu2 %1768 }
  0xd1   : > { %v1389_v42 = vpop.f32.mrf.mxu3  ;;  %v1124_v46 = vpop.f32.mrf.mxu0  ;;  %v1301_v9 = vadd.f32 %v1300_v13, %v1212_v25  ;;  %v1656_v25 = vadd.f32 %v3092_v10, %v1620_v16  ;;  %v732_v13 = vpack.c.bf16 %v652_v17, %v648_v14  ;;  %v1690_v39 = vmax.f32 %v1658_v7, 0.0 }
  0xd2   : > { %v1213_v18 = vpop.f32.mrf.mxu1  ;;  %v1125_v27 = vadd.f32 %v2461_v19, %v1124_v46  ;;  %v2465_v16 = vunpack.c.h.bf16 %v3111_v45  ;;  %v3151_v7 = vcvt.s32.f32 %v527_v47 }
  0xd3   : > { %v1390_v52 = vadd.f32 %v1389_v42, %v1301_v9  ;;  %v734_v42 = vpack.c.bf16 %v654_v29, %v650_v35  ;;  %v1688_v14 = vmax.f32 %v1656_v25, 0.0  ;;  %v1914_v5 = vmul.f32 %v1769_v44, %v1690_v39  ;;  %v3157_v35 = vld [vmem:[%s2789_s22 + $0xd8] sm:$0xff] }
  0xd4   : > { %v1214_v31 = vadd.f32 %v1213_v18, %v1125_v27  ;;  %v3134_v18 = vld [vmem:[%s2789_s22 + $0xd0] sm:$0xff]  ;;  %v528_v27 = vunpack.c.0.s8 %v3129_v41 }
  0xd5   : > { %v3115_v50 = vpop.permute.xlu1 %1616  ;;  %v1623_v4 = vmul.f32 %v2900_v53, %v1390_v52  ;;  %v532_v53 = vunpack.c.1.s8 %v3129_v41  ;;  %v529_v26 = vunpack.c.0.s8 %v3134_v18  ;;  %v533_v45 = vunpack.c.1.s8 %v3134_v18 }
  0xd6   : > { %v3118_v28 = vpop.permute.xlu0 %1611  ;;  %v3161_v23 = vcvt.s32.f32 %v528_v27  ;;  %v2047_v44 = vmul.f32 %v1914_v5, %v1914_v5 }
  0xd7   : > { %v660_v39 = vcvt.s32.f32 %v532_v53 }
  0xd8   : > { %v1302_v54 = vpop.f32.mrf.mxu2 }
  0xd9   : > { %v1303_v19 = vadd.f32 %v1302_v54, %v1214_v31  ;;  %v1391_v61 = vpop.f32.mrf.mxu3  ;;  %v1127_v24 = vpop.f32.mrf.mxu0  ;;  %v1659_v54 = vadd.f32 %v3092_v10, %v1623_v4 }
  0xda   : > { %v1128_v46 = vadd.f32 %v2464_v62, %v1127_v24  ;;  %v1216_v55 = vpop.f32.mrf.mxu1  ;;  %v3153_v62 = vcvt.s32.f32 %v531_v49 }
  0xdb   : > { %v1392_v56 = vadd.f32 %v1391_v61, %v1303_v19 }
  0xdc   : > { %1166 = vmatmul.bf16.gmra.mxu0 %v731_v59  ;;  %v1217_v9 = vadd.f32 %v1216_v55, %v1128_v46  ;;  %v657_v46 = vcvt.s32.f32 %v529_v26  ;;  %v530_v55 = vunpack.c.0.s8 %v3157_v35 }
  0xdd   : > { %v1624_v6 = vmul.f32 %v2908_v15, %v1392_v56  ;;  %v1764_v63 = vpop.permute.xlu1 %1763  ;;  %1255 = vmatmul.bf16.gmra.mxu1 %v732_v13  ;;  %1344 = vmatmul.bf16.gmra.mxu2 %v733_v38 }
  0xde   : > { %v1913_v17 = vmul.f32 %v1764_v63, %v1689_v60  ;;  %v1759_v21 = vpop.permute.xlu0 %1758  ;;  %1433 = vmatmul.bf16.gmra.mxu3 %v734_v42  ;;  %v534_v42 = vunpack.c.1.s8 %v3157_v35  ;;  %v3170_v60 = vld [vmem:[%s3018_s16 + $0x20] sm:$0xff]  }
  0xdf   : > { %v1912_v15 = vmul.f32 %v1759_v21, %v1688_v14  ;;  %v1660_v52 = vadd.f32 %v3092_v10, %v1624_v6  ;;  %v661_v6 = vcvt.s32.f32 %v533_v45  ;;  %v1691_v21 = vmax.f32 %v1659_v54, 0.0 }
  0xe0   : > { %v2522_v29 = vpack.c.bf16 %v1914_v5, %v1913_v17  ;;  %v1305_v31 = vpop.f32.mrf.mxu2  ;;  %v2046_v56 = vmul.f32 %v1913_v17, %v1913_v17  ;;  %v735_v45 = vpack.c.bf16 %v3153_v62, %v3151_v7 }
  0xe1   : > { %v2517_v59 = vpack.c.bf16 %v1912_v15, %v3121_v12  ;;  %v2007_v19 = vadd.f32 %v1912_v15, %v3121_v12  ;;  %v2045_v61 = vmul.f32 %v1912_v15, %v1912_v15  ;;  %v1306_v24 = vadd.f32 %v1305_v31, %v1217_v9  ;;  %v1394_v25 = vpop.f32.mrf.mxu3  ;;  %v1129_v13 = vpop.f32.mrf.mxu0 }
  0xe2   : > { %2609 = vst [vmem:[%s3149_s24 + $0x8] sm:$0xff] %v2522_v29   ;;  %v1218_v38 = vpop.f32.mrf.mxu1  ;;  %v1130_v12 = vadd.f32 %v2465_v16, %v1129_v13  ;;  %v1692_v27 = vmax.f32 %v1660_v52, 0.0  ;;  %v2468_v29 = vunpack.c.l.bf16 %v3170_v60  ;;  %v658_v31 = vcvt.s32.f32 %v530_v55 }
  0xe3   : > { %2518 = vst [vmem:[%s3149_s24] sm:$0xff] %v2517_v59   ;;  %v2008_v47 = vadd.f32 %v2007_v19, %v1913_v17  ;;  %v2076_v49 = vadd.f32 %v2045_v61, %v2044_v57  ;;  %v1395_v4 = vadd.f32 %v1394_v25, %v1306_v24  ;;  %v662_v17 = vcvt.s32.f32 %v534_v42  ;;  %v1784_v42 = vpop.permute.xlu2 %1783 }
  0xe4   : > { %v1219_v16 = vadd.f32 %v1218_v38, %v1130_v12  ;;  %v737_v54 = vpack.c.bf16 %v661_v6, %v657_v46 }
  0xe5   : > { %v2077_v9 = vadd.f32 %v2076_v49, %v2046_v56  ;;  %v1625_v63 = vmul.f32 %v2955_v8, %v1395_v4  ;;  %v1779_v14 = vpop.permute.xlu1 %1778  ;;  %v2009_v53 = vadd.f32 %v2008_v47, %v1914_v5  ;;  %v736_v8 = vpack.c.bf16 %v660_v39, %v3161_v23 }
  0xe6   : > { %v1916_v26 = vmul.f32 %v1779_v14, %v1692_v27  ;;  %v1774_v15 = vpop.permute.xlu0 %1773  ;;  %v738_v4 = vpack.c.bf16 %v662_v17, %v658_v31  ;;  %v535_v14 = vunpack.c.2.s8 %v3125_v0  ;;  %v537_v31 = vunpack.c.2.s8 %v3134_v18 }
  0xe7   : > { %v1661_v57 = vadd.f32 %v3092_v10, %v1625_v63  ;;  %v1915_v59 = vmul.f32 %v1774_v15, %v1691_v21  ;;  %v2078_v19 = vadd.f32 %v2077_v9, %v2047_v44  ;;  %v2469_v63 = vunpack.c.h.bf16 %v3170_v60 }
  0xe8   : > { %v1307_v52 = vpop.f32.mrf.mxu2  ;;  %v2049_v12 = vmul.f32 %v1916_v26, %v1916_v26  ;;  %v539_v21 = vunpack.c.3.s8 %v3125_v0  ;;  %v536_v15 = vunpack.c.2.s8 %v3129_v41  ;;  %v538_v60 = vunpack.c.2.s8 %v3157_v35 }
  0xe9   : > { %v1693_v5 = vmax.f32 %v1661_v57, 0.0  ;;  %v2527_v61 = vpack.c.bf16 %v1916_v26, %v1915_v59  ;;  %v2010_v24 = vadd.f32 %v2009_v53, %v1915_v59  ;;  %v2048_v25 = vmul.f32 %v1915_v59, %v1915_v59  ;;  %v1396_v13 = vpop.f32.mrf.mxu3  ;;  %v1132_v55 = vpop.f32.mrf.mxu0 }
  0xea   : > { %v1308_v56 = vadd.f32 %v1307_v52, %v1219_v16  ;;  %v1133_v47 = vadd.f32 %v2468_v29, %v1132_v55  ;;  %v1221_v49 = vpop.f32.mrf.mxu1  ;;  %v540_v29 = vunpack.c.3.s8 %v3129_v41  ;;  %v541_v59 = vunpack.c.3.s8 %v3134_v18  ;;  %v3190_v52 = vld [vmem:[%s3018_s16 + $0x28] sm:$0xff]  }
  0xeb   : > { %v1917_v38 = vmul.f32 %v1784_v42, %v1693_v5  ;;  %2610 = vst [vmem:[%s3149_s24 + $0x10] sm:$0xff] %v2527_v61   ;;  %v2011_v27 = vadd.f32 %v2010_v24, %v1916_v26  ;;  %v2079_v7 = vadd.f32 %v2078_v19, %v2048_v25  ;;  %v542_v0 = vunpack.c.3.s8 %v3157_v35 }
  0xec   : > { %v1397_v62 = vadd.f32 %v1396_v13, %v1308_v56  ;;  %v1222_v44 = vadd.f32 %v1221_v49, %v1133_v47  ;;  %1171 = vmatmul.bf16.gmra.mxu0 %v735_v45  ;;  %v663_v5 = vcvt.s32.f32 %v535_v14  ;;  %v667_v41 = vcvt.s32.f32 %v539_v21 }
  0xed   : > { %v2080_v23 = vadd.f32 %v2079_v7, %v2049_v12  ;;  %v2012_v39 = vadd.f32 %v2011_v27, %v1917_v38  ;;  %v2050_v46 = vmul.f32 %v1917_v38, %v1917_v38  ;;  %1260 = vmatmul.bf16.gmra.mxu1 %v736_v8  ;;  %1349 = vmatmul.bf16.gmra.mxu2 %v737_v54  ;;  %v664_v24 = vcvt.s32.f32 %v536_v15 }
  0xee   : > { %v1626_v6 = vmul.f32 %v2953_v3, %v1397_v62  ;;  %1438 = vmatmul.bf16.gmra.mxu3 %v738_v4  ;;  %v1789_v45 = vpop.permute.xlu0 %1788  ;;  %v668_v25 = vcvt.s32.f32 %v540_v29  ;;  %v665_v13 = vcvt.s32.f32 %v537_v31  ;;  %v2472_v55 = vunpack.c.l.bf16 %v3190_v52  ;;  %v3198_v29 = vld [vmem:[%s2789_s22 + $0xe0] sm:$0xff] }
  0xef   : > { %v2081_v9 = vadd.f32 %v2080_v23, %v2050_v46  ;;  %v669_v42 = vcvt.s32.f32 %v541_v59  ;;  %v666_v56 = vcvt.s32.f32 %v538_v60  ;;  %v670_v35 = vcvt.s32.f32 %v542_v0  ;;  %v3205_v59 = vld [vmem:[%s2789_s22 + $0xf0] sm:$0xff] }
  0xf0   : > { %v1662_v53 = vadd.f32 %v3092_v10, %v1626_v6  ;;  %v1310_v26 = vpop.f32.mrf.mxu2  ;;  %v543_v60 = vunpack.c.0.s8 %v3198_v29  ;;  %v2473_v0 = vunpack.c.h.bf16 %v3190_v52 }
  0xf1   : > { %v1311_v17 = vadd.f32 %v1310_v26, %v1222_v44  ;;  %v1399_v3 = vpop.f32.mrf.mxu3  ;;  %v1134_v57 = vpop.f32.mrf.mxu0  ;;  %v739_v44 = vpack.c.bf16 %v667_v41, %v663_v5  ;;  %v741_v14 = vpack.c.bf16 %v669_v42, %v665_v13  ;;  %v545_v41 = vunpack.c.0.s8 %v3205_v59 }
  0xf2   : > { %v1694_v19 = vmax.f32 %v1662_v53, 0.0  ;;  %v1223_v16 = vpop.f32.mrf.mxu1  ;;  %v1135_v54 = vadd.f32 %v2469_v63, %v1134_v57  ;;  %v740_v63 = vpack.c.bf16 %v668_v25, %v664_v24  ;;  %v742_v53 = vpack.c.bf16 %v670_v35, %v666_v56  ;;  %v3202_v57 = vld [vmem:[%s2789_s22 + $0xe8] sm:$0xff] }
  0xf3   : > { %v1400_v8 = vadd.f32 %v1399_v3, %v1311_v17  ;;  %v548_v5 = vunpack.c.1.s8 %v3202_v57  ;;  %v671_v42 = vcvt.s32.f32 %v543_v60 }
  0xf4   : > { %v1918_v61 = vmul.f32 %v1789_v45, %v1694_v19  ;;  %v1224_v27 = vadd.f32 %v1223_v16, %v1135_v54  ;;  %v547_v45 = vunpack.c.1.s8 %v3198_v29 }
  0xf5   : > { %v1627_v18 = vmul.f32 %v2929_v32, %v1400_v8  ;;  %v3212_v8 = vld [vmem:[%s2789_s22 + $0xf8] sm:$0xff] }
  0xf6   : > { %v2532_v47 = vpack.c.bf16 %v1918_v61, %v1917_v38  ;;  %v2013_v49 = vadd.f32 %v2012_v39, %v1918_v61  ;;  %v2051_v4 = vmul.f32 %v1918_v61, %v1918_v61  ;;  %v1794_v38 = vpop.permute.xlu1 %1793  ;;  %v549_v61 = vunpack.c.1.s8 %v3205_v59 }
  0xf7   : > { %v1663_v12 = vadd.f32 %v3092_v10, %v1627_v18  ;;  %v546_v56 = vunpack.c.0.s8 %v3212_v8 }
  0xf8   : > { %2611 = vst [vmem:[%s3149_s24 + $0x18] sm:$0xff] %v2532_v47   ;;  %v2082_v7 = vadd.f32 %v2081_v9, %v2051_v4  ;;  %v1312_v62 = vpop.f32.mrf.mxu2  ;;  %v550_v47 = vunpack.c.1.s8 %v3212_v8 }
  0xf9   : > { %v1695_v23 = vmax.f32 %v1663_v12, 0.0  ;;  %v1313_v46 = vadd.f32 %v1312_v62, %v1224_v27  ;;  %v1401_v6 = vpop.f32.mrf.mxu3  ;;  %v1137_v32 = vpop.f32.mrf.mxu0  ;;  %v2599_v12 = vld [vmem:[%s3018_s16 + $0x30] sm:$0xff]   ;;  %v675_v27 = vcvt.s32.f32 %v547_v45  ;;  %v676_v62 = vcvt.s32.f32 %v548_v5 }
  0xfa   : > { %v1138_v39 = vadd.f32 %v2472_v55, %v1137_v32  ;;  %v1226_v21 = vpop.f32.mrf.mxu1  ;;  %v1799_v55 = vpop.permute.xlu2 %1798 }
  0xfb   : > { %v1919_v26 = vmul.f32 %v1794_v38, %v1695_v23  ;;  %v1402_v15 = vadd.f32 %v1401_v6, %v1313_v46  ;;  %v677_v23 = vcvt.s32.f32 %v549_v61  ;;  %v674_v38 = vcvt.s32.f32 %v546_v56 }
  0xfc   : > { %v1227_v9 = vadd.f32 %v1226_v21, %v1138_v39  ;;  %1176 = vmatmul.bf16.gmra.mxu0 %v739_v44  ;;  %v673_v44 = vcvt.s32.f32 %v545_v41  ;;  %v678_v39 = vcvt.s32.f32 %v550_v47  ;;  %v552_v47 = vunpack.c.2.s8 %v3202_v57 }
  0xfd   : > { %v2014_v31 = vadd.f32 %v2013_v49, %v1919_v26  ;;  %v2052_v17 = vmul.f32 %v1919_v26, %v1919_v26  ;;  %v1628_v3 = vmul.f32 %v2967_v22, %v1402_v15  ;;  %1265 = vmatmul.bf16.gmra.mxu1 %v740_v63  ;;  %1354 = vmatmul.bf16.gmra.mxu2 %v741_v14  ;;  %v544_v22 = vunpack.c.0.s8 %v3202_v57 }
  0xfe   : > { %1443 = vmatmul.bf16.gmra.mxu3 %v742_v53  ;;  %v2476_v14 = vunpack.c.l.bf16 %v2599_v12 }
  0xff   : > { %v2083_v19 = vadd.f32 %v2082_v7, %v2052_v17  ;;  %v1664_v16 = vadd.f32 %v3092_v10, %v1628_v3  ;;  %v672_v7 = vcvt.s32.f32 %v544_v22  ;;  %v743_v17 = vpack.c.bf16 %v675_v27, %v671_v42 }
 0x100   : > { %v1315_v54 = vpop.f32.mrf.mxu2  ;;  %v555_v42 = vunpack.c.3.s8 %v3198_v29 }
 0x101   : > { %v1696_v24 = vmax.f32 %v1664_v16, 0.0  ;;  %v1316_v25 = vadd.f32 %v1315_v54, %v1227_v9  ;;  %v1404_v13 = vpop.f32.mrf.mxu3  ;;  %v1139_v18 = vpop.f32.mrf.mxu0  ;;  %v744_v45 = vpack.c.bf16 %v676_v62, %v672_v7 }
 0x102   : > { %v1228_v52 = vpop.f32.mrf.mxu1  ;;  %v1140_v35 = vadd.f32 %v2473_v0, %v1139_v18 }
 0x103   : > { %v1920_v49 = vmul.f32 %v1799_v55, %v1696_v24  ;;  %v1405_v4 = vadd.f32 %v1404_v13, %v1316_v25  ;;  %v551_v13 = vunpack.c.2.s8 %v3198_v29  ;;  %v558_v29 = vunpack.c.3.s8 %v3212_v8 }
 0x104   : > { %v1229_v15 = vadd.f32 %v1228_v52, %v1140_v35  ;;  %v2477_v52 = vunpack.c.h.bf16 %v2599_v12  ;;  %v554_v12 = vunpack.c.2.s8 %v3212_v8 }
 0x105   : > { %v2537_v46 = vpack.c.bf16 %v1920_v49, %v1919_v26  ;;  %v2015_v6 = vadd.f32 %v2014_v31, %v1920_v49  ;;  %v2053_v32 = vmul.f32 %v1920_v49, %v1920_v49  ;;  %v1629_v63 = vmul.f32 %v2962_v20, %v1405_v4  ;;  %v1804_v31 = vpop.permute.xlu0 %1803 }
 0x106   : > { %v745_v26 = vpack.c.bf16 %v677_v23, %v673_v44  ;;  %v746_v20 = vpack.c.bf16 %v678_v39, %v674_v38  ;;  %v556_v49 = vunpack.c.3.s8 %v3202_v57  ;;  %v553_v4 = vunpack.c.2.s8 %v3205_v59  ;;  %v1809_v44 = vpop.permute.xlu1 %1808  ;;  %v2600_v57 = vld [vmem:[%s3018_s16 + $0x38] sm:$0xff]  }
 0x107   : > { %2612 = vst [vmem:[%s3149_s24 + $0x20] sm:$0xff] %v2537_v46   ;;  %v2084_v21 = vadd.f32 %v2083_v19, %v2053_v32  ;;  %v1665_v53 = vadd.f32 %v3092_v10, %v1629_v63  ;;  %v679_v46 = vcvt.s32.f32 %v551_v13  ;;  %v680_v38 = vcvt.s32.f32 %v552_v47 }
 0x108   : > { %v1317_v9 = vpop.f32.mrf.mxu2  ;;  %v684_v39 = vcvt.s32.f32 %v556_v49 }
 0x109   : > { %v1697_v3 = vmax.f32 %v1665_v53, 0.0  ;;  %v1318_v60 = vadd.f32 %v1317_v9, %v1229_v15  ;;  %v1406_v16 = vpop.f32.mrf.mxu3  ;;  %v1142_v0 = vpop.f32.mrf.mxu0 }
 0x10a   : > { %v1143_v54 = vadd.f32 %v2476_v14, %v1142_v0  ;;  %v1231_v22 = vpop.f32.mrf.mxu1  ;;  %v683_v14 = vcvt.s32.f32 %v555_v42 }
 0x10b   : > { %v1921_v5 = vmul.f32 %v1804_v31, %v1697_v3  ;;  %v1407_v41 = vadd.f32 %v1406_v16, %v1318_v60  ;;  %v2480_v3 = vunpack.c.l.bf16 %v2600_v57  ;;  %v682_v60 = vcvt.s32.f32 %v554_v12 }
 0x10c   : > { %v1232_v61 = vadd.f32 %v1231_v22, %v1143_v54  ;;  %1181 = vmatmul.bf16.gmra.mxu0 %v743_v17  ;;  %v686_v16 = vcvt.s32.f32 %v558_v29  ;;  %v747_v31 = vpack.c.bf16 %v683_v14, %v679_v46 }
 0x10d   : > { %v2016_v19 = vadd.f32 %v2015_v6, %v1921_v5  ;;  %v2054_v24 = vmul.f32 %v1921_v5, %v1921_v5  ;;  %v1630_v25 = vmul.f32 %v2940_v51, %v1407_v41  ;;  %1270 = vmatmul.bf16.gmra.mxu1 %v744_v45  ;;  %1359 = vmatmul.bf16.gmra.mxu2 %v745_v26  ;;  %v557_v51 = vunpack.c.3.s8 %v3205_v59 }
 0x10e   : > { %1448 = vmatmul.bf16.gmra.mxu3 %v746_v20  ;;  %v681_v59 = vcvt.s32.f32 %v553_v4  ;;  %v2481_v4 = vunpack.c.h.bf16 %v2600_v57 }
 0x10f   : > { %v2085_v18 = vadd.f32 %v2084_v21, %v2054_v24  ;;  %v1666_v55 = vadd.f32 %v3092_v10, %v1630_v25  ;;  %v685_v21 = vcvt.s32.f32 %v557_v51 }
 0x110   : > { %v1320_v56 = vpop.f32.mrf.mxu2 }
 0x111   : > { %v1698_v35 = vmax.f32 %v1666_v55, 0.0  ;;  %v1321_v27 = vadd.f32 %v1320_v56, %v1232_v61  ;;  %v1409_v7 = vpop.f32.mrf.mxu3  ;;  %v1144_v62 = vpop.f32.mrf.mxu0  ;;  %v748_v61 = vpack.c.bf16 %v684_v39, %v680_v38 }
 0x112   : > { %v1233_v23 = vpop.f32.mrf.mxu1  ;;  %v1145_v63 = vadd.f32 %v2477_v52, %v1144_v62 }
 0x113   : > { %v1922_v6 = vmul.f32 %v1809_v44, %v1698_v35  ;;  %v1410_v32 = vadd.f32 %v1409_v7, %v1321_v27  ;;  %v1819_v44 = vpop.permute.xlu0 %1818 }
 0x114   : > { %v1234_v45 = vadd.f32 %v1233_v23, %v1145_v63 }
 0x115   : > { %v2542_v53 = vpack.c.bf16 %v1922_v6, %v1921_v5  ;;  %v2017_v15 = vadd.f32 %v2016_v19, %v1922_v6  ;;  %v2055_v9 = vmul.f32 %v1922_v6, %v1922_v6  ;;  %v1631_v17 = vmul.f32 %v2993_v48, %v1410_v32  ;;  %v1814_v19 = vpop.permute.xlu2 %1813 }
 0x116   : > { %v749_v5 = vpack.c.bf16 %v685_v21, %v681_v59  ;;  %v750_v48 = vpack.c.bf16 %v686_v16, %v682_v60 }
 0x117   : > { %2613 = vst [vmem:[%s3149_s24 + $0x28] sm:$0xff] %v2542_v53   ;;  %v2086_v8 = vadd.f32 %v2085_v18, %v2055_v9  ;;  %v1667_v0 = vadd.f32 %v3092_v10, %v1631_v17 }
 0x118   : > { %v1322_v26 = vpop.f32.mrf.mxu2 }
 0x119   : > { %v1699_v54 = vmax.f32 %v1667_v0, 0.0  ;;  %v1323_v22 = vadd.f32 %v1322_v26, %v1234_v45  ;;  %v1411_v20 = vpop.f32.mrf.mxu3  ;;  %v1147_v41 = vpop.f32.mrf.mxu0 }
 0x11a   : > { %v1148_v24 = vadd.f32 %v2480_v3, %v1147_v41  ;;  %v1236_v25 = vpop.f32.mrf.mxu1  ;;  %v1824_v3 = vpop.permute.xlu1 %1823 }
 0x11b   : > { %v1923_v13 = vmul.f32 %v1814_v19, %v1699_v54  ;;  %v1412_v55 = vadd.f32 %v1411_v20, %v1323_v22 }
 0x11c   : > { %v1237_v52 = vadd.f32 %v1236_v25, %v1148_v24  ;;  %1186 = vmatmul.bf16.gmra.mxu0 %v747_v31 }
 0x11d   : > { %v2018_v18 = vadd.f32 %v2017_v15, %v1923_v13  ;;  %v2056_v42 = vmul.f32 %v1923_v13, %v1923_v13  ;;  %v1632_v56 = vmul.f32 %v2991_v43, %v1412_v55  ;;  %1275 = vmatmul.bf16.gmra.mxu1 %v748_v61  ;;  %1364 = vmatmul.bf16.gmra.mxu2 %v749_v5  ;;  %v2601_v43 = vld [vmem:[%s3018_s16 + $0x40] sm:$0xff]   ;;  %v1829_v25 = vpop.permute.xlu2 %1828 }
 0x11e   : > { %1453 = vmatmul.bf16.gmra.mxu3 %v750_v48  ;;  %v2484_v38 = vunpack.c.l.bf16 %v2601_v43  ;;  %v2485_v20 = vunpack.c.h.bf16 %v2601_v43 }
 0x11f   : > { %v2087_v47 = vadd.f32 %v2086_v8, %v2056_v42  ;;  %v1668_v49 = vadd.f32 %v3092_v10, %v1632_v56 }
 0x120   : > { %v1325_v51 = vpop.f32.mrf.mxu2 }
 0x121   : > { %v1700_v35 = vmax.f32 %v1668_v49, 0.0  ;;  %v1326_v27 = vadd.f32 %v1325_v51, %v1237_v52  ;;  %v1414_v7 = vpop.f32.mrf.mxu3  ;;  %v1149_v62 = vpop.f32.mrf.mxu0 }
 0x122   : > { %v1238_v23 = vpop.f32.mrf.mxu1  ;;  %v1150_v29 = vadd.f32 %v2481_v4, %v1149_v62 }
 0x123   : > { %v1924_v46 = vmul.f32 %v1819_v44, %v1700_v35  ;;  %v1415_v12 = vadd.f32 %v1414_v7, %v1326_v27 }
 0x124   : > { %v1239_v59 = vadd.f32 %v1238_v23, %v1150_v29 }
 0x125   : > { %v2547_v6 = vpack.c.bf16 %v1924_v46, %v1923_v13  ;;  %v2019_v32 = vadd.f32 %v2018_v18, %v1924_v46  ;;  %v2057_v63 = vmul.f32 %v1924_v46, %v1924_v46  ;;  %v1633_v14 = vmul.f32 %v2957_v11, %v1415_v12  ;;  %v2602_v18 = vld [vmem:[%s3018_s16 + $0x48] sm:$0xff]   ;;  %v1834_v46 = vpop.permute.xlu0 %1833 }
 0x126   : > { %v2488_v49 = vunpack.c.l.bf16 %v2602_v18 }
 0x127   : > { %2614 = vst [vmem:[%s3149_s24 + $0x30] sm:$0xff] %v2547_v6   ;;  %v2088_v57 = vadd.f32 %v2087_v47, %v2057_v63  ;;  %v1669_v39 = vadd.f32 %v3092_v10, %v1633_v14 }
 0x128   : > { %v1327_v21 = vpop.f32.mrf.mxu2 }
 0x129   : > { %v1701_v53 = vmax.f32 %v1669_v39, 0.0  ;;  %v1328_v15 = vadd.f32 %v1327_v21, %v1239_v59  ;;  %v1416_v9 = vpop.f32.mrf.mxu3  ;;  %v1152_v17 = vpop.f32.mrf.mxu0  ;;  %v2489_v39 = vunpack.c.h.bf16 %v2602_v18 }
 0x12a   : > { %v1153_v60 = vadd.f32 %v2484_v38, %v1152_v17  ;;  %v1241_v16 = vpop.f32.mrf.mxu1  ;;  %v1839_v17 = vpop.permute.xlu1 %1838 }
 0x12b   : > { %v1925_v8 = vmul.f32 %v1824_v3, %v1701_v53  ;;  %v1417_v0 = vadd.f32 %v1416_v9, %v1328_v15 }
 0x12c   : > { %v1242_v31 = vadd.f32 %v1241_v16, %v1153_v60 }
 0x12d   : > { %v2020_v45 = vadd.f32 %v2019_v32, %v1925_v8  ;;  %v2058_v26 = vmul.f32 %v1925_v8, %v1925_v8  ;;  %v1634_v11 = vmul.f32 %v3005_v2, %v1417_v0  ;;  %v2603_v0 = vld [vmem:[%s3018_s16 + $0x50] sm:$0xff]  }
 0x12f   : > { %v2089_v54 = vadd.f32 %v2088_v57, %v2058_v26  ;;  %v1670_v22 = vadd.f32 %v3092_v10, %v1634_v11 }
 0x130   : > { %v1330_v41 = vpop.f32.mrf.mxu2 }
 0x131   : > { %v1702_v61 = vmax.f32 %v1670_v22, 0.0  ;;  %v1331_v5 = vadd.f32 %v1330_v41, %v1242_v31  ;;  %v1419_v19 = vpop.f32.mrf.mxu3  ;;  %v1154_v24 = vpop.f32.mrf.mxu0  ;;  %v2492_v31 = vunpack.c.l.bf16 %v2603_v0 }
 0x132   : > { %v1243_v48 = vpop.f32.mrf.mxu1  ;;  %v1155_v52 = vadd.f32 %v2485_v20, %v1154_v24 }
 0x133   : > { %v1926_v13 = vmul.f32 %v1829_v25, %v1702_v61  ;;  %v1420_v55 = vadd.f32 %v1419_v19, %v1331_v5  ;;  %v1844_v25 = vpop.permute.xlu2 %1843 }
 0x134   : > { %v1244_v35 = vadd.f32 %v1243_v48, %v1155_v52 }
 0x135   : > { %v2552_v42 = vpack.c.bf16 %v1926_v13, %v1925_v8  ;;  %v2021_v56 = vadd.f32 %v2020_v45, %v1926_v13  ;;  %v2059_v2 = vmul.f32 %v1926_v13, %v1926_v13  ;;  %v1635_v47 = vmul.f32 %v3002_v1, %v1420_v55 }
 0x137   : > { %2615 = vst [vmem:[%s3149_s24 + $0x38] sm:$0xff] %v2552_v42   ;;  %v2090_v4 = vadd.f32 %v2089_v54, %v2059_v2  ;;  %v1671_v51 = vadd.f32 %v3092_v10, %v1635_v47 }
 0x138   : > { %v1332_v27 = vpop.f32.mrf.mxu2 }
 0x139   : > { %v1703_v7 = vmax.f32 %v1671_v51, 0.0  ;;  %v1333_v62 = vadd.f32 %v1332_v27, %v1244_v35  ;;  %v1421_v44 = vpop.f32.mrf.mxu3  ;;  %v1157_v23 = vpop.f32.mrf.mxu0 }
 0x13a   : > { %v1158_v12 = vadd.f32 %v2488_v49, %v1157_v23  ;;  %v1246_v29 = vpop.f32.mrf.mxu1  ;;  %v2493_v49 = vunpack.c.h.bf16 %v2603_v0 }
 0x13b   : > { %v1927_v43 = vmul.f32 %v1834_v46, %v1703_v7  ;;  %v1422_v6 = vadd.f32 %v1421_v44, %v1333_v62  ;;  %v1849_v62 = vpop.permute.xlu0 %1848 }
 0x13c   : > { %v1247_v14 = vadd.f32 %v1246_v29, %v1158_v12  ;;  %v2604_v29 = vld [vmem:[%s3018_s16 + $0x58] sm:$0xff]  }
 0x13d   : > { %v2022_v32 = vadd.f32 %v2021_v56, %v1927_v43  ;;  %v2060_v63 = vmul.f32 %v1927_v43, %v1927_v43  ;;  %v1636_v1 = vmul.f32 %v2987_v37, %v1422_v6 }
 0x13f   : > { %v2091_v38 = vadd.f32 %v2090_v4, %v2060_v63  ;;  %v1672_v57 = vadd.f32 %v3092_v10, %v1636_v1  ;;  %v3380_v1 = vld [vmem:[#allocation2_spill] sm:$0xff] }
 0x140   : > { %v1335_v59 = vpop.f32.mrf.mxu2 }
 0x141   : > { %v1704_v21 = vmax.f32 %v1672_v57, 0.0  ;;  %v1336_v53 = vadd.f32 %v1335_v59, %v1247_v14  ;;  %v1424_v15 = vpop.f32.mrf.mxu3  ;;  %v1159_v9 = vpop.f32.mrf.mxu0 }
 0x142   : > { %v1248_v3 = vpop.f32.mrf.mxu1  ;;  %v1160_v8 = vadd.f32 %v2489_v39, %v1159_v9 }
 0x143   : > { %v1928_v60 = vmul.f32 %v1839_v17, %v1704_v21  ;;  %v1425_v16 = vadd.f32 %v1424_v15, %v1336_v53 }
 0x144   : > { %v1249_v20 = vadd.f32 %v1248_v3, %v1160_v8  ;;  %v3381_v3 = vld [vmem:[#allocation5_spill] sm:$0xff] }
 0x145   : > { %v2557_v45 = vpack.c.bf16 %v1928_v60, %v1927_v43  ;;  %v2023_v26 = vadd.f32 %v2022_v32, %v1928_v60  ;;  %v2061_v37 = vmul.f32 %v1928_v60, %v1928_v60  ;;  %v1637_v11 = vmul.f32 %v3040_v36, %v1425_v16 }
 0x146   : > { %v2496_v32 = vunpack.c.l.bf16 %v2604_v29 }
 0x147   : > { %2616 = vst [vmem:[%s3149_s24 + $0x40] sm:$0xff] %v2557_v45   ;;  %v2092_v54 = vadd.f32 %v2091_v38, %v2061_v37  ;;  %v1673_v22 = vadd.f32 %v3092_v10, %v1637_v11  ;;  %v2497_v45 = vunpack.c.h.bf16 %v2604_v29 }
 0x148   : > { %v1337_v41 = vpop.f32.mrf.mxu2 }
 0x149   : > { %v1705_v61 = vmax.f32 %v1673_v22, 0.0  ;;  %v1338_v5 = vadd.f32 %v1337_v41, %v1249_v20  ;;  %v1426_v19 = vpop.f32.mrf.mxu3  ;;  %v1162_v24 = vpop.f32.mrf.mxu0 }
 0x14a   : > { %v1163_v48 = vadd.f32 %v2492_v31, %v1162_v24  ;;  %v1251_v13 = vpop.f32.mrf.mxu1  ;;  %v1854_v20 = vpop.permute.xlu1 %1853 }
 0x14b   : > { %v1929_v55 = vmul.f32 %v1844_v25, %v1705_v61  ;;  %v1427_v52 = vadd.f32 %v1426_v19, %v1338_v5  ;;  %v2605_v25 = vld [vmem:[%s3018_s16 + $0x60] sm:$0xff]  }
 0x14c   : > { %v1252_v56 = vadd.f32 %v1251_v13, %v1163_v48  ;;  %v2500_v48 = vunpack.c.l.bf16 %v2605_v25  ;;  %v3382_v13 = vld [vmem:[#allocation4_spill] sm:$0xff] }
 0x14d   : > { %v2024_v18 = vadd.f32 %v2023_v26, %v1929_v55  ;;  %v2062_v42 = vmul.f32 %v1929_v55, %v1929_v55  ;;  %v1638_v36 = vmul.f32 %v3036_v30, %v1427_v52  ;;  %v1859_v26 = vpop.permute.xlu2 %1858 }
 0x14f   : > { %v2093_v2 = vadd.f32 %v2092_v54, %v2062_v42  ;;  %v1674_v47 = vadd.f32 %v3092_v10, %v1638_v36 }
 0x150   : > { %v1340_v4 = vpop.f32.mrf.mxu2 }
 0x151   : > { %v1706_v51 = vmax.f32 %v1674_v47, 0.0  ;;  %v1341_v35 = vadd.f32 %v1340_v4, %v1252_v56  ;;  %v1429_v27 = vpop.f32.mrf.mxu3  ;;  %v1164_v7 = vpop.f32.mrf.mxu0 }
 0x152   : > { %v1253_v44 = vpop.f32.mrf.mxu1  ;;  %v1165_v12 = vadd.f32 %v2493_v49, %v1164_v7  ;;  %v3280_v49 = vld [vmem:[%s3368_s4] ss:$0 sm:$0xff] }
 0x153   : > { %v1930_v23 = vmul.f32 %v1849_v62, %v1706_v51  ;;  %v1430_v46 = vadd.f32 %v1429_v27, %v1341_v35  ;;  %v3383_v35 = vld [vmem:[#allocation3_spill] sm:$0xff] }
 0x154   : > { %v1254_v38 = vadd.f32 %v1253_v44, %v1165_v12 }
 0x155   : > { %v2562_v43 = vpack.c.bf16 %v1930_v23, %v1929_v55  ;;  %v3259_v6 = vadd.f32 %v2024_v18, %v1930_v23  ;;  %v2063_v30 = vmul.f32 %v1930_v23, %v1930_v23  ;;  %v1639_v14 = vmul.f32 %v3380_v1, %v1430_v46  ;;  %v1869_v46 = vpop.permute.xlu1 %1868  ;;  %v1864_v1 = vpop.permute.xlu0 %1863 }
 0x156   : > { %v2501_v23 = vunpack.c.h.bf16 %v2605_v25 }
 0x157   : > { %2617 = vst [vmem:[%s3149_s24 + $0x48] sm:$0xff] %v2562_v43   ;;  %v3262_v63 = vadd.f32 %v2093_v2, %v2063_v30  ;;  %v1675_v9 = vadd.f32 %v3092_v10, %v1639_v14 }
 0x158   : > { %v1342_v57 = vpop.f32.mrf.mxu2 }
 0x159   : > { %v1343_v39 = vadd.f32 %v1342_v57, %v1254_v38  ;;  %v1431_v59 = vpop.f32.mrf.mxu3  ;;  %v1167_v21 = vpop.f32.mrf.mxu0  ;;  %v1707_v8 = vmax.f32 %v1675_v9, 0.0 }
 0x15a   : > { %v1168_v53 = vadd.f32 %v2496_v32, %v1167_v21  ;;  %v1256_v15 = vpop.f32.mrf.mxu1  ;;  %v2606_v21 = vld [vmem:[%s3018_s16 + $0x68] sm:$0xff]  }
 0x15b   : > { %v1432_v17 = vadd.f32 %v1431_v59, %v1343_v39  ;;  %v3268_v61 = vmul.f32 %v1854_v20, %v1707_v8 }
 0x15c   : > { %v1257_v16 = vadd.f32 %v1256_v15, %v1168_v53  ;;  %v2504_v15 = vunpack.c.l.bf16 %v2606_v21 }
 0x15d   : > { %v1640_v60 = vmul.f32 %v3381_v3, %v1432_v17 }
 0x15f   : > { %v1676_v0 = vadd.f32 %v3092_v10, %v1640_v60 }
 0x160   : > { %v1345_v37 = vpop.f32.mrf.mxu2 }
 0x161   : > { %v1708_v11 = vmax.f32 %v1676_v0, 0.0  ;;  %v1346_v31 = vadd.f32 %v1345_v37, %v1257_v16  ;;  %v1434_v54 = vpop.f32.mrf.mxu3  ;;  %v1169_v22 = vpop.f32.mrf.mxu0 }
 0x162   : > { %v1258_v41 = vpop.f32.mrf.mxu1  ;;  %v1170_v24 = vadd.f32 %v2497_v45, %v1169_v22 }
 0x163   : > { %v3270_v5 = vmul.f32 %v1859_v26, %v1708_v11  ;;  %v1435_v19 = vadd.f32 %v1434_v54, %v1346_v31  ;;  %v3384_v11 = vld [vmem:[#allocation7_spill] sm:$0xff] }
 0x164   : > { %v1259_v52 = vadd.f32 %v1258_v41, %v1170_v24  ;;  %v2505_v41 = vunpack.c.h.bf16 %v2606_v21 }
 0x165   : > { %v2567_v10 = vpack.c.bf16 %v3270_v5, %v3268_v61  ;;  %v1641_v55 = vmul.f32 %v3382_v13, %v1435_v19  ;;  %v1879_v13 = vpop.permute.xlu0 %1878 }
 0x167   : > { %2618 = vst [vmem:[%s3149_s24 + $0x50] sm:$0xff] %v2567_v10   ;;  %v1677_v4 = vadd.f32 %v3280_v49, %v1641_v55 }
 0x168   : > { %v1347_v18 = vpop.f32.mrf.mxu2 }
 0x169   : > { %v1348_v42 = vadd.f32 %v1347_v18, %v1259_v52  ;;  %v1436_v36 = vpop.f32.mrf.mxu3  ;;  %v1172_v56 = vpop.f32.mrf.mxu0  ;;  %v1709_v62 = vmax.f32 %v1677_v4, 0.0  ;;  %v3385_v4 = vld [vmem:[#allocation6_spill] sm:$0xff] }
 0x16a   : > { %v1173_v2 = vadd.f32 %v2500_v48, %v1172_v56  ;;  %v1261_v47 = vpop.f32.mrf.mxu1  ;;  %v2607_v56 = vld [vmem:[%s3018_s16 + $0x70] sm:$0xff]  }
 0x16b   : > { %v1437_v51 = vadd.f32 %v1436_v36, %v1348_v42  ;;  %v3285_v38 = vmul.f32 %v1864_v1, %v1709_v62 }
 0x16c   : > { %v1262_v7 = vadd.f32 %v1261_v47, %v1173_v2  ;;  %v2508_v47 = vunpack.c.l.bf16 %v2607_v56 }
 0x16d   : > { %v1642_v27 = vmul.f32 %v3383_v35, %v1437_v51 }
 0x16f   : > { %v1678_v44 = vadd.f32 %v3280_v49, %v1642_v27 }
 0x170   : > { %v1350_v12 = vpop.f32.mrf.mxu2 }
 0x171   : > { %v1710_v29 = vmax.f32 %v1678_v44, 0.0  ;;  %v1351_v43 = vadd.f32 %v1350_v12, %v1262_v7  ;;  %v1439_v30 = vpop.f32.mrf.mxu3  ;;  %v1174_v32 = vpop.f32.mrf.mxu0 }
 0x172   : > { %v1263_v14 = vpop.f32.mrf.mxu1  ;;  %v1175_v59 = vadd.f32 %v2501_v23, %v1174_v32 }
 0x173   : > { %v3287_v57 = vmul.f32 %v1869_v46, %v1710_v29  ;;  %v1440_v39 = vadd.f32 %v1439_v30, %v1351_v43 }
 0x174   : > { %v1264_v17 = vadd.f32 %v1263_v14, %v1175_v59  ;;  %v2509_v14 = vunpack.c.h.bf16 %v2607_v56 }
 0x175   : > { %v2572_v53 = vpack.c.bf16 %v3287_v57, %v3285_v38  ;;  %v1643_v9 = vmul.f32 %v3081_v34, %v1440_v39  ;;  %v1874_v34 = vpop.permute.xlu2 %1873 }
 0x177   : > { %2619 = vst [vmem:[%s3149_s24 + $0x58] sm:$0xff] %v2572_v53   ;;  %v1679_v26 = vadd.f32 %v3280_v49, %v1643_v9 }
 0x178   : > { %v1352_v3 = vpop.f32.mrf.mxu2 }
 0x179   : > { %v1353_v60 = vadd.f32 %v1352_v3, %v1264_v17  ;;  %v1441_v16 = vpop.f32.mrf.mxu3  ;;  %v1177_v8 = vpop.f32.mrf.mxu0  ;;  %v1711_v22 = vmax.f32 %v1679_v26, 0.0 }
 0x17a   : > { %v1178_v0 = vadd.f32 %v2504_v15, %v1177_v8  ;;  %v1266_v45 = vpop.f32.mrf.mxu1  ;;  %v1884_v17 = vpop.permute.xlu1 %1883 }
 0x17b   : > { %v1442_v37 = vadd.f32 %v1441_v16, %v1353_v60  ;;  %v3297_v52 = vmul.f32 %v1874_v34, %v1711_v22 }
 0x17c   : > { %v1267_v54 = vadd.f32 %v1266_v45, %v1178_v0  ;;  %v2608_v0 = vld [vmem:[%s3018_s16 + $0x78] sm:$0xff]  }
 0x17d   : > { %v1644_v31 = vmul.f32 %v3384_v11, %v1442_v37  ;;  %v1889_v39 = vpop.permute.xlu2 %1888  ;;  %v2512_v26 = vunpack.c.l.bf16 %v2608_v0 }
 0x17f   : > { %v1680_v20 = vadd.f32 %v3280_v49, %v1644_v31 }
 0x180   : > { %v1355_v19 = vpop.f32.mrf.mxu2 }
 0x181   : > { %v1712_v24 = vmax.f32 %v1680_v20, 0.0  ;;  %v1356_v25 = vadd.f32 %v1355_v19, %v1267_v54  ;;  %v1444_v10 = vpop.f32.mrf.mxu3  ;;  %v1179_v48 = vpop.f32.mrf.mxu0 }
 0x182   : > { %v1268_v55 = vpop.f32.mrf.mxu1  ;;  %v1180_v36 = vadd.f32 %v2505_v41, %v1179_v48 }
 0x183   : > { %v3299_v18 = vmul.f32 %v1879_v13, %v1712_v24  ;;  %v1445_v42 = vadd.f32 %v1444_v10, %v1356_v25  ;;  %v2064_v24 = vmul.f32 %v3268_v61, %v3268_v61  ;;  %v2026_v13 = vadd.f32 %v3259_v6, %v3268_v61  ;;  %v1899_v6 = vpop.permute.xlu1 %1898  ;;  %v1894_v61 = vpop.permute.xlu0 %1893 }
 0x184   : > { %v1269_v35 = vadd.f32 %v1268_v55, %v1180_v36  ;;  %v2513_v36 = vunpack.c.h.bf16 %v2608_v0 }
 0x185   : > { %v2577_v2 = vpack.c.bf16 %v3299_v18, %v3297_v52  ;;  %v1645_v51 = vmul.f32 %v3385_v4, %v1445_v42  ;;  %v2095_v56 = vadd.f32 %v3262_v63, %v2064_v24 }
 0x187   : > { %2620 = vst [vmem:[%s3149_s24 + $0x60] sm:$0xff] %v2577_v2   ;;  %v1681_v12 = vadd.f32 %v3280_v49, %v1645_v51  ;;  %v2027_v2 = vadd.f32 %v2026_v13, %v3270_v5 }
 0x188   : > { %v1357_v27 = vpop.f32.mrf.mxu2 }
 0x189   : > { %v1358_v7 = vadd.f32 %v1357_v27, %v1269_v35  ;;  %v1446_v62 = vpop.f32.mrf.mxu3  ;;  %v1182_v44 = vpop.f32.mrf.mxu0  ;;  %v1713_v32 = vmax.f32 %v1681_v12, 0.0 }
 0x18a   : > { %v1183_v23 = vadd.f32 %v2508_v47, %v1182_v44  ;;  %v1271_v46 = vpop.f32.mrf.mxu1  ;;  %v2066_v47 = vmul.f32 %v3285_v38, %v3285_v38  ;;  %v2067_v44 = vmul.f32 %v3287_v57, %v3287_v57 }
 0x18b   : > { %v1447_v29 = vadd.f32 %v1446_v62, %v1358_v7  ;;  %v3309_v60 = vmul.f32 %v1884_v17, %v1713_v32  ;;  %v2028_v62 = vadd.f32 %v2027_v2, %v3285_v38  ;;  %v2069_v38 = vmul.f32 %v3299_v18, %v3299_v18 }
 0x18c   : > { %v1272_v30 = vadd.f32 %v1271_v46, %v1183_v23 }
 0x18d   : > { %v1646_v43 = vmul.f32 %v3097_v40, %v1447_v29  ;;  %v2068_v29 = vmul.f32 %v3297_v52, %v3297_v52 }
 0x18f   : > { %v1682_v1 = vadd.f32 %v3280_v49, %v1646_v43  ;;  %v2029_v43 = vadd.f32 %v2028_v62, %v3287_v57 }
 0x190   : > { %v1360_v59 = vpop.f32.mrf.mxu2 }
 0x191   : > { %v1714_v21 = vmax.f32 %v1682_v1, 0.0  ;;  %v1361_v53 = vadd.f32 %v1360_v59, %v1272_v30  ;;  %v1449_v15 = vpop.f32.mrf.mxu3  ;;  %v1184_v9 = vpop.f32.mrf.mxu0 }
 0x192   : > { %v1273_v3 = vpop.f32.mrf.mxu1  ;;  %v1185_v8 = vadd.f32 %v2509_v14, %v1184_v9 }
 0x193   : > { %v3311_v16 = vmul.f32 %v1889_v39, %v1714_v21  ;;  %v1450_v40 = vadd.f32 %v1449_v15, %v1361_v53  ;;  %v2030_v39 = vadd.f32 %v2029_v43, %v3297_v52  ;;  %v2070_v15 = vmul.f32 %v3309_v60, %v3309_v60 }
 0x194   : > { %v1274_v11 = vadd.f32 %v1273_v3, %v1185_v8 }
 0x195   : > { %v2582_v45 = vpack.c.bf16 %v3311_v16, %v3309_v60  ;;  %v1647_v37 = vmul.f32 %v3095_v58, %v1450_v40  ;;  %v2065_v58 = vmul.f32 %v3270_v5, %v3270_v5  ;;  %v2031_v57 = vadd.f32 %v2030_v39, %v3299_v18 }
 0x196   : > { %v2071_v52 = vmul.f32 %v3311_v16, %v3311_v16 }
 0x197   : > { %2621 = vst [vmem:[%s3149_s24 + $0x68] sm:$0xff] %v2582_v45   ;;  %v1683_v34 = vadd.f32 %v3280_v49, %v1647_v37  ;;  %v2096_v7 = vadd.f32 %v2095_v56, %v2065_v58  ;;  %v2032_v8 = vadd.f32 %v2031_v57, %v3309_v60  ;;  %v1904_v45 = vpop.permute.xlu2 %1903 }
 0x198   : > { %v1362_v31 = vpop.f32.mrf.mxu2 }
 0x199   : > { %v1363_v54 = vadd.f32 %v1362_v31, %v1274_v11  ;;  %v1451_v22 = vpop.f32.mrf.mxu3  ;;  %v1187_v20 = vpop.f32.mrf.mxu0  ;;  %v1715_v55 = vmax.f32 %v1683_v34, 0.0  ;;  %v2097_v12 = vadd.f32 %v2096_v7, %v2066_v47  ;;  %v2033_v37 = vadd.f32 %v2032_v8, %v3311_v16 }
 0x19a   : > { %v1188_v41 = vadd.f32 %v2512_v26, %v1187_v20  ;;  %v1276_v25 = vpop.f32.mrf.mxu1 }
 0x19b   : > { %v1452_v19 = vadd.f32 %v1451_v22, %v1363_v54  ;;  %v1939_v63 = vmul.f32 %v1894_v61, %v1715_v55  ;;  %v2098_v1 = vadd.f32 %v2097_v12, %v2067_v44 }
 0x19c   : > { %v1277_v48 = vadd.f32 %v1276_v25, %v1188_v41  ;;  %v1909_v25 = vpop.permute.xlu0 %1908 }
 0x19d   : > { %v1648_v10 = vmul.f32 %v3087_v33, %v1452_v19  ;;  %v2099_v53 = vadd.f32 %v2098_v1, %v2068_v29  ;;  %v2072_v11 = vmul.f32 %v1939_v63, %v1939_v63  ;;  %v2034_v22 = vadd.f32 %v2033_v37, %v1939_v63 }
 0x19f   : > { %v1684_v42 = vadd.f32 %v3280_v49, %v1648_v10  ;;  %v2100_v3 = vadd.f32 %v2099_v53, %v2069_v38 }
 0x1a0   : > { %v1365_v4 = vpop.f32.mrf.mxu2 }
 0x1a1   : > { %v1716_v33 = vmax.f32 %v1684_v42, 0.0  ;;  %v1366_v51 = vadd.f32 %v1365_v4, %v1277_v48  ;;  %v1454_v35 = vpop.f32.mrf.mxu3  ;;  %v1189_v27 = vpop.f32.mrf.mxu0  ;;  %v2101_v26 = vadd.f32 %v2100_v3, %v2070_v15 }
 0x1a2   : > { %v1190_v46 = vadd.f32 %v2513_v36, %v1189_v27  ;;  %v1278_v14 = vpop.f32.mrf.mxu1 }
 0x1a3   : > { %v1940_v23 = vmul.f32 %v1899_v6, %v1716_v33  ;;  %v1455_v5 = vadd.f32 %v1454_v35, %v1366_v51  ;;  %v2102_v18 = vadd.f32 %v2101_v26, %v2071_v52 }
 0x1a4   : > { %v1279_v21 = vadd.f32 %v1278_v14, %v1190_v46 }
 0x1a5   : > { %v2587_v30 = vpack.c.bf16 %v1940_v23, %v1939_v63  ;;  %v1649_v32 = vmul.f32 %v3118_v28, %v1455_v5  ;;  %v2073_v20 = vmul.f32 %v1940_v23, %v1940_v23  ;;  %v2103_v60 = vadd.f32 %v2102_v18, %v2072_v11 }
 0x1a6   : > { %v2035_v34 = vadd.f32 %v2034_v22, %v1940_v23 }
 0x1a7   : > { %2622 = vst [vmem:[%s3149_s24 + $0x70] sm:$0xff] %v2587_v30   ;;  %v1685_v59 = vadd.f32 %v3280_v49, %v1649_v32  ;;  %v2104_v10 = vadd.f32 %v2103_v60, %v2073_v20 }
 0x1a8   : > { %v1367_v9 = vpop.f32.mrf.mxu2 }
 0x1a9   : > { %v1717_v17 = vmax.f32 %v1685_v59, 0.0  ;;  %v1368_v28 = vadd.f32 %v1367_v9, %v1279_v21  ;;  %v1456_v40 = vpop.f32.mrf.mxu3 }
 0x1ab   : > { %v1457_v0 = vadd.f32 %v1456_v40, %v1368_v28  ;;  %v1941_v31 = vmul.f32 %v1904_v45, %v1717_v17 }
 0x1ad   : > { %v1650_v54 = vmul.f32 %v3115_v50, %v1457_v0  ;;  %v2074_v19 = vmul.f32 %v1941_v31, %v1941_v31  ;;  %v2036_v48 = vadd.f32 %v2035_v34, %v1941_v31 }
 0x1af   : > { %v1686_v41 = vadd.f32 %v3280_v49, %v1650_v54  ;;  %v2105_v13 = vadd.f32 %v2104_v10, %v2074_v19 }
 0x1b1   : > { %v1718_v24 = vmax.f32 %v1686_v41, 0.0 }
 0x1b3   : > { %v1942_v16 = vmul.f32 %v1909_v25, %v1718_v24 }
 0x1b5   : > { %v2592_v58 = vpack.c.bf16 %v1942_v16, %v1941_v31  ;;  %v2037_v55 = vadd.f32 %v2036_v48, %v1942_v16  ;;  %v2075_v50 = vmul.f32 %v1942_v16, %v1942_v16 }
 0x1b7   : > { %2623 = vst [vmem:[%s3149_s24 + $0x78] sm:$0xff] %v2592_v58   ;;  %v2038_v42 = vrot.slane %v2037_v55, 4  ;;  %v2106_v36 = vadd.f32 %v2105_v13, %v2075_v50 }
 0x1b9   : > { %v2039_v56 = vadd.f32 %v2038_v42, %v2037_v55  ;;  %v2107_v49 = vrot.slane %v2106_v36, 4 }
 0x1bb   : > { %v2040_v2 = vrot.slane %v2039_v56, 2  ;;  %v2108_v47 = vadd.f32 %v2107_v49, %v2106_v36 }
 0x1bd   : > { %v2041_v4 = vadd.f32 %v2040_v2, %v2039_v56  ;;  %v2109_v33 = vrot.slane %v2108_v47, 2 }
 0x1bf   : > { %v2042_v51 = vrot.slane %v2041_v4, 1  ;;  %v2110_v35 = vadd.f32 %v2109_v33, %v2108_v47 }
 0x1c1   : > { %v2043_v27 = vadd.f32 %v2042_v51, %v2041_v4  ;;  %v2111_v6 = vrot.slane %v2110_v35, 1 }
 0x1c3   : > { %v2112_v61 = vadd.f32 %v2111_v6, %v2110_v35  ;;  %2113 = vst [vmem:[%s394_s9] sm:$0xff] %v2043_v27 }
 0x1c5   : > { %2114 = vst [vmem:[%s398_s14] sm:$0xff] %v2112_v61 }
 0x1c6 PF: > { %s19_s27 = sadd.s32 1, %s2644_s27  }
 0x1c7   : > { %p16_p6 = scmp.ge.s32.totalorder %s19_s27, 4  }
 0x1c9   :  { %18 = sbr.rel (!%p16_p6) target bundleno = 1 (0x1), region = 107 }

// kernel: bio_encoder_forward.9
= control target key start
LH: loop header
LB: loop body
LE: loop exit
PB: predicated region body
PF: predicated region fallthrough
CT: control target
= control target key end

     0   :  { %18 = vsyncpa [#allocation3], 0  ;;  %s5024_s0 = inlined_call_operand.vmem [shape: bf16[512,128], index: 0, kind: input, shape index: {}]   ;;  %s5025_s1 = inlined_call_operand.vmem [shape: f32[1,128], index: 1, kind: input, shape index: {}]   ;;  %s5026_s2 = inlined_call_operand.vmem [shape: f32[1,128], index: 2, kind: input, shape index: {}]   ;;  %s5027_s3 = inlined_call_operand.vmem [shape: s32[512,1], index: 3, kind: input, shape index: {}]   ;;  %s5028_s4 = inlined_call_operand.vmem [shape: f32[4,32], index: 4, kind: input, shape index: {}]   ;;  %s5029_s5 = inlined_call_operand.vmem [shape: f32[32,128], index: 5, kind: input, shape index: {}]   ;;  %s5030_s6 = inlined_call_operand.vmem [shape: f32[1,128], index: 6, kind: input, shape index: {}]   ;;  %s5031_s7 = inlined_call_operand.vmem [shape: f32[1,128], index: 7, kind: input, shape index: {}]   ;;  %s5032_s8 = inlined_call_operand.vmem [shape: f32[1,128], index: 8, kind: input, shape index: {}]   ;;  %s5033_s9 = inlined_call_operand.vmem [shape: f32[128,128], index: 9, kind: input, shape index: {}]   ;;  %s5034_s10 = inlined_call_operand.vmem [shape: f32[1,128], index: 10, kind: input, shape index: {}]   ;;  %s5035_s11 = inlined_call_operand.hbm [shape: f32[16,128], index: 11, kind: output, shape index: {0}]   ;;  %s5036_s12 = inlined_call_operand.hbm [shape: f32[4,128], index: 12, kind: output, shape index: {1}]  }
   0x1   :  { %19 = vsyncpa [#allocation5], 0  ;;  %s3156_s21 = smov 0  }
   0x2 LB: > { %s3162_s22 = sadd.s32 4294967295, %s3082_s21   ;;  %p2885_p0 = scmp.ge.s32.totalorder %s3082_s21, 1  ;;  %s3082_s21 = sphi %s3156_s21, %s25_s21  }
   0x3   : > { %p369_p1 = scmp.lt.s32.totalorder %s3082_s21, 5 }
   0x5   : > { %p370_p2 = pnand %p2885_p0, %p369_p1 }
   0x7   : > { %373 = sbr.rel (%p370_p2) target bundleno = 1179 (0x49b), region = 64 }
   0xc   : > { %s2886_s23 = sshll.u32 %s3162_s22, 4  ;;  %p2890_p4 = scmp.ne.s32.totalorder %s3162_s22, 0 }
   0xd   : > { %p412_p3 = scmp.lt.s32.totalorder %s2886_s23, 63 }
   0xe   : > { %426 = sbr.rel (%p2890_p4) target bundleno = 351 (0x15f), region = 68 }
   0xf   : > { %s5259_s23 = smov (!%p412_p3, %s2886_s23), 63 }
  0x10   : > { %s2887_s24 = sshll.u32 %s5259_s23, 2  ;;  %s2889_s25 = sshll.u32 %s5259_s23, 3 }
  0x11   : > { %s3170_s28 = scalar_lea.vmem %s5024_s0, %s2887_s24  ;;  %s3175_s13 = scalar_lea.vmem %s5027_s3, %s2889_s25 }
  0x13   : > { %v433_v0 = vld [vmem:[%s5029_s5 + $0x18] sm:$0xff]  ;;  %v432_v1 = vld [vmem:[%s5029_s5 + $0x10] sm:$0xff]  ;;  %v3084_v2 = vmov -1e+30   ;;  %v431_v3 = vld [vmem:[%s5029_s5 + $0x8] sm:$0xff]  ;;  %vm438_vm0 = vcmask 261120  }
  0x14   : > { %427 = vst [vmem:[#allocation2] sm:$0xff] %v3084_v2  ;;  %454 = vmatpush.msra.mxu0 %v433_v0  ;;  %v430_v4 = vld [vmem:[%s5029_s5] sm:$0xff]  ;;  %v526_v6 = vld [vmem:[%s5033_s9 + $0x78] sm:$0xff]  ;;  %v525_v7 = vld [vmem:[%s5033_s9 + $0x70] sm:$0xff]  ;;  %v3085_v12 = vmov 4.0   ;;  %vm463_vm1 = vcmask 1043456  }
  0x15   : > { %428 = vst [vmem:[#allocation2 + $0x8] sm:$0xff] %v3084_v2  ;;  %v429_v5 = vld [vmem:[%s5028_s4] sm:$0xf]  ;;  %531 = vmatpush.msra.mxu1 %v526_v6  ;;  %v524_v8 = vld [vmem:[%s5033_s9 + $0x68] sm:$0xff]  ;;  %v522_v10 = vld [vmem:[%s5033_s9 + $0x58] sm:$0xff]  ;;  %2968 = vrcp.f32 %v3085_v12 }
  0x16   : > { %455 = vmatpush.msra.mxu0 %v432_v1  ;;  %v523_v9 = vld [vmem:[%s5033_s9 + $0x60] sm:$0xff]  ;;  %v521_v11 = vld [vmem:[%s5033_s9 + $0x50] sm:$0xff]  ;;  %v520_v14 = vld [vmem:[%s5033_s9 + $0x48] sm:$0xff] }
  0x17   : > { %532 = vmatpush.msra.mxu1 %v525_v7  ;;  %v2964_v13 = vld [vmem:[%s5030_s6] ss:$0 sm:$0xff]  ;;  %v518_v19 = vld [vmem:[%s5033_s9 + $0x38] sm:$0xff]  ;;  %v517_v20 = vld [vmem:[%s5033_s9 + $0x30] sm:$0xff] }
  0x18   : > { %456 = vmatpush.msra.mxu0 %v431_v3  ;;  %v519_v15 = vld [vmem:[%s5033_s9 + $0x40] sm:$0xff]  ;;  %v516_v22 = vld [vmem:[%s5033_s9 + $0x28] sm:$0xff]  ;;  %v514_v26 = vld [vmem:[%s5033_s9 + $0x18] sm:$0xff] }
  0x19   : > { %533 = vmatpush.msra.mxu1 %v524_v8  ;;  %v515_v23 = vld [vmem:[%s5033_s9 + $0x20] sm:$0xff]  ;;  %v513_v29 = vld [vmem:[%s5033_s9 + $0x10] sm:$0xff]  ;;  %v512_v32 = vld [vmem:[%s5033_s9 + $0x8] sm:$0xff] }
  0x1a   : > { %457 = vmatpush.msra.mxu0 %v430_v4  ;;  %v511_v34 = vld [vmem:[%s5033_s9] sm:$0xff] }
  0x1b   : > { %2891 = vmatmul.msk.f32.vlgmr.msra.gmra.mxu0 %vm438_vm0, %v429_v5  ;;  %534 = vmatpush.msra.mxu1 %v523_v9  ;;  %v2969_v17 = vpop.eup %2968  ;;  %v2965_v56 = vld [vmem:[%s5031_s7] ss:$0 sm:$0xff] }
  0x1c   : > { %v472_v21 = vmul.f32 4.0, %v2969_v17  ;;  %vm476_vm2 = vweird.f32 %v2969_v17  ;;  %v2966_v60 = vld [vmem:[%s5032_s8] ss:$0 sm:$0xff] }
  0x1d   : > { %535 = vmatpush.msra.mxu1 %v522_v10  ;;  %v2967_v0 = vld [vmem:[%s5034_s10] ss:$0 sm:$0xff] }
  0x1e   : > { %v473_v24 = vsub.f32 1.0, %v472_v21 }
  0x1f   : > { %536 = vmatpush.msra.mxu1 %v521_v11 }
  0x20   : > { %v474_v30 = vmul.f32 %v2969_v17, %v473_v24 }
  0x21   : > { %537 = vmatpush.msra.mxu1 %v520_v14 }
  0x22   : > { %v475_v35 = vadd.f32 %v2969_v17, %v474_v30 }
  0x23   : > { %538 = vmatpush.msra.mxu1 %v519_v15 }
  0x24   : > { %v477_v38 = vsel %vm476_vm2, %v2969_v17, %v475_v35 }
  0x25   : > { %539 = vmatpush.msra.mxu1 %v518_v19 }
  0x27   : > { %540 = vmatpush.msra.mxu1 %v517_v20 }
  0x29   : > { %541 = vmatpush.msra.mxu1 %v516_v22 }
  0x2b   : > { %542 = vmatpush.msra.mxu1 %v515_v23 }
  0x2d   : > { %543 = vmatpush.msra.mxu1 %v514_v26 }
  0x2f   : > { %544 = vmatpush.msra.mxu1 %v513_v29 }
  0x31   : > { %545 = vmatpush.msra.mxu1 %v512_v32 }
  0x33   : > { %546 = vmatpush.msra.mxu1 %v511_v34 }
  0x98   : > { %v459_v16 = vpop.f32.mrf.mxu0 }
  0x99   : > { %v460_v18 = vadd.f32 %v2964_v13, %v459_v16 }
  0x9b   : > { %2970 = vtanh.f32 %v460_v18 }
  0xa1   : > { %v2971_v25 = vpop.eup %2970 }
  0xa2   : > { %v464_v27 = vsel %vm463_vm1, %v2971_v25, 0.0 }
  0xa3   : > { %v465_v28 = vrot.slane %v464_v27, 4 }
  0xa5   : > { %v466_v31 = vadd.f32 %v465_v28, %v464_v27 }
  0xa7   : > { %v467_v33 = vrot.slane %v466_v31, 2 }
  0xa9   : > { %v468_v36 = vadd.f32 %v467_v33, %v466_v31 }
  0xab   : > { %v469_v37 = vrot.slane %v468_v36, 1 }
  0xad   : > { %v470_v39 = vadd.f32 %v469_v37, %v468_v36 }
  0xaf   : > { %v478_v40 = vmul.f32 %v477_v38, %v470_v39 }
  0xb1   : > { %v479_v41 = vsub.f32 %v2971_v25, %v478_v40 }
  0xb3   : > { %v480_v42 = vmul.f32 %v479_v41, %v479_v41  ;;  %v493_v59 = vmul.f32 %v2965_v56, %v479_v41 }
  0xb5   : > { %v481_v43 = vsel %vm463_vm1, %v480_v42, 0.0 }
  0xb6   : > { %v482_v44 = vrot.slane %v481_v43, 4 }
  0xb8   : > { %v483_v45 = vadd.f32 %v482_v44, %v481_v43 }
  0xba   : > { %v484_v46 = vrot.slane %v483_v45, 2 }
  0xbc   : > { %v485_v47 = vadd.f32 %v484_v46, %v483_v45 }
  0xbe   : > { %v486_v48 = vrot.slane %v485_v47, 1 }
  0xc0   : > { %v487_v49 = vadd.f32 %v486_v48, %v485_v47 }
  0xc2   : > { %v488_v50 = vmul.f32 %v487_v49, %v477_v38 }
  0xc4   : > { %v494_v51 = vadd.f32 1e-05, %v488_v50 }
  0xc6   : > { %2972 = vrsqrt.f32 %v494_v51  ;;  %vm501_vm4 = vweird.f32 %v494_v51 }
  0xcc   : > { %v2973_v52 = vpop.eup %2972 }
  0xcd   : > { %v496_v53 = vmul.f32 %v2973_v52, %v494_v51  ;;  %vm502_vm3 = vweird.f32 %v2973_v52 }
  0xce   : > { %vm503_vm5 = vmor %vm501_vm4, %vm502_vm3 }
  0xcf   : > { %v497_v54 = vmul.f32 %v2973_v52, %v496_v53 }
  0xd1   : > { %v498_v55 = vmul.f32 0.5, %v497_v54 }
  0xd3   : > { %v499_v57 = vsub.f32 1.5, %v498_v55 }
  0xd5   : > { %v500_v58 = vmul.f32 %v2973_v52, %v499_v57 }
  0xd7   : > { %v504_v61 = vsel %vm503_vm5, %v2973_v52, %v500_v58 }
  0xd8   : > { %v505_v62 = vmul.f32 %v504_v61, %v493_v59 }
  0xda   : > { %v510_v63 = vadd.f32 %v2966_v60, %v505_v62 }
  0xdc   : > { %547 = vmatmul.f32.vlgmr.msra.gmra.mxu1 %v510_v63 }
 0x159   : > { %v548_v1 = vpop.f32.mrf.mxu1 }
 0x15a   : > { %v549_v2 = vadd.f32 %v2967_v0, %v548_v1 }
 0x15c   : > { %v551_v3 = vmax.f32 %v549_v2, 0.0 }
 0x15e   : > { %552 = vst [vmem:[#allocation4] sm:$0xf] %v551_v3 }
 0x15f PF: > { %v3256_v4 = vld [vmem:[%s3175_s13 + $0x20] sm:$0xff]  ;;  %v3259_v5 = vld [vmem:[%s3175_s13 + $0x10] sm:$0xff]  ;;  %v5047_v7 = vmov 0   ;;  %v3274_v11 = vld [vmem:[%s3175_s13 + $0x28] sm:$0xff]  ;;  %p2945_p5 = scmp.eq.s32.totalorder %s3162_s22, 3  ;;  %s2818_s14 = sshll.u32 %s5036_s12, 4  ;;  %s2819_s14 = int_to_ptr.hbm [resolvable:$true] %s2818_s14 }
 0x160   : > { %v3262_v6 = vld [vmem:[%s3175_s13] sm:$0xff]  ;;  %2976 = vset.pattern.permute.xlu2 %v5047_v7  ;;  %2975 = vset.pattern.permute.xlu1 %v5047_v7  ;;  %vm645_vm6 = vcmp.eq.s32.totalorder %v3256_v4, 0  ;;  %vm643_vm7 = vcmp.eq.s32.totalorder %v3259_v5, 0  ;;  %v3277_v12 = vld [vmem:[%s3175_s13 + $0x18] sm:$0xff]  ;;  %v3280_v13 = vld [vmem:[%s3175_s13 + $0x8] sm:$0xff]  ;;  %vm646_vm9 = vcmp.eq.s32.totalorder %v3274_v11, 0 }
 0x161   : > { %vm641_vm8 = vcmp.eq.s32.totalorder %v3262_v6, 0  ;;  %2974 = vset.pattern.permute.xlu0 %v5047_v7  ;;  %v661_v8 = vsel %vm645_vm6, 1, %v5047_v7  ;;  %v659_v9 = vsel %vm643_vm7, 1, %v5047_v7  ;;  %vm644_vm10 = vcmp.eq.s32.totalorder %v3277_v12, 0  ;;  %v3289_v17 = vld [vmem:[%s3175_s13 + $0x40] sm:$0xff]  ;;  %v3292_v18 = vld [vmem:[%s3175_s13 + $0x38] sm:$0xff] }
 0x162   : > { %v657_v10 = vsel %vm641_vm8, 1, %v5047_v7  ;;  %686 = vperm.xlu2 %2976, %v661_v8   ;;  %680 = vperm.xlu1 %2975, %v659_v9   ;;  %vm642_vm11 = vcmp.eq.s32.totalorder %v3280_v13, 0  ;;  %v662_v14 = vsel %vm646_vm9, 1, %v5047_v7  ;;  %v660_v15 = vsel %vm644_vm10, 1, %v5047_v7  ;;  %v3295_v19 = vld [vmem:[%s3175_s13 + $0x30] sm:$0xff]  ;;  %v3304_v23 = vld [vmem:[%s3175_s13 + $0x58] sm:$0xff] }
 0x163   : > { %674 = vperm.xlu0 %2974, %v657_v10   ;;  %v658_v16 = vsel %vm642_vm11, 1, %v5047_v7  ;;  %vm649_vm12 = vcmp.eq.s32.totalorder %v3289_v17, 0  ;;  %vm648_vm13 = vcmp.eq.s32.totalorder %v3292_v18, 0  ;;  %vm647_vm14 = vcmp.eq.s32.totalorder %v3295_v19, 0  ;;  %v3307_v24 = vld [vmem:[%s3175_s13 + $0x50] sm:$0xff]  ;;  %v3310_v25 = vld [vmem:[%s3175_s13 + $0x48] sm:$0xff] }
 0x164   : > { %v665_v20 = vsel %vm649_vm12, 1, %v5047_v7  ;;  %v664_v21 = vsel %vm648_vm13, 1, %v5047_v7  ;;  %v663_v22 = vsel %vm647_vm14, 1, %v5047_v7  ;;  %vm652_vm15 = vcmp.eq.s32.totalorder %v3304_v23, 0  ;;  %v3319_v29 = vld [vmem:[%s3175_s13 + $0x70] sm:$0xff]  ;;  %v3322_v30 = vld [vmem:[%s3175_s13 + $0x68] sm:$0xff] }
 0x165   : > { %vm651_vm0 = vcmp.eq.s32.totalorder %v3307_v24, 0  ;;  %vm650_vm1 = vcmp.eq.s32.totalorder %v3310_v25, 0  ;;  %v668_v26 = vsel %vm652_vm15, 1, %v5047_v7  ;;  %v3325_v31 = vld [vmem:[%s3175_s13 + $0x60] sm:$0xff]  ;;  %vm655_vm2 = vcmp.eq.s32.totalorder %v3319_v29, 0  ;;  %v3334_v35 = vld [vmem:[%s3175_s13 + $0x78] sm:$0xff] }
 0x166   : > { %v667_v27 = vsel %vm651_vm0, 1, %v5047_v7  ;;  %v666_v28 = vsel %vm650_vm1, 1, %v5047_v7  ;;  %vm654_vm3 = vcmp.eq.s32.totalorder %v3322_v30, 0  ;;  %vm653_vm4 = vcmp.eq.s32.totalorder %v3325_v31, 0  ;;  %s3088_s15 = smov [#allocation2]   ;;  %s2803_s19 = sshll.u32 %s5035_s11, 4  ;;  %s2804_s19 = int_to_ptr.hbm [resolvable:$true] %s2803_s19 }
 0x167   : > { %v671_v32 = vsel %vm655_vm2, 1, %v5047_v7  ;;  %v670_v33 = vsel %vm654_vm3, 1, %v5047_v7  ;;  %v669_v34 = vsel %vm653_vm4, 1, %v5047_v7  ;;  %vm775_vm5 = vcmp.eq.s32.totalorder %v3280_v13, 1  ;;  %s2801_s16 = sshll.u32 %s3088_s15, 4  ;;  %s3089_s20 = smov 128   ;;  %s2802_s16 = int_to_ptr.vmem [resolvable:$true] %s2801_s16 }
 0x168   : > { %vm774_vm6 = vcmp.eq.s32.totalorder %v3262_v6, 1  ;;  %vm656_vm7 = vcmp.eq.s32.totalorder %v3334_v35, 0  ;;  %v791_v36 = vsel %vm775_vm5, 1, %v5047_v7  ;;  %vm778_vm8 = vcmp.eq.s32.totalorder %v3256_v4, 1  ;;  %s3090_s23 = smov 8  }
 0x169   : > { %v790_v37 = vsel %vm774_vm6, 1, %v5047_v7  ;;  %v672_v38 = vsel %vm656_vm7, 1, %v5047_v7  ;;  %vm777_vm9 = vcmp.eq.s32.totalorder %v3277_v12, 1  ;;  %vm776_vm10 = vcmp.eq.s32.totalorder %v3259_v5, 1 }
 0x16a   : > { %689 = vperm.xlu2 %2976, %v662_v14   ;;  %683 = vperm.xlu1 %2975, %v660_v15   ;;  %v794_v39 = vsel %vm778_vm8, 1, %v5047_v7  ;;  %v793_v40 = vsel %vm777_vm9, 1, %v5047_v7  ;;  %v792_v41 = vsel %vm776_vm10, 1, %v5047_v7  ;;  %vm781_vm11 = vcmp.eq.s32.totalorder %v3292_v18, 1 }
 0x16b   : > { %677 = vperm.xlu0 %2974, %v658_v16   ;;  %vm780_vm12 = vcmp.eq.s32.totalorder %v3295_v19, 1  ;;  %vm779_vm13 = vcmp.eq.s32.totalorder %v3274_v11, 1  ;;  %v797_v42 = vsel %vm781_vm11, 1, %v5047_v7  ;;  %vm784_vm14 = vcmp.eq.s32.totalorder %v3307_v24, 1 }
 0x16c   : > { %v796_v43 = vsel %vm780_vm12, 1, %v5047_v7  ;;  %v795_v44 = vsel %vm779_vm13, 1, %v5047_v7  ;;  %vm783_vm15 = vcmp.eq.s32.totalorder %v3310_v25, 1  ;;  %vm782_vm0 = vcmp.eq.s32.totalorder %v3289_v17, 1 }
 0x16d   : > { %v800_v45 = vsel %vm784_vm14, 1, %v5047_v7  ;;  %v799_v46 = vsel %vm783_vm15, 1, %v5047_v7  ;;  %v798_v47 = vsel %vm782_vm0, 1, %v5047_v7  ;;  %vm787_vm1 = vcmp.eq.s32.totalorder %v3322_v30, 1 }
 0x16e   : > { %vm786_vm2 = vcmp.eq.s32.totalorder %v3325_v31, 1  ;;  %vm785_vm3 = vcmp.eq.s32.totalorder %v3304_v23, 1  ;;  %v803_v48 = vsel %vm787_vm1, 1, %v5047_v7  ;;  %vm907_vm4 = vcmp.eq.s32.totalorder %v3262_v6, 2 }
 0x16f   : > { %v802_v49 = vsel %vm786_vm2, 1, %v5047_v7  ;;  %v801_v50 = vsel %vm785_vm3, 1, %v5047_v7  ;;  %vm789_vm5 = vcmp.eq.s32.totalorder %v3334_v35, 1  ;;  %vm788_vm6 = vcmp.eq.s32.totalorder %v3319_v29, 1 }
 0x170   : > { %v923_v51 = vsel %vm907_vm4, 1, %v5047_v7  ;;  %v805_v52 = vsel %vm789_vm5, 1, %v5047_v7  ;;  %v804_v53 = vsel %vm788_vm6, 1, %v5047_v7  ;;  %vm910_vm7 = vcmp.eq.s32.totalorder %v3277_v12, 2 }
 0x171   : > { %vm909_vm8 = vcmp.eq.s32.totalorder %v3259_v5, 2  ;;  %vm908_vm9 = vcmp.eq.s32.totalorder %v3280_v13, 2  ;;  %v926_v54 = vsel %vm910_vm7, 1, %v5047_v7  ;;  %vm913_vm10 = vcmp.eq.s32.totalorder %v3295_v19, 2 }
 0x172   : > { %698 = vperm.xlu2 %2976, %v665_v20   ;;  %695 = vperm.xlu1 %2975, %v664_v21   ;;  %v925_v55 = vsel %vm909_vm8, 1, %v5047_v7  ;;  %v924_v56 = vsel %vm908_vm9, 1, %v5047_v7  ;;  %vm912_vm11 = vcmp.eq.s32.totalorder %v3274_v11, 2  ;;  %vm911_vm12 = vcmp.eq.s32.totalorder %v3256_v4, 2 }
 0x173   : > { %692 = vperm.xlu0 %2974, %v663_v22   ;;  %v929_v58 = vsel %vm913_vm10, 1, %v5047_v7  ;;  %v928_v59 = vsel %vm912_vm11, 1, %v5047_v7  ;;  %v927_v60 = vsel %vm911_vm12, 1, %v5047_v7  ;;  %vm916_vm13 = vcmp.eq.s32.totalorder %v3310_v25, 2 }
 0x174   : > { %vm915_vm14 = vcmp.eq.s32.totalorder %v3289_v17, 2  ;;  %vm914_vm15 = vcmp.eq.s32.totalorder %v3292_v18, 2  ;;  %v932_v62 = vsel %vm916_vm13, 1, %v5047_v7  ;;  %vm919_vm0 = vcmp.eq.s32.totalorder %v3325_v31, 2 }
 0x175   : > { %v931_v63 = vsel %vm915_vm14, 1, %v5047_v7  ;;  %v930_v0 = vsel %vm914_vm15, 1, %v5047_v7  ;;  %vm918_vm1 = vcmp.eq.s32.totalorder %v3304_v23, 2  ;;  %vm917_vm2 = vcmp.eq.s32.totalorder %v3307_v24, 2 }
 0x176   : > { %v935_v2 = vsel %vm919_vm0, 1, %v5047_v7  ;;  %v934_v3 = vsel %vm918_vm1, 1, %v5047_v7  ;;  %v933_v8 = vsel %vm917_vm2, 1, %v5047_v7  ;;  %vm922_vm3 = vcmp.eq.s32.totalorder %v3334_v35, 2 }
 0x177   : > { %vm921_vm4 = vcmp.eq.s32.totalorder %v3319_v29, 2  ;;  %vm920_vm5 = vcmp.eq.s32.totalorder %v3322_v30, 2  ;;  %v938_v15 = vsel %vm922_vm3, 1, %v5047_v7  ;;  %vm1042_vm6 = vcmp.eq.s32.totalorder %v3259_v5, 3 }
 0x178   : > { %v937_v16 = vsel %vm921_vm4, 1, %v5047_v7  ;;  %v936_v20 = vsel %vm920_vm5, 1, %v5047_v7  ;;  %vm1041_vm7 = vcmp.eq.s32.totalorder %v3280_v13, 3  ;;  %vm1040_vm8 = vcmp.eq.s32.totalorder %v3262_v6, 3 }
 0x179   : > { %vm1045_vm9 = vcmp.eq.s32.totalorder %v3274_v11, 3  ;;  %vm1044_vm10 = vcmp.eq.s32.totalorder %v3256_v4, 3  ;;  %vm1043_vm11 = vcmp.eq.s32.totalorder %v3277_v12, 3  ;;  %vm1048_vm12 = vcmp.eq.s32.totalorder %v3289_v17, 3 }
 0x17a   : > { %707 = vperm.xlu2 %2976, %v668_v26   ;;  %704 = vperm.xlu1 %2975, %v667_v27   ;;  %v1058_v27 = vsel %vm1042_vm6, 1, %v5047_v7  ;;  %vm1047_vm13 = vcmp.eq.s32.totalorder %v3292_v18, 3  ;;  %vm1046_vm14 = vcmp.eq.s32.totalorder %v3295_v19, 3  ;;  %vm1051_vm15 = vcmp.eq.s32.totalorder %v3304_v23, 3 }
 0x17b   : > { %701 = vperm.xlu0 %2974, %v666_v28   ;;  %v1057_v28 = vsel %vm1041_vm7, 1, %v5047_v7  ;;  %vm1050_vm0 = vcmp.eq.s32.totalorder %v3307_v24, 3  ;;  %vm1049_vm1 = vcmp.eq.s32.totalorder %v3310_v25, 3  ;;  %vm1054_vm2 = vcmp.eq.s32.totalorder %v3319_v29, 3 }
 0x17c   : > { %vm1053_vm3 = vcmp.eq.s32.totalorder %v3322_v30, 3  ;;  %vm1052_vm4 = vcmp.eq.s32.totalorder %v3325_v31, 3  ;;  %vm1174_vm5 = vcmp.eq.s32.totalorder %v3280_v13, 4  ;;  %vm1173_vm6 = vcmp.eq.s32.totalorder %v3262_v6, 4 }
 0x17d   : > { %vm1055_vm7 = vcmp.eq.s32.totalorder %v3334_v35, 3 }
 0x182   : > { %716 = vperm.xlu2 %2976, %v671_v32   ;;  %713 = vperm.xlu1 %2975, %v670_v33   ;;  %v1056_v32 = vsel %vm1040_vm8, 1, %v5047_v7  ;;  %vm1177_vm8 = vcmp.eq.s32.totalorder %v3256_v4, 4 }
 0x183   : > { %710 = vperm.xlu0 %2974, %v669_v34  }
 0x18a   : > { %810 = vperm.xlu2 %2976, %v791_v36   ;;  %807 = vperm.xlu1 %2975, %v790_v37   ;;  %v1061_v37 = vsel %vm1045_vm9, 1, %v5047_v7  ;;  %vm1176_vm9 = vcmp.eq.s32.totalorder %v3277_v12, 4 }
 0x18b   : > { %719 = vperm.xlu0 %2974, %v672_v38   ;;  %v1060_v38 = vsel %vm1044_vm10, 1, %v5047_v7  ;;  %vm1175_vm10 = vcmp.eq.s32.totalorder %v3259_v5, 4 }
 0x192   : > { %819 = vperm.xlu2 %2976, %v794_v39   ;;  %816 = vperm.xlu1 %2975, %v793_v40   ;;  %v1059_v39 = vsel %vm1043_vm11, 1, %v5047_v7  ;;  %vm1180_vm11 = vcmp.eq.s32.totalorder %v3292_v18, 4 }
 0x193   : > { %813 = vperm.xlu0 %2974, %v792_v41  }
 0x19a   : > { %828 = vperm.xlu2 %2976, %v797_v42   ;;  %825 = vperm.xlu1 %2975, %v796_v43   ;;  %v1064_v43 = vsel %vm1048_vm12, 1, %v5047_v7  ;;  %vm1179_vm12 = vcmp.eq.s32.totalorder %v3295_v19, 4 }
 0x19b   : > { %822 = vperm.xlu0 %2974, %v795_v44   ;;  %v1063_v44 = vsel %vm1047_vm13, 1, %v5047_v7  ;;  %vm1178_vm13 = vcmp.eq.s32.totalorder %v3274_v11, 4 }
 0x1a2   : > { %837 = vperm.xlu2 %2976, %v800_v45   ;;  %834 = vperm.xlu1 %2975, %v799_v46   ;;  %v1062_v45 = vsel %vm1046_vm14, 1, %v5047_v7  ;;  %vm1183_vm14 = vcmp.eq.s32.totalorder %v3307_v24, 4 }
 0x1a3   : > { %831 = vperm.xlu0 %2974, %v798_v47  }
 0x1aa   : > { %846 = vperm.xlu2 %2976, %v803_v48   ;;  %843 = vperm.xlu1 %2975, %v802_v49   ;;  %v1067_v49 = vsel %vm1051_vm15, 1, %v5047_v7  ;;  %vm1182_vm15 = vcmp.eq.s32.totalorder %v3310_v25, 4 }
 0x1ab   : > { %840 = vperm.xlu0 %2974, %v801_v50   ;;  %v1066_v50 = vsel %vm1050_vm0, 1, %v5047_v7  ;;  %vm1181_vm0 = vcmp.eq.s32.totalorder %v3289_v17, 4 }
 0x1b2   : > { %940 = vperm.xlu2 %2976, %v923_v51   ;;  %852 = vperm.xlu1 %2975, %v805_v52   ;;  %v1065_v51 = vsel %vm1049_vm1, 1, %v5047_v7  ;;  %vm1186_vm1 = vcmp.eq.s32.totalorder %v3322_v30, 4 }
 0x1b3   : > { %849 = vperm.xlu0 %2974, %v804_v53  }
 0x1ba   : > { %949 = vperm.xlu2 %2976, %v926_v54   ;;  %946 = vperm.xlu1 %2975, %v925_v55   ;;  %v1070_v55 = vsel %vm1054_vm2, 1, %v5047_v7  ;;  %vm1185_vm2 = vcmp.eq.s32.totalorder %v3325_v31, 4 }
 0x1bb   : > { %943 = vperm.xlu0 %2974, %v924_v56   ;;  %v1069_v56 = vsel %vm1053_vm3, 1, %v5047_v7  ;;  %vm1184_vm3 = vcmp.eq.s32.totalorder %v3304_v23, 4 }
 0x1bc   : > { %v3378_v57 = vpop.permute.xlu2 %686 }
 0x1c2   : > { %958 = vperm.xlu2 %2976, %v929_v58   ;;  %955 = vperm.xlu1 %2975, %v928_v59   ;;  %v1068_v58 = vsel %vm1052_vm4, 1, %v5047_v7  ;;  %vm1306_vm4 = vcmp.eq.s32.totalorder %v3262_v6, 5 }
 0x1c3   : > { %952 = vperm.xlu0 %2974, %v927_v60  }
 0x1c4   : > { %v3386_v61 = vpop.permute.xlu2 %689 }
 0x1ca   : > { %967 = vperm.xlu2 %2976, %v932_v62   ;;  %964 = vperm.xlu1 %2975, %v931_v63   ;;  %v1190_v63 = vsel %vm1174_vm5, 1, %v5047_v7  ;;  %vm1188_vm5 = vcmp.eq.s32.totalorder %v3334_v35, 4 }
 0x1cb   : > { %961 = vperm.xlu0 %2974, %v930_v0   ;;  %v1189_v0 = vsel %vm1173_vm6, 1, %v5047_v7  ;;  %vm1187_vm6 = vcmp.eq.s32.totalorder %v3319_v29, 4 }
 0x1cc   : > { %v3394_v1 = vpop.permute.xlu2 %698 }
 0x1d2   : > { %976 = vperm.xlu2 %2976, %v935_v2   ;;  %973 = vperm.xlu1 %2975, %v934_v3   ;;  %v1071_v2 = vsel %vm1055_vm7, 1, %v5047_v7  ;;  %vm1309_vm7 = vcmp.eq.s32.totalorder %v3277_v12, 5 }
 0x1d3   : > { %970 = vperm.xlu0 %2974, %v933_v8  }
 0x1d4   : > { %v3402_v9 = vpop.permute.xlu2 %707  ;;  %v3404_v10 = vpop.permute.xlu1 %680 }
 0x1d5   : > { %v3408_v14 = vpop.permute.xlu0 %674 }
 0x1da   : > { %985 = vperm.xlu2 %2976, %v938_v15   ;;  %982 = vperm.xlu1 %2975, %v937_v16   ;;  %v1193_v16 = vsel %vm1177_vm8, 1, %v5047_v7  ;;  %vm1308_vm8 = vcmp.eq.s32.totalorder %v3259_v5, 5 }
 0x1db   : > { %979 = vperm.xlu0 %2974, %v936_v20   ;;  %v1192_v20 = vsel %vm1176_vm9, 1, %v5047_v7  ;;  %vm1307_vm9 = vcmp.eq.s32.totalorder %v3280_v13, 5 }
 0x1dc   : > { %v3414_v21 = vpop.permute.xlu2 %716  ;;  %v3416_v22 = vpop.permute.xlu1 %683 }
 0x1dd   : > { %v3420_v26 = vpop.permute.xlu0 %677 }
 0x1e2   : > { %1079 = vperm.xlu2 %2976, %v1058_v27   ;;  %1076 = vperm.xlu1 %2975, %v1057_v28   ;;  %v1191_v27 = vsel %vm1175_vm10, 1, %v5047_v7  ;;  %vm1312_vm10 = vcmp.eq.s32.totalorder %v3295_v19, 5 }
 0x1e3   : > { %1073 = vperm.xlu0 %2974, %v1056_v32  }
 0x1e4   : > { %v3426_v33 = vpop.permute.xlu1 %695  ;;  %v3428_v34 = vpop.permute.xlu2 %810 }
 0x1e5   : > { %v3432_v36 = vpop.permute.xlu0 %692 }
 0x1ea   : > { %1088 = vperm.xlu2 %2976, %v1061_v37   ;;  %1085 = vperm.xlu1 %2975, %v1060_v38   ;;  %v1196_v38 = vsel %vm1180_vm11, 1, %v5047_v7  ;;  %vm1311_vm11 = vcmp.eq.s32.totalorder %v3274_v11, 5 }
 0x1eb   : > { %1082 = vperm.xlu0 %2974, %v1059_v39   ;;  %v1195_v39 = vsel %vm1179_vm12, 1, %v5047_v7  ;;  %vm1310_vm12 = vcmp.eq.s32.totalorder %v3256_v4, 5 }
 0x1ec   : > { %v3438_v40 = vpop.permute.xlu1 %704  ;;  %v3440_v41 = vpop.permute.xlu2 %819 }
 0x1ed   : > { %v3444_v42 = vpop.permute.xlu0 %701 }
 0x1f2   : > { %1097 = vperm.xlu2 %2976, %v1064_v43   ;;  %1094 = vperm.xlu1 %2975, %v1063_v44   ;;  %v1194_v43 = vsel %vm1178_vm13, 1, %v5047_v7  ;;  %vm1315_vm13 = vcmp.eq.s32.totalorder %v3310_v25, 5 }
 0x1f3   : > { %1091 = vperm.xlu0 %2974, %v1062_v45  }
 0x1f4   : > { %v3450_v46 = vpop.permute.xlu1 %713  ;;  %v3452_v47 = vpop.permute.xlu2 %828 }
 0x1f5   : > { %v3456_v48 = vpop.permute.xlu0 %710 }
 0x1fa   : > { %1106 = vperm.xlu2 %2976, %v1067_v49   ;;  %1103 = vperm.xlu1 %2975, %v1066_v50   ;;  %v1199_v50 = vsel %vm1183_vm14, 1, %v5047_v7  ;;  %vm1314_vm14 = vcmp.eq.s32.totalorder %v3289_v17, 5 }
 0x1fb   : > { %1100 = vperm.xlu0 %2974, %v1065_v51   ;;  %v1198_v51 = vsel %vm1182_vm15, 1, %v5047_v7  ;;  %vm1313_vm15 = vcmp.eq.s32.totalorder %v3292_v18, 5 }
 0x1fc   : > { %v3462_v52 = vpop.permute.xlu2 %837  ;;  %v3464_v53 = vpop.permute.xlu1 %807 }
 0x1fd   : > { %v3468_v54 = vpop.permute.xlu0 %719 }
 0x202   : > { %1115 = vperm.xlu2 %2976, %v1070_v55   ;;  %1112 = vperm.xlu1 %2975, %v1069_v56   ;;  %v1197_v55 = vsel %vm1181_vm0, 1, %v5047_v7  ;;  %vm1318_vm0 = vcmp.eq.s32.totalorder %v3325_v31, 5 }
 0x203   : > { %1109 = vperm.xlu0 %2974, %v1068_v58  }
 0x204   : > { %v3474_v59 = vpop.permute.xlu2 %846  ;;  %v3476_v60 = vpop.permute.xlu1 %816 }
 0x205   : > { %v3480_v62 = vpop.permute.xlu0 %813 }
 0x20a   : > { %1209 = vperm.xlu2 %2976, %v1190_v63   ;;  %1206 = vperm.xlu1 %2975, %v1189_v0   ;;  %v1202_v0 = vsel %vm1186_vm1, 1, %v5047_v7  ;;  %vm1317_vm1 = vcmp.eq.s32.totalorder %v3304_v23, 5 }
 0x20b   : > { %1118 = vperm.xlu0 %2974, %v1071_v2   ;;  %v1201_v2 = vsel %vm1185_vm2, 1, %v5047_v7  ;;  %vm1316_vm2 = vcmp.eq.s32.totalorder %v3307_v24, 5 }
 0x20c   : > { %v3486_v3 = vpop.permute.xlu2 %940  ;;  %v3488_v8 = vpop.permute.xlu1 %825 }
 0x20d   : > { %5079 = vst [vmem:[#allocation8_spill] sm:$0xff] %v3486_v3  ;;  %v3492_v15 = vpop.permute.xlu0 %822 }
 0x212   : > { %1218 = vperm.xlu2 %2976, %v1193_v16   ;;  %1215 = vperm.xlu1 %2975, %v1192_v20   ;;  %v1200_v16 = vsel %vm1184_vm3, 1, %v5047_v7  ;;  %vm1321_vm3 = vcmp.eq.s32.totalorder %v3334_v35, 5 }
 0x213   : > { %1212 = vperm.xlu0 %2974, %v1191_v27  }
 0x214   : > { %v3498_v28 = vpop.permute.xlu2 %949  ;;  %v3500_v32 = vpop.permute.xlu1 %834 }
 0x215   : > { %5080 = vst [vmem:[#allocation9_spill] sm:$0xff] %v3498_v28  ;;  %v3504_v37 = vpop.permute.xlu0 %831 }
 0x21a   : > { %1227 = vperm.xlu2 %2976, %v1196_v38   ;;  %1224 = vperm.xlu1 %2975, %v1195_v39   ;;  %v1322_v39 = vsel %vm1306_vm4, 1, %v5047_v7  ;;  %vm1320_vm4 = vcmp.eq.s32.totalorder %v3319_v29, 5 }
 0x21b   : > { %1221 = vperm.xlu0 %2974, %v1194_v43   ;;  %v1204_v43 = vsel %vm1188_vm5, 1, %v5047_v7  ;;  %vm1319_vm5 = vcmp.eq.s32.totalorder %v3322_v30, 5 }
 0x21c   : > { %v3510_v44 = vpop.permute.xlu2 %958  ;;  %v3512_v45 = vpop.permute.xlu1 %843 }
 0x21d   : > { %5081 = vst [vmem:[#allocation10_spill] sm:$0xff] %v3510_v44  ;;  %v3516_v49 = vpop.permute.xlu0 %840 }
 0x21e   : > { %5082 = vst [vmem:[#allocation11_spill] sm:$0xff] %v3512_v45 }
 0x222   : > { %1236 = vperm.xlu2 %2976, %v1199_v50   ;;  %1233 = vperm.xlu1 %2975, %v1198_v51   ;;  %v1203_v50 = vsel %vm1187_vm6, 1, %v5047_v7  ;;  %vm1441_vm6 = vcmp.eq.s32.totalorder %v3259_v5, 6 }
 0x223   : > { %1230 = vperm.xlu0 %2974, %v1197_v55  }
 0x224   : > { %v3522_v56 = vpop.permute.xlu2 %967  ;;  %v3524_v58 = vpop.permute.xlu1 %852 }
 0x225   : > { %5083 = vst [vmem:[#allocation12_spill] sm:$0xff] %v3522_v56  ;;  %v3528_v63 = vpop.permute.xlu0 %849 }
 0x226   : > { %5084 = vst [vmem:[#allocation13_spill] sm:$0xff] %v3524_v58 }
 0x227   : > { %5085 = vst [vmem:[#allocation14_spill] sm:$0xff] %v3528_v63 }
 0x22a   : > { %1245 = vperm.xlu2 %2976, %v1202_v0   ;;  %1242 = vperm.xlu1 %2975, %v1201_v2   ;;  %v1325_v2 = vsel %vm1309_vm7, 1, %v5047_v7  ;;  %vm1440_vm7 = vcmp.eq.s32.totalorder %v3280_v13, 6 }
 0x22b   : > { %1239 = vperm.xlu0 %2974, %v1200_v16   ;;  %v1324_v16 = vsel %vm1308_vm8, 1, %v5047_v7  ;;  %vm1439_vm8 = vcmp.eq.s32.totalorder %v3262_v6, 6 }
 0x22c   : > { %v3534_v20 = vpop.permute.xlu2 %976  ;;  %v3536_v27 = vpop.permute.xlu1 %946 }
 0x22d   : > { %5086 = vst [vmem:[#allocation15_spill] sm:$0xff] %v3534_v20  ;;  %v3540_v38 = vpop.permute.xlu0 %943  ;;  %v1328_v20 = vsel %vm1312_vm10, 1, %v5047_v7  ;;  %vm1443_vm10 = vcmp.eq.s32.totalorder %v3256_v4, 6 }
 0x22e   : > { %5087 = vst [vmem:[#allocation16_spill] sm:$0xff] %v3536_v27 }
 0x22f   : > { %5088 = vst [vmem:[#allocation17_spill] sm:$0xff] %v3540_v38 }
 0x232   : > { %1339 = vperm.xlu2 %2976, %v1322_v39   ;;  %1251 = vperm.xlu1 %2975, %v1204_v43   ;;  %v1323_v39 = vsel %vm1307_vm9, 1, %v5047_v7  ;;  %vm1444_vm9 = vcmp.eq.s32.totalorder %v3274_v11, 6 }
 0x233   : > { %1248 = vperm.xlu0 %2974, %v1203_v50  }
 0x234   : > { %v3546_v51 = vpop.permute.xlu2 %985  ;;  %v3548_v55 = vpop.permute.xlu1 %955 }
 0x235   : > { %5089 = vst [vmem:[#allocation18_spill] sm:$0xff] %v3546_v51  ;;  %v3552_v0 = vpop.permute.xlu0 %952 }
 0x236   : > { %5090 = vst [vmem:[#allocation19_spill] sm:$0xff] %v3548_v55 }
 0x237   : > { %5091 = vst [vmem:[#allocation20_spill] sm:$0xff] %v3552_v0  ;;  %v1327_v0 = vsel %vm1311_vm11, 1, %v5047_v7  ;;  %vm1442_vm11 = vcmp.eq.s32.totalorder %v3277_v12, 6 }
 0x23a   : > { %1348 = vperm.xlu2 %2976, %v1325_v2   ;;  %1345 = vperm.xlu1 %2975, %v1324_v16   ;;  %v1326_v2 = vsel %vm1310_vm12, 1, %v5047_v7  ;;  %vm1447_vm12 = vcmp.eq.s32.totalorder %v3289_v17, 6 }
 0x23b   : > { %1342 = vperm.xlu0 %2974, %v1323_v39  }
 0x23c   : > { %v3558_v43 = vpop.permute.xlu2 %1079  ;;  %v3560_v50 = vpop.permute.xlu1 %964 }
 0x23d   : > { %5092 = vst [vmem:[#allocation21_spill] sm:$0xff] %v3558_v43  ;;  %v3564_v51 = vpop.permute.xlu0 %961 }
 0x23e   : > { %5093 = vst [vmem:[#allocation22_spill] sm:$0xff] %v3560_v50  ;;  %v1331_v50 = vsel %vm1315_vm13, 1, %v5047_v7  ;;  %vm1446_vm13 = vcmp.eq.s32.totalorder %v3292_v18, 6 }
 0x23f   : > { %5094 = vst [vmem:[#allocation23_spill] sm:$0xff] %v3564_v51  ;;  %v1330_v51 = vsel %vm1314_vm14, 1, %v5047_v7  ;;  %vm1445_vm14 = vcmp.eq.s32.totalorder %v3295_v19, 6 }
 0x242   : > { %1357 = vperm.xlu2 %2976, %v1328_v20   ;;  %1354 = vperm.xlu1 %2975, %v1327_v0   ;;  %v1329_v20 = vsel %vm1313_vm15, 1, %v5047_v7  ;;  %vm1450_vm15 = vcmp.eq.s32.totalorder %v3304_v23, 6 }
 0x243   : > { %1351 = vperm.xlu0 %2974, %v1326_v2  }
 0x244   : > { %v3570_v16 = vpop.permute.xlu2 %1088  ;;  %v3572_v39 = vpop.permute.xlu1 %973 }
 0x245   : > { %5095 = vst [vmem:[#allocation24_spill] sm:$0xff] %v3570_v16  ;;  %v3576_v43 = vpop.permute.xlu0 %970 }
 0x246   : > { %5096 = vst [vmem:[#allocation25_spill] sm:$0xff] %v3572_v39  ;;  %v1333_v39 = vsel %vm1317_vm1, 1, %v5047_v7  ;;  %vm1448_vm1 = vcmp.eq.s32.totalorder %v3310_v25, 6 }
 0x247   : > { %5097 = vst [vmem:[#allocation26_spill] sm:$0xff] %v3576_v43  ;;  %v1334_v43 = vsel %vm1318_vm0, 1, %v5047_v7  ;;  %vm1449_vm0 = vcmp.eq.s32.totalorder %v3307_v24, 6 }
 0x24a   : > { %1366 = vperm.xlu2 %2976, %v1331_v50   ;;  %1363 = vperm.xlu1 %2975, %v1330_v51   ;;  %v1332_v50 = vsel %vm1316_vm2, 1, %v5047_v7  ;;  %vm1453_vm2 = vcmp.eq.s32.totalorder %v3319_v29, 6 }
 0x24b   : > { %1360 = vperm.xlu0 %2974, %v1329_v20  }
 0x24c   : > { %v3582_v0 = vpop.permute.xlu2 %1097  ;;  %v3584_v2 = vpop.permute.xlu1 %982 }
 0x24d   : > { %5098 = vst [vmem:[#allocation27_spill] sm:$0xff] %v3582_v0  ;;  %v3588_v16 = vpop.permute.xlu0 %979 }
 0x24e   : > { %5099 = vst [vmem:[#allocation28_spill] sm:$0xff] %v3584_v2  ;;  %v1336_v2 = vsel %vm1320_vm4, 1, %v5047_v7  ;;  %vm1451_vm4 = vcmp.eq.s32.totalorder %v3325_v31, 6 }
 0x24f   : > { %5100 = vst [vmem:[#allocation29_spill] sm:$0xff] %v3588_v16  ;;  %v1337_v16 = vsel %vm1321_vm3, 1, %v5047_v7  ;;  %vm1452_vm3 = vcmp.eq.s32.totalorder %v3322_v30, 6 }
 0x252   : > { %1375 = vperm.xlu2 %2976, %v1334_v43   ;;  %1372 = vperm.xlu1 %2975, %v1333_v39   ;;  %v1335_v43 = vsel %vm1319_vm5, 1, %v5047_v7  ;;  %vm1573_vm5 = vcmp.eq.s32.totalorder %v3280_v13, 7 }
 0x253   : > { %1369 = vperm.xlu0 %2974, %v1332_v50  }
 0x254   : > { %v3594_v51 = vpop.permute.xlu2 %1106  ;;  %v3596_v20 = vpop.permute.xlu1 %1076 }
 0x255   : > { %5101 = vst [vmem:[#allocation30_spill] sm:$0xff] %v3594_v51  ;;  %v3600_v0 = vpop.permute.xlu0 %1073  ;;  %v1457_v51 = vsel %vm1441_vm6, 1, %v5047_v7  ;;  %vm1572_vm6 = vcmp.eq.s32.totalorder %v3262_v6, 7 }
 0x256   : > { %5102 = vst [vmem:[#allocation31_spill] sm:$0xff] %v3596_v20 }
 0x257   : > { %5103 = vst [vmem:[#allocation32_spill] sm:$0xff] %v3600_v0  ;;  %v1456_v0 = vsel %vm1440_vm7, 1, %v5047_v7  ;;  %vm1454_vm7 = vcmp.eq.s32.totalorder %v3334_v35, 6 }
 0x25a   : > { %1384 = vperm.xlu2 %2976, %v1337_v16   ;;  %1381 = vperm.xlu1 %2975, %v1336_v2   ;;  %v1455_v16 = vsel %vm1439_vm8, 1, %v5047_v7  ;;  %vm1576_vm8 = vcmp.eq.s32.totalorder %v3256_v4, 7  ;;  %v3698_v4 = vld [vmem:[%s5025_s1] ss:$0 sm:$0xff] }
 0x25b   : > { %1378 = vperm.xlu0 %2974, %v1335_v43  }
 0x25c   : > { %v3606_v39 = vpop.permute.xlu2 %1115  ;;  %v3608_v50 = vpop.permute.xlu1 %1085 }
 0x25d   : > { %5104 = vst [vmem:[#allocation33_spill] sm:$0xff] %v3606_v39  ;;  %v3612_v20 = vpop.permute.xlu0 %1082 }
 0x25e   : > { %5105 = vst [vmem:[#allocation34_spill] sm:$0xff] %v3608_v50  ;;  %v1459_v50 = vsel %vm1443_vm10, 1, %v5047_v7  ;;  %vm1574_vm10 = vcmp.eq.s32.totalorder %v3259_v5, 7 }
 0x25f   : > { %5106 = vst [vmem:[#allocation35_spill] sm:$0xff] %v3612_v20  ;;  %v1460_v20 = vsel %vm1444_vm9, 1, %v5047_v7  ;;  %vm1575_vm9 = vcmp.eq.s32.totalorder %v3277_v12, 7  ;;  %v2934_v12 = vld [vmem:[%s3170_s28 + $0x28] sm:$0xff]  }
 0x260   : > { %v2921_v27 = vunpack.c.h.bf16 %v2934_v12 }
 0x262   : > { %1478 = vperm.xlu2 %2976, %v1457_v51   ;;  %1475 = vperm.xlu1 %2975, %v1456_v0   ;;  %v1458_v51 = vsel %vm1442_vm11, 1, %v5047_v7  ;;  %vm1579_vm11 = vcmp.eq.s32.totalorder %v3292_v18, 7  ;;  %v600_v55 = vmul.f32 %v3698_v4, %v2921_v27  ;;  %v2920_v27 = vunpack.c.l.bf16 %v2934_v12 }
 0x263   : > { %1472 = vperm.xlu0 %2974, %v1455_v16  }
 0x264   : > { %v3618_v2 = vpop.permute.xlu2 %1209  ;;  %v3620_v43 = vpop.permute.xlu1 %1094 }
 0x265   : > { %5107 = vst [vmem:[#allocation36_spill] sm:$0xff] %v3618_v2  ;;  %v3624_v39 = vpop.permute.xlu0 %1091 }
 0x266   : > { %5108 = vst [vmem:[#allocation37_spill] sm:$0xff] %v3620_v43  ;;  %v1463_v43 = vsel %vm1447_vm12, 1, %v5047_v7  ;;  %vm1578_vm12 = vcmp.eq.s32.totalorder %v3295_v19, 7  ;;  %v2932_v19 = vld [vmem:[%s3170_s28 + $0x18] sm:$0xff]  }
 0x267   : > { %5109 = vst [vmem:[#allocation38_spill] sm:$0xff] %v3624_v39  ;;  %v1462_v39 = vsel %vm1446_vm13, 1, %v5047_v7  ;;  %vm1577_vm13 = vcmp.eq.s32.totalorder %v3274_v11, 7  ;;  %v2912_v45 = vunpack.c.l.bf16 %v2932_v19 }
 0x26a   : > { %1487 = vperm.xlu2 %2976, %v1460_v20   ;;  %1484 = vperm.xlu1 %2975, %v1459_v50   ;;  %v1461_v20 = vsel %vm1445_vm14, 1, %v5047_v7  ;;  %vm1582_vm14 = vcmp.eq.s32.totalorder %v3307_v24, 7 }
 0x26b   : > { %1481 = vperm.xlu0 %2974, %v1458_v51  }
 0x26c   : > { %v3630_v0 = vpop.permute.xlu2 %1218  ;;  %v3632_v16 = vpop.permute.xlu1 %1103 }
 0x26d   : > { %5110 = vst [vmem:[#allocation39_spill] sm:$0xff] %v3630_v0  ;;  %v3636_v2 = vpop.permute.xlu0 %1100 }
 0x26e   : > { %5111 = vst [vmem:[#allocation40_spill] sm:$0xff] %v3632_v16  ;;  %v1465_v16 = vsel %vm1449_vm0, 1, %v5047_v7  ;;  %vm1580_vm0 = vcmp.eq.s32.totalorder %v3289_v17, 7  ;;  %v599_v17 = vmul.f32 %v3698_v4, %v2920_v27 }
 0x26f   : > { %5112 = vst [vmem:[#allocation41_spill] sm:$0xff] %v3636_v2  ;;  %v1466_v2 = vsel %vm1450_vm15, 1, %v5047_v7  ;;  %vm1581_vm15 = vcmp.eq.s32.totalorder %v3310_v25, 7 }
 0x272   : > { %1496 = vperm.xlu2 %2976, %v1463_v43   ;;  %1493 = vperm.xlu1 %2975, %v1462_v39   ;;  %v1464_v43 = vsel %vm1448_vm1, 1, %v5047_v7  ;;  %vm725_vm1 = vcmp.eq.s32.totalorder %v3378_v57, 1 }
 0x273   : > { %1490 = vperm.xlu0 %2974, %v1461_v20  }
 0x274   : > { %v3642_v50 = vpop.permute.xlu2 %1227  ;;  %v3644_v51 = vpop.permute.xlu1 %1112 }
 0x275   : > { %5113 = vst [vmem:[#allocation42_spill] sm:$0xff] %v3642_v50  ;;  %v3648_v0 = vpop.permute.xlu0 %1109 }
 0x276   : > { %5114 = vst [vmem:[#allocation43_spill] sm:$0xff] %v3644_v51  ;;  %v1468_v51 = vsel %vm1452_vm3, 1, %v5047_v7  ;;  %vm721_vm3 = vcmp.eq.s32.totalorder %v3408_v14, 1 }
 0x277   : > { %5115 = vst [vmem:[#allocation44_spill] sm:$0xff] %v3648_v0  ;;  %v1469_v0 = vsel %vm1453_vm2, 1, %v5047_v7  ;;  %vm726_vm2 = vcmp.eq.s32.totalorder %v3386_v61, 1 }
 0x27a   : > { %1505 = vperm.xlu2 %2976, %v1466_v2   ;;  %1502 = vperm.xlu1 %2975, %v1465_v16   ;;  %v1467_v2 = vsel %vm1451_vm4, 1, %v5047_v7  ;;  %vm729_vm4 = vcmp.eq.s32.totalorder %v3394_v1, 1 }
 0x27b   : > { %1499 = vperm.xlu0 %2974, %v1464_v43  }
 0x27c   : > { %v3654_v39 = vpop.permute.xlu2 %1236  ;;  %v3656_v20 = vpop.permute.xlu1 %1206 }
 0x27d   : > { %5116 = vst [vmem:[#allocation45_spill] sm:$0xff] %v3654_v39  ;;  %v3660_v50 = vpop.permute.xlu0 %1118  ;;  %v1589_v39 = vsel %vm1573_vm5, 1, %v5047_v7  ;;  %vm1585_vm5 = vcmp.eq.s32.totalorder %v3322_v30, 7 }
 0x27e   : > { %5117 = vst [vmem:[#allocation46_spill] sm:$0xff] %v3656_v20 }
 0x27f   : > { %5118 = vst [vmem:[#allocation47_spill] sm:$0xff] %v3660_v50 }
 0x282   : > { %1514 = vperm.xlu2 %2976, %v1469_v0   ;;  %1511 = vperm.xlu1 %2975, %v1468_v51   ;;  %v1588_v0 = vsel %vm1572_vm6, 1, %v5047_v7  ;;  %v1470_v51 = vsel %vm1454_vm7, 1, %v5047_v7  ;;  %vm1584_vm6 = vcmp.eq.s32.totalorder %v3325_v31, 7  ;;  %vm1583_vm7 = vcmp.eq.s32.totalorder %v3304_v23, 7 }
 0x283   : > { %1508 = vperm.xlu0 %2974, %v1467_v2  }
 0x284   : > { %v3666_v16 = vpop.permute.xlu2 %1245  ;;  %v3668_v43 = vpop.permute.xlu1 %1215 }
 0x285   : > { %5119 = vst [vmem:[#allocation48_spill] sm:$0xff] %v3666_v16  ;;  %v3672_v29 = vpop.permute.xlu0 %1212  ;;  %v2931_v16 = vld [vmem:[%s3170_s28 + $0x10] sm:$0xff]  }
 0x286   : > { %5120 = vst [vmem:[#allocation49_spill] sm:$0xff] %v3668_v43  ;;  %v2908_v43 = vunpack.c.l.bf16 %v2931_v16  ;;  %v2909_v5 = vunpack.c.h.bf16 %v2931_v16 }
 0x287   : > { %5121 = vst [vmem:[#allocation50_spill] sm:$0xff] %v3672_v29  ;;  %v1592_v29 = vsel %vm1576_vm8, 1, %v5047_v7  ;;  %vm732_vm8 = vcmp.eq.s32.totalorder %v3402_v9, 1 }
 0x288   : > { %v593_v16 = vmul.f32 %v3698_v4, %v2908_v43 }
 0x28a   : > { %1608 = vperm.xlu2 %2976, %v1589_v39   ;;  %1605 = vperm.xlu1 %2975, %v1588_v0   ;;  %v1591_v39 = vsel %vm1575_vm9, 1, %v5047_v7  ;;  %v3691_v0 = vld [vmem:[%s3170_s28 + $0x20] sm:$0xff]   ;;  %vm723_vm9 = vcmp.eq.s32.totalorder %v3404_v10, 1 }
 0x28b   : > { %1517 = vperm.xlu0 %2974, %v1470_v51   ;;  %v1590_v51 = vsel %vm1574_vm10, 1, %v5047_v7  ;;  %v2916_v50 = vunpack.c.l.bf16 %v3691_v0  ;;  %vm727_vm10 = vcmp.eq.s32.totalorder %v3432_v36, 1 }
 0x28c   : > { %v3678_v13 = vpop.permute.xlu2 %1339  ;;  %v3680_v6 = vpop.permute.xlu1 %1224 }
 0x28d   : > { %5122 = vst [vmem:[#allocation51_spill] sm:$0xff] %v3678_v13  ;;  %v3684_v2 = vpop.permute.xlu0 %1221  ;;  %v2899_v13 = vld [vmem:[%s3170_s28] sm:$0xff]   ;;  %v597_v18 = vmul.f32 %v3698_v4, %v2916_v50 }
 0x28e   : > { %5123 = vst [vmem:[#allocation52_spill] sm:$0xff] %v3680_v6  ;;  %v2900_v6 = vunpack.c.l.bf16 %v2899_v13  ;;  %v2901_v63 = vunpack.c.h.bf16 %v2899_v13 }
 0x28f   : > { %5124 = vst [vmem:[#allocation53_spill] sm:$0xff] %v3684_v2  ;;  %v2930_v2 = vld [vmem:[%s3170_s28 + $0x8] sm:$0xff]  }
 0x290   : > { %v2904_v56 = vunpack.c.l.bf16 %v2930_v2  ;;  %v589_v11 = vmul.f32 %v3698_v4, %v2900_v6  ;;  %v2905_v3 = vunpack.c.h.bf16 %v2930_v2  ;;  %v590_v24 = vmul.f32 %v3698_v4, %v2901_v63 }
 0x292   : > { %1617 = vperm.xlu2 %2976, %v1592_v29   ;;  %1614 = vperm.xlu1 %2975, %v1591_v39   ;;  %v3714_v29 = vld [vmem:[%s3170_s28 + $0x38] sm:$0xff]   ;;  %v3719_v39 = vld [vmem:[%s5026_s2] ss:$0 sm:$0xff]  ;;  %v591_v44 = vmul.f32 %v3698_v4, %v2904_v56  ;;  %v592_v12 = vmul.f32 %v3698_v4, %v2905_v3 }
 0x293   : > { %1611 = vperm.xlu0 %2974, %v1590_v51   ;;  %v594_v51 = vmul.f32 %v3698_v4, %v2909_v5  ;;  %v2928_v28 = vunpack.c.l.bf16 %v3714_v29  ;;  %v2913_v5 = vunpack.c.h.bf16 %v2932_v19  ;;  %v3732_v50 = vadd.f32 %v3719_v39, %v593_v16 }
 0x294   : > { %v3703_v20 = vpop.permute.xlu2 %1348  ;;  %v3705_v7 = vpop.permute.xlu1 %1233  ;;  %v3738_v6 = vadd.f32 %v3719_v39, %v597_v18  ;;  %v3741_v56 = vadd.f32 %v3719_v39, %v589_v11  ;;  %v3753_v2 = vadd.f32 %v3719_v39, %v591_v44  ;;  %v2935_v18 = vld [vmem:[%s3170_s28 + $0x30] sm:$0xff]   ;;  %v2917_v44 = vunpack.c.h.bf16 %v3691_v0  ;;  %s3087_s28 = smov [#allocation4]  }
 0x295   : > { %5125 = vst [vmem:[#allocation54_spill] sm:$0xff] %v3703_v20  ;;  %v3709_v38 = vpop.permute.xlu0 %1230  ;;  %v5128_v20 = vmov 0   ;;  %v3735_v58 = vadd.f32 %v3719_v39, %v594_v51  ;;  %v603_v16 = vmul.f32 %v3698_v4, %v2928_v28  ;;  %v596_v25 = vmul.f32 %v3698_v4, %v2913_v5 }
 0x296   : > { %5126 = vst [vmem:[#allocation55_spill] sm:$0xff] %v3705_v7  ;;  %v1595_v7 = vsel %vm1579_vm11, 1, %v5128_v20  ;;  %v1593_v43 = vsel %vm1577_vm13, 1, %v5128_v20  ;;  %v1598_v19 = vsel %vm1582_vm14, 1, %v5128_v20  ;;  %v1597_v28 = vsel %vm1581_vm15, 1, %v5128_v20 }
 0x297   : > { %5127 = vst [vmem:[#allocation56_spill] sm:$0xff] %v3709_v38  ;;  %v1594_v38 = vsel %vm1578_vm12, 1, %v5128_v20  ;;  %v1596_v3 = vsel %vm1580_vm0, 1, %v5128_v20  ;;  %v3774_v63 = vadd.f32 %v3719_v39, %v603_v16  ;;  %v2924_v11 = vunpack.c.l.bf16 %v2935_v18 }
 0x298   : > { %v741_v0 = vsel %vm725_vm1, %v3732_v50, -1e+30  ;;  %v3783_v61 = vadd.f32 %v3719_v39, %v590_v24  ;;  %v3786_v14 = vadd.f32 %v3719_v39, %v596_v25  ;;  %v3789_v1 = vsel %vm726_vm2, %v3735_v58, -1e+30 }
 0x299   : > { %v737_v5 = vsel %vm721_vm3, %v3741_v56, -1e+30  ;;  %v598_v57 = vmul.f32 %v3698_v4, %v2917_v44  ;;  %v745_v16 = vsel %vm729_vm4, %v3738_v6, -1e+30  ;;  %v2929_v44 = vunpack.c.h.bf16 %v3714_v29 }
 0x29a   : > { %1626 = vperm.xlu2 %2976, %v1595_v7   ;;  %1623 = vperm.xlu1 %2975, %v1594_v38   ;;  %v3750_v38 = vadd.f32 %v3719_v39, %v600_v55  ;;  %v595_v55 = vmul.f32 %v3698_v4, %v2912_v45  ;;  %v2925_v45 = vunpack.c.h.bf16 %v2935_v18  ;;  %vm722_vm11 = vcmp.eq.s32.totalorder %v3420_v26, 1 }
 0x29b   : > { %1620 = vperm.xlu0 %2974, %v1593_v43   ;;  %v3780_v43 = vadd.f32 %v3719_v39, %v592_v12  ;;  %v3798_v12 = vadd.f32 %v3719_v39, %v599_v17  ;;  %vm728_vm12 = vcmp.eq.s32.totalorder %v3426_v33, 1  ;;  %v1601_v30 = vsel %vm1585_vm5, 1, %v5128_v20 }
 0x29c   : > { %v3743_v13 = vpop.permute.xlu2 %1357  ;;  %v3745_v7 = vpop.permute.xlu1 %1242  ;;  %v3793_v27 = vadd.f32 %v3719_v39, %v595_v55  ;;  %v602_v18 = vmul.f32 %v3698_v4, %v2925_v45  ;;  %v601_v55 = vmul.f32 %v3698_v4, %v2924_v11  ;;  %v1600_v31 = vsel %vm1584_vm6, 1, %v5128_v20 }
 0x29d   : > { %v3756_v51 = vpop.permute.xlu0 %1239  ;;  %vm724_vm13 = vcmp.eq.s32.totalorder %v3416_v22, 1  ;;  %vm731_vm14 = vcmp.eq.s32.totalorder %v3438_v40, 1  ;;  %v3822_v23 = vadd.f32 %v3719_v39, %v598_v57  ;;  %v1599_v9 = vsel %vm1583_vm7, 1, %v5128_v20  ;;  %v3848_v57 = vld [vmem:[%s3175_s13] sm:$0xff] }
 0x29e   : > { %v748_v10 = vsel %vm732_vm8, %v3750_v38, -1e+30  ;;  %v743_v36 = vsel %vm727_vm10, %v3793_v27, -1e+30  ;;  %v3828_v26 = vadd.f32 %v3719_v39, %v602_v18  ;;  %v604_v33 = vmul.f32 %v3698_v4, %v2929_v44  ;;  %5131 = vst [vmem:[#allocation59_spill] sm:$0xff] %v3848_v57 }
 0x29f   : > { %v739_v29 = vsel %vm723_vm9, %v3753_v2, -1e+30  ;;  %v738_v22 = vsel %vm722_vm11, %v3783_v61, -1e+30  ;;  %v744_v40 = vsel %vm728_vm12, %v3786_v14, -1e+30  ;;  %v3835_v17 = vadd.f32 %v3719_v39, %v601_v55 }
 0x2a0   : > { %vm735_vm15 = vcmp.eq.s32.totalorder %v3414_v21, 1  ;;  %v747_v45 = vsel %vm731_vm14, %v3798_v12, -1e+30  ;;  %v755_v11 = vmax.f32 %v739_v29, %v743_v36  ;;  %vm730_vm0 = vcmp.eq.s32.totalorder %v3444_v42, 1  ;;  %v3962_v21 = vld [vmem:[%s3175_s13 + $0x30] sm:$0xff] }
 0x2a1   : > { %vm1705_vm1 = vcmp.eq.s32.totalorder %v3848_v57, 8  ;;  %vm1587_vm2 = vcmp.eq.s32.totalorder %v3334_v35, 7  ;;  %v754_v18 = vmax.f32 %v738_v22, %v3789_v1  ;;  %vm855_vm4 = vcmp.eq.s32.totalorder %v3428_v34, 1  ;;  %v3912_v22 = vld [vmem:[%s3175_s13 + $0x18] sm:$0xff] }
 0x2a2   : > { %1635 = vperm.xlu2 %2976, %v1598_v19   ;;  %1632 = vperm.xlu1 %2975, %v1597_v28   ;;  %v753_v28 = vmax.f32 %v737_v5, %v741_v0  ;;  %vm858_vm5 = vcmp.eq.s32.totalorder %v3440_v41, 1  ;;  %vm734_vm6 = vcmp.eq.s32.totalorder %v3450_v46, 1  ;;  %v746_v35 = vsel %vm730_vm0, %v3822_v23, -1e+30  ;;  %5134 = vst [vmem:[#allocation62_spill] sm:$0xff] %v3912_v22 }
 0x2a3   : > { %1629 = vperm.xlu0 %2974, %v1596_v3   ;;  %v740_v3 = vsel %vm724_vm13, %v3780_v43, -1e+30  ;;  %vm733_vm7 = vcmp.eq.s32.totalorder %v3456_v48, 1  ;;  %v1603_v1 = vsel %vm1587_vm2, 1, %v5128_v20  ;;  %vm861_vm8 = vcmp.eq.s32.totalorder %v3452_v47, 1 }
 0x2a4   : > { %v3800_v24 = vpop.permute.xlu2 %1366  ;;  %v3802_v25 = vpop.permute.xlu1 %1251  ;;  %v3840_v4 = vmax.f32 %v753_v28, %v745_v16  ;;  %v756_v55 = vmax.f32 %v740_v3, %v744_v40  ;;  %v3854_v16 = vadd.f32 %v3719_v39, %v604_v33  ;;  %v3859_v28 = vld [vmem:[%s3175_s13 + $0x70] sm:$0xff]  ;;  %v1721_v39 = vsel %vm1705_vm1, 1, %v5128_v20 }
 0x2a5   : > { %v3809_v19 = vpop.permute.xlu0 %1248  ;;  %vm1586_vm3 = vcmp.eq.s32.totalorder %v3859_v28, 7  ;;  %vm854_vm9 = vcmp.eq.s32.totalorder %v3464_v53, 1  ;;  %vm736_vm10 = vcmp.eq.s32.totalorder %v3468_v54, 1  ;;  %v3880_v41 = vsel %vm735_vm15, %v3774_v63, -1e+30  ;;  %v3916_v40 = vld [vmem:[%s3175_s13 + $0x10] sm:$0xff] }
 0x2a6   : > { %v1602_v34 = vsel %vm1586_vm3, 1, %v5128_v20  ;;  %v3883_v42 = vsel %vm855_vm4, %v3783_v61, -1e+30  ;;  %v3886_v46 = vsel %vm734_vm6, %v3828_v26, -1e+30  ;;  %v3888_v48 = vmax.f32 %v756_v55, %v748_v10  ;;  %5135 = vst [vmem:[#allocation63_spill] sm:$0xff] %v3916_v40 }
 0x2a7   : > { %v874_v47 = vsel %vm858_vm5, %v3732_v50, -1e+30  ;;  %v3891_v53 = vmax.f32 %v754_v18, %v746_v35  ;;  %v3894_v54 = vsel %vm733_vm7, %v3835_v17, -1e+30  ;;  %vm864_vm11 = vcmp.eq.s32.totalorder %v3462_v52, 1  ;;  %v3928_v18 = vld [vmem:[%s3175_s13 + $0x8] sm:$0xff] }
 0x2a8   : > { %v3902_v10 = vsel %vm736_vm10, %v3854_v16, -1e+30  ;;  %vm860_vm12 = vcmp.eq.s32.totalorder %v3488_v8, 1  ;;  %vm1708_vm13 = vcmp.eq.s32.totalorder %v3912_v22, 8  ;;  %vm1707_vm14 = vcmp.eq.s32.totalorder %v3916_v40, 8  ;;  %5137 = vst [vmem:[#allocation65_spill] sm:$0xff] %v3928_v18 }
 0x2a9   : > { %v761_v3 = vmax.f32 %v3840_v4, %v3894_v54  ;;  %vm857_vm15 = vcmp.eq.s32.totalorder %v3476_v60, 1  ;;  %vm1706_vm0 = vcmp.eq.s32.totalorder %v3928_v18, 8  ;;  %v764_v35 = vmax.f32 %v3888_v48, %v3902_v10  ;;  %v5139_v48 = vld [vmem:[#allocation13_spill] sm:$0xff] }
 0x2aa   : > { %1644 = vperm.xlu2 %2976, %v1601_v30   ;;  %1641 = vperm.xlu1 %2975, %v1600_v31   ;;  %v3863_v30 = vmax.f32 %v755_v11, %v747_v45  ;;  %v877_v31 = vsel %vm861_vm8, %v3786_v14, -1e+30  ;;  %v880_v45 = vsel %vm864_vm11, %v3798_v12, -1e+30  ;;  %vm856_vm1 = vcmp.eq.s32.totalorder %v3480_v62, 1 }
 0x2ab   : > { %1638 = vperm.xlu0 %2974, %v1599_v9   ;;  %v870_v9 = vsel %vm854_vm9, %v3741_v56, -1e+30  ;;  %vm859_vm2 = vcmp.eq.s32.totalorder %v3492_v15, 1  ;;  %v876_v52 = vsel %vm860_vm12, %v3793_v27, -1e+30  ;;  %vm862_vm3 = vcmp.eq.s32.totalorder %v3504_v37, 1 }
 0x2ac   : > { %v3843_v0 = vpop.permute.xlu2 %1375  ;;  %v3845_v5 = vpop.permute.xlu1 %1345  ;;  %v886_v55 = vmax.f32 %v870_v9, %v874_v47  ;;  %v1724_v60 = vsel %vm1708_vm13, 1, %v5128_v20  ;;  %v1723_v4 = vsel %vm1707_vm14, 1, %v5128_v20  ;;  %vm863_vm4 = vcmp.eq.s32.totalorder %v3500_v32, 1  ;;  %v5140_v32 = vld [vmem:[#allocation14_spill] sm:$0xff]  ;;  %v5141_v47 = vld [vmem:[#allocation8_spill] sm:$0xff] }
 0x2ad   : > { %5129 = vst [vmem:[#allocation57_spill] sm:$0xff] %v3843_v0  ;;  %v3856_v44 = vpop.permute.xlu0 %1342  ;;  %vm865_vm5 = vcmp.eq.s32.totalorder %v3516_v49, 1  ;;  %v1722_v62 = vsel %vm1706_vm0, 1, %v5128_v20  ;;  %vm867_vm6 = vcmp.eq.s32.totalorder %v3474_v59, 1  ;;  %v872_v15 = vsel %vm856_vm1, %v3753_v2, -1e+30 }
 0x2ae   : > { %5130 = vst [vmem:[#allocation58_spill] sm:$0xff] %v3845_v5  ;;  %v875_v8 = vsel %vm859_vm2, %v3735_v58, -1e+30  ;;  %v888_v37 = vmax.f32 %v872_v15, %v876_v52  ;;  %vm869_vm8 = vcmp.eq.s32.totalorder %v5139_v48, 1  ;;  %vm868_vm9 = vcmp.eq.s32.totalorder %v5140_v32, 1 }
 0x2af   : > { %5132 = vst [vmem:[#allocation60_spill] sm:$0xff] %v3856_v44  ;;  %vm987_vm10 = vcmp.eq.s32.totalorder %v5141_v47, 1  ;;  %v879_v54 = vsel %vm863_vm4, %v3822_v23, -1e+30  ;;  %v881_v9 = vsel %vm865_vm5, %v3750_v38, -1e+30  ;;  %v887_v10 = vmax.f32 %v3883_v42, %v875_v8 }
 0x2b0   : > { %5144 = vst [vmem:[#allocation14_spill] sm:$0xff] %v3962_v21  ;;  %vm1711_vm11 = vcmp.eq.s32.totalorder %v3962_v21, 8  ;;  %v884_v42 = vsel %vm868_vm9, %v3774_v63, -1e+30  ;;  %v5148_v8 = vld [vmem:[#allocation9_spill] sm:$0xff]  ;;  %v5151_v44 = vmax.f32 %v3891_v53, %v3886_v46 }
 0x2b1   : > { %vm990_vm14 = vcmp.eq.s32.totalorder %v5148_v8, 1  ;;  %v891_v36 = vmax.f32 %v887_v10, %v879_v54  ;;  %v1727_v48 = vsel %vm1711_vm11, 1, %v5128_v20  ;;  %v4014_v54 = vld [vmem:[%s3175_s13 + $0x48] sm:$0xff]  ;;  %v5159_v10 = vld [vmem:[#allocation20_spill] sm:$0xff]  ;;  %v5162_v8 = vld [vmem:[#allocation25_spill] sm:$0xff] }
 0x2b2   : > { %1738 = vperm.xlu2 %2976, %v1721_v39   ;;  %1650 = vperm.xlu1 %2975, %v1603_v1   ;;  %v873_v39 = vsel %vm857_vm15, %v3780_v43, -1e+30  ;;  %v5138_v1 = vld [vmem:[#allocation11_spill] sm:$0xff]  ;;  %v765_v5 = vmax.f32 %v761_v3, %v5151_v44  ;;  %v5153_v44 = vld [vmem:[#allocation17_spill] sm:$0xff]  ;;  %vm1714_vm4 = vcmp.eq.s32.totalorder %v4014_v54, 8 }
 0x2b3   : > { %1647 = vperm.xlu0 %2974, %v1602_v34   ;;  %vm866_vm7 = vcmp.eq.s32.totalorder %v5138_v1, 1  ;;  %v878_v34 = vsel %vm862_vm3, %v3738_v6, -1e+30  ;;  %v889_v49 = vmax.f32 %v873_v39, %v877_v31  ;;  %v3966_v31 = vld [vmem:[%s3175_s13 + $0x28] sm:$0xff]  ;;  %vm988_vm1 = vcmp.eq.s32.totalorder %v5153_v44, 1 }
 0x2b4   : > { %v3907_v33 = vpop.permute.xlu2 %1384  ;;  %v3909_v29 = vpop.permute.xlu1 %1354  ;;  %v882_v52 = vsel %vm866_vm7, %v3835_v17, -1e+30  ;;  %5145 = vst [vmem:[#allocation8_spill] sm:$0xff] %v3966_v31  ;;  %vm1710_vm12 = vcmp.eq.s32.totalorder %v3966_v31, 8 }
 0x2b5   : > { %5133 = vst [vmem:[#allocation61_spill] sm:$0xff] %v3907_v33  ;;  %v3925_v11 = vpop.permute.xlu0 %1351  ;;  %v892_v33 = vmax.f32 %v888_v37, %v880_v45  ;;  %v1726_v0 = vsel %vm1710_vm12, 1, %v5128_v20  ;;  %v5152_v45 = vmax.f32 %v3863_v30, %v3880_v41  ;;  %v5154_v30 = vld [vmem:[#allocation12_spill] sm:$0xff] }
 0x2b6   : > { %5136 = vst [vmem:[#allocation64_spill] sm:$0xff] %v3925_v11  ;;  %v5150_v11 = vld [vmem:[#allocation19_spill] sm:$0xff]  ;;  %vm996_vm2 = vcmp.eq.s32.totalorder %v5154_v30, 1  ;;  %v5155_v41 = vld [vmem:[#allocation16_spill] sm:$0xff] }
 0x2b7   : > { %vm992_vm0 = vcmp.eq.s32.totalorder %v5150_v11, 1  ;;  %v766_v37 = vmax.f32 %v5152_v45, %v764_v35  ;;  %v1006_v11 = vsel %vm990_vm14, %v3780_v43, -1e+30  ;;  %vm989_vm3 = vcmp.eq.s32.totalorder %v5155_v41, 1  ;;  %v5164_v30 = vld [vmem:[#allocation15_spill] sm:$0xff]  ;;  %v5165_v41 = vld [vmem:[#allocation28_spill] sm:$0xff] }
 0x2b8   : > { %v1008_v53 = vsel %vm992_vm0, %v3735_v58, -1e+30  ;;  %vm999_vm12 = vcmp.eq.s32.totalorder %v5164_v30, 1 }
 0x2ba   : > { %1747 = vperm.xlu2 %2976, %v1724_v60   ;;  %1744 = vperm.xlu1 %2975, %v1723_v4   ;;  %v890_v60 = vmax.f32 %v886_v55, %v878_v34  ;;  %v885_v4 = vsel %vm869_vm8, %v3854_v16, -1e+30  ;;  %v5149_v55 = vld [vmem:[#allocation10_spill] sm:$0xff] }
 0x2bb   : > { %1741 = vperm.xlu0 %2974, %v1722_v62   ;;  %v3978_v62 = vld [vmem:[%s3175_s13 + $0x20] sm:$0xff]  ;;  %vm993_vm15 = vcmp.eq.s32.totalorder %v5149_v55, 1  ;;  %5157 = vst [vmem:[#allocation10_spill] sm:$0xff] %v4014_v54 }
 0x2bc   : > { %v3957_v15 = vpop.permute.xlu2 %1478  ;;  %v3959_v1 = vpop.permute.xlu1 %1363  ;;  %5147 = vst [vmem:[#allocation67_spill] sm:$0xff] %v3978_v62  ;;  %vm1709_vm13 = vcmp.eq.s32.totalorder %v3978_v62, 8  ;;  %v894_v34 = vmax.f32 %v890_v60, %v882_v52  ;;  %v1009_v59 = vsel %vm993_vm15, %v3793_v27, -1e+30  ;;  %v5160_v52 = vld [vmem:[#allocation23_spill] sm:$0xff]  ;;  %v5163_v55 = vld [vmem:[#allocation26_spill] sm:$0xff] }
 0x2bd   : > { %5142 = vst [vmem:[#allocation11_spill] sm:$0xff] %v3957_v15  ;;  %v3975_v39 = vpop.permute.xlu0 %1360  ;;  %v893_v15 = vmax.f32 %v889_v49, %v881_v9  ;;  %v883_v49 = vsel %vm867_vm6, %v3828_v26, -1e+30  ;;  %v1004_v9 = vsel %vm988_vm1, %v3783_v61, -1e+30  ;;  %vm991_vm6 = vcmp.eq.s32.totalorder %v5159_v10, 1 }
 0x2be   : > { %5143 = vst [vmem:[#allocation13_spill] sm:$0xff] %v3959_v1  ;;  %v896_v1 = vmax.f32 %v892_v33, %v884_v42  ;;  %v1003_v33 = vsel %vm987_vm10, %v3741_v56, -1e+30  ;;  %v895_v46 = vmax.f32 %v891_v36, %v883_v49  ;;  %vm994_vm7 = vcmp.eq.s32.totalorder %v5160_v52, 1  ;;  %v5167_v52 = vld [vmem:[#allocation18_spill] sm:$0xff] }
 0x2bf   : > { %5146 = vst [vmem:[#allocation66_spill] sm:$0xff] %v3975_v39  ;;  %v897_v32 = vmax.f32 %v893_v15, %v885_v4  ;;  %v1725_v39 = vsel %vm1709_vm13, 1, %v5128_v20  ;;  %v1012_v60 = vsel %vm996_vm2, %v3822_v23, -1e+30  ;;  %v1005_v4 = vsel %vm989_vm3, %v3753_v2, -1e+30 }
 0x2c0   : > { %v898_v3 = vmax.f32 %v894_v34, %v895_v46  ;;  %v1020_v42 = vmax.f32 %v1004_v9, %v1008_v53  ;;  %vm998_vm10 = vcmp.eq.s32.totalorder %v5162_v8, 1  ;;  %vm997_vm11 = vcmp.eq.s32.totalorder %v5163_v55, 1  ;;  %v5166_v53 = vld [vmem:[#allocation29_spill] sm:$0xff] }
 0x2c1   : > { %v899_v35 = vmax.f32 %v896_v1, %v897_v32  ;;  %v4029_v1 = vld [vmem:[%s3175_s13 + $0x38] sm:$0xff]  ;;  %v1730_v34 = vsel %vm1714_vm4, 1, %v5128_v20  ;;  %v767_v32 = vmax.f32 %v765_v5, %v766_v37  ;;  %v1007_v45 = vsel %vm991_vm6, %v3732_v50, -1e+30 }
 0x2c2   : > { %1756 = vperm.xlu2 %2976, %v1727_v48   ;;  %1753 = vperm.xlu1 %2975, %v1726_v0   ;;  %v4018_v0 = vld [vmem:[%s3175_s13 + $0x40] sm:$0xff]  ;;  %vm1712_vm8 = vcmp.eq.s32.totalorder %v4029_v1, 8  ;;  %v1010_v49 = vsel %vm994_vm7, %v3786_v14, -1e+30  ;;  %vm1001_vm13 = vcmp.eq.s32.totalorder %v5165_v41, 1  ;;  %vm1000_vm14 = vcmp.eq.s32.totalorder %v5166_v53, 1 }
 0x2c3   : > { %1750 = vperm.xlu0 %2974, %v1725_v39   ;;  %5158 = vst [vmem:[#allocation19_spill] sm:$0xff] %v4018_v0  ;;  %vm1713_vm5 = vcmp.eq.s32.totalorder %v4018_v0, 8  ;;  %v5161_v39 = vld [vmem:[#allocation22_spill] sm:$0xff]  ;;  %v1728_v46 = vsel %vm1712_vm8, 1, %v5128_v20  ;;  %v900_v44 = vmax.f32 %v898_v3, %v899_v35  ;;  %v1021_v9 = vmax.f32 %v1005_v4, %v1009_v59 }
 0x2c4   : > { %v4009_v47 = vpop.permute.xlu2 %1487  ;;  %v4011_v36 = vpop.permute.xlu1 %1372  ;;  %vm995_vm9 = vcmp.eq.s32.totalorder %v5161_v39, 1  ;;  %v1729_v48 = vsel %vm1713_vm5, 1, %v5128_v20  ;;  %v1014_v5 = vsel %vm998_vm10, %v3750_v38, -1e+30  ;;  %v1013_v37 = vsel %vm997_vm11, %v3798_v12, -1e+30 }
 0x2c5   : > { %5156 = vst [vmem:[#allocation9_spill] sm:$0xff] %v4009_v47  ;;  %v4026_v15 = vpop.permute.xlu0 %1369  ;;  %v1011_v10 = vsel %vm995_vm9, %v3738_v6, -1e+30  ;;  %vm1002_vm15 = vcmp.eq.s32.totalorder %v5167_v52, 1  ;;  %v1019_v3 = vmax.f32 %v1003_v33, %v1007_v45  ;;  %v1022_v35 = vmax.f32 %v1006_v11, %v1010_v49  ;;  %v4060_v41 = vld [vmem:[%s3175_s13 + $0x60] sm:$0xff]  ;;  %v4089_v47 = vld [vmem:[%s3175_s13 + $0x78] sm:$0xff] }
 0x2c6   : > { %v1024_v39 = vmax.f32 %v1020_v42, %v1012_v60  ;;  %v1017_v8 = vsel %vm1001_vm13, %v3774_v63, -1e+30  ;;  %v1016_v59 = vsel %vm1000_vm14, %v3828_v26, -1e+30  ;;  %vm1717_vm0 = vcmp.eq.s32.totalorder %v4060_v41, 8  ;;  %5174 = vst [vmem:[#allocation25_spill] sm:$0xff] %v4089_v47 }
 0x2c7   : > { %v1023_v33 = vmax.f32 %v1019_v3, %v1011_v10  ;;  %v1026_v11 = vmax.f32 %v1022_v35, %v1014_v5  ;;  %v1025_v60 = vmax.f32 %v1021_v9, %v1013_v37  ;;  %v768_v45 = vrot.slane %v767_v32, 4 }
 0x2c8   : > { %v1733_v53 = vsel %vm1717_vm0, 1, %v5128_v20  ;;  %v1015_v10 = vsel %vm999_vm12, %v3835_v17, -1e+30  ;;  %v1018_v9 = vsel %vm1002_vm15, %v3854_v16, -1e+30  ;;  %v901_v37 = vrot.slane %v900_v44, 4 }
 0x2c9   : > { %v1029_v49 = vmax.f32 %v1025_v60, %v1017_v8  ;;  %v1027_v3 = vmax.f32 %v1023_v33, %v1015_v10  ;;  %v1030_v35 = vmax.f32 %v1026_v11, %v1018_v9  ;;  %vm1720_vm3 = vcmp.eq.s32.totalorder %v4089_v47, 8  ;;  %v5176_v33 = vld [vmem:[#allocation21_spill] sm:$0xff]  ;;  %v5187_v11 = vld [vmem:[#allocation31_spill] sm:$0xff] }
 0x2ca   : > { %1765 = vperm.xlu2 %2976, %v1730_v34   ;;  %1762 = vperm.xlu1 %2975, %v1729_v48   ;;  %v4064_v34 = vld [vmem:[%s3175_s13 + $0x58] sm:$0xff]  ;;  %v4070_v48 = vld [vmem:[%s3175_s13 + $0x50] sm:$0xff]  ;;  %vm1719_vm4 = vcmp.eq.s32.totalorder %v3859_v28, 8  ;;  %v4093_v52 = vmax.f32 %v900_v44, %v901_v37  ;;  %vm1122_vm5 = vcmp.eq.s32.totalorder %v5176_v33, 1  ;;  %v1736_v44 = vsel %vm1720_vm3, 1, %v5128_v20 }
 0x2cb   : > { %1759 = vperm.xlu0 %2974, %v1728_v46   ;;  %5169 = vst [vmem:[#allocation12_spill] sm:$0xff] %v4064_v34  ;;  %vm1716_vm1 = vcmp.eq.s32.totalorder %v4064_v34, 8  ;;  %vm1715_vm2 = vcmp.eq.s32.totalorder %v4070_v48, 8  ;;  %v1028_v46 = vmax.f32 %v1024_v39, %v1016_v59  ;;  %v4082_v39 = vmax.f32 %v767_v32, %v768_v45  ;;  %v5178_v45 = vld [vmem:[#allocation24_spill] sm:$0xff]  ;;  %v5182_v37 = vld [vmem:[#allocation37_spill] sm:$0xff] }
 0x2cc   : > { %v4055_v4 = vpop.permute.xlu2 %1496  ;;  %v4057_v55 = vpop.permute.xlu1 %1381  ;;  %5170 = vst [vmem:[#allocation16_spill] sm:$0xff] %v4070_v48  ;;  %v1731_v5 = vsel %vm1715_vm2, 1, %v5128_v20  ;;  %v1032_v8 = vmax.f32 %v1029_v49, %v1030_v35  ;;  %vm1125_vm7 = vcmp.eq.s32.totalorder %v5178_v45, 1  ;;  %v5179_v49 = vld [vmem:[#allocation34_spill] sm:$0xff]  ;;  %v1735_v10 = vsel %vm1719_vm4, 1, %v5128_v20  ;;  %v5184_v45 = vld [vmem:[#allocation27_spill] sm:$0xff] }
 0x2cd   : > { %5168 = vst [vmem:[#allocation17_spill] sm:$0xff] %v4055_v4  ;;  %v4067_v42 = vpop.permute.xlu0 %1378  ;;  %v1732_v4 = vsel %vm1716_vm1, 1, %v5128_v20  ;;  %v1031_v59 = vmax.f32 %v1027_v3, %v1028_v46  ;;  %vm1124_vm8 = vcmp.eq.s32.totalorder %v5179_v49, 1  ;;  %v1138_v9 = vsel %vm1122_vm5, %v3753_v2, -1e+30  ;;  %v5185_v49 = vld [vmem:[#allocation30_spill] sm:$0xff] }
 0x2ce   : > { %5171 = vst [vmem:[#allocation20_spill] sm:$0xff] %v4082_v39  ;;  %vm1127_vm11 = vcmp.eq.s32.totalorder %v5182_v37, 1  ;;  %v1141_v33 = vsel %vm1125_vm7, %v3735_v58, -1e+30  ;;  %vm1128_vm13 = vcmp.eq.s32.totalorder %v5184_v45, 1  ;;  %vm1131_vm14 = vcmp.eq.s32.totalorder %v5185_v49, 1 }
 0x2cf   : > { %5175 = vst [vmem:[#allocation26_spill] sm:$0xff] %v4093_v52  ;;  %v1033_v46 = vmax.f32 %v1031_v59, %v1032_v8  ;;  %v1140_v8 = vsel %vm1124_vm8, %v3732_v50, -1e+30  ;;  %v5183_v59 = vld [vmem:[#allocation40_spill] sm:$0xff]  ;;  %vm1121_vm0 = vcmp.eq.s32.totalorder %v5187_v11, 1  ;;  %vm1840_vm1 = vcmp.eq.s32.totalorder %v3916_v40, 9 }
 0x2d0   : > { %vm1130_vm12 = vcmp.eq.s32.totalorder %v5183_v59, 1  ;;  %vm1839_vm2 = vcmp.eq.s32.totalorder %v3928_v18, 9  ;;  %vm1838_vm4 = vcmp.eq.s32.totalorder %v3848_v57, 9  ;;  %v5193_v40 = vld [vmem:[#allocation36_spill] sm:$0xff]  ;;  %v1147_v45 = vsel %vm1131_vm14, %v3750_v38, -1e+30 }
 0x2d1   : > { %v1034_v37 = vrot.slane %v1033_v46, 4  ;;  %v1146_v59 = vsel %vm1130_vm12, %v3798_v12, -1e+30  ;;  %v5197_v49 = vld [vmem:[#allocation44_spill] sm:$0xff]  ;;  %vm1842_vm14 = vcmp.eq.s32.totalorder %v3978_v62, 9 }
 0x2d2   : > { %1774 = vperm.xlu2 %2976, %v1733_v53   ;;  %1771 = vperm.xlu1 %2975, %v1732_v4   ;;  %v4099_v4 = vld [vmem:[%s3175_s13 + $0x68] sm:$0xff]  ;;  %v5211_v39 = vld [vmem:[#allocation56_spill] sm:$0xff] }
 0x2d3   : > { %1768 = vperm.xlu0 %2974, %v1731_v5   ;;  %vm1718_vm6 = vcmp.eq.s32.totalorder %v4099_v4, 8  ;;  %v5180_v53 = vld [vmem:[#allocation38_spill] sm:$0xff]  ;;  %v5181_v5 = vld [vmem:[#allocation32_spill] sm:$0xff] }
 0x2d4   : > { %v4084_v60 = vpop.permute.xlu2 %1505  ;;  %v4086_v30 = vpop.permute.xlu1 %1475  ;;  %vm1126_vm9 = vcmp.eq.s32.totalorder %v5180_v53, 1  ;;  %vm1120_vm10 = vcmp.eq.s32.totalorder %v5181_v5, 1  ;;  %v1734_v3 = vsel %vm1718_vm6, 1, %v5128_v20  ;;  %v5186_v53 = vld [vmem:[#allocation35_spill] sm:$0xff]  ;;  %vm1254_vm6 = vcmp.eq.s32.totalorder %v5193_v40, 1 }
 0x2d5   : > { %5172 = vst [vmem:[#allocation23_spill] sm:$0xff] %v4084_v60  ;;  %v4096_v32 = vpop.permute.xlu0 %1472  ;;  %vm1123_vm15 = vcmp.eq.s32.totalorder %v5186_v53, 1  ;;  %v1142_v5 = vsel %vm1126_vm9, %v3793_v27, -1e+30  ;;  %v1136_v35 = vsel %vm1120_vm10, %v3741_v56, -1e+30 }
 0x2d6   : > { %5173 = vst [vmem:[#allocation22_spill] sm:$0xff] %v4086_v30  ;;  %v1143_v30 = vsel %vm1127_vm11, %v3786_v14, -1e+30  ;;  %v5190_v53 = vld [vmem:[#allocation41_spill] sm:$0xff]  ;;  %vm1132_vm9 = vcmp.eq.s32.totalorder %v5197_v49, 1 }
 0x2d7   : > { %5177 = vst [vmem:[#allocation15_spill] sm:$0xff] %v4096_v32  ;;  %v1152_v32 = vmax.f32 %v1136_v35, %v1140_v8  ;;  %vm1129_vm3 = vcmp.eq.s32.totalorder %v5190_v53, 1  ;;  %v1137_v35 = vsel %vm1121_vm0, %v3783_v61, -1e+30  ;;  %v5192_v8 = vld [vmem:[#allocation33_spill] sm:$0xff]  ;;  %v1855_v53 = vsel %vm1839_vm2, 1, %v5128_v20 }
 0x2d8   : > { %vm1134_vm5 = vcmp.eq.s32.totalorder %v5192_v8, 1  ;;  %v1145_v11 = vsel %vm1129_vm3, %v3822_v23, -1e+30  ;;  %v4153_v8 = vmax.f32 %v1033_v46, %v1034_v37  ;;  %vm1841_vm0 = vcmp.eq.s32.totalorder %v3912_v22, 9 }
 0x2d9   : > { %v4156_v40 = vsel %vm1134_vm5, %v3774_v63, -1e+30 }
 0x2da   : > { %1783 = vperm.xlu2 %2976, %v1736_v44   ;;  %1780 = vperm.xlu1 %2975, %v1735_v10   ;;  %v1139_v44 = vsel %vm1123_vm15, %v3780_v43, -1e+30  ;;  %v1154_v10 = vmax.f32 %v1138_v9, %v1142_v5  ;;  %v1856_v5 = vsel %vm1840_vm1, 1, %v5128_v20  ;;  %5195 = vst [vmem:[#allocation21_spill] sm:$0xff] %v4153_v8  ;;  %v5210_v8 = vld [vmem:[#allocation55_spill] sm:$0xff] }
 0x2db   : > { %1777 = vperm.xlu0 %2974, %v1734_v3   ;;  %v1144_v3 = vsel %vm1128_vm13, %v3738_v6, -1e+30  ;;  %vm1843_vm13 = vcmp.eq.s32.totalorder %v3966_v31, 9 }
 0x2dc   : > { %v4124_v60 = vpop.permute.xlu2 %1514  ;;  %v4126_v47 = vpop.permute.xlu1 %1484  ;;  %v4143_v9 = vmax.f32 %v1154_v10, %v1146_v59  ;;  %v4158_v59 = vmax.f32 %v1152_v32, %v1144_v3  ;;  %v5196_v10 = vld [vmem:[#allocation43_spill] sm:$0xff]  ;;  %v5198_v32 = vld [vmem:[#allocation46_spill] sm:$0xff]  ;;  %v1859_v49 = vsel %vm1843_vm13, 1, %v5128_v20  ;;  %vm1844_vm13 = vcmp.eq.s32.totalorder %v3962_v21, 9 }
 0x2dd   : > { %5188 = vst [vmem:[#allocation28_spill] sm:$0xff] %v4124_v60  ;;  %v4132_v52 = vpop.permute.xlu0 %1481  ;;  %v1155_v60 = vmax.f32 %v1139_v44, %v1143_v30  ;;  %v1153_v30 = vmax.f32 %v1137_v35, %v1141_v33  ;;  %v4161_v44 = vsel %vm1254_vm6, %v3783_v61, -1e+30  ;;  %vm1133_vm8 = vcmp.eq.s32.totalorder %v5196_v10, 1  ;;  %v5199_v3 = vld [vmem:[#allocation42_spill] sm:$0xff]  ;;  %v5200_v35 = vld [vmem:[#allocation52_spill] sm:$0xff] }
 0x2de   : > { %5189 = vst [vmem:[#allocation29_spill] sm:$0xff] %v4126_v47  ;;  %v1854_v47 = vsel %vm1838_vm4, 1, %v5128_v20  ;;  %vm1253_vm10 = vcmp.eq.s32.totalorder %v5198_v32, 1  ;;  %vm1260_vm11 = vcmp.eq.s32.totalorder %v5199_v3, 1  ;;  %vm1259_vm12 = vcmp.eq.s32.totalorder %v5200_v35, 1  ;;  %v5206_v32 = vld [vmem:[#allocation49_spill] sm:$0xff] }
 0x2df   : > { %5191 = vst [vmem:[#allocation18_spill] sm:$0xff] %v4132_v52  ;;  %v5194_v52 = vld [vmem:[#allocation39_spill] sm:$0xff]  ;;  %v4172_v37 = vmax.f32 %v1153_v30, %v1145_v11  ;;  %v5205_v11 = vld [vmem:[#allocation45_spill] sm:$0xff]  ;;  %v1269_v30 = vsel %vm1253_vm10, %v3741_v56, -1e+30  ;;  %vm1256_vm2 = vcmp.eq.s32.totalorder %v5206_v32, 1 }
 0x2e0   : > { %vm1257_vm7 = vcmp.eq.s32.totalorder %v5194_v52, 1  ;;  %v4165_v52 = vmax.f32 %v1155_v60, %v1147_v45  ;;  %vm1263_vm1 = vcmp.eq.s32.totalorder %v5205_v11, 1  ;;  %v5207_v10 = vld [vmem:[#allocation50_spill] sm:$0xff]  ;;  %v1275_v35 = vsel %vm1259_vm12, %v3793_v27, -1e+30  ;;  %v5208_v33 = vld [vmem:[#allocation53_spill] sm:$0xff] }
 0x2e1   : > { %v4168_v46 = vsel %vm1257_vm7, %v3732_v50, -1e+30  ;;  %vm1255_vm3 = vcmp.eq.s32.totalorder %v5207_v10, 1  ;;  %vm1258_vm4 = vcmp.eq.s32.totalorder %v5208_v33, 1  ;;  %v1857_v32 = vsel %vm1841_vm0, 1, %v5128_v20 }
 0x2e2   : > { %1877 = vperm.xlu2 %2976, %v1856_v5   ;;  %1874 = vperm.xlu1 %2975, %v1855_v53   ;;  %v4186_v5 = vsel %vm1133_vm8, %v3828_v26, -1e+30  ;;  %v5203_v53 = vld [vmem:[#allocation47_spill] sm:$0xff]  ;;  %v1272_v33 = vsel %vm1256_vm2, %v3780_v43, -1e+30  ;;  %v1285_v31 = vmax.f32 %v1269_v30, %v4168_v46  ;;  %vm1262_vm6 = vcmp.eq.s32.totalorder %v5210_v8, 1 }
 0x2e3   : > { %1871 = vperm.xlu0 %2974, %v1854_v47   ;;  %v4191_v47 = vsel %vm1132_vm9, %v3835_v17, -1e+30  ;;  %vm1135_vm15 = vcmp.eq.s32.totalorder %v5203_v53, 1  ;;  %v1858_v53 = vsel %vm1842_vm14, 1, %v5128_v20  ;;  %v1271_v62 = vsel %vm1255_vm3, %v3753_v2, -1e+30 }
 0x2e4   : > { %v4177_v57 = vpop.permute.xlu2 %1608  ;;  %v4179_v60 = vpop.permute.xlu1 %1493  ;;  %v4211_v22 = vsel %vm1135_vm15, %v3854_v16, -1e+30  ;;  %v1279_v3 = vsel %vm1263_vm1, %v3798_v12, -1e+30  ;;  %v1274_v18 = vsel %vm1258_vm4, %v3735_v58, -1e+30 }
 0x2e5   : > { %5201 = vst [vmem:[#allocation24_spill] sm:$0xff] %v4177_v57  ;;  %v4194_v45 = vpop.permute.xlu0 %1490  ;;  %v1276_v57 = vsel %vm1260_vm11, %v3786_v14, -1e+30  ;;  %vm1261_vm7 = vcmp.eq.s32.totalorder %v5211_v39, 1  ;;  %vm1264_vm8 = vcmp.eq.s32.totalorder %v3756_v51, 1  ;;  %vm1846_vm9 = vcmp.eq.s32.totalorder %v4018_v0, 9 }
 0x2e6   : > { %5202 = vst [vmem:[#allocation34_spill] sm:$0xff] %v4179_v60  ;;  %v1287_v60 = vmax.f32 %v1271_v62, %v1275_v35  ;;  %vm1845_vm10 = vcmp.eq.s32.totalorder %v4029_v1, 9  ;;  %v1286_v30 = vmax.f32 %v4161_v44, %v1274_v18  ;;  %v5213_v8 = vld [vmem:[#allocation54_spill] sm:$0xff]  ;;  %vm1268_vm12 = vcmp.eq.s32.totalorder %v3802_v25, 1 }
 0x2e7   : > { %5204 = vst [vmem:[#allocation38_spill] sm:$0xff] %v4194_v45  ;;  %v5209_v45 = vld [vmem:[#allocation51_spill] sm:$0xff]  ;;  %vm1389_vm11 = vcmp.eq.s32.totalorder %v5213_v8, 1  ;;  %v1277_v39 = vsel %vm1261_vm7, %v3738_v6, -1e+30  ;;  %vm1392_vm14 = vcmp.eq.s32.totalorder %v3743_v13, 1 }
 0x2e8   : > { %vm1386_vm5 = vcmp.eq.s32.totalorder %v5209_v45, 1  ;;  %v1288_v45 = vmax.f32 %v1272_v33, %v1276_v57  ;;  %v1278_v57 = vsel %vm1262_vm6, %v3822_v23, -1e+30  ;;  %v1280_v35 = vsel %vm1264_vm8, %v3750_v38, -1e+30 }
 0x2e9   : > { %v4230_v11 = vsel %vm1386_vm5, %v3741_v56, -1e+30  ;;  %vm1265_vm15 = vcmp.eq.s32.totalorder %v3745_v7, 1  ;;  %v1862_v18 = vsel %vm1846_vm9, 1, %v5128_v20  ;;  %v1861_v25 = vsel %vm1845_vm10, 1, %v5128_v20  ;;  %v5214_v7 = vld [vmem:[#allocation48_spill] sm:$0xff] }
 0x2ea   : > { %1886 = vperm.xlu2 %2976, %v1859_v49   ;;  %1883 = vperm.xlu1 %2975, %v1858_v53   ;;  %v4247_v49 = vmax.f32 %v1287_v60, %v1279_v3  ;;  %v1405_v44 = vsel %vm1389_vm11, %v3780_v43, -1e+30  ;;  %vm1395_vm0 = vcmp.eq.s32.totalorder %v3800_v24, 1  ;;  %v4256_v53 = vsel %vm1268_vm12, %v3854_v16, -1e+30  ;;  %v5215_v24 = vld [vmem:[#allocation58_spill] sm:$0xff] }
 0x2eb   : > { %1880 = vperm.xlu0 %2974, %v1857_v32   ;;  %v1860_v32 = vsel %vm1844_vm13, 1, %v5128_v20  ;;  %v4259_v33 = vmax.f32 %v1286_v30, %v1278_v57  ;;  %v4261_v60 = vmax.f32 %v1285_v31, %v1277_v39  ;;  %v4263_v13 = vmax.f32 %v1288_v45, %v1280_v35  ;;  %v5216_v30 = vld [vmem:[#allocation60_spill] sm:$0xff]  ;;  %v5218_v39 = vld [vmem:[#allocation66_spill] sm:$0xff] }
 0x2ec   : > { %v4232_v46 = vpop.permute.xlu2 %1617  ;;  %v4234_v62 = vpop.permute.xlu1 %1502  ;;  %vm1391_vm1 = vcmp.eq.s32.totalorder %v3909_v29, 1  ;;  %vm1266_vm2 = vcmp.eq.s32.totalorder %v5214_v7, 1  ;;  %v1408_v3 = vsel %vm1392_vm14, %v3793_v27, -1e+30  ;;  %v4269_v8 = vsel %vm1265_vm15, %v3835_v17, -1e+30 }
 0x2ed   : > { %5212 = vst [vmem:[#allocation32_spill] sm:$0xff] %v4232_v46  ;;  %v4241_v51 = vpop.permute.xlu0 %1499  ;;  %vm1267_vm3 = vcmp.eq.s32.totalorder %v3809_v19, 1  ;;  %vm1388_vm4 = vcmp.eq.s32.totalorder %v5215_v24, 1  ;;  %v1411_v31 = vsel %vm1395_vm0, %v3822_v23, -1e+30  ;;  %v1296_v45 = vmax.f32 %v4263_v13, %v4256_v53  ;;  %v5217_v29 = vld [vmem:[#allocation64_spill] sm:$0xff] }
 0x2ee   : > { %vm1387_vm5 = vcmp.eq.s32.totalorder %v5216_v30, 1  ;;  %vm1390_vm6 = vcmp.eq.s32.totalorder %v5217_v29, 1  ;;  %v1407_v57 = vsel %vm1391_vm1, %v3735_v58, -1e+30  ;;  %vm1393_vm7 = vcmp.eq.s32.totalorder %v5218_v39, 1  ;;  %v5220_v53 = vld [vmem:[#allocation13_spill] sm:$0xff] }
 0x2ef   : > { %vm1849_vm8 = vcmp.eq.s32.totalorder %v4064_v34, 9  ;;  %vm1848_vm9 = vcmp.eq.s32.totalorder %v4070_v48, 9  ;;  %vm1394_vm10 = vcmp.eq.s32.totalorder %v5220_v53, 1  ;;  %vm1847_vm11 = vcmp.eq.s32.totalorder %v4014_v54, 9  ;;  %v5222_v48 = vld [vmem:[#allocation61_spill] sm:$0xff] }
 0x2f0   : > { %v1406_v24 = vsel %vm1390_vm6, %v3732_v50, -1e+30  ;;  %vm1397_vm12 = vcmp.eq.s32.totalorder %v4011_v36, 1  ;;  %vm1396_vm13 = vcmp.eq.s32.totalorder %v4026_v15, 1  ;;  %v1409_v29 = vsel %vm1393_vm7, %v3786_v14, -1e+30 }
 0x2f1   : > { %v1865_v39 = vsel %vm1849_vm8, 1, %v5128_v20  ;;  %v1864_v10 = vsel %vm1848_vm9, 1, %v5128_v20  ;;  %v1410_v53 = vsel %vm1394_vm10, %v3738_v6, -1e+30  ;;  %vm1400_vm14 = vcmp.eq.s32.totalorder %v4057_v55, 1 }
 0x2f2   : > { %1895 = vperm.xlu2 %2976, %v1862_v18   ;;  %1892 = vperm.xlu1 %2975, %v1861_v25   ;;  %v1283_v18 = vsel %vm1267_vm3, %v3774_v63, -1e+30  ;;  %v1404_v25 = vsel %vm1388_vm4, %v3753_v2, -1e+30  ;;  %vm1399_vm15 = vcmp.eq.s32.totalorder %v4067_v42, 1  ;;  %v1863_v34 = vsel %vm1847_vm11, 1, %v5128_v20 }
 0x2f3   : > { %1889 = vperm.xlu0 %2974, %v1860_v32   ;;  %v1403_v32 = vsel %vm1387_vm5, %v3783_v61, -1e+30  ;;  %v1295_v0 = vmax.f32 %v4247_v49, %v1283_v18  ;;  %v1418_v36 = vmax.f32 %v4230_v11, %v1406_v24  ;;  %v1413_v15 = vsel %vm1397_vm12, %v3750_v38, -1e+30 }
 0x2f4   : > { %v4280_v35 = vpop.permute.xlu2 %1626  ;;  %v4282_v19 = vpop.permute.xlu1 %1511  ;;  %v1419_v30 = vmax.f32 %v1403_v32, %v1407_v57  ;;  %v1412_v57 = vsel %vm1396_vm13, %v3798_v12, -1e+30  ;;  %v5221_v32 = vld [vmem:[#allocation57_spill] sm:$0xff]  ;;  %v1420_v54 = vmax.f32 %v1404_v25, %v1408_v3  ;;  %vm1401_vm1 = vcmp.eq.s32.totalorder %v5222_v48, 1 }
 0x2f5   : > { %5219 = vst [vmem:[#allocation37_spill] sm:$0xff] %v4280_v35  ;;  %v4289_v13 = vpop.permute.xlu0 %1508  ;;  %vm1398_vm0 = vcmp.eq.s32.totalorder %v5221_v32, 1  ;;  %v1421_v35 = vmax.f32 %v1405_v44, %v1409_v29  ;;  %v1422_v55 = vmax.f32 %v1418_v36, %v1410_v53  ;;  %v1416_v42 = vsel %vm1400_vm14, %v3774_v63, -1e+30  ;;  %v5229_v29 = vld [vmem:[#allocation26_spill] sm:$0xff]  ;;  %v5231_v48 = vld [vmem:[#allocation21_spill] sm:$0xff] }
 0x2f6   : > { %v1415_v46 = vsel %vm1399_vm15, %v3828_v26, -1e+30  ;;  %v1423_v49 = vmax.f32 %v1419_v30, %v1411_v31  ;;  %v1424_v18 = vmax.f32 %v1420_v54, %v1412_v57  ;;  %vm1852_vm3 = vcmp.eq.s32.totalorder %v3859_v28, 9 }
 0x2f7   : > { %v1425_v11 = vmax.f32 %v1421_v35, %v1413_v15  ;;  %vm1851_vm4 = vcmp.eq.s32.totalorder %v4099_v4, 9  ;;  %v5224_v44 = vmax.f32 %v4158_v59, %v4191_v47  ;;  %v5226_v54 = vmax.f32 %v4143_v9, %v4156_v40 }
 0x2f8   : > { %v1282_v28 = vsel %vm1266_vm2, %v3828_v26, -1e+30  ;;  %vm1850_vm5 = vcmp.eq.s32.totalorder %v4060_v41, 9  ;;  %v1293_v59 = vmax.f32 %v4261_v60, %v4269_v8  ;;  %v1427_v47 = vmax.f32 %v1423_v49, %v1415_v46  ;;  %v5227_v60 = vld [vmem:[#allocation20_spill] sm:$0xff]  ;;  %v5232_v49 = vld [vmem:[#allocation65_spill] sm:$0xff] }
 0x2f9   : > { %v1417_v9 = vsel %vm1401_vm1, %v3854_v16, -1e+30  ;;  %v1868_v40 = vsel %vm1852_vm3, 1, %v5128_v20  ;;  %v1298_v7 = vmax.f32 %v1295_v0, %v1296_v45  ;;  %v1866_v30 = vsel %vm1850_vm5, 1, %v5128_v20 }
 0x2fa   : > { %1904 = vperm.xlu2 %2976, %v1865_v39   ;;  %1901 = vperm.xlu1 %2975, %v1864_v10   ;;  %v5223_v10 = vmax.f32 %v4172_v37, %v4186_v5  ;;  %v1294_v37 = vmax.f32 %v4259_v33, %v1282_v28  ;;  %v1428_v5 = vmax.f32 %v1424_v18, %v1416_v42  ;;  %v5228_v8 = vrot.slane %v5227_v60, 2  ;;  %v5236_v28 = vld [vmem:[#allocation9_spill] sm:$0xff] }
 0x2fb   : > { %1898 = vperm.xlu0 %2974, %v1863_v34   ;;  %v5225_v34 = vmax.f32 %v4165_v52, %v4211_v22  ;;  %v1414_v22 = vsel %vm1398_vm0, %v3835_v17, -1e+30  ;;  %v1867_v52 = vsel %vm1851_vm4, 1, %v5128_v20  ;;  %v1429_v33 = vmax.f32 %v1425_v11, %v1417_v9  ;;  %v5233_v11 = vld [vmem:[#allocation59_spill] sm:$0xff] }
 0x2fc   : > { %v4311_v24 = vpop.permute.xlu2 %1635  ;;  %v4313_v21 = vpop.permute.xlu1 %1605  ;;  %v1164_v3 = vmax.f32 %v5224_v44, %v5223_v10  ;;  %v1426_v25 = vmax.f32 %v1422_v55, %v1414_v22  ;;  %v4350_v46 = vmax.f32 %v5227_v60, %v5228_v8  ;;  %v5230_v39 = vrot.slane %v5229_v29, 2  ;;  %v5242_v60 = vld [vmem:[#allocation18_spill] sm:$0xff]  ;;  %v5243_v8 = vld [vmem:[#allocation17_spill] sm:$0xff] }
 0x2fd   : > { %v1165_v31 = vmax.f32 %v5226_v54, %v5225_v34  ;;  %v4332_v35 = vpop.permute.xlu0 %1517  ;;  %v1036_v36 = vrot.slane %v5231_v48, 2  ;;  %v1297_v57 = vmax.f32 %v1293_v59, %v1294_v37  ;;  %v1431_v0 = vmax.f32 %v1428_v5, %v1429_v33  ;;  %v5234_v34 = vld [vmem:[#allocation25_spill] sm:$0xff]  ;;  %v5237_v59 = vld [vmem:[#allocation23_spill] sm:$0xff]  ;;  %v5238_v5 = vld [vmem:[#allocation34_spill] sm:$0xff] }
 0x2fe   : > { %v4355_v53 = vmax.f32 %v5229_v29, %v5230_v39  ;;  %v1430_v45 = vmax.f32 %v1426_v25, %v1427_v47  ;;  %vm1972_vm2 = vcmp.eq.s32.totalorder %v5232_v49, 10  ;;  %vm1971_vm6 = vcmp.eq.s32.totalorder %v5233_v11, 10  ;;  %v5244_v39 = vld [vmem:[#allocation22_spill] sm:$0xff] }
 0x2ff   : > { %v4358_v15 = vmax.f32 %v1164_v3, %v1165_v31  ;;  %v4360_v32 = vmax.f32 %v1297_v57, %v1298_v7  ;;  %v772_v18 = vrot.slane %v4350_v46, 1  ;;  %v4371_v44 = vmax.f32 %v5231_v48, %v1036_v36  ;;  %v5235_v31 = vld [vmem:[#allocation11_spill] sm:$0xff] }
 0x300   : > { %v905_v10 = vrot.slane %v4355_v53, 1  ;;  %vm1853_vm7 = vcmp.eq.s32.totalorder %v5234_v34, 9  ;;  %vm1521_vm8 = vcmp.eq.s32.totalorder %v5235_v31, 1  ;;  %vm1524_vm9 = vcmp.eq.s32.totalorder %v5236_v28, 1  ;;  %v5245_v28 = vld [vmem:[#allocation67_spill] sm:$0xff] }
 0x301   : > { %v1167_v54 = vrot.slane %v4358_v15, 4  ;;  %v1432_v37 = vmax.f32 %v1430_v45, %v1431_v0  ;;  %vm1530_vm10 = vcmp.eq.s32.totalorder %v5237_v59, 1  ;;  %vm1526_vm11 = vcmp.eq.s32.totalorder %v5238_v5, 1  ;;  %v5246_v59 = vld [vmem:[#allocation62_spill] sm:$0xff] }
 0x302   : > { %1913 = vperm.xlu2 %2976, %v1868_v40   ;;  %1910 = vperm.xlu1 %2975, %v1867_v52   ;;  %v1988_v47 = vsel %vm1972_vm2, 1, %v5128_v20  ;;  %v1987_v22 = vsel %vm1971_vm6, 1, %v5128_v20  ;;  %v1300_v9 = vrot.slane %v4360_v32, 4  ;;  %v5239_v40 = vld [vmem:[#allocation29_spill] sm:$0xff]  ;;  %v5240_v52 = vld [vmem:[#allocation38_spill] sm:$0xff]  ;;  %v1869_v7 = vsel %vm1853_vm7, 1, %v5128_v20 }
 0x303   : > { %1907 = vperm.xlu0 %2974, %v1866_v30   ;;  %vm1523_vm12 = vcmp.eq.s32.totalorder %v5239_v40, 1  ;;  %vm1525_vm13 = vcmp.eq.s32.totalorder %v5240_v52, 1  ;;  %v1537_v25 = vsel %vm1521_vm8, %v3753_v2, -1e+30  ;;  %v1540_v33 = vsel %vm1524_vm9, %v3735_v58, -1e+30 }
 0x304   : > { %v4362_v55 = vpop.permute.xlu2 %1644  ;;  %v4364_v42 = vpop.permute.xlu1 %1614  ;;  %v5241_v30 = vld [vmem:[#allocation15_spill] sm:$0xff]  ;;  %vm1522_vm15 = vcmp.eq.s32.totalorder %v5242_v60, 1  ;;  %vm1527_vm0 = vcmp.eq.s32.totalorder %v5243_v8, 1  ;;  %v1546_v29 = vsel %vm1530_vm10, %v3750_v38, -1e+30  ;;  %vm1520_vm1 = vcmp.eq.s32.totalorder %v5244_v39, 1 }
 0x305   : > { %v4373_v3 = vpop.permute.xlu0 %1611  ;;  %vm1519_vm14 = vcmp.eq.s32.totalorder %v5241_v30, 1  ;;  %v1542_v48 = vsel %vm1526_vm11, %v3786_v14, -1e+30  ;;  %v1433_v36 = vrot.slane %v1432_v37, 4  ;;  %v1539_v57 = vsel %vm1523_vm12, %v3732_v50, -1e+30 }
 0x306   : > { %v1541_v0 = vsel %vm1525_vm13, %v3793_v27, -1e+30  ;;  %vm1529_vm3 = vcmp.eq.s32.totalorder %v4234_v62, 1  ;;  %v1535_v45 = vsel %vm1519_vm14, %v3741_v56, -1e+30  ;;  %vm1975_vm4 = vcmp.eq.s32.totalorder %v5245_v28, 10 }
 0x307   : > { %v1538_v49 = vsel %vm1522_vm15, %v3780_v43, -1e+30  ;;  %vm1974_vm5 = vcmp.eq.s32.totalorder %v5246_v59, 10  ;;  %vm1528_vm2 = vcmp.eq.s32.totalorder %v4241_v51, 1  ;;  %vm1534_vm6 = vcmp.eq.s32.totalorder %v4332_v35, 1  ;;  %v5249_v8 = vld [vmem:[#allocation14_spill] sm:$0xff] }
 0x308   : > { %v1554_v5 = vmax.f32 %v1538_v49, %v1542_v48  ;;  %v1536_v40 = vsel %vm1520_vm1, %v3783_v61, -1e+30  ;;  %v1551_v52 = vmax.f32 %v1535_v45, %v1539_v57  ;;  %v1545_v30 = vsel %vm1529_vm3, %v3798_v12, -1e+30 }
 0x309   : > { %vm1532_vm8 = vcmp.eq.s32.totalorder %v4282_v19, 1  ;;  %vm1531_vm9 = vcmp.eq.s32.totalorder %v4289_v13, 1  ;;  %v1991_v51 = vsel %vm1975_vm4, 1, %v5128_v20  ;;  %v1990_v35 = vsel %vm1974_vm5, 1, %v5128_v20 }
 0x30a   : > { %2007 = vperm.xlu2 %2976, %v1988_v47   ;;  %2004 = vperm.xlu1 %2975, %v1987_v22   ;;  %v5247_v22 = vld [vmem:[#allocation63_spill] sm:$0xff]  ;;  %v1168_v60 = vmax.f32 %v4358_v15, %v1167_v54  ;;  %v1544_v48 = vsel %vm1528_vm2, %v3822_v23, -1e+30  ;;  %v1550_v39 = vsel %vm1534_vm6, %v3854_v16, -1e+30  ;;  %v1552_v57 = vmax.f32 %v1536_v40, %v1540_v33 }
 0x30b   : > { %1916 = vperm.xlu0 %2974, %v1869_v7   ;;  %vm1973_vm7 = vcmp.eq.s32.totalorder %v5247_v22, 10  ;;  %v1553_v7 = vmax.f32 %v1537_v25, %v1541_v0  ;;  %v5248_v0 = vld [vmem:[#allocation28_spill] sm:$0xff]  ;;  %v1558_v45 = vmax.f32 %v1554_v5, %v1546_v29  ;;  %v1301_v19 = vmax.f32 %v4360_v32, %v1300_v9 }
 0x30c   : > { %v4400_v11 = vpop.permute.xlu2 %1738  ;;  %v4402_v31 = vpop.permute.xlu1 %1623  ;;  %v1989_v25 = vsel %vm1973_vm7, 1, %v5128_v20  ;;  %vm1533_vm10 = vcmp.eq.s32.totalorder %v5248_v0, 1  ;;  %v1543_v13 = vsel %vm1527_vm0, %v3738_v6, -1e+30  ;;  %v1548_v49 = vsel %vm1532_vm8, %v3828_v26, -1e+30 }
 0x30d   : > { %v4408_v47 = vpop.permute.xlu0 %1620  ;;  %v1557_v62 = vmax.f32 %v1553_v7, %v1545_v30  ;;  %v1547_v15 = vsel %vm1531_vm9, %v3835_v17, -1e+30  ;;  %v1434_v54 = vmax.f32 %v1432_v37, %v1433_v36  ;;  %v1556_v28 = vmax.f32 %v1552_v57, %v1544_v48  ;;  %v5250_v37 = vld [vmem:[#allocation8_spill] sm:$0xff] }
 0x30e   : > { %v1555_v59 = vmax.f32 %v1551_v52, %v1543_v13  ;;  %v1562_v33 = vmax.f32 %v1558_v45, %v1550_v39  ;;  %v1038_v22 = vrot.slane %v4371_v44, 1  ;;  %v1549_v29 = vsel %vm1533_vm10, %v3774_v63, -1e+30  ;;  %v5251_v57 = vld [vmem:[#allocation24_spill] sm:$0xff]  ;;  %v5253_v13 = vld [vmem:[#allocation37_spill] sm:$0xff] }
 0x30f   : > { %vm1978_vm11 = vcmp.eq.s32.totalorder %v4029_v1, 10  ;;  %vm1977_vm12 = vcmp.eq.s32.totalorder %v5249_v8, 10  ;;  %v1561_v5 = vmax.f32 %v1557_v62, %v1549_v29  ;;  %v1560_v40 = vmax.f32 %v1556_v28, %v1548_v49  ;;  %v5252_v45 = vld [vmem:[#allocation32_spill] sm:$0xff]  ;;  %v5255_v28 = vld [vmem:[#allocation10_spill] sm:$0xff]  ;;  %v5256_v29 = vld [vmem:[#allocation19_spill] sm:$0xff] }
 0x310   : > { %v1559_v7 = vmax.f32 %v1555_v59, %v1547_v15  ;;  %vm1976_vm13 = vcmp.eq.s32.totalorder %v5250_v37, 10  ;;  %v1169_v36 = vrot.slane %v1168_v60, 2  ;;  %v1302_v52 = vrot.slane %v1301_v19, 2 }
 0x311   : > { %v1994_v48 = vsel %vm1978_vm11, 1, %v5128_v20  ;;  %v1993_v39 = vsel %vm1977_vm12, 1, %v5128_v20  ;;  %v4444_v1 = vmax.f32 %v4350_v46, %v772_v18  ;;  %vm1653_vm14 = vcmp.eq.s32.totalorder %v5251_v57, 1 }
 0x312   : > { %2016 = vperm.xlu2 %2976, %v1991_v51   ;;  %2013 = vperm.xlu1 %2975, %v1990_v35   ;;  %v1435_v51 = vrot.slane %v1434_v54, 2  ;;  %v1564_v35 = vmax.f32 %v1561_v5, %v1562_v33  ;;  %v1992_v0 = vsel %vm1976_vm13, 1, %v5128_v20  ;;  %v4454_v62 = vmax.f32 %v4371_v44, %v1038_v22 }
 0x313   : > { %2010 = vperm.xlu0 %2974, %v1989_v25   ;;  %v4449_v25 = vmax.f32 %v4355_v53, %v905_v10  ;;  %vm1656_vm15 = vcmp.eq.s32.totalorder %v5252_v45, 1  ;;  %vm1659_vm0 = vcmp.eq.s32.totalorder %v5253_v13, 1  ;;  %v1563_v49 = vmax.f32 %v1559_v7, %v1560_v40  ;;  %v5254_v53 = vld [vmem:[#allocation16_spill] sm:$0xff] }
 0x314   : > { %v4434_v32 = vpop.permute.xlu2 %1747  ;;  %v1633_v9 = vpop.permute.xlu1 %1632  ;;  %v4458_v15 = vmax.f32 %v1168_v60, %v1169_v36  ;;  %v4460_v46 = vmax.f32 %v1301_v19, %v1302_v52  ;;  %vm1652_vm1 = vcmp.eq.s32.totalorder %v4313_v21, 1  ;;  %vm1981_vm3 = vcmp.eq.s32.totalorder %v5254_v53, 10 }
 0x315   : > { %v1630_v30 = vpop.permute.xlu0 %1629  ;;  %v4464_v18 = vmax.f32 %v1434_v54, %v1435_v51  ;;  %v1669_v10 = vsel %vm1653_vm14, %v3783_v61, -1e+30  ;;  %v1565_v44 = vmax.f32 %v1563_v49, %v1564_v35  ;;  %vm1980_vm4 = vcmp.eq.s32.totalorder %v5255_v28, 10 }
 0x316   : > { %v1672_v59 = vsel %vm1656_vm15, %v3732_v50, -1e+30  ;;  %v1675_v60 = vsel %vm1659_vm0, %v3786_v14, -1e+30  ;;  %vm1658_vm5 = vcmp.eq.s32.totalorder %v4402_v31, 1  ;;  %vm1657_vm2 = vcmp.eq.s32.totalorder %v4408_v47, 1 }
 0x317   : > { %v1668_v54 = vsel %vm1652_vm1, %v3741_v56, -1e+30  ;;  %vm1655_vm6 = vcmp.eq.s32.totalorder %v4364_v42, 1  ;;  %v1997_v22 = vsel %vm1981_vm3, 1, %v5128_v20  ;;  %vm1979_vm7 = vcmp.eq.s32.totalorder %v5256_v29, 10 }
 0x318   : > { %vm1654_vm8 = vcmp.eq.s32.totalorder %v4373_v3, 1  ;;  %vm1661_vm9 = vcmp.eq.s32.totalorder %v1633_v9, 1  ;;  %vm1660_vm10 = vcmp.eq.s32.totalorder %v1630_v30, 1  ;;  %v1996_v31 = vsel %vm1980_vm4, 1, %v5128_v20 }
 0x319   : > { %vm2769_vm11 = vcmask 1040384   ;;  %v1566_v47 = vrot.slane %v1565_v44, 4  ;;  %v1674_v8 = vsel %vm1658_vm5, %v3793_v27, -1e+30  ;;  %v1673_v5 = vsel %vm1657_vm2, %v3735_v58, -1e+30 }
 0x31a   : > { %2025 = vperm.xlu2 %2976, %v1994_v48   ;;  %2022 = vperm.xlu1 %2975, %v1993_v39   ;;  %vm2771_vm13 = vcmask 1041408   ;;  %vm1662_vm14 = vcmp.eq.s32.totalorder %v4311_v24, 1  ;;  %v1671_v42 = vsel %vm1655_vm6, %v3780_v43, -1e+30  ;;  %v1995_v40 = vsel %vm1979_vm7, 1, %v5128_v20 }
 0x31b   : > { %2019 = vperm.xlu0 %2974, %v1992_v0   ;;  %v1684_v3 = vmax.f32 %v1668_v54, %v1672_v59  ;;  %v1670_v9 = vsel %vm1654_vm8, %v3753_v2, -1e+30  ;;  %v1677_v7 = vsel %vm1661_vm9, %v3822_v23, -1e+30  ;;  %v1676_v30 = vsel %vm1660_vm10, %v3738_v6, -1e+30 }
 0x31c   : > { %v4472_v21 = vpop.permute.xlu2 %1756  ;;  %v1642_v19 = vpop.permute.xlu1 %1641  ;;  %vm1665_vm0 = vcmp.eq.s32.totalorder %v4362_v55, 1  ;;  %v1686_v37 = vmax.f32 %v1670_v9, %v1674_v8  ;;  %v1685_v36 = vmax.f32 %v1669_v10, %v1673_v5  ;;  %v1678_v24 = vsel %vm1662_vm14, %v3798_v12, -1e+30  ;;  %v5257_v10 = vld [vmem:[#allocation12_spill] sm:$0xff] }
 0x31d   : > { %v1639_v33 = vpop.permute.xlu0 %1638  ;;  %vm1664_vm15 = vcmp.eq.s32.totalorder %v1642_v19, 1  ;;  %v1567_v51 = vmax.f32 %v1565_v44, %v1566_v47  ;;  %v1687_v35 = vmax.f32 %v1671_v42, %v1675_v60  ;;  %v1688_v57 = vmax.f32 %v1684_v3, %v1676_v30 }
 0x31e   : > { %vm1663_vm12 = vcmp.eq.s32.totalorder %v1639_v33, 1  ;;  %v1680_v48 = vsel %vm1664_vm15, %v3835_v17, -1e+30  ;;  %v1689_v39 = vmax.f32 %v1685_v36, %v1677_v7  ;;  %vm1984_vm1 = vcmp.eq.s32.totalorder %v4099_v4, 10 }
 0x31f   : > { %v1679_v52 = vsel %vm1663_vm12, %v3750_v38, -1e+30  ;;  %vm1983_vm3 = vcmp.eq.s32.totalorder %v4060_v41, 10  ;;  %v1681_v13 = vsel %vm1665_vm0, %v3828_v26, -1e+30  ;;  %vm1982_vm5 = vcmp.eq.s32.totalorder %v5257_v10, 10 }
 0x320   : > { %v1691_v49 = vmax.f32 %v1687_v35, %v1679_v52  ;;  %v1692_v44 = vmax.f32 %v1688_v57, %v1680_v48  ;;  %v1690_v59 = vmax.f32 %v1686_v37, %v1678_v24  ;;  %v2000_v4 = vsel %vm1984_vm1, 1, %v5128_v20  ;;  %v4523_v37 = vld [vmem:[%s3175_s13 + $0x70] sm:$0xff] }
 0x321   : > { %v1999_v41 = vsel %vm1983_vm3, 1, %v5128_v20  ;;  %v1568_v54 = vrot.slane %v1567_v51, 2  ;;  %v1693_v55 = vmax.f32 %v1689_v39, %v1681_v13  ;;  %v1171_v29 = vrot.slane %v4458_v15, 1  ;;  %v4545_v13 = vld [vmem:[%s3175_s13 + $0x18] sm:$0xff] }
 0x322   : > { %2034 = vperm.xlu2 %2976, %v1997_v22   ;;  %2031 = vperm.xlu1 %2975, %v1996_v31   ;;  %v1998_v22 = vsel %vm1982_vm5, 1, %v5128_v20  ;;  %v2770_v31 = vsel %vm2769_vm11, %v4444_v1, %v4449_v25  ;;  %v1304_v47 = vrot.slane %v4460_v46, 1  ;;  %vm2773_vm6 = vcmask 1042432   ;;  %v4517_v25 = vld [vmem:[%s3175_s13] sm:$0xff] }
 0x323   : > { %2028 = vperm.xlu0 %2974, %v1995_v40   ;;  %v1696_v8 = vmax.f32 %v1692_v44, %v1693_v55  ;;  %v2772_v42 = vsel %vm2771_vm13, %v2770_v31, %v4454_v62  ;;  %v1437_v40 = vrot.slane %v4464_v18, 1  ;;  %vm1791_vm7 = vcmp.eq.s32.totalorder %v4472_v21, 1 }
 0x324   : > { %v4492_v0 = vpop.permute.xlu2 %1765  ;;  %v1651_v45 = vpop.permute.xlu1 %1650  ;;  %v1569_v3 = vmax.f32 %v1567_v51, %v1568_v54  ;;  %vm2104_vm8 = vcmp.eq.s32.totalorder %v4517_v25, 11  ;;  %vm1986_vm9 = vcmp.eq.s32.totalorder %v5234_v34, 10  ;;  %v1172_v62 = vmax.f32 %v4458_v15, %v1171_v29 }
 0x325   : > { %vm1667_vm4 = vcmp.eq.s32.totalorder %v1651_v45, 1  ;;  %v1648_v53 = vpop.permute.xlu0 %1647  ;;  %vm2775_vm10 = vcmask 1043456   ;;  %vm1985_vm14 = vcmp.eq.s32.totalorder %v4523_v37, 10  ;;  %v1305_v36 = vmax.f32 %v4460_v46, %v1304_v47 }
 0x326   : > { %v1683_v28 = vsel %vm1667_vm4, %v3854_v16, -1e+30  ;;  %vm1666_vm2 = vcmp.eq.s32.totalorder %v1648_v53, 1  ;;  %v4530_v52 = vsel %vm1791_vm7, %v3793_v27, -1e+30  ;;  %v1438_v15 = vmax.f32 %v4464_v18, %v1437_v40 }
 0x327   : > { %v1695_v60 = vmax.f32 %v1691_v49, %v1683_v28  ;;  %v1682_v19 = vsel %vm1666_vm2, %v3774_v63, -1e+30  ;;  %v2120_v35 = vsel %vm2104_vm8, 1, %v5128_v20  ;;  %v2002_v48 = vsel %vm1986_vm9, 1, %v5128_v20 }
 0x328   : > { %v1694_v33 = vmax.f32 %v1690_v59, %v1682_v19  ;;  %vm2777_vm15 = vcmask 1044480   ;;  %v1570_v46 = vrot.slane %v1569_v3, 1  ;;  %v2001_v21 = vsel %vm1985_vm14, 1, %v5128_v20  ;;  %v4553_v59 = vld [vmem:[%s3175_s13 + $0x10] sm:$0xff] }
 0x329   : > { %v2774_v57 = vsel %vm2773_vm6, %v2772_v42, %v1172_v62  ;;  %vm1785_vm0 = vcmp.eq.s32.totalorder %v4400_v11, 1  ;;  %vm2107_vm1 = vcmp.eq.s32.totalorder %v4545_v13, 11  ;;  %vm2779_vm4 = vcmask 1045504  }
 0x32a   : > { %v1697_v5 = vmax.f32 %v1694_v33, %v1695_v60  ;;  %2043 = vperm.xlu2 %2976, %v2000_v4   ;;  %2040 = vperm.xlu1 %2975, %v1999_v41   ;;  %v2776_v45 = vsel %vm2775_vm10, %v2774_v57, %v1305_v36  ;;  %v1571_v53 = vmax.f32 %v1569_v3, %v1570_v46  ;;  %v1801_v10 = vsel %vm1785_vm0, %v3741_v56, -1e+30  ;;  %v4559_v4 = vld [vmem:[%s3175_s13 + $0x8] sm:$0xff] }
 0x32b   : > { %2037 = vperm.xlu0 %2974, %v1998_v22   ;;  %v2778_v49 = vsel %vm2777_vm15, %v2776_v45, %v1438_v15  ;;  %vm2106_vm5 = vcmp.eq.s32.totalorder %v4553_v59, 11  ;;  %vm1794_vm2 = vcmp.eq.s32.totalorder %v4492_v0, 1  ;;  %v2123_v19 = vsel %vm2107_vm1, 1, %v5128_v20  ;;  %v4581_v36 = vld [vmem:[%s3175_s13 + $0x28] sm:$0xff]  ;;  %v4586_v15 = vld [vmem:[%s3175_s13 + $0x20] sm:$0xff] }
 0x32c   : > { %v1698_v9 = vmax.f32 %v1696_v8, %v1697_v5  ;;  %v4514_v7 = vpop.permute.xlu2 %1774  ;;  %v1745_v1 = vpop.permute.xlu1 %1744  ;;  %vm2105_vm8 = vcmp.eq.s32.totalorder %v4559_v4, 11  ;;  %v2122_v0 = vsel %vm2106_vm5, 1, %v5128_v20  ;;  %v1810_v29 = vsel %vm1794_vm2, %v3822_v23, -1e+30  ;;  %v2790_v5 = vld [vmem:[#allocation2] sm:$0xff] }
 0x32d   : > { %vm1787_vm12 = vcmp.eq.s32.totalorder %v1745_v1, 1  ;;  %v1742_v30 = vpop.permute.xlu0 %1741  ;;  %v2121_v8 = vsel %vm2105_vm8, 1, %v5128_v20  ;;  %v2780_v40 = vsel %vm2779_vm4, %v2778_v49, %v1571_v53  ;;  %vm1788_vm14 = vcmp.eq.s32.totalorder %v4434_v32, 1 }
 0x32e   : > { %v1699_v24 = vrot.slane %v1698_v9, 4  ;;  %v4533_v34 = vsel %vm1787_vm12, %v3753_v2, -1e+30  ;;  %vm1786_vm3 = vcmp.eq.s32.totalorder %v1742_v30, 1  ;;  %vm2781_vm12 = vcmask 1046528   ;;  %v4577_v30 = vld [vmem:[%s3175_s13 + $0x30] sm:$0xff] }
 0x32f   : > { %v1819_v51 = vmax.f32 %v4533_v34, %v4530_v52  ;;  %v1802_v54 = vsel %vm1786_vm3, %v3783_v61, -1e+30  ;;  %vm2110_vm0 = vcmp.eq.s32.totalorder %v4577_v30, 11  ;;  %vm2109_vm1 = vcmp.eq.s32.totalorder %v4581_v36, 11  ;;  %v4627_v52 = vld [vmem:[%s3175_s13 + $0x50] sm:$0xff] }
 0x330   : > { %v1700_v39 = vmax.f32 %v1698_v9, %v1699_v24  ;;  %vm1797_vm3 = vcmp.eq.s32.totalorder %v4514_v7, 1  ;;  %vm2108_vm2 = vcmp.eq.s32.totalorder %v4586_v15, 11  ;;  %v1804_v32 = vsel %vm1788_vm14, %v3780_v43, -1e+30 }
 0x331   : > { %v2125_v7 = vsel %vm2109_vm1, 1, %v5128_v20  ;;  %v2124_v45 = vsel %vm2108_vm2, 1, %v5128_v20 }
 0x332   : > { %v1701_v18 = vrot.slane %v1700_v39, 2  ;;  %2137 = vperm.xlu2 %2976, %v2120_v35   ;;  %2049 = vperm.xlu1 %2975, %v2002_v48  }
 0x333   : > { %2046 = vperm.xlu0 %2974, %v2001_v21   ;;  %v1813_v21 = vsel %vm1797_vm3, %v3835_v17, -1e+30 }
 0x334   : > { %v1702_v11 = vmax.f32 %v1700_v39, %v1701_v18  ;;  %v4550_v44 = vpop.permute.xlu2 %1783  ;;  %v1754_v28 = vpop.permute.xlu1 %1753  ;;  %v2126_v39 = vsel %vm2110_vm0, 1, %v5128_v20 }
 0x335   : > { %vm1790_vm7 = vcmp.eq.s32.totalorder %v1754_v28, 1  ;;  %v1751_v60 = vpop.permute.xlu0 %1750  ;;  %vm1800_vm14 = vcmp.eq.s32.totalorder %v4550_v44, 1 }
 0x336   : > { %v1703_v41 = vrot.slane %v1702_v11, 1  ;;  %v1806_v55 = vsel %vm1790_vm7, %v3735_v58, -1e+30  ;;  %vm1789_vm9 = vcmp.eq.s32.totalorder %v1751_v60, 1  ;;  %v4606_v60 = vld [vmem:[%s3175_s13 + $0x38] sm:$0xff] }
 0x337   : > { %v1818_v33 = vmax.f32 %v1802_v54, %v1806_v55  ;;  %v1805_v22 = vsel %vm1789_vm9, %v3732_v50, -1e+30  ;;  %vm2111_vm1 = vcmp.eq.s32.totalorder %v4606_v60, 11  ;;  %v1816_v44 = vsel %vm1800_vm14, %v3854_v16, -1e+30 }
 0x338   : > { %v1704_v31 = vmax.f32 %v1702_v11, %v1703_v41  ;;  %v1817_v47 = vmax.f32 %v1801_v10, %v1805_v22  ;;  %v4597_v10 = vld [vmem:[%s3175_s13 + $0x48] sm:$0xff]  ;;  %v4601_v11 = vld [vmem:[%s3175_s13 + $0x40] sm:$0xff] }
 0x339   : > { %v4569_v42 = vmax.f32 %v1818_v33, %v1810_v29  ;;  %vm2113_vm8 = vcmp.eq.s32.totalorder %v4597_v10, 11  ;;  %vm2112_vm9 = vcmp.eq.s32.totalorder %v4601_v11, 11 }
 0x33a   : > { %2146 = vperm.xlu2 %2976, %v2123_v19   ;;  %2143 = vperm.xlu1 %2975, %v2122_v0   ;;  %v2782_v3 = vsel %vm2781_vm12, %v2780_v40, %v1704_v31  ;;  %v2129_v55 = vsel %vm2113_vm8, 1, %v5128_v20  ;;  %v2128_v33 = vsel %vm2112_vm9, 1, %v5128_v20  ;;  %v2127_v0 = vsel %vm2111_vm1, 1, %v5128_v20 }
 0x33b   : > { %2140 = vperm.xlu0 %2974, %v2121_v8   ;;  %v2792_v9 = vmax.f32 %v2790_v5, %v2782_v3  ;;  %v4619_v8 = vld [vmem:[%s3175_s13 + $0x60] sm:$0xff]  ;;  %v4623_v5 = vld [vmem:[%s3175_s13 + $0x58] sm:$0xff]  ;;  %vm2114_vm8 = vcmp.eq.s32.totalorder %v4627_v52, 11  ;;  %vm2118_vm1 = vcmp.eq.s32.totalorder %v4523_v37, 11 }
 0x33c   : > { %v4574_v1 = vpop.permute.xlu2 %1877  ;;  %v1763_v62 = vpop.permute.xlu1 %1762  ;;  %vm2115_vm2 = vcmp.eq.s32.totalorder %v4623_v5, 11 }
 0x33d   : > { %vm1793_vm5 = vcmp.eq.s32.totalorder %v1763_v62, 1  ;;  %v1760_v24 = vpop.permute.xlu0 %1759  ;;  %2794 = vst [vmem:[#allocation2] sm:$0xff] %v2792_v9  ;;  %v2131_v62 = vsel %vm2115_vm2, 1, %v5128_v20 }
 0x33e   : > { %v1809_v35 = vsel %vm1793_vm5, %v3738_v6, -1e+30  ;;  %vm1792_vm7 = vcmp.eq.s32.totalorder %v1760_v24, 1  ;;  %vm2116_vm5 = vcmp.eq.s32.totalorder %v4619_v8, 11 }
 0x33f   : > { %v1821_v48 = vmax.f32 %v1817_v47, %v1809_v35  ;;  %v1808_v46 = vsel %vm1792_vm7, %v3786_v14, -1e+30  ;;  %v2132_v9 = vsel %vm2116_vm5, 1, %v5128_v20 }
 0x340   : > { %v1820_v57 = vmax.f32 %v1804_v32, %v1808_v46  ;;  %v2130_v32 = vsel %vm2114_vm8, 1, %v5128_v20  ;;  %vm2238_vm8 = vcmp.eq.s32.totalorder %v4559_v4, 12 }
 0x341   : > { %v1825_v18 = vmax.f32 %v1821_v48, %v1813_v21  ;;  %v4639_v21 = vld [vmem:[%s3175_s13 + $0x78] sm:$0xff] }
 0x342   : > { %2155 = vperm.xlu2 %2976, %v2126_v39   ;;  %2152 = vperm.xlu1 %2975, %v2125_v7  }
 0x343   : > { %2149 = vperm.xlu0 %2974, %v2124_v45  }
 0x344   : > { %v1887_v49 = vpop.permute.xlu2 %1886  ;;  %v1772_v53 = vpop.permute.xlu1 %1771 }
 0x345   : > { %vm1796_vm0 = vcmp.eq.s32.totalorder %v1772_v53, 1  ;;  %v1769_v28 = vpop.permute.xlu0 %1768  ;;  %vm1923_vm14 = vcmp.eq.s32.totalorder %v1887_v49, 1 }
 0x346   : > { %v1812_v19 = vsel %vm1796_vm0, %v3750_v38, -1e+30  ;;  %vm1795_vm3 = vcmp.eq.s32.totalorder %v1769_v28, 1  ;;  %vm2119_vm0 = vcmp.eq.s32.totalorder %v4639_v21, 11  ;;  %v4648_v45 = vsel %vm1923_vm14, %v3735_v58, -1e+30 }
 0x347   : > { %v1824_v41 = vmax.f32 %v1820_v57, %v1812_v19  ;;  %v1811_v54 = vsel %vm1795_vm3, %v3798_v12, -1e+30  ;;  %v4644_v57 = vld [vmem:[%s3175_s13 + $0x68] sm:$0xff]  ;;  %v2135_v53 = vsel %vm2119_vm0, 1, %v5128_v20  ;;  %v2134_v28 = vsel %vm2118_vm1, 1, %v5128_v20 }
 0x348   : > { %v1823_v22 = vmax.f32 %v1819_v51, %v1811_v54  ;;  %vm2117_vm5 = vcmp.eq.s32.totalorder %v4644_v57, 11  ;;  %vm1920_vm0 = vcmp.eq.s32.totalorder %v4574_v1, 1 }
 0x349   : > { %v1828_v29 = vmax.f32 %v1824_v41, %v1816_v44  ;;  %v2133_v19 = vsel %vm2117_vm5, 1, %v5128_v20  ;;  %vm2242_vm5 = vcmp.eq.s32.totalorder %v4581_v36, 12 }
 0x34a   : > { %2164 = vperm.xlu2 %2976, %v2129_v55   ;;  %2161 = vperm.xlu1 %2975, %v2128_v33  }
 0x34b   : > { %2158 = vperm.xlu0 %2974, %v2127_v0  }
 0x34c   : > { %v1896_v31 = vpop.permute.xlu2 %1895  ;;  %v1781_v47 = vpop.permute.xlu1 %1780 }
 0x34d   : > { %vm1799_vm7 = vcmp.eq.s32.totalorder %v1781_v47, 1  ;;  %v1778_v40 = vpop.permute.xlu0 %1777 }
 0x34e   : > { %v1815_v34 = vsel %vm1799_vm7, %v3774_v63, -1e+30  ;;  %vm1798_vm9 = vcmp.eq.s32.totalorder %v1778_v40, 1  ;;  %vm2239_vm7 = vcmp.eq.s32.totalorder %v4553_v59, 12 }
 0x34f   : > { %v1827_v51 = vmax.f32 %v1823_v22, %v1815_v34  ;;  %v1814_v3 = vsel %vm1798_vm9, %v3828_v26, -1e+30  ;;  %vm1926_vm9 = vcmp.eq.s32.totalorder %v1896_v31, 1  ;;  %v2255_v0 = vsel %vm2239_vm7, 1, %v5128_v20 }
 0x350   : > { %v1826_v24 = vmax.f32 %v4569_v42, %v1814_v3  ;;  %v1942_v47 = vsel %vm1926_vm9, %v3738_v6, -1e+30  ;;  %v1936_v3 = vsel %vm1920_vm0, %v3753_v2, -1e+30  ;;  %vm2240_vm9 = vcmp.eq.s32.totalorder %v4545_v13, 12 }
 0x351   : > { %v1830_v35 = vmax.f32 %v1827_v51, %v1828_v29  ;;  %v2254_v29 = vsel %vm2238_vm8, 1, %v5128_v20  ;;  %vm2244_vm0 = vcmp.eq.s32.totalorder %v4606_v60, 12 }
 0x352   : > { %v1829_v48 = vmax.f32 %v1825_v18, %v1826_v24  ;;  %2173 = vperm.xlu2 %2976, %v2132_v9   ;;  %2170 = vperm.xlu1 %2975, %v2131_v62  }
 0x353   : > { %2167 = vperm.xlu0 %2974, %v2130_v32  }
 0x354   : > { %v4636_v46 = vmax.f32 %v1829_v48, %v1830_v35  ;;  %v1905_v39 = vpop.permute.xlu2 %1904  ;;  %v1875_v7 = vpop.permute.xlu1 %1874  ;;  %v2258_v35 = vsel %vm2242_vm5, 1, %v5128_v20 }
 0x355   : > { %vm1919_vm3 = vcmp.eq.s32.totalorder %v1875_v7, 1  ;;  %v1872_v42 = vpop.permute.xlu0 %1871  ;;  %vm1929_vm7 = vcmp.eq.s32.totalorder %v1905_v39, 1  ;;  %v2256_v39 = vsel %vm2240_vm9, 1, %v5128_v20  ;;  %vm2247_vm9 = vcmp.eq.s32.totalorder %v4627_v52, 12 }
 0x356   : > { %v4651_v18 = vsel %vm1919_vm3, %v3783_v61, -1e+30  ;;  %vm1918_vm2 = vcmp.eq.s32.totalorder %v1872_v42, 1  ;;  %vm2237_vm3 = vcmp.eq.s32.totalorder %v4517_v25, 12  ;;  %v1945_v7 = vsel %vm1929_vm7, %v3750_v38, -1e+30 }
 0x357   : > { %v1951_v49 = vmax.f32 %v4651_v18, %v4648_v45  ;;  %v1934_v33 = vsel %vm1918_vm2, %v3741_v56, -1e+30  ;;  %v2253_v40 = vsel %vm2237_vm3, 1, %v5128_v20  ;;  %vm2241_vm2 = vcmp.eq.s32.totalorder %v4586_v15, 12 }
 0x358   : > { %v2257_v48 = vsel %vm2241_vm2, 1, %v5128_v20  ;;  %vm2245_vm3 = vcmp.eq.s32.totalorder %v4601_v11, 12  ;;  %vm2243_vm2 = vcmp.eq.s32.totalorder %v4577_v30, 12 }
 0x35a   : > { %2182 = vperm.xlu2 %2976, %v2135_v53   ;;  %2179 = vperm.xlu1 %2975, %v2134_v28  }
 0x35b   : > { %2176 = vperm.xlu0 %2974, %v2133_v19  }
 0x35c   : > { %v1914_v41 = vpop.permute.xlu2 %1913  ;;  %v1884_v54 = vpop.permute.xlu1 %1883 }
 0x35d   : > { %vm1922_vm14 = vcmp.eq.s32.totalorder %v1884_v54, 1  ;;  %v1881_v55 = vpop.permute.xlu0 %1880 }
 0x35e   : > { %v1938_v44 = vsel %vm1922_vm14, %v3732_v50, -1e+30  ;;  %vm1921_vm1 = vcmp.eq.s32.totalorder %v1881_v55, 1 }
 0x35f   : > { %v1950_v22 = vmax.f32 %v1934_v33, %v1938_v44  ;;  %v1937_v1 = vsel %vm1921_vm1, %v3780_v43, -1e+30  ;;  %vm1932_vm1 = vcmp.eq.s32.totalorder %v1914_v41, 1 }
 0x361   : > { %v4667_v34 = vmax.f32 %v1950_v22, %v1942_v47  ;;  %v2261_v22 = vsel %vm2245_vm3, 1, %v5128_v20  ;;  %v2259_v47 = vsel %vm2243_vm2, 1, %v5128_v20  ;;  %vm2246_vm3 = vcmp.eq.s32.totalorder %v4597_v10, 12 }
 0x362   : > { %2276 = vperm.xlu2 %2976, %v2255_v0   ;;  %2273 = vperm.xlu1 %2975, %v2254_v29   ;;  %v2260_v0 = vsel %vm2244_vm0, 1, %v5128_v20  ;;  %v1948_v29 = vsel %vm1932_vm1, %v3774_v63, -1e+30  ;;  %vm2250_vm2 = vcmp.eq.s32.totalorder %v4644_v57, 12 }
 0x363   : > { %2270 = vperm.xlu0 %2974, %v2253_v40  }
 0x364   : > { %v4670_v31 = vpop.permute.xlu2 %2007  ;;  %v1893_v51 = vpop.permute.xlu1 %1892 }
 0x365   : > { %vm1925_vm8 = vcmp.eq.s32.totalorder %v1893_v51, 1  ;;  %v1890_v9 = vpop.permute.xlu0 %1889 }
 0x366   : > { %v1941_v62 = vsel %vm1925_vm8, %v3786_v14, -1e+30  ;;  %vm1924_vm14 = vcmp.eq.s32.totalorder %v1890_v9, 1  ;;  %vm2248_vm8 = vcmp.eq.s32.totalorder %v4623_v5, 12 }
 0x367   : > { %v1953_v24 = vmax.f32 %v1937_v1, %v1941_v62  ;;  %v1940_v32 = vsel %vm1924_vm14, %v3793_v27, -1e+30  ;;  %v2263_v62 = vsel %vm2247_vm9, 1, %v5128_v20 }
 0x368   : > { %v1952_v42 = vmax.f32 %v1936_v3, %v1940_v32 }
 0x369   : > { %v4683_v53 = vmax.f32 %v1953_v24, %v1945_v7  ;;  %v1832_v24 = vrot.slane %v4636_v46, 4 }
 0x36a   : > { %2285 = vperm.xlu2 %2976, %v2258_v35   ;;  %2282 = vperm.xlu1 %2975, %v2257_v48   ;;  %v2262_v35 = vsel %vm2246_vm3, 1, %v5128_v20  ;;  %vm2371_vm3 = vcmp.eq.s32.totalorder %v4559_v4, 13 }
 0x36b   : > { %2279 = vperm.xlu0 %2974, %v2256_v39   ;;  %v1833_v7 = vmax.f32 %v4636_v46, %v1832_v24 }
 0x36c   : > { %v2017_v28 = vpop.permute.xlu2 %2016  ;;  %v1902_v19 = vpop.permute.xlu1 %1901 }
 0x36d   : > { %vm1928_vm5 = vcmp.eq.s32.totalorder %v1902_v19, 1  ;;  %v1899_v54 = vpop.permute.xlu0 %1898  ;;  %vm2055_vm1 = vcmp.eq.s32.totalorder %v2017_v28, 1 }
 0x36e   : > { %v1944_v55 = vsel %vm1928_vm5, %v3798_v12, -1e+30  ;;  %vm1927_vm7 = vcmp.eq.s32.totalorder %v1899_v54, 1  ;;  %vm2251_vm5 = vcmp.eq.s32.totalorder %v4523_v37, 12 }
 0x36f   : > { %v1956_v33 = vmax.f32 %v1952_v42, %v1944_v55  ;;  %v1943_v44 = vsel %vm1927_vm7, %v3822_v23, -1e+30  ;;  %v2267_v55 = vsel %vm2251_vm5, 1, %v5128_v20  ;;  %vm2252_vm5 = vcmp.eq.s32.totalorder %v4639_v21, 12 }
 0x370   : > { %v1955_v41 = vmax.f32 %v1951_v49, %v1943_v44  ;;  %v2264_v49 = vsel %vm2248_vm8, 1, %v5128_v20  ;;  %vm2249_vm8 = vcmp.eq.s32.totalorder %v4619_v8, 12  ;;  %v1834_v44 = vrot.slane %v1833_v7, 2 }
 0x371   : > { %v1960_v40 = vmax.f32 %v1956_v33, %v1948_v29  ;;  %v2266_v33 = vsel %vm2250_vm2, 1, %v5128_v20  ;;  %vm2052_vm2 = vcmp.eq.s32.totalorder %v4670_v31, 1 }
 0x372   : > { %2294 = vperm.xlu2 %2976, %v2261_v22   ;;  %2291 = vperm.xlu1 %2975, %v2260_v0   ;;  %v2265_v0 = vsel %vm2249_vm8, 1, %v5128_v20  ;;  %vm2374_vm8 = vcmp.eq.s32.totalorder %v4586_v15, 13 }
 0x373   : > { %2288 = vperm.xlu0 %2974, %v2259_v47  }
 0x374   : > { %v2026_v51 = vpop.permute.xlu2 %2025  ;;  %v1911_v3 = vpop.permute.xlu1 %1910 }
 0x375   : > { %vm1931_vm14 = vcmp.eq.s32.totalorder %v1911_v3, 1  ;;  %v1908_v9 = vpop.permute.xlu0 %1907 }
 0x376   : > { %v1947_v1 = vsel %vm1931_vm14, %v3828_v26, -1e+30  ;;  %vm1930_vm0 = vcmp.eq.s32.totalorder %v1908_v9, 1  ;;  %vm2058_vm14 = vcmp.eq.s32.totalorder %v2026_v51, 1 }
 0x377   : > { %v1959_v45 = vmax.f32 %v1955_v41, %v1947_v1  ;;  %v1946_v18 = vsel %vm1930_vm0, %v3835_v17, -1e+30  ;;  %v1835_v41 = vmax.f32 %v1833_v7, %v1834_v44  ;;  %vm2370_vm0 = vcmp.eq.s32.totalorder %v4517_v25, 13 }
 0x378   : > { %v1958_v32 = vmax.f32 %v4667_v34, %v1946_v18  ;;  %v4714_v34 = vsel %vm2055_vm1, %v3732_v50, -1e+30  ;;  %v2387_v18 = vsel %vm2371_vm3, 1, %v5128_v20 }
 0x37a   : > { %v1962_v48 = vmax.f32 %v1958_v32, %v1959_v45  ;;  %2303 = vperm.xlu2 %2976, %v2264_v49   ;;  %2300 = vperm.xlu1 %2975, %v2263_v62   ;;  %v2386_v49 = vsel %vm2370_vm0, 1, %v5128_v20  ;;  %v1836_v62 = vrot.slane %v1835_v41, 1  ;;  %v2268_v32 = vsel %vm2252_vm5, 1, %v5128_v20 }
 0x37b   : > { %2297 = vperm.xlu0 %2974, %v2262_v35   ;;  %vm2372_vm0 = vcmp.eq.s32.totalorder %v4553_v59, 13  ;;  %vm2377_vm5 = vcmp.eq.s32.totalorder %v4606_v60, 13 }
 0x37c   : > { %v4708_v42 = vpop.permute.xlu2 %2034  ;;  %v2005_v39 = vpop.permute.xlu1 %2004 }
 0x37d   : > { %vm2051_vm7 = vcmp.eq.s32.totalorder %v2005_v39, 1  ;;  %v1917_v19 = vpop.permute.xlu0 %1916 }
 0x37e   : > { %v4717_v54 = vsel %vm2051_vm7, %v3741_v56, -1e+30  ;;  %vm1933_vm9 = vcmp.eq.s32.totalorder %v1917_v19, 1 }
 0x37f   : > { %v2083_v46 = vmax.f32 %v4717_v54, %v4714_v34  ;;  %v1949_v28 = vsel %vm1933_vm9, %v3854_v16, -1e+30  ;;  %vm2373_vm9 = vcmp.eq.s32.totalorder %v4545_v13, 13 }
 0x380   : > { %v1961_v22 = vmax.f32 %v4683_v53, %v1949_v28  ;;  %v4732_v53 = vsel %vm2058_vm14, %v3786_v14, -1e+30  ;;  %v2068_v28 = vsel %vm2052_vm2, %v3783_v61, -1e+30  ;;  %vm2061_vm14 = vcmp.eq.s32.totalorder %v4708_v42, 1 }
 0x381   : > { %vm2376_vm2 = vcmp.eq.s32.totalorder %v4577_v30, 13 }
 0x382   : > { %v1963_v29 = vmax.f32 %v1960_v40, %v1961_v22  ;;  %2312 = vperm.xlu2 %2976, %v2267_v55   ;;  %2309 = vperm.xlu1 %2975, %v2266_v33  }
 0x383   : > { %2306 = vperm.xlu0 %2974, %v2265_v0  }
 0x384   : > { %v1964_v47 = vmax.f32 %v1962_v48, %v1963_v29  ;;  %v4726_v3 = vpop.permute.xlu2 %2043  ;;  %v2014_v9 = vpop.permute.xlu1 %2013  ;;  %v1837_v48 = vmax.f32 %v1835_v41, %v1836_v62  ;;  %v2390_v29 = vsel %vm2374_vm8, 1, %v5128_v20  ;;  %v2389_v41 = vsel %vm2373_vm9, 1, %v5128_v20 }
 0x385   : > { %vm2054_vm1 = vcmp.eq.s32.totalorder %v2014_v9, 1  ;;  %v2011_v1 = vpop.permute.xlu0 %2010  ;;  %vm2375_vm9 = vcmp.eq.s32.totalorder %v4581_v36, 13 }
 0x386   : > { %v1965_v40 = vrot.slane %v1964_v47, 4  ;;  %v4735_v51 = vsel %vm2054_vm1, %v3780_v43, -1e+30  ;;  %vm2053_vm7 = vcmp.eq.s32.totalorder %v2011_v1, 1  ;;  %v2388_v1 = vsel %vm2372_vm0, 1, %v5128_v20 }
 0x387   : > { %v2086_v45 = vmax.f32 %v4735_v51, %v4732_v53  ;;  %v2069_v33 = vsel %vm2053_vm7, %v3753_v2, -1e+30  ;;  %vm2064_vm7 = vcmp.eq.s32.totalorder %v4726_v3, 1 }
 0x388   : > { %v1966_v24 = vmax.f32 %v1964_v47, %v1965_v40  ;;  %v2077_v47 = vsel %vm2061_vm14, %v3798_v12, -1e+30  ;;  %vm2380_vm14 = vcmp.eq.s32.totalorder %v4627_v52, 13 }
 0x38a   : > { %v1967_v35 = vrot.slane %v1966_v24, 2  ;;  %2406 = vperm.xlu2 %2976, %v2387_v18   ;;  %2403 = vperm.xlu1 %2975, %v2386_v49  }
 0x38b   : > { %2315 = vperm.xlu0 %2974, %v2268_v32  }
 0x38c   : > { %v1968_v7 = vmax.f32 %v1966_v24, %v1967_v35  ;;  %v4743_v39 = vpop.permute.xlu2 %2137  ;;  %v2023_v19 = vpop.permute.xlu1 %2022 }
 0x38d   : > { %vm2057_vm3 = vcmp.eq.s32.totalorder %v2023_v19, 1  ;;  %v2020_v31 = vpop.permute.xlu0 %2019  ;;  %v2392_v19 = vsel %vm2376_vm2, 1, %v5128_v20  ;;  %vm2383_vm2 = vcmp.eq.s32.totalorder %v4644_v57, 13 }
 0x38e   : > { %v1969_v55 = vrot.slane %v1968_v7, 1  ;;  %v2073_v44 = vsel %vm2057_vm3, %v3793_v27, -1e+30  ;;  %vm2056_vm1 = vcmp.eq.s32.totalorder %v2020_v31, 1  ;;  %v2391_v31 = vsel %vm2375_vm9, 1, %v5128_v20 }
 0x38f   : > { %v2085_v22 = vmax.f32 %v2069_v33, %v2073_v44  ;;  %v2072_v0 = vsel %vm2056_vm1, %v3735_v58, -1e+30  ;;  %vm2379_vm3 = vcmp.eq.s32.totalorder %v4597_v10, 13  ;;  %vm2378_vm1 = vcmp.eq.s32.totalorder %v4601_v11, 13 }
 0x390   : > { %v1970_v42 = vmax.f32 %v1968_v7, %v1969_v55  ;;  %v2084_v9 = vmax.f32 %v2068_v28, %v2072_v0  ;;  %v2393_v7 = vsel %vm2377_vm5, 1, %v5128_v20  ;;  %v2080_v28 = vsel %vm2064_vm7, %v3828_v26, -1e+30 }
 0x391   : > { %v2089_v40 = vmax.f32 %v2085_v22, %v2077_v47  ;;  %v2394_v47 = vsel %vm2378_vm1, 1, %v5128_v20  ;;  %vm2382_vm7 = vcmp.eq.s32.totalorder %v4619_v8, 13  ;;  %vm2381_vm9 = vcmp.eq.s32.totalorder %v4623_v5, 13 }
 0x392   : > { %v4758_v18 = vsel %vm2769_vm11, %v1837_v48, %v1970_v42  ;;  %2415 = vperm.xlu2 %2976, %v2390_v29   ;;  %2412 = vperm.xlu1 %2975, %v2389_v41   ;;  %v2395_v29 = vsel %vm2379_vm3, 1, %v5128_v20  ;;  %vm2503_vm3 = vcmp.eq.s32.totalorder %v4517_v25, 14 }
 0x393   : > { %2409 = vperm.xlu0 %2974, %v2388_v1  }
 0x394   : > { %v4760_v49 = vpop.permute.xlu2 %2146  ;;  %v2032_v62 = vpop.permute.xlu1 %2031 }
 0x395   : > { %vm2060_vm8 = vcmp.eq.s32.totalorder %v2032_v62, 1  ;;  %v2029_v24 = vpop.permute.xlu0 %2028 }
 0x396   : > { %v2076_v32 = vsel %vm2060_vm8, %v3822_v23, -1e+30  ;;  %vm2059_vm11 = vcmp.eq.s32.totalorder %v2029_v24, 1 }
 0x397   : > { %v2088_v35 = vmax.f32 %v2084_v9, %v2076_v32  ;;  %v2075_v48 = vsel %vm2059_vm11, %v3738_v6, -1e+30  ;;  %v2398_v32 = vsel %vm2382_vm7, 1, %v5128_v20 }
 0x398   : > { %v2087_v3 = vmax.f32 %v2083_v46, %v2075_v48  ;;  %v2396_v46 = vsel %vm2380_vm14, 1, %v5128_v20  ;;  %v2397_v48 = vsel %vm2381_vm9, 1, %v5128_v20  ;;  %vm2505_vm9 = vcmp.eq.s32.totalorder %v4553_v59, 14 }
 0x399   : > { %v2092_v55 = vmax.f32 %v2088_v35, %v2080_v28 }
 0x39a   : > { %2424 = vperm.xlu2 %2976, %v2393_v7   ;;  %2421 = vperm.xlu1 %2975, %v2392_v19  }
 0x39b   : > { %2418 = vperm.xlu0 %2974, %v2391_v31  }
 0x39c   : > { %v2156_v33 = vpop.permute.xlu2 %2155  ;;  %v2041_v44 = vpop.permute.xlu1 %2040 }
 0x39d   : > { %vm2063_vm0 = vcmp.eq.s32.totalorder %v2041_v44, 1  ;;  %v2038_v22 = vpop.permute.xlu0 %2037  ;;  %vm2190_vm14 = vcmp.eq.s32.totalorder %v2156_v33, 1 }
 0x39e   : > { %v2079_v0 = vsel %vm2063_vm0, %v3835_v17, -1e+30  ;;  %vm2062_vm5 = vcmp.eq.s32.totalorder %v2038_v22, 1  ;;  %vm2385_vm0 = vcmp.eq.s32.totalorder %v4639_v21, 13  ;;  %v2519_v22 = vsel %vm2503_vm3, 1, %v5128_v20 }
 0x39f   : > { %v2091_v34 = vmax.f32 %v2087_v3, %v2079_v0  ;;  %v2078_v54 = vsel %vm2062_vm5, %v3750_v38, -1e+30  ;;  %vm2384_vm5 = vcmp.eq.s32.totalorder %v4523_v37, 13  ;;  %v2401_v0 = vsel %vm2385_vm0, 1, %v5128_v20 }
 0x3a0   : > { %v2090_v41 = vmax.f32 %v2086_v45, %v2078_v54  ;;  %v2399_v45 = vsel %vm2383_vm2, 1, %v5128_v20  ;;  %v2400_v54 = vsel %vm2384_vm5, 1, %v5128_v20  ;;  %vm2184_vm2 = vcmp.eq.s32.totalorder %v4743_v39, 1 }
 0x3a1   : > { %v2095_v42 = vmax.f32 %v2091_v34, %v2092_v55  ;;  %vm2504_vm3 = vcmp.eq.s32.totalorder %v4559_v4, 14  ;;  %vm2509_vm5 = vcmp.eq.s32.totalorder %v4577_v30, 14 }
 0x3a2   : > { %2433 = vperm.xlu2 %2976, %v2396_v46   ;;  %2430 = vperm.xlu1 %2975, %v2395_v29  }
 0x3a3   : > { %2427 = vperm.xlu0 %2974, %v2394_v47  }
 0x3a4   : > { %v2165_v9 = vpop.permute.xlu2 %2164  ;;  %v2050_v1 = vpop.permute.xlu1 %2049 }
 0x3a5   : > { %vm2066_vm8 = vcmp.eq.s32.totalorder %v2050_v1, 1  ;;  %v2047_v62 = vpop.permute.xlu0 %2046 }
 0x3a6   : > { %v2082_v24 = vsel %vm2066_vm8, %v3854_v16, -1e+30  ;;  %vm2065_vm11 = vcmp.eq.s32.totalorder %v2047_v62, 1  ;;  %vm2506_vm8 = vcmp.eq.s32.totalorder %v4545_v13, 14 }
 0x3a7   : > { %v2094_v53 = vmax.f32 %v2090_v41, %v2082_v24  ;;  %v2081_v51 = vsel %vm2065_vm11, %v3774_v63, -1e+30  ;;  %vm2193_vm11 = vcmp.eq.s32.totalorder %v2165_v9, 1 }
 0x3a8   : > { %v2093_v35 = vmax.f32 %v2089_v40, %v2081_v51  ;;  %v4800_v40 = vsel %vm2190_vm14, %v3793_v27, -1e+30 }
 0x3aa   : > { %v2096_v7 = vmax.f32 %v2093_v35, %v2094_v53  ;;  %2442 = vperm.xlu2 %2976, %v2399_v45   ;;  %2439 = vperm.xlu1 %2975, %v2398_v32   ;;  %v2522_v45 = vsel %vm2506_vm8, 1, %v5128_v20  ;;  %v2521_v32 = vsel %vm2505_vm9, 1, %v5128_v20  ;;  %v2209_v35 = vsel %vm2193_vm11, %v3822_v23, -1e+30 }
 0x3ab   : > { %2436 = vperm.xlu0 %2974, %v2397_v48   ;;  %vm2507_vm9 = vcmp.eq.s32.totalorder %v4586_v15, 14  ;;  %vm2512_vm11 = vcmp.eq.s32.totalorder %v4597_v10, 14 }
 0x3ac   : > { %v2097_v19 = vmax.f32 %v2095_v42, %v2096_v7  ;;  %v4794_v28 = vpop.permute.xlu2 %2173  ;;  %v2144_v3 = vpop.permute.xlu1 %2143  ;;  %v2200_v42 = vsel %vm2184_vm2, %v3741_v56, -1e+30  ;;  %v2520_v7 = vsel %vm2504_vm3, 1, %v5128_v20  ;;  %vm2508_vm2 = vcmp.eq.s32.totalorder %v4581_v36, 14 }
 0x3ad   : > { %vm2186_vm1 = vcmp.eq.s32.totalorder %v2144_v3, 1  ;;  %v2141_v31 = vpop.permute.xlu0 %2140 }
 0x3ae   : > { %v2098_v55 = vrot.slane %v2097_v19, 4  ;;  %v4803_v44 = vsel %vm2186_vm1, %v3753_v2, -1e+30  ;;  %vm2185_vm7 = vcmp.eq.s32.totalorder %v2141_v31, 1  ;;  %vm2187_vm1 = vcmp.eq.s32.totalorder %v4760_v49, 1 }
 0x3af   : > { %v2218_v33 = vmax.f32 %v4803_v44, %v4800_v40  ;;  %v2201_v62 = vsel %vm2185_vm7, %v3783_v61, -1e+30  ;;  %vm2196_vm7 = vcmp.eq.s32.totalorder %v4794_v28, 1  ;;  %v2523_v28 = vsel %vm2507_vm9, 1, %v5128_v20 }
 0x3b0   : > { %v2099_v34 = vmax.f32 %v2097_v19, %v2098_v55  ;;  %vm2513_vm9 = vcmp.eq.s32.totalorder %v4627_v52, 14 }
 0x3b2   : > { %v2100_v46 = vrot.slane %v2099_v34, 2  ;;  %2536 = vperm.xlu2 %2976, %v2519_v22   ;;  %2448 = vperm.xlu1 %2975, %v2401_v0  }
 0x3b3   : > { %2445 = vperm.xlu0 %2974, %v2400_v54   ;;  %v2525_v54 = vsel %vm2509_vm5, 1, %v5128_v20 }
 0x3b4   : > { %v2101_v29 = vmax.f32 %v2099_v34, %v2100_v46  ;;  %v4811_v41 = vpop.permute.xlu2 %2182  ;;  %v2153_v47 = vpop.permute.xlu1 %2152  ;;  %v2524_v46 = vsel %vm2508_vm2, 1, %v5128_v20  ;;  %vm2515_vm2 = vcmp.eq.s32.totalorder %v4619_v8, 14 }
 0x3b5   : > { %vm2189_vm14 = vcmp.eq.s32.totalorder %v2153_v47, 1  ;;  %v2150_v1 = vpop.permute.xlu0 %2149  ;;  %vm2199_vm3 = vcmp.eq.s32.totalorder %v4811_v41, 1 }
 0x3b6   : > { %v2102_v39 = vrot.slane %v2101_v29, 1  ;;  %v2205_v24 = vsel %vm2189_vm14, %v3735_v58, -1e+30  ;;  %vm2188_vm0 = vcmp.eq.s32.totalorder %v2150_v1, 1  ;;  %vm2511_vm14 = vcmp.eq.s32.totalorder %v4601_v11, 14 }
 0x3b7   : > { %v2217_v53 = vmax.f32 %v2201_v62, %v2205_v24  ;;  %v2204_v51 = vsel %vm2188_vm0, %v3732_v50, -1e+30 }
 0x3b8   : > { %v2103_v9 = vmax.f32 %v2101_v29, %v2102_v39  ;;  %v2216_v48 = vmax.f32 %v2200_v42, %v2204_v51  ;;  %v2212_v29 = vsel %vm2196_vm7, %v3835_v17, -1e+30  ;;  %vm2514_vm7 = vcmp.eq.s32.totalorder %v4623_v5, 14 }
 0x3b9   : > { %v4824_v19 = vmax.f32 %v2217_v53, %v2209_v35  ;;  %v2215_v35 = vsel %vm2199_vm3, %v3854_v16, -1e+30  ;;  %vm2517_vm3 = vcmp.eq.s32.totalorder %v4523_v37, 14 }
 0x3ba   : > { %v4828_v3 = vsel %vm2771_vm13, %v4758_v18, %v2103_v9  ;;  %2545 = vperm.xlu2 %2976, %v2522_v45   ;;  %2542 = vperm.xlu1 %2975, %v2521_v32   ;;  %v2203_v18 = vsel %vm2187_vm1, %v3780_v43, -1e+30  ;;  %vm2510_vm1 = vcmp.eq.s32.totalorder %v4606_v60, 14  ;;  %v2528_v45 = vsel %vm2512_vm11, 1, %v5128_v20 }
 0x3bb   : > { %2539 = vperm.xlu0 %2974, %v2520_v7   ;;  %v2527_v32 = vsel %vm2511_vm14, 1, %v5128_v20  ;;  %v2526_v9 = vsel %vm2510_vm1, 1, %v5128_v20  ;;  %vm2518_vm14 = vcmp.eq.s32.totalorder %v4639_v21, 14  ;;  %vm2516_vm1 = vcmp.eq.s32.totalorder %v4644_v57, 14 }
 0x3bc   : > { %v4831_v31 = vpop.permute.xlu2 %2276  ;;  %v2162_v55 = vpop.permute.xlu1 %2161  ;;  %v2532_v37 = vsel %vm2516_vm1, 1, %v5128_v20 }
 0x3bd   : > { %vm2192_vm8 = vcmp.eq.s32.totalorder %v2162_v55, 1  ;;  %v2159_v22 = vpop.permute.xlu0 %2158 }
 0x3be   : > { %v2208_v0 = vsel %vm2192_vm8, %v3738_v6, -1e+30  ;;  %vm2191_vm13 = vcmp.eq.s32.totalorder %v2159_v22, 1 }
 0x3bf   : > { %v2220_v49 = vmax.f32 %v2216_v48, %v2208_v0  ;;  %v2207_v34 = vsel %vm2191_vm13, %v3786_v14, -1e+30  ;;  %v2530_v0 = vsel %vm2514_vm7, 1, %v5128_v20  ;;  %vm2637_vm7 = vcmp.eq.s32.totalorder %v4559_v4, 15 }
 0x3c0   : > { %v2219_v47 = vmax.f32 %v2203_v18, %v2207_v34  ;;  %v2529_v34 = vsel %vm2513_vm9, 1, %v5128_v20 }
 0x3c1   : > { %v2224_v42 = vmax.f32 %v2220_v49, %v2212_v29 }
 0x3c2   : > { %2554 = vperm.xlu2 %2976, %v2525_v54   ;;  %2551 = vperm.xlu1 %2975, %v2524_v46  }
 0x3c3   : > { %2548 = vperm.xlu0 %2974, %v2523_v28  }
 0x3c4   : > { %v2286_v1 = vpop.permute.xlu2 %2285  ;;  %v2171_v39 = vpop.permute.xlu1 %2170 }
 0x3c5   : > { %vm2195_vm0 = vcmp.eq.s32.totalorder %v2171_v39, 1  ;;  %v2168_v62 = vpop.permute.xlu0 %2167  ;;  %vm2322_vm11 = vcmp.eq.s32.totalorder %v2286_v1, 1 }
 0x3c6   : > { %v2211_v24 = vsel %vm2195_vm0, %v3750_v38, -1e+30  ;;  %vm2194_vm5 = vcmp.eq.s32.totalorder %v2168_v62, 1 }
 0x3c7   : > { %v2223_v53 = vmax.f32 %v2219_v47, %v2211_v24  ;;  %v2210_v51 = vsel %vm2194_vm5, %v3798_v12, -1e+30  ;;  %v2534_v24 = vsel %vm2518_vm14, 1, %v5128_v20 }
 0x3c8   : > { %v2222_v41 = vmax.f32 %v2218_v33, %v2210_v51  ;;  %v2531_v33 = vsel %vm2515_vm2, 1, %v5128_v20  ;;  %vm2638_vm2 = vcmp.eq.s32.totalorder %v4553_v59, 15 }
 0x3c9   : > { %v2227_v48 = vmax.f32 %v2223_v53, %v2215_v35  ;;  %v2533_v53 = vsel %vm2517_vm3, 1, %v5128_v20  ;;  %vm2641_vm3 = vcmp.eq.s32.totalorder %v4581_v36, 15 }
 0x3ca   : > { %2563 = vperm.xlu2 %2976, %v2528_v45   ;;  %2560 = vperm.xlu1 %2975, %v2527_v32  }
 0x3cb   : > { %2557 = vperm.xlu0 %2974, %v2526_v9  }
 0x3cc   : > { %v2295_v7 = vpop.permute.xlu2 %2294  ;;  %v2180_v55 = vpop.permute.xlu1 %2179 }
 0x3cd   : > { %vm2198_vm8 = vcmp.eq.s32.totalorder %v2180_v55, 1  ;;  %v2177_v22 = vpop.permute.xlu0 %2176 }
 0x3ce   : > { %v2214_v18 = vsel %vm2198_vm8, %v3774_v63, -1e+30  ;;  %vm2197_vm13 = vcmp.eq.s32.totalorder %v2177_v22, 1  ;;  %vm2325_vm8 = vcmp.eq.s32.totalorder %v2295_v7, 1 }
 0x3cf   : > { %v2226_v40 = vmax.f32 %v2222_v41, %v2214_v18  ;;  %v2213_v44 = vsel %vm2197_vm13, %v3828_v26, -1e+30  ;;  %vm2636_vm13 = vcmp.eq.s32.totalorder %v4517_v25, 15 }
 0x3d0   : > { %v2225_v49 = vmax.f32 %v4824_v19, %v2213_v44  ;;  %v4870_v19 = vsel %vm2322_vm11, %v3735_v58, -1e+30  ;;  %v2653_v44 = vsel %vm2637_vm7, 1, %v5128_v20  ;;  %v2652_v4 = vsel %vm2636_vm13, 1, %v5128_v20 }
 0x3d1   : > { %v2229_v54 = vmax.f32 %v2226_v40, %v2227_v48  ;;  %v2654_v40 = vsel %vm2638_vm2, 1, %v5128_v20  ;;  %vm2319_vm11 = vcmp.eq.s32.totalorder %v4831_v31, 1  ;;  %vm2639_vm2 = vcmp.eq.s32.totalorder %v4545_v13, 15 }
 0x3d2   : > { %v2228_v46 = vmax.f32 %v2224_v42, %v2225_v49  ;;  %2572 = vperm.xlu2 %2976, %v2531_v33   ;;  %2569 = vperm.xlu1 %2975, %v2530_v0   ;;  %v2341_v33 = vsel %vm2325_vm8, %v3738_v6, -1e+30  ;;  %vm2644_vm7 = vcmp.eq.s32.totalorder %v4601_v11, 15  ;;  %vm2643_vm8 = vcmp.eq.s32.totalorder %v4606_v60, 15 }
 0x3d3   : > { %2566 = vperm.xlu0 %2974, %v2529_v34   ;;  %v2335_v34 = vsel %vm2319_vm11, %v3753_v2, -1e+30  ;;  %vm2642_vm11 = vcmp.eq.s32.totalorder %v4577_v30, 15 }
 0x3d4   : > { %v2230_v29 = vmax.f32 %v2228_v46, %v2229_v54  ;;  %v2304_v47 = vpop.permute.xlu2 %2303  ;;  %v2274_v28 = vpop.permute.xlu1 %2273 }
 0x3d5   : > { %vm2318_vm0 = vcmp.eq.s32.totalorder %v2274_v28, 1  ;;  %v2271_v39 = vpop.permute.xlu0 %2270  ;;  %vm2328_vm1 = vcmp.eq.s32.totalorder %v2304_v47, 1  ;;  %v2657_v28 = vsel %vm2641_vm3, 1, %v5128_v20  ;;  %v2655_v47 = vsel %vm2639_vm2, 1, %v5128_v20 }
 0x3d6   : > { %v2231_v62 = vrot.slane %v2230_v29, 4  ;;  %v4873_v42 = vsel %vm2318_vm0, %v3783_v61, -1e+30  ;;  %vm2317_vm5 = vcmp.eq.s32.totalorder %v2271_v39, 1  ;;  %vm2640_vm0 = vcmp.eq.s32.totalorder %v4586_v15, 15 }
 0x3d7   : > { %v2350_v1 = vmax.f32 %v4873_v42, %v4870_v19  ;;  %v2333_v55 = vsel %vm2317_vm5, %v3741_v56, -1e+30  ;;  %v2656_v36 = vsel %vm2640_vm0, 1, %v5128_v20  ;;  %v2344_v15 = vsel %vm2328_vm1, %v3750_v38, -1e+30 }
 0x3d8   : > { %v2232_v51 = vmax.f32 %v2230_v29, %v2231_v62  ;;  %vm2647_vm3 = vcmp.eq.s32.totalorder %v4623_v5, 15  ;;  %vm2646_vm0 = vcmp.eq.s32.totalorder %v4627_v52, 15 }
 0x3da   : > { %v2233_v45 = vrot.slane %v2232_v51, 2  ;;  %2581 = vperm.xlu2 %2976, %v2534_v24   ;;  %2578 = vperm.xlu1 %2975, %v2533_v53  }
 0x3db   : > { %2575 = vperm.xlu0 %2974, %v2532_v37  }
 0x3dc   : > { %v2234_v32 = vmax.f32 %v2232_v51, %v2233_v45  ;;  %v2313_v35 = vpop.permute.xlu2 %2312  ;;  %v2283_v41 = vpop.permute.xlu1 %2282 }
 0x3dd   : > { %vm2321_vm9 = vcmp.eq.s32.totalorder %v2283_v41, 1  ;;  %v2280_v9 = vpop.permute.xlu0 %2279  ;;  %v2659_v41 = vsel %vm2643_vm8, 1, %v5128_v20  ;;  %vm2649_vm8 = vcmp.eq.s32.totalorder %v4644_v57, 15 }
 0x3de   : > { %v2235_v48 = vrot.slane %v2234_v32, 1  ;;  %v2337_v22 = vsel %vm2321_vm9, %v3732_v50, -1e+30  ;;  %vm2320_vm14 = vcmp.eq.s32.totalorder %v2280_v9, 1  ;;  %vm2331_vm9 = vcmp.eq.s32.totalorder %v2313_v35, 1 }
 0x3df   : > { %v2349_v18 = vmax.f32 %v2333_v55, %v2337_v22  ;;  %v2347_v11 = vsel %vm2331_vm9, %v3774_v63, -1e+30  ;;  %v2658_v35 = vsel %vm2642_vm11, 1, %v5128_v20  ;;  %v2663_v22 = vsel %vm2647_vm3, 1, %v5128_v20 }
 0x3e0   : > { %v2236_v59 = vmax.f32 %v2234_v32, %v2235_v48  ;;  %v2660_v32 = vsel %vm2644_vm7, 1, %v5128_v20 }
 0x3e1   : > { %v4889_v7 = vmax.f32 %v2349_v18, %v2341_v33  ;;  %v2662_v18 = vsel %vm2646_vm0, 1, %v5128_v20  ;;  %vm2651_vm0 = vcmp.eq.s32.totalorder %v4639_v21, 15 }
 0x3e2   : > { %v4894_v25 = vsel %vm2773_vm6, %v4828_v3, %v2236_v59  ;;  %2675 = vperm.xlu2 %2976, %v2654_v40   ;;  %2672 = vperm.xlu1 %2975, %v2653_v44   ;;  %v2336_v3 = vsel %vm2320_vm14, %v3780_v43, -1e+30  ;;  %v3011_v44 = vld [vmem:[%s3175_s13 + $0x70] sm:$0xff]  ;;  %s2816_s13 = sshll.u32 %s3087_s28, 4  ;;  %s2817_s13 = int_to_ptr.vmem [resolvable:$true] %s2816_s13 }
 0x3e3   : > { %2669 = vperm.xlu0 %2974, %v2652_v4   ;;  %vm2650_vm7 = vcmp.eq.s32.totalorder %v3011_v44, 15  ;;  %2940 = dma.vmem_to_hbm [thread:$0]  (%p2945_p5), %s2817_s13, 64, %s2819_s14, [#allocation5]  }
 0x3e4   : > { %v4896_v0 = vpop.permute.xlu2 %2406  ;;  %v2292_v49 = vpop.permute.xlu1 %2291 }
 0x3e5   : > { %vm2324_vm5 = vcmp.eq.s32.totalorder %v2292_v49, 1  ;;  %v2289_v31 = vpop.permute.xlu0 %2288 }
 0x3e6   : > { %v2340_v54 = vsel %vm2324_vm5, %v3786_v14, -1e+30  ;;  %vm2323_vm6 = vcmp.eq.s32.totalorder %v2289_v31, 1  ;;  %vm2645_vm5 = vcmp.eq.s32.totalorder %v4597_v10, 15  ;;  %v2665_v31 = vsel %vm2649_vm8, 1, %v5128_v20 }
 0x3e7   : > { %v2352_v46 = vmax.f32 %v2336_v3, %v2340_v54  ;;  %v2339_v29 = vsel %vm2323_vm6, %v3793_v27, -1e+30  ;;  %v2661_v52 = vsel %vm2645_vm5, 1, %v5128_v20  ;;  %vm2451_vm5 = vcmp.eq.s32.totalorder %v4896_v0, 1 }
 0x3e8   : > { %v2351_v39 = vmax.f32 %v2335_v34, %v2339_v29  ;;  %v2666_v34 = vsel %vm2650_vm7, 1, %v5128_v20 }
 0x3e9   : > { %v4909_v62 = vmax.f32 %v2352_v46, %v2344_v15 }
 0x3ea   : > { %2684 = vperm.xlu2 %2976, %v2657_v28   ;;  %2681 = vperm.xlu1 %2975, %v2656_v36  }
 0x3eb   : > { %2678 = vperm.xlu0 %2974, %v2655_v47  }
 0x3ec   : > { %v2301_v13 = vpop.permute.xlu1 %2300  ;;  %v2416_v24 = vpop.permute.xlu2 %2415 }
 0x3ed   : > { %vm2327_vm13 = vcmp.eq.s32.totalorder %v2301_v13, 1  ;;  %v2298_v53 = vpop.permute.xlu0 %2297  ;;  %vm2454_vm6 = vcmp.eq.s32.totalorder %v2416_v24, 1  ;;  %v2667_v13 = vsel %vm2651_vm0, 1, %v5128_v20 }
 0x3ee   : > { %v2343_v51 = vsel %vm2327_vm13, %v3798_v12, -1e+30  ;;  %vm2326_vm14 = vcmp.eq.s32.totalorder %v2298_v53, 1  ;;  %vm2648_vm13 = vcmp.eq.s32.totalorder %v4619_v8, 15  ;;  %v2470_v59 = vsel %vm2454_vm6, %v3732_v50, -1e+30 }
 0x3ef   : > { %v2355_v37 = vmax.f32 %v2351_v39, %v2343_v51  ;;  %v2342_v45 = vsel %vm2326_vm14, %v3822_v23, -1e+30  ;;  %v2664_v57 = vsel %vm2648_vm13, 1, %v5128_v20  ;;  %v2467_v20 = vsel %vm2451_vm5, %v3783_v61, -1e+30 }
 0x3f0   : > { %v2354_v60 = vmax.f32 %v2350_v1, %v2342_v45 }
 0x3f1   : > { %v2359_v9 = vmax.f32 %v2355_v37, %v2347_v11 }
 0x3f2   : > { %2693 = vperm.xlu2 %2976, %v2660_v32   ;;  %2690 = vperm.xlu1 %2975, %v2659_v41  }
 0x3f3   : > { %2687 = vperm.xlu0 %2974, %v2658_v35  }
 0x3f4   : > { %v2310_v30 = vpop.permute.xlu1 %2309  ;;  %v2425_v19 = vpop.permute.xlu2 %2424 }
 0x3f5   : > { %vm2330_vm1 = vcmp.eq.s32.totalorder %v2310_v30, 1  ;;  %v2307_v48 = vpop.permute.xlu0 %2306  ;;  %vm2457_vm14 = vcmp.eq.s32.totalorder %v2425_v19, 1 }
 0x3f6   : > { %v2346_v55 = vsel %vm2330_vm1, %v3828_v26, -1e+30  ;;  %vm2329_vm2 = vcmp.eq.s32.totalorder %v2307_v48, 1  ;;  %v2473_v36 = vsel %vm2457_vm14, %v3786_v14, -1e+30 }
 0x3f7   : > { %v2358_v42 = vmax.f32 %v2354_v60, %v2346_v55  ;;  %v2345_v1 = vsel %vm2329_vm2, %v3835_v17, -1e+30 }
 0x3f8   : > { %v2357_v5 = vmax.f32 %v4889_v7, %v2345_v1 }
 0x3fa   : > { %v2361_v40 = vmax.f32 %v2357_v5, %v2358_v42  ;;  %2702 = vperm.xlu2 %2976, %v2663_v22   ;;  %2699 = vperm.xlu1 %2975, %v2662_v18  }
 0x3fb   : > { %2696 = vperm.xlu0 %2974, %v2661_v52  }
 0x3fc   : > { %v2404_v10 = vpop.permute.xlu1 %2403  ;;  %v2434_v54 = vpop.permute.xlu2 %2433 }
 0x3fd   : > { %vm2450_vm9 = vcmp.eq.s32.totalorder %v2404_v10, 1  ;;  %v2316_v33 = vpop.permute.xlu0 %2315  ;;  %vm2460_vm2 = vcmp.eq.s32.totalorder %v2434_v54, 1 }
 0x3fe   : > { %v2466_v4 = vsel %vm2450_vm9, %v3741_v56, -1e+30  ;;  %vm2332_vm11 = vcmp.eq.s32.totalorder %v2316_v33, 1  ;;  %v2476_v35 = vsel %vm2460_vm2, %v3798_v12, -1e+30 }
 0x3ff   : > { %v2482_v7 = vmax.f32 %v2466_v4, %v2470_v59  ;;  %v2348_v49 = vsel %vm2332_vm11, %v3854_v16, -1e+30 }
 0x400   : > { %v2360_v3 = vmax.f32 %v4909_v62, %v2348_v49 }
 0x402   : > { %v2362_v46 = vmax.f32 %v2359_v9, %v2360_v3  ;;  %2711 = vperm.xlu2 %2976, %v2666_v34   ;;  %2708 = vperm.xlu1 %2975, %v2665_v31  }
 0x403   : > { %2705 = vperm.xlu0 %2974, %v2664_v57  }
 0x404   : > { %v2363_v8 = vmax.f32 %v2361_v40, %v2362_v46  ;;  %v2413_v29 = vpop.permute.xlu1 %2412  ;;  %v2443_v53 = vpop.permute.xlu2 %2442 }
 0x405   : > { %vm2453_vm3 = vcmp.eq.s32.totalorder %v2413_v29, 1  ;;  %v2410_v28 = vpop.permute.xlu0 %2409  ;;  %vm2463_vm8 = vcmp.eq.s32.totalorder %v2443_v53, 1 }
 0x406   : > { %v2364_v15 = vrot.slane %v2363_v8, 4  ;;  %v2469_v39 = vsel %vm2453_vm3, %v3780_v43, -1e+30  ;;  %vm2452_vm1 = vcmp.eq.s32.totalorder %v2410_v28, 1  ;;  %v2479_v5 = vsel %vm2463_vm8, %v3828_v26, -1e+30 }
 0x407   : > { %v2485_v47 = vmax.f32 %v2469_v39, %v2473_v36  ;;  %v2468_v32 = vsel %vm2452_vm1, %v3753_v2, -1e+30 }
 0x408   : > { %v2365_v62 = vmax.f32 %v2363_v8, %v2364_v15 }
 0x40a   : > { %v2366_v24 = vrot.slane %v2365_v62, 2 }
 0x40b   : > { %2714 = vperm.xlu0 %2974, %v2667_v13  }
 0x40c   : > { %v2367_v51 = vmax.f32 %v2365_v62, %v2366_v24  ;;  %v2422_v37 = vpop.permute.xlu1 %2421  ;;  %v2537_v19 = vpop.permute.xlu2 %2536 }
 0x40d   : > { %vm2456_vm6 = vcmp.eq.s32.totalorder %v2422_v37, 1  ;;  %v2419_v21 = vpop.permute.xlu0 %2418  ;;  %vm2583_vm0 = vcmp.eq.s32.totalorder %v2537_v19, 1 }
 0x40e   : > { %v2368_v45 = vrot.slane %v2367_v51, 1  ;;  %v2472_v41 = vsel %vm2456_vm6, %v3793_v27, -1e+30  ;;  %vm2455_vm7 = vcmp.eq.s32.totalorder %v2419_v21, 1  ;;  %v2599_v21 = vsel %vm2583_vm0, %v3741_v56, -1e+30 }
 0x40f   : > { %v2484_v11 = vmax.f32 %v2468_v32, %v2472_v41  ;;  %v2471_v60 = vsel %vm2455_vm7, %v3735_v58, -1e+30 }
 0x410   : > { %v2369_v0 = vmax.f32 %v2367_v51, %v2368_v45  ;;  %v2483_v9 = vmax.f32 %v2467_v20, %v2471_v60 }
 0x411   : > { %v2488_v30 = vmax.f32 %v2484_v11, %v2476_v35 }
 0x412   : > { %v2786_v48 = vsel %vm2775_vm10, %v4894_v25, %v2369_v0 }
 0x414   : > { %v2431_v55 = vpop.permute.xlu1 %2430  ;;  %v2546_v33 = vpop.permute.xlu2 %2545 }
 0x415   : > { %vm2459_vm9 = vcmp.eq.s32.totalorder %v2431_v55, 1  ;;  %v2428_v42 = vpop.permute.xlu0 %2427  ;;  %vm2586_vm6 = vcmp.eq.s32.totalorder %v2546_v33, 1 }
 0x416   : > { %v2475_v1 = vsel %vm2459_vm9, %v3822_v23, -1e+30  ;;  %vm2458_vm13 = vcmp.eq.s32.totalorder %v2428_v42, 1 }
 0x417   : > { %v2487_v22 = vmax.f32 %v2483_v9, %v2475_v1  ;;  %v2474_v18 = vsel %vm2458_vm13, %v3738_v6, -1e+30 }
 0x418   : > { %v2486_v52 = vmax.f32 %v2482_v7, %v2474_v18 }
 0x419   : > { %v2491_v25 = vmax.f32 %v2487_v22, %v2479_v5 }
 0x41c   : > { %v2440_v40 = vpop.permute.xlu1 %2439  ;;  %v2555_v8 = vpop.permute.xlu2 %2554 }
 0x41d   : > { %vm2462_vm10 = vcmp.eq.s32.totalorder %v2440_v40, 1  ;;  %v2437_v10 = vpop.permute.xlu0 %2436 }
 0x41e   : > { %v2478_v44 = vsel %vm2462_vm10, %v3835_v17, -1e+30  ;;  %vm2461_vm11 = vcmp.eq.s32.totalorder %v2437_v10, 1  ;;  %vm2589_vm10 = vcmp.eq.s32.totalorder %v2555_v8, 1 }
 0x41f   : > { %v2490_v59 = vmax.f32 %v2486_v52, %v2478_v44  ;;  %v2477_v4 = vsel %vm2461_vm11, %v3750_v38, -1e+30  ;;  %v2605_v52 = vsel %vm2589_vm10, %v3793_v27, -1e+30 }
 0x420   : > { %v2489_v7 = vmax.f32 %v2485_v47, %v2477_v4 }
 0x421   : > { %v2494_v49 = vmax.f32 %v2490_v59, %v2491_v25 }
 0x424   : > { %v2449_v34 = vpop.permute.xlu1 %2448  ;;  %v2564_v47 = vpop.permute.xlu2 %2563 }
 0x425   : > { %vm2465_vm14 = vcmp.eq.s32.totalorder %v2449_v34, 1  ;;  %v2446_v31 = vpop.permute.xlu0 %2445  ;;  %vm2592_vm11 = vcmp.eq.s32.totalorder %v2564_v47, 1 }
 0x426   : > { %v2481_v3 = vsel %vm2465_vm14, %v3854_v16, -1e+30  ;;  %vm2464_vm3 = vcmp.eq.s32.totalorder %v2446_v31, 1  ;;  %v2608_v4 = vsel %vm2592_vm11, %v3822_v23, -1e+30 }
 0x427   : > { %v2493_v57 = vmax.f32 %v2489_v7, %v2481_v3  ;;  %v2480_v54 = vsel %vm2464_vm3, %v3774_v63, -1e+30 }
 0x428   : > { %v2492_v46 = vmax.f32 %v2488_v30, %v2480_v54 }
 0x42a   : > { %v2495_v29 = vmax.f32 %v2492_v46, %v2493_v57 }
 0x42c   : > { %v2496_v28 = vmax.f32 %v2494_v49, %v2495_v29  ;;  %v2543_v36 = vpop.permute.xlu1 %2542  ;;  %v2573_v60 = vpop.permute.xlu2 %2572 }
 0x42d   : > { %v2540_v15 = vpop.permute.xlu0 %2539  ;;  %vm2585_vm7 = vcmp.eq.s32.totalorder %v2543_v36, 1  ;;  %vm2595_vm3 = vcmp.eq.s32.totalorder %v2573_v60, 1 }
 0x42e   : > { %v2497_v39 = vrot.slane %v2496_v28, 4  ;;  %vm2584_vm9 = vcmp.eq.s32.totalorder %v2540_v15, 1  ;;  %v2601_v42 = vsel %vm2585_vm7, %v3753_v2, -1e+30  ;;  %v2611_v57 = vsel %vm2595_vm3, %v3835_v17, -1e+30 }
 0x42f   : > { %v2600_v22 = vsel %vm2584_vm9, %v3783_v61, -1e+30  ;;  %v2617_v10 = vmax.f32 %v2601_v42, %v2605_v52 }
 0x430   : > { %v2498_v62 = vmax.f32 %v2496_v28, %v2497_v39 }
 0x432   : > { %v2499_v13 = vrot.slane %v2498_v62, 2 }
 0x434   : > { %v2500_v24 = vmax.f32 %v2498_v62, %v2499_v13  ;;  %v2552_v53 = vpop.permute.xlu1 %2551  ;;  %v2582_v55 = vpop.permute.xlu2 %2581 }
 0x435   : > { %v2549_v51 = vpop.permute.xlu0 %2548  ;;  %vm2588_vm2 = vcmp.eq.s32.totalorder %v2552_v53, 1  ;;  %vm2598_vm14 = vcmp.eq.s32.totalorder %v2582_v55, 1 }
 0x436   : > { %v2501_v37 = vrot.slane %v2500_v24, 1  ;;  %vm2587_vm1 = vcmp.eq.s32.totalorder %v2549_v51, 1  ;;  %v2604_v19 = vsel %vm2588_vm2, %v3735_v58, -1e+30  ;;  %v2614_v34 = vsel %vm2598_vm14, %v3854_v16, -1e+30 }
 0x437   : > { %v2603_v45 = vsel %vm2587_vm1, %v3732_v50, -1e+30  ;;  %v2616_v25 = vmax.f32 %v2600_v22, %v2604_v19 }
 0x438   : > { %v2502_v32 = vmax.f32 %v2500_v24, %v2501_v37  ;;  %v2615_v41 = vmax.f32 %v2599_v21, %v2603_v45 }
 0x439   : > { %v2620_v3 = vmax.f32 %v2616_v25, %v2608_v4 }
 0x43a   : > { %v4970_v20 = vsel %vm2777_vm15, %v2786_v48, %v2502_v32  ;;  %v2602_v48 = vsel %vm2586_vm6, %v3780_v43, -1e+30 }
 0x43c   : > { %v2561_v11 = vpop.permute.xlu1 %2560  ;;  %v2676_v36 = vpop.permute.xlu2 %2675 }
 0x43d   : > { %v2558_v35 = vpop.permute.xlu0 %2557  ;;  %vm2591_vm13 = vcmp.eq.s32.totalorder %v2561_v11, 1 }
 0x43e   : > { %vm2590_vm5 = vcmp.eq.s32.totalorder %v2558_v35, 1  ;;  %v2607_v18 = vsel %vm2591_vm13, %v3738_v6, -1e+30 }
 0x43f   : > { %v2606_v30 = vsel %vm2590_vm5, %v3786_v14, -1e+30  ;;  %v2619_v33 = vmax.f32 %v2615_v41, %v2607_v18  ;;  %vm2718_vm5 = vcmp.eq.s32.totalorder %v2676_v36, 1 }
 0x440   : > { %v2618_v5 = vmax.f32 %v2602_v48, %v2606_v30  ;;  %v2734_v48 = vsel %vm2718_vm5, %v3753_v2, -1e+30 }
 0x441   : > { %v2623_v29 = vmax.f32 %v2619_v33, %v2611_v57 }
 0x444   : > { %v2570_v0 = vpop.permute.xlu1 %2569  ;;  %v2685_v37 = vpop.permute.xlu2 %2684 }
 0x445   : > { %vm2594_vm8 = vcmp.eq.s32.totalorder %v2570_v0, 1  ;;  %v2567_v9 = vpop.permute.xlu0 %2566  ;;  %vm2721_vm2 = vcmp.eq.s32.totalorder %v2685_v37, 1 }
 0x446   : > { %vm2593_vm15 = vcmp.eq.s32.totalorder %v2567_v9, 1  ;;  %v2610_v1 = vsel %vm2594_vm8, %v3750_v38, -1e+30  ;;  %v2737_v42 = vsel %vm2721_vm2, %v3735_v58, -1e+30 }
 0x447   : > { %v2609_v40 = vsel %vm2593_vm15, %v3798_v12, -1e+30  ;;  %v2622_v44 = vmax.f32 %v2618_v5, %v2610_v1 }
 0x448   : > { %v2621_v7 = vmax.f32 %v2617_v10, %v2609_v40 }
 0x449   : > { %v2626_v54 = vmax.f32 %v2622_v44, %v2614_v34 }
 0x44c   : > { %v2579_v59 = vpop.permute.xlu1 %2578  ;;  %v2694_v0 = vpop.permute.xlu2 %2693 }
 0x44d   : > { %vm2597_vm0 = vcmp.eq.s32.totalorder %v2579_v59, 1  ;;  %v2576_v49 = vpop.permute.xlu0 %2575  ;;  %vm2724_vm11 = vcmp.eq.s32.totalorder %v2694_v0, 1 }
 0x44e   : > { %v2613_v31 = vsel %vm2597_vm0, %v3774_v63, -1e+30  ;;  %vm2596_vm1 = vcmp.eq.s32.totalorder %v2576_v49, 1 }
 0x44f   : > { %v2625_v46 = vmax.f32 %v2621_v7, %v2613_v31  ;;  %v2612_v8 = vsel %vm2596_vm1, %v3828_v26, -1e+30 }
 0x450   : > { %v2624_v28 = vmax.f32 %v2620_v3, %v2612_v8 }
 0x451   : > { %v2628_v15 = vmax.f32 %v2625_v46, %v2626_v54 }
 0x452   : > { %v2627_v39 = vmax.f32 %v2623_v29, %v2624_v28 }
 0x454   : > { %v2629_v62 = vmax.f32 %v2627_v39, %v2628_v15  ;;  %v2673_v13 = vpop.permute.xlu1 %2672  ;;  %v2703_v19 = vpop.permute.xlu2 %2702 }
 0x455   : > { %v2670_v47 = vpop.permute.xlu0 %2669  ;;  %vm2717_vm7 = vcmp.eq.s32.totalorder %v2673_v13, 1  ;;  %vm2727_vm0 = vcmp.eq.s32.totalorder %v2703_v19, 1 }
 0x456   : > { %v2630_v24 = vrot.slane %v2629_v62, 4  ;;  %vm2716_vm8 = vcmp.eq.s32.totalorder %v2670_v47, 1  ;;  %v2733_v18 = vsel %vm2717_vm7, %v3783_v61, -1e+30 }
 0x457   : > { %v2732_v5 = vsel %vm2716_vm8, %v3741_v56, -1e+30  ;;  %v2749_v10 = vmax.f32 %v2733_v18, %v2737_v42  ;;  %v2740_v56 = vsel %vm2724_vm11, %v3738_v6, -1e+30 }
 0x458   : > { %v2631_v53 = vmax.f32 %v2629_v62, %v2630_v24 }
 0x45a   : > { %v2632_v51 = vrot.slane %v2631_v53, 2 }
 0x45c   : > { %v2633_v21 = vmax.f32 %v2631_v53, %v2632_v51  ;;  %v2682_v45 = vpop.permute.xlu1 %2681  ;;  %v2712_v58 = vpop.permute.xlu2 %2711 }
 0x45d   : > { %v2679_v32 = vpop.permute.xlu0 %2678  ;;  %vm2720_vm6 = vcmp.eq.s32.totalorder %v2682_v45, 1  ;;  %vm2730_vm1 = vcmp.eq.s32.totalorder %v2712_v58, 1 }
 0x45e   : > { %v2634_v41 = vrot.slane %v2633_v21, 1  ;;  %v2746_v31 = vsel %vm2730_vm1, %v3774_v63, -1e+30 }
 0x460   : > { %v2635_v11 = vmax.f32 %v2633_v21, %v2634_v41 }
 0x462   : > { %v4988_v60 = vsel %vm2779_vm4, %v4970_v20, %v2635_v11  ;;  %v2736_v20 = vsel %vm2720_vm6, %v3732_v50, -1e+30  ;;  %vm2719_vm4 = vcmp.eq.s32.totalorder %v2679_v32, 1 }
 0x463   : > { %v2748_v40 = vmax.f32 %v2732_v5, %v2736_v20  ;;  %v2735_v50 = vsel %vm2719_vm4, %v3780_v43, -1e+30  ;;  %v2743_v43 = vsel %vm2727_vm0, %v3750_v38, -1e+30 }
 0x464   : > { %v2691_v35 = vpop.permute.xlu1 %2690 }
 0x465   : > { %v2688_v9 = vpop.permute.xlu0 %2687  ;;  %vm2723_vm9 = vcmp.eq.s32.totalorder %v2691_v35, 1  ;;  %v2752_v7 = vmax.f32 %v2748_v40, %v2740_v56 }
 0x466   : > { %vm2722_vm13 = vcmp.eq.s32.totalorder %v2688_v9, 1  ;;  %v2739_v52 = vsel %vm2723_vm9, %v3786_v14, -1e+30 }
 0x467   : > { %v2738_v25 = vsel %vm2722_vm13, %v3793_v27, -1e+30  ;;  %v2751_v44 = vmax.f32 %v2735_v50, %v2739_v52 }
 0x468   : > { %v2750_v33 = vmax.f32 %v2734_v48, %v2738_v25 }
 0x46c   : > { %v2700_v30 = vpop.permute.xlu1 %2699 }
 0x46d   : > { %v2697_v55 = vpop.permute.xlu0 %2696  ;;  %vm2726_vm10 = vcmp.eq.s32.totalorder %v2700_v30, 1 }
 0x46e   : > { %vm2725_vm15 = vcmp.eq.s32.totalorder %v2697_v55, 1  ;;  %v2742_v2 = vsel %vm2726_vm10, %v3798_v12, -1e+30 }
 0x46f   : > { %v2741_v61 = vsel %vm2725_vm15, %v3822_v23, -1e+30  ;;  %v2754_v59 = vmax.f32 %v2750_v33, %v2742_v2  ;;  %v2755_v23 = vmax.f32 %v2751_v44, %v2743_v43 }
 0x470   : > { %v2753_v4 = vmax.f32 %v2749_v10, %v2741_v61 }
 0x471   : > { %v2758_v6 = vmax.f32 %v2754_v59, %v2746_v31 }
 0x474   : > { %v2709_v1 = vpop.permute.xlu1 %2708 }
 0x475   : > { %v2706_v22 = vpop.permute.xlu0 %2705  ;;  %vm2729_vm14 = vcmp.eq.s32.totalorder %v2709_v1, 1 }
 0x476   : > { %vm2728_vm3 = vcmp.eq.s32.totalorder %v2706_v22, 1  ;;  %v2745_v14 = vsel %vm2729_vm14, %v3828_v26, -1e+30 }
 0x477   : > { %v2744_v27 = vsel %vm2728_vm3, %v3835_v17, -1e+30  ;;  %v2757_v12 = vmax.f32 %v2753_v4, %v2745_v14 }
 0x478   : > { %v2756_v34 = vmax.f32 %v2752_v7, %v2744_v27 }
 0x47a   : > { %v2760_v26 = vmax.f32 %v2756_v34, %v2757_v12 }
 0x47d   : > { %v2715_v49 = vpop.permute.xlu0 %2714 }
 0x47e   : > { %vm2731_vm5 = vcmp.eq.s32.totalorder %v2715_v49, 1 }
 0x47f   : > { %v2747_v3 = vsel %vm2731_vm5, %v3854_v16, -1e+30  ;;  %v2791_v16 = vld [vmem:[#allocation2 + $0x8] sm:$0xff] }
 0x480   : > { %v2759_v57 = vmax.f32 %v2755_v23, %v2747_v3 }
 0x482   : > { %v2761_v54 = vmax.f32 %v2758_v6, %v2759_v57 }
 0x484   : > { %v2762_v17 = vmax.f32 %v2760_v26, %v2761_v54 }
 0x486   : > { %v2763_v46 = vrot.slane %v2762_v17, 4 }
 0x488   : > { %v2764_v8 = vmax.f32 %v2762_v17, %v2763_v46 }
 0x48a   : > { %v2765_v29 = vrot.slane %v2764_v8, 2 }
 0x48c   : > { %v2766_v38 = vmax.f32 %v2764_v8, %v2765_v29 }
 0x48e   : > { %v2767_v28 = vrot.slane %v2766_v38, 1 }
 0x490   : > { %v2768_v63 = vmax.f32 %v2766_v38, %v2767_v28 }
 0x492   : > { %v2789_v36 = vsel %vm2781_vm12, %v4988_v60, %v2768_v63 }
 0x493   : > { %v2793_v15 = vmax.f32 %v2791_v16, %v2789_v36 }
 0x495   : > { %2795 = vst [vmem:[#allocation2 + $0x8] sm:$0xff] %v2793_v15 }
 0x496   : > { %2938 = dma.vmem_to_hbm [thread:$0]  (%p2945_p5), %s2802_s16, 256, %s2804_s19, [#allocation3], %s3089_s20, %s3089_s20, %s3090_s23  }
 0x497   : > { %3073 = dma.done.wait (%p2945_p5), [#allocation3], 256  }
 0x498   : > { %3075 = vsyncadd (%p2945_p5), [#allocation3], 4294967040 }
 0x499   : > { %3077 = dma.done.wait (%p2945_p5), [#allocation5], 64  }
 0x49a   : > { %3079 = vsyncadd (%p2945_p5), [#allocation5], 4294967232 }
 0x49b PF: > { %s25_s21 = sadd.s32 1, %s3082_s21  }
 0x49c   : > { %p22_p6 = scmp.ge.s32.totalorder %s25_s21, 6  }
 0x49e   :  { %24 = sbr.rel (!%p22_p6) target bundleno = 2 (0x2), region = 106 }
 0x4a3   :  { %2837 = vsyncpa [#allocation3], 1 }
 0x4a4   :  { %2839 = vsyncpa [#allocation3 + $0x1], 1 }
 0x4a5   :  { %2840 = vsyncpa [#allocation5], 1 }

</bundles_post_ra>
